<compile_context>
chip_gen: v5e
topology: v5e:2x2
jax: 0.10.0
libtpu: 0.0.40
codegen_flags: <defaults>
</compile_context>

<pallas_src>
import functools
import math

import numpy as np
import jax
import jax.numpy as jnp
from jax.experimental import pallas as pl
from jax.experimental.pallas import tpu as pltpu

LEAKY_SLOPE = 0.1
C_IN = 128          # conv1/conv2 channels (fixed by the module)
C_MID = 64          # transposed-conv output channels
C_OUT = 3           # est_normal output channels
CDT = jnp.bfloat16  # MXU input dtype (accumulation stays f32)

# ConvTranspose2d(k=4, s=2, p=1) parity decomposition:
#   (output parity, term) -> (kernel tap index k, row offset into pad-1 input)
# derived from output_row p = 2*i - 1 + k.
_DECONV_TAP = {(0, 0): (1, 1), (0, 1): (3, 0), (1, 0): (0, 2), (1, 1): (2, 1)}

# est_normal (3x3, pad 1) evaluated on the parity-decomposed deconv output:
#   (output parity, kernel tap u) -> (source parity rho, row offset di)
# from: Y[2i + r + u - 1] == Y_parity[rho][i + di].
_EST_TAP = {(0, 0): (1, -1), (0, 1): (0, 0), (0, 2): (1, 0),
            (1, 0): (0, 0), (1, 1): (1, 0), (1, 2): (0, 1)}


def _leaky(x):
    return jnp.where(x >= 0, x, LEAKY_SLOPE * x)


def _regressor_kernel(H, W,
                      x_ref, w1_ref, b1_ref, w2_ref, b2_ref, w3_ref, w4_ref,
                      out_ref,
                      xpad_ref, ypad_ref):
    """Fused forward pass for one batch element; grid = (N,)."""
    HW = H * W
    D = x_ref.shape[1]          # x block: (1, D, HW, C_IN), channels-last

    # ---------------- max_pool3d over D (lane-dense, VPU max chain) ----------
    xm = x_ref[0, 0]                                      # (HW, 128) f32
    for dd in range(1, D):
        xm = jnp.maximum(xm, x_ref[0, dd])

    # Zero-padded NHWC activation scratch; one interior slab store.
    xpad_ref[...] = jnp.zeros((H + 2, W + 2, C_IN), CDT)
    xpad_ref[1:H + 1, 1:W + 1, :] = xm.reshape(H, W, C_IN).astype(CDT)

    # ---------------- deconv1 / deconv2: 3x3 conv as one big-K matmul --------
    def conv3x3(w_ref, b_ref):
        # im2col over the 9 taps -> one K = 9*128 = 1152 MXU matmul.
        patches = jnp.concatenate(
            [xpad_ref[ky:ky + H, kx:kx + W, :].reshape(HW, C_IN)
             for ky in range(3) for kx in range(3)], axis=-1)     # (HW, 1152)
        acc = jnp.dot(patches, w_ref[...],
                      preferred_element_type=jnp.float32)         # (HW, 128) f32
        return _leaky(acc + b_ref[...])

    def write_back(act):                                          # (HW, 128) f32
        xpad_ref[1:H + 1, 1:W + 1, :] = act.reshape(H, W, C_IN).astype(CDT)

    write_back(conv3x3(w1_ref, b1_ref))
    write_back(conv3x3(w2_ref, b2_ref))

    # ---------------- deconv3: ConvTranspose2d(128->64, k=4, s=2, p=1) -------
    # 4 parity sub-convolutions, each one K = 4*128 = 512 matmul; results land
    # in zero-padded parity scratches (est_normal's input). Slab stores.
    ypad_ref[...] = jnp.zeros((2, 2, H + 2, W + 2, C_MID), CDT)
    for r in range(2):
        for s in range(2):
            taps = []
            for a in range(2):
                _, dy = _DECONV_TAP[(r, a)]
                for b in range(2):
                    _, dx = _DECONV_TAP[(s, b)]
                    taps.append(xpad_ref[dy:dy + H, dx:dx + W, :]
                                .reshape(HW, C_IN))
            patches = jnp.concatenate(taps, axis=-1)              # (HW, 512)
            y = jnp.dot(patches, w3_ref[r, s],
                        preferred_element_type=jnp.float32)       # (HW, 64) f32
            ypad_ref[r, s, 1:H + 1, 1:W + 1, :] = (
                _leaky(y).reshape(H, W, C_MID).astype(CDT))

    # ---------------- est_normal + L2 normalize (single fused matmul) --------
    # Per output parity, concat the 9 taps (K = 9*64 = 576); stack the 4
    # parities along M -> one (4*HW, 576) x (576, 3) matmul, one normalize.
    par_patches = []
    for r in range(2):
        for s in range(2):
            taps = []
            for u in range(3):
                rho, di = _EST_TAP[(r, u)]
                for v in range(3):
                    sig, dj = _EST_TAP[(s, v)]
                    taps.append(ypad_ref[rho, sig,
                                         1 + di:1 + di + H,
                                         1 + dj:1 + dj + W, :].reshape(HW, C_MID))
            par_patches.append(jnp.concatenate(taps, axis=-1))    # (HW, 576)
    patches = jnp.concatenate(par_patches, axis=0)                # (4*HW, 576)
    z = jnp.dot(patches, w4_ref[...],
                preferred_element_type=jnp.float32)               # (4*HW, 3) f32

    # F.normalize(p=2, dim=channels, eps=1e-12), done in f32.
    ssq = jnp.sum(z * z, axis=-1, keepdims=True)
    z = z * jax.lax.rsqrt(jnp.maximum(ssq, 1e-24))

    # One slab store; rows ordered (r, s, i, j). (Fully lane-dense variant would
    # store z.T as (3, 4*HW); kept as a plain full-block store since the output
    # is only 3 KB / image.)
    out_ref[0] = z.astype(out_ref.dtype)


def _vmem_limit_bytes(D, H, W):
    """Scoped-VMEM request sized to blocks + scratch + temporaries (v5e default
    is only 16 MiB); capped at v7x's 64 MiB physical VMEM."""
    HW = H * W
    blocks = (D * HW * C_IN * 4                                   # x block (f32)
              + (2 * 9 * C_IN * C_IN + 4 * 4 * C_IN * C_MID
                 + 9 * C_MID * C_OUT) * 2 + 2 * C_IN * 4          # weights/biases
              + 4 * HW * C_OUT * 4)                               # out block
    scratch = ((H + 2) * (W + 2) * C_IN
               + 4 * (H + 2) * (W + 2) * C_MID) * 2               # bf16 pads
    temps = (9 * HW * C_IN + 4 * 9 * HW * C_MID) * 2              # im2col concats
    est = 2 * blocks + scratch + 2 * temps + (8 << 20)            # 2x dbl-buffer + headroom
    return int(min(max(est, 32 << 20), 64 << 20))


def regressor_forward(params, x_ncdhw):
    """x_ncdhw: (N, 128, D, H, W) float32 (PyTorch layout) -> (N, 3, 2H, 2W)."""
    N, C, D, H, W = x_ncdhw.shape
    assert C == C_IN, "Regressor expects 128 input channels"
    HW = H * W

    # Channels-last, lane-dense presentation of the input (layout plumbing only).
    x_cl = jnp.transpose(x_ncdhw, (0, 2, 3, 4, 1)).reshape(N, D, HW, C_IN)

    kernel = functools.partial(_regressor_kernel, H, W)
    out_flat = pl.pallas_call(
        kernel,
        out_shape=jax.ShapeDtypeStruct((N, 4 * HW, C_OUT), jnp.float32),
        grid=(N,),
        in_specs=[
            pl.BlockSpec((1, D, HW, C_IN), lambda n: (n, 0, 0, 0)),          # x
            pl.BlockSpec((9 * C_IN, C_IN), lambda n: (0, 0)),                # w1
            pl.BlockSpec((1, C_IN), lambda n: (0, 0)),                       # b1
            pl.BlockSpec((9 * C_IN, C_IN), lambda n: (0, 0)),                # w2
            pl.BlockSpec((1, C_IN), lambda n: (0, 0)),                       # b2
            pl.BlockSpec((2, 2, 4 * C_IN, C_MID), lambda n: (0, 0, 0, 0)),   # w3
            pl.BlockSpec((9 * C_MID, C_OUT), lambda n: (0, 0)),              # w4
        ],
        out_specs=pl.BlockSpec((1, 4 * HW, C_OUT), lambda n: (n, 0, 0)),
        scratch_shapes=[
            pltpu.VMEM((H + 2, W + 2, C_IN), CDT),           # padded conv acts
            pltpu.VMEM((2, 2, H + 2, W + 2, C_MID), CDT),    # padded deconv parities
        ],
        compiler_params=pltpu.CompilerParams(
            dimension_semantics=("parallel",),               # batch -> megacore / v7x 2 TCs
            vmem_limit_bytes=_vmem_limit_bytes(D, H, W)),
    )(x_cl, params["w1"], params["b1"], params["w2"], params["b2"],
      params["w3"], params["w4"])

    # Interleave parities (tiny 3-channel tensor, free in XLA):
    #   out[n, c, 2i+r, 2j+s] = out_flat[n, (r,s,i,j), c]
    out = out_flat.reshape(N, 2, 2, H, W, C_OUT)
    out = jnp.transpose(out, (0, 5, 3, 1, 4, 2)).reshape(N, C_OUT, 2 * H, 2 * W)
    return out


# --------------------------- parameters & reference ---------------------------
def init_dense_params(key):
    """Deterministic f32 parameters in PyTorch layout (kaiming-style std)."""
    k1, k1b, k2, k2b, k3, k4 = jax.random.split(key, 6)

    def kaiming(k, shape, fan_in):
        return jax.random.normal(k, shape, jnp.float32) * math.sqrt(2.0 / fan_in)

    return {
        "w1": kaiming(k1, (C_IN, C_IN, 3, 3), C_IN * 9),       # Conv2d OIHW
        "b1": jax.random.normal(k1b, (C_IN,), jnp.float32) * 0.01,
        "w2": kaiming(k2, (C_IN, C_IN, 3, 3), C_IN * 9),
        "b2": jax.random.normal(k2b, (C_IN,), jnp.float32) * 0.01,
        "w3": kaiming(k3, (C_IN, C_MID, 4, 4), C_IN * 16),     # ConvTranspose2d (in,out,kh,kw)
        "w4": kaiming(k4, (C_OUT, C_MID, 3, 3), C_MID * 9),    # Conv2d OIHW
    }


def pack_kernel_params(dense):
    """Rearrange dense f32 weights into the kernel's matmul layouts (bf16).
    Biases stay f32 (epilogue runs in f32)."""
    p = {}
    # conv1/conv2: contraction rows ordered (ky, kx, cin) -> cout columns.
    p["w1"] = jnp.transpose(dense["w1"], (2, 3, 1, 0)).reshape(9 * C_IN, C_IN).astype(CDT)
    p["b1"] = dense["b1"].reshape(1, C_IN)
    p["w2"] = jnp.transpose(dense["w2"], (2, 3, 1, 0)).reshape(9 * C_IN, C_IN).astype(CDT)
    p["b2"] = dense["b2"].reshape(1, C_IN)
    # deconv3: per-parity sub-weights, rows ordered (row-term a, col-term b, cin).
    wt = np.asarray(dense["w3"])                               # (cin, cout, 4, 4)
    wsub = np.zeros((2, 2, 2, 2, C_IN, C_MID), np.float32)
    for r in range(2):
        for s in range(2):
            for a in range(2):
                for b in range(2):
                    ky, _ = _DECONV_TAP[(r, a)]
                    kx, _ = _DECONV_TAP[(s, b)]
                    wsub[r, s, a, b] = wt[:, :, ky, kx]
    p["w3"] = jnp.asarray(wsub.reshape(2, 2, 4 * C_IN, C_MID)).astype(CDT)
    # est_normal: single (576, 3) matmul weight, rows ordered (u, v, cin).
    p["w4"] = jnp.transpose(dense["w4"], (2, 3, 1, 0)).reshape(9 * C_MID, C_OUT).astype(CDT)
    return p


def reference_forward(dense, x):
    """Full-precision XLA reference of the PyTorch graph.
    Returns (normalized output, pre-normalization est_normal output)."""
    hi = jax.lax.Precision.HIGHEST
    leaky = lambda v: jnp.where(v >= 0, v, LEAKY_SLOPE * v)

    def conv(h, w, pad):
        return jax.lax.conv_general_dilated(
            h, w, (1, 1), ((pad, pad), (pad, pad)),
            dimension_numbers=("NCHW", "OIHW", "NCHW"),
            precision=hi, preferred_element_type=jnp.float32)

    h = jnp.max(x, axis=2)                                              # (N,128,H,W)
    h = leaky(conv(h, dense["w1"], 1) + dense["b1"][None, :, None, None])
    h = leaky(conv(h, dense["w2"], 1) + dense["b2"][None, :, None, None])
    # ConvTranspose2d(128,64,4,2,1) == dilated conv with flipped, IO-swapped kernel.
    w3c = jnp.transpose(dense["w3"], (1, 0, 2, 3))[:, :, ::-1, ::-1]
    h = jax.lax.conv_general_dilated(
        h, w3c, (1, 1), ((2, 2), (2, 2)), lhs_dilation=(2, 2),
        dimension_numbers=("NCHW", "OIHW", "NCHW"),
        precision=hi, preferred_element_type=jnp.float32)
    h = leaky(h)
    z = conv(h, dense["w4"], 1)                                         # (N,3,2H,2W)
    out = z * jax.lax.rsqrt(jnp.maximum(jnp.sum(z * z, axis=1, keepdims=True), 1e-24))
    return out, z


if __name__ == "__main__":
    key = jax.random.PRNGKey(0)
    kx, kp = jax.random.split(key)
    N, C, D, H, W = 2, C_IN, 4, 8, 8           # C=128 is fixed by the module
    x = jax.random.normal(kx, (N, C, D, H, W), jnp.float32)
    dense = init_dense_params(kp)
    params = pack_kernel_params(dense)

    out = jax.jit(regressor_forward)(params, x)
    out = jax.block_until_ready(out)

    assert out.shape == (N, C_OUT, 2 * H, 2 * W) and out.dtype == jnp.float32
    assert bool(jnp.all(jnp.isfinite(out)))

    # F.normalize(p=2, dim=1) => per-pixel unit norm (normalization runs in f32).
    norms = jnp.linalg.norm(out, axis=1)
    assert bool(jnp.all(jnp.abs(norms - 1.0) < 1e-2))

    # Element-wise check vs the full-precision reference. Compare at the
    # pre-normalization scale (kernel direction * reference magnitude) so bf16
    # activation noise is not amplified by 1/||z|| at near-zero normals; any
    # algorithmic error (wrong tap / weight layout) shows up at O(std(z)).
    ref_out, ref_z = reference_forward(dense, x)
    znorm = jnp.linalg.norm(ref_z, axis=1, keepdims=True)
    err = jnp.abs(out * znorm - ref_z)
    scale = float(jnp.std(ref_z))
    assert float(jnp.max(err)) < 0.15 * scale, float(jnp.max(err))
    assert float(jnp.mean(err)) < 0.02 * scale, float(jnp.mean(err))

    print("KERNEL_OK")
</pallas_src>

<mosaic_0001>
module attributes {stable_mosaic.version = 11 : i64} {
  func.func @_regressor_kernel(%arg0: i32, %arg1: memref<1x4x64x128xf32, #tpu.memory_space<vmem>>, %arg2: memref<1152x128xbf16, #tpu.memory_space<vmem>>, %arg3: memref<1x128xf32, #tpu.memory_space<vmem>>, %arg4: memref<1152x128xbf16, #tpu.memory_space<vmem>>, %arg5: memref<1x128xf32, #tpu.memory_space<vmem>>, %arg6: memref<2x2x512x64xbf16, #tpu.memory_space<vmem>>, %arg7: memref<576x3xbf16, #tpu.memory_space<vmem>>, %arg8: memref<1x256x3xf32, #tpu.memory_space<vmem>>, %arg9: memref<10x10x128xbf16, #tpu.memory_space<vmem>>, %arg10: memref<2x2x10x10x64xbf16, #tpu.memory_space<vmem>>) attributes {dimension_semantics = [#tpu.dimension_semantics<parallel>], iteration_bounds = array<i64: 2>, scalar_prefetch = 0 : i64, scratch_operands = 2 : i64, tpu.core_type = #tpu.core_type<tc>, window_params = [{transform_indices = @transform_0, window_bounds = array<i64: 1, 4, 64, 128>}, {pipeline_mode = #tpu.pipeline_mode<synchronous>, transform_indices = @transform_1, window_bounds = array<i64: 1152, 128>}, {pipeline_mode = #tpu.pipeline_mode<synchronous>, transform_indices = @transform_2, window_bounds = array<i64: 1, 128>}, {pipeline_mode = #tpu.pipeline_mode<synchronous>, transform_indices = @transform_3, window_bounds = array<i64: 1152, 128>}, {pipeline_mode = #tpu.pipeline_mode<synchronous>, transform_indices = @transform_4, window_bounds = array<i64: 1, 128>}, {pipeline_mode = #tpu.pipeline_mode<synchronous>, transform_indices = @transform_5, window_bounds = array<i64: 2, 2, 512, 64>}, {pipeline_mode = #tpu.pipeline_mode<synchronous>, transform_indices = @transform_6, window_bounds = array<i64: 576, 3>}, {transform_indices = @transform_7, window_bounds = array<i64: 1, 256, 3>}]} {
    %c0 = arith.constant 0 : index
    %c0_0 = arith.constant 0 : index
    %c0_1 = arith.constant 0 : index
    %c0_2 = arith.constant 0 : index
    %0 = vector.load %arg1[%c0, %c0_0, %c0_1, %c0_2] : memref<1x4x64x128xf32, #tpu.memory_space<vmem>>, vector<1x1x64x128xf32>
    %1 = vector.shape_cast %0 : vector<1x1x64x128xf32> to vector<64x128xf32>
    %c0_3 = arith.constant 0 : index
    %c1 = arith.constant 1 : index
    %c0_4 = arith.constant 0 : index
    %c0_5 = arith.constant 0 : index
    %2 = vector.load %arg1[%c0_3, %c1, %c0_4, %c0_5] : memref<1x4x64x128xf32, #tpu.memory_space<vmem>>, vector<1x1x64x128xf32>
    %3 = vector.shape_cast %2 : vector<1x1x64x128xf32> to vector<64x128xf32>
    %4 = arith.maximumf %1, %3 : vector<64x128xf32>
    %c0_6 = arith.constant 0 : index
    %c2 = arith.constant 2 : index
    %c0_7 = arith.constant 0 : index
    %c0_8 = arith.constant 0 : index
    %5 = vector.load %arg1[%c0_6, %c2, %c0_7, %c0_8] : memref<1x4x64x128xf32, #tpu.memory_space<vmem>>, vector<1x1x64x128xf32>
    %6 = vector.shape_cast %5 : vector<1x1x64x128xf32> to vector<64x128xf32>
    %7 = arith.maximumf %4, %6 : vector<64x128xf32>
    %c0_9 = arith.constant 0 : index
    %c3 = arith.constant 3 : index
    %c0_10 = arith.constant 0 : index
    %c0_11 = arith.constant 0 : index
    %8 = vector.load %arg1[%c0_9, %c3, %c0_10, %c0_11] : memref<1x4x64x128xf32, #tpu.memory_space<vmem>>, vector<1x1x64x128xf32>
    %9 = vector.shape_cast %8 : vector<1x1x64x128xf32> to vector<64x128xf32>
    %10 = arith.maximumf %7, %9 : vector<64x128xf32>
    %cst = arith.constant 0.000000e+00 : bf16
    %11 = vector.broadcast %cst : bf16 to vector<10x10x128xbf16>
    %c0_12 = arith.constant 0 : index
    %c0_13 = arith.constant 0 : index
    %c0_14 = arith.constant 0 : index
    %12 = vector.load %arg9[%c0_12, %c0_13, %c0_14] : memref<10x10x128xbf16, #tpu.memory_space<vmem>>, vector<10x10x128xbf16>
    tpu.vector_store %arg9[%c0_12, %c0_13, %c0_14], %11 {strides = array<i32>} : memref<10x10x128xbf16, #tpu.memory_space<vmem>>, vector<10x10x128xbf16>,
    %13 = vector.shape_cast %10 : vector<64x128xf32> to vector<8x8x128xf32>
    %14 = arith.truncf %13 : vector<8x8x128xf32> to vector<8x8x128xbf16>
    %c1_15 = arith.constant 1 : index
    %c1_16 = arith.constant 1 : index
    %c0_17 = arith.constant 0 : index
    %15 = vector.load %arg9[%c1_15, %c1_16, %c0_17] : memref<10x10x128xbf16, #tpu.memory_space<vmem>>, vector<8x8x128xbf16>
    tpu.vector_store %arg9[%c1_15, %c1_16, %c0_17], %14 {strides = array<i32>} : memref<10x10x128xbf16, #tpu.memory_space<vmem>>, vector<8x8x128xbf16>,
    %c0_18 = arith.constant 0 : index
    %c0_19 = arith.constant 0 : index
    %c0_20 = arith.constant 0 : index
    %16 = vector.load %arg9[%c0_18, %c0_19, %c0_20] : memref<10x10x128xbf16, #tpu.memory_space<vmem>>, vector<8x8x128xbf16>
    %17 = vector.shape_cast %16 : vector<8x8x128xbf16> to vector<64x128xbf16>
    %c0_21 = arith.constant 0 : index
    %c1_22 = arith.constant 1 : index
    %c0_23 = arith.constant 0 : index
    %18 = vector.load %arg9[%c0_21, %c1_22, %c0_23] : memref<10x10x128xbf16, #tpu.memory_space<vmem>>, vector<8x8x128xbf16>
    %19 = vector.shape_cast %18 : vector<8x8x128xbf16> to vector<64x128xbf16>
    %c0_24 = arith.constant 0 : index
    %c2_25 = arith.constant 2 : index
    %c0_26 = arith.constant 0 : index
    %20 = vector.load %arg9[%c0_24, %c2_25, %c0_26] : memref<10x10x128xbf16, #tpu.memory_space<vmem>>, vector<8x8x128xbf16>
    %21 = vector.shape_cast %20 : vector<8x8x128xbf16> to vector<64x128xbf16>
    %c1_27 = arith.constant 1 : index
    %c0_28 = arith.constant 0 : index
    %c0_29 = arith.constant 0 : index
    %22 = vector.load %arg9[%c1_27, %c0_28, %c0_29] : memref<10x10x128xbf16, #tpu.memory_space<vmem>>, vector<8x8x128xbf16>
    %23 = vector.shape_cast %22 : vector<8x8x128xbf16> to vector<64x128xbf16>
    %c1_30 = arith.constant 1 : index
    %c1_31 = arith.constant 1 : index
    %c0_32 = arith.constant 0 : index
    %24 = vector.load %arg9[%c1_30, %c1_31, %c0_32] : memref<10x10x128xbf16, #tpu.memory_space<vmem>>, vector<8x8x128xbf16>
    %25 = vector.shape_cast %24 : vector<8x8x128xbf16> to vector<64x128xbf16>
    %c1_33 = arith.constant 1 : index
    %c2_34 = arith.constant 2 : index
    %c0_35 = arith.constant 0 : index
    %26 = vector.load %arg9[%c1_33, %c2_34, %c0_35] : memref<10x10x128xbf16, #tpu.memory_space<vmem>>, vector<8x8x128xbf16>
    %27 = vector.shape_cast %26 : vector<8x8x128xbf16> to vector<64x128xbf16>
    %c2_36 = arith.constant 2 : index
    %c0_37 = arith.constant 0 : index
    %c0_38 = arith.constant 0 : index
    %28 = vector.load %arg9[%c2_36, %c0_37, %c0_38] : memref<10x10x128xbf16, #tpu.memory_space<vmem>>, vector<8x8x128xbf16>
    %29 = vector.shape_cast %28 : vector<8x8x128xbf16> to vector<64x128xbf16>
    %c2_39 = arith.constant 2 : index
    %c1_40 = arith.constant 1 : index
    %c0_41 = arith.constant 0 : index
    %30 = vector.load %arg9[%c2_39, %c1_40, %c0_41] : memref<10x10x128xbf16, #tpu.memory_space<vmem>>, vector<8x8x128xbf16>
    %31 = vector.shape_cast %30 : vector<8x8x128xbf16> to vector<64x128xbf16>
    %c2_42 = arith.constant 2 : index
    %c2_43 = arith.constant 2 : index
    %c0_44 = arith.constant 0 : index
    %32 = vector.load %arg9[%c2_42, %c2_43, %c0_44] : memref<10x10x128xbf16, #tpu.memory_space<vmem>>, vector<8x8x128xbf16>
    %33 = vector.shape_cast %32 : vector<8x8x128xbf16> to vector<64x128xbf16>
    %34 = tpu.concatenate %17, %19, %21, %23, %25, %27, %29, %31, %33 in 1 : vector<64x128xbf16>, vector<64x128xbf16>, vector<64x128xbf16>, vector<64x128xbf16>, vector<64x128xbf16>, vector<64x128xbf16>, vector<64x128xbf16>, vector<64x128xbf16>, vector<64x128xbf16> -> vector<64x1152xbf16>
    %c0_45 = arith.constant 0 : index
    %c0_46 = arith.constant 0 : index
    %35 = vector.load %arg2[%c0_45, %c0_46] : memref<1152x128xbf16, #tpu.memory_space<vmem>>, vector<1152x128xbf16>
    %cst_47 = arith.constant dense<0.000000e+00> : vector<64x128xf32>
    %36 = tpu.matmul %34, %35, %cst_47 {dimension_numbers = #tpu.dot_dimension_numbers<[1], [0], [0], [1], [0, 0, 1, 1], [], []>} : vector<64x1152xbf16>, vector<1152x128xbf16>, vector<64x128xf32> -> vector<64x128xf32>
    %c0_48 = arith.constant 0 : index
    %c0_49 = arith.constant 0 : index
    %37 = vector.load %arg3[%c0_48, %c0_49] : memref<1x128xf32, #tpu.memory_space<vmem>>, vector<1x128xf32>
    %38 = vector.broadcast %37 : vector<1x128xf32> to vector<64x128xf32>
    %39 = arith.addf %36, %38 : vector<64x128xf32>
    %cst_50 = arith.constant 0.000000e+00 : f32
    %40 = vector.broadcast %cst_50 : f32 to vector<64x128xf32>
    %41 = arith.cmpf oge, %39, %40 : vector<64x128xf32>
    %cst_51 = arith.constant 1.000000e-01 : f32
    %42 = vector.broadcast %cst_51 : f32 to vector<64x128xf32>
    %43 = arith.mulf %42, %39 : vector<64x128xf32>
    %44 = arith.select %41, %39, %43 : vector<64x128xi1>, vector<64x128xf32>
    %45 = vector.shape_cast %44 : vector<64x128xf32> to vector<8x8x128xf32>
    %46 = arith.truncf %45 : vector<8x8x128xf32> to vector<8x8x128xbf16>
    %c1_52 = arith.constant 1 : index
    %c1_53 = arith.constant 1 : index
    %c0_54 = arith.constant 0 : index
    %47 = vector.load %arg9[%c1_52, %c1_53, %c0_54] : memref<10x10x128xbf16, #tpu.memory_space<vmem>>, vector<8x8x128xbf16>
    tpu.vector_store %arg9[%c1_52, %c1_53, %c0_54], %46 {strides = array<i32>} : memref<10x10x128xbf16, #tpu.memory_space<vmem>>, vector<8x8x128xbf16>,
    %c0_55 = arith.constant 0 : index
    %c0_56 = arith.constant 0 : index
    %c0_57 = arith.constant 0 : index
    %48 = vector.load %arg9[%c0_55, %c0_56, %c0_57] : memref<10x10x128xbf16, #tpu.memory_space<vmem>>, vector<8x8x128xbf16>
    %49 = vector.shape_cast %48 : vector<8x8x128xbf16> to vector<64x128xbf16>
    %c0_58 = arith.constant 0 : index
    %c1_59 = arith.constant 1 : index
    %c0_60 = arith.constant 0 : index
    %50 = vector.load %arg9[%c0_58, %c1_59, %c0_60] : memref<10x10x128xbf16, #tpu.memory_space<vmem>>, vector<8x8x128xbf16>
    %51 = vector.shape_cast %50 : vector<8x8x128xbf16> to vector<64x128xbf16>
    %c0_61 = arith.constant 0 : index
    %c2_62 = arith.constant 2 : index
    %c0_63 = arith.constant 0 : index
    %52 = vector.load %arg9[%c0_61, %c2_62, %c0_63] : memref<10x10x128xbf16, #tpu.memory_space<vmem>>, vector<8x8x128xbf16>
    %53 = vector.shape_cast %52 : vector<8x8x128xbf16> to vector<64x128xbf16>
    %c1_64 = arith.constant 1 : index
    %c0_65 = arith.constant 0 : index
    %c0_66 = arith.constant 0 : index
    %54 = vector.load %arg9[%c1_64, %c0_65, %c0_66] : memref<10x10x128xbf16, #tpu.memory_space<vmem>>, vector<8x8x128xbf16>
    %55 = vector.shape_cast %54 : vector<8x8x128xbf16> to vector<64x128xbf16>
    %c1_67 = arith.constant 1 : index
    %c1_68 = arith.constant 1 : index
    %c0_69 = arith.constant 0 : index
    %56 = vector.load %arg9[%c1_67, %c1_68, %c0_69] : memref<10x10x128xbf16, #tpu.memory_space<vmem>>, vector<8x8x128xbf16>
    %57 = vector.shape_cast %56 : vector<8x8x128xbf16> to vector<64x128xbf16>
    %c1_70 = arith.constant 1 : index
    %c2_71 = arith.constant 2 : index
    %c0_72 = arith.constant 0 : index
    %58 = vector.load %arg9[%c1_70, %c2_71, %c0_72] : memref<10x10x128xbf16, #tpu.memory_space<vmem>>, vector<8x8x128xbf16>
    %59 = vector.shape_cast %58 : vector<8x8x128xbf16> to vector<64x128xbf16>
    %c2_73 = arith.constant 2 : index
    %c0_74 = arith.constant 0 : index
    %c0_75 = arith.constant 0 : index
    %60 = vector.load %arg9[%c2_73, %c0_74, %c0_75] : memref<10x10x128xbf16, #tpu.memory_space<vmem>>, vector<8x8x128xbf16>
    %61 = vector.shape_cast %60 : vector<8x8x128xbf16> to vector<64x128xbf16>
    %c2_76 = arith.constant 2 : index
    %c1_77 = arith.constant 1 : index
    %c0_78 = arith.constant 0 : index
    %62 = vector.load %arg9[%c2_76, %c1_77, %c0_78] : memref<10x10x128xbf16, #tpu.memory_space<vmem>>, vector<8x8x128xbf16>
    %63 = vector.shape_cast %62 : vector<8x8x128xbf16> to vector<64x128xbf16>
    %c2_79 = arith.constant 2 : index
    %c2_80 = arith.constant 2 : index
    %c0_81 = arith.constant 0 : index
    %64 = vector.load %arg9[%c2_79, %c2_80, %c0_81] : memref<10x10x128xbf16, #tpu.memory_space<vmem>>, vector<8x8x128xbf16>
    %65 = vector.shape_cast %64 : vector<8x8x128xbf16> to vector<64x128xbf16>
    %66 = tpu.concatenate %49, %51, %53, %55, %57, %59, %61, %63, %65 in 1 : vector<64x128xbf16>, vector<64x128xbf16>, vector<64x128xbf16>, vector<64x128xbf16>, vector<64x128xbf16>, vector<64x128xbf16>, vector<64x128xbf16>, vector<64x128xbf16>, vector<64x128xbf16> -> vector<64x1152xbf16>
    %c0_82 = arith.constant 0 : index
    %c0_83 = arith.constant 0 : index
    %67 = vector.load %arg4[%c0_82, %c0_83] : memref<1152x128xbf16, #tpu.memory_space<vmem>>, vector<1152x128xbf16>
    %cst_84 = arith.constant dense<0.000000e+00> : vector<64x128xf32>
    %68 = tpu.matmul %66, %67, %cst_84 {dimension_numbers = #tpu.dot_dimension_numbers<[1], [0], [0], [1], [0, 0, 1, 1], [], []>} : vector<64x1152xbf16>, vector<1152x128xbf16>, vector<64x128xf32> -> vector<64x128xf32>
    %c0_85 = arith.constant 0 : index
    %c0_86 = arith.constant 0 : index
    %69 = vector.load %arg5[%c0_85, %c0_86] : memref<1x128xf32, #tpu.memory_space<vmem>>, vector<1x128xf32>
    %70 = vector.broadcast %69 : vector<1x128xf32> to vector<64x128xf32>
    %71 = arith.addf %68, %70 : vector<64x128xf32>
    %cst_87 = arith.constant 0.000000e+00 : f32
    %72 = vector.broadcast %cst_87 : f32 to vector<64x128xf32>
    %73 = arith.cmpf oge, %71, %72 : vector<64x128xf32>
    %cst_88 = arith.constant 1.000000e-01 : f32
    %74 = vector.broadcast %cst_88 : f32 to vector<64x128xf32>
    %75 = arith.mulf %74, %71 : vector<64x128xf32>
    %76 = arith.select %73, %71, %75 : vector<64x128xi1>, vector<64x128xf32>
    %77 = vector.shape_cast %76 : vector<64x128xf32> to vector<8x8x128xf32>
    %78 = arith.truncf %77 : vector<8x8x128xf32> to vector<8x8x128xbf16>
    %c1_89 = arith.constant 1 : index
    %c1_90 = arith.constant 1 : index
    %c0_91 = arith.constant 0 : index
    %79 = vector.load %arg9[%c1_89, %c1_90, %c0_91] : memref<10x10x128xbf16, #tpu.memory_space<vmem>>, vector<8x8x128xbf16>
    tpu.vector_store %arg9[%c1_89, %c1_90, %c0_91], %78 {strides = array<i32>} : memref<10x10x128xbf16, #tpu.memory_space<vmem>>, vector<8x8x128xbf16>,
    %cst_92 = arith.constant 0.000000e+00 : bf16
    %80 = vector.broadcast %cst_92 : bf16 to vector<2x2x10x10x64xbf16>
    %c0_93 = arith.constant 0 : index
    %c0_94 = arith.constant 0 : index
    %c0_95 = arith.constant 0 : index
    %c0_96 = arith.constant 0 : index
    %c0_97 = arith.constant 0 : index
    %81 = vector.load %arg10[%c0_93, %c0_94, %c0_95, %c0_96, %c0_97] : memref<2x2x10x10x64xbf16, #tpu.memory_space<vmem>>, vector<2x2x10x10x64xbf16>
    tpu.vector_store %arg10[%c0_93, %c0_94, %c0_95, %c0_96, %c0_97], %80 {strides = array<i32>} : memref<2x2x10x10x64xbf16, #tpu.memory_space<vmem>>, vector<2x2x10x10x64xbf16>,
    %c1_98 = arith.constant 1 : index
    %c1_99 = arith.constant 1 : index
    %c0_100 = arith.constant 0 : index
    %82 = vector.load %arg9[%c1_98, %c1_99, %c0_100] : memref<10x10x128xbf16, #tpu.memory_space<vmem>>, vector<8x8x128xbf16>
    %83 = vector.shape_cast %82 : vector<8x8x128xbf16> to vector<64x128xbf16>
    %c1_101 = arith.constant 1 : index
    %c0_102 = arith.constant 0 : index
    %c0_103 = arith.constant 0 : index
    %84 = vector.load %arg9[%c1_101, %c0_102, %c0_103] : memref<10x10x128xbf16, #tpu.memory_space<vmem>>, vector<8x8x128xbf16>
    %85 = vector.shape_cast %84 : vector<8x8x128xbf16> to vector<64x128xbf16>
    %c0_104 = arith.constant 0 : index
    %c1_105 = arith.constant 1 : index
    %c0_106 = arith.constant 0 : index
    %86 = vector.load %arg9[%c0_104, %c1_105, %c0_106] : memref<10x10x128xbf16, #tpu.memory_space<vmem>>, vector<8x8x128xbf16>
    %87 = vector.shape_cast %86 : vector<8x8x128xbf16> to vector<64x128xbf16>
    %c0_107 = arith.constant 0 : index
    %c0_108 = arith.constant 0 : index
    %c0_109 = arith.constant 0 : index
    %88 = vector.load %arg9[%c0_107, %c0_108, %c0_109] : memref<10x10x128xbf16, #tpu.memory_space<vmem>>, vector<8x8x128xbf16>
    %89 = vector.shape_cast %88 : vector<8x8x128xbf16> to vector<64x128xbf16>
    %90 = tpu.concatenate %83, %85, %87, %89 in 1 : vector<64x128xbf16>, vector<64x128xbf16>, vector<64x128xbf16>, vector<64x128xbf16> -> vector<64x512xbf16>
    %c0_110 = arith.constant 0 : index
    %c0_111 = arith.constant 0 : index
    %c0_112 = arith.constant 0 : index
    %c0_113 = arith.constant 0 : index
    %91 = vector.load %arg6[%c0_110, %c0_111, %c0_112, %c0_113] : memref<2x2x512x64xbf16, #tpu.memory_space<vmem>>, vector<1x1x512x64xbf16>
    %92 = vector.shape_cast %91 : vector<1x1x512x64xbf16> to vector<512x64xbf16>
    %cst_114 = arith.constant dense<0.000000e+00> : vector<64x64xf32>
    %93 = tpu.matmul %90, %92, %cst_114 {dimension_numbers = #tpu.dot_dimension_numbers<[1], [0], [0], [1], [0, 0, 1, 1], [], []>} : vector<64x512xbf16>, vector<512x64xbf16>, vector<64x64xf32> -> vector<64x64xf32>
    %cst_115 = arith.constant 0.000000e+00 : f32
    %94 = vector.broadcast %cst_115 : f32 to vector<64x64xf32>
    %95 = arith.cmpf oge, %93, %94 : vector<64x64xf32>
    %cst_116 = arith.constant 1.000000e-01 : f32
    %96 = vector.broadcast %cst_116 : f32 to vector<64x64xf32>
    %97 = arith.mulf %96, %93 : vector<64x64xf32>
    %98 = arith.select %95, %93, %97 : vector<64x64xi1>, vector<64x64xf32>
    %99 = vector.shape_cast %98 : vector<64x64xf32> to vector<8x8x64xf32>
    %100 = arith.truncf %99 : vector<8x8x64xf32> to vector<8x8x64xbf16>
    %c0_117 = arith.constant 0 : index
    %c0_118 = arith.constant 0 : index
    %c1_119 = arith.constant 1 : index
    %c1_120 = arith.constant 1 : index
    %c0_121 = arith.constant 0 : index
    %101 = vector.load %arg10[%c0_117, %c0_118, %c1_119, %c1_120, %c0_121] : memref<2x2x10x10x64xbf16, #tpu.memory_space<vmem>>, vector<1x1x8x8x64xbf16>
    %102 = vector.shape_cast %101 : vector<1x1x8x8x64xbf16> to vector<8x8x64xbf16>
    %103 = vector.shape_cast %100 : vector<8x8x64xbf16> to vector<1x1x8x8x64xbf16>
    tpu.vector_store %arg10[%c0_117, %c0_118, %c1_119, %c1_120, %c0_121], %103 {strides = array<i32>} : memref<2x2x10x10x64xbf16, #tpu.memory_space<vmem>>, vector<1x1x8x8x64xbf16>,
    %c1_122 = arith.constant 1 : index
    %c2_123 = arith.constant 2 : index
    %c0_124 = arith.constant 0 : index
    %104 = vector.load %arg9[%c1_122, %c2_123, %c0_124] : memref<10x10x128xbf16, #tpu.memory_space<vmem>>, vector<8x8x128xbf16>
    %105 = vector.shape_cast %104 : vector<8x8x128xbf16> to vector<64x128xbf16>
    %c1_125 = arith.constant 1 : index
    %c1_126 = arith.constant 1 : index
    %c0_127 = arith.constant 0 : index
    %106 = vector.load %arg9[%c1_125, %c1_126, %c0_127] : memref<10x10x128xbf16, #tpu.memory_space<vmem>>, vector<8x8x128xbf16>
    %107 = vector.shape_cast %106 : vector<8x8x128xbf16> to vector<64x128xbf16>
    %c0_128 = arith.constant 0 : index
    %c2_129 = arith.constant 2 : index
    %c0_130 = arith.constant 0 : index
    %108 = vector.load %arg9[%c0_128, %c2_129, %c0_130] : memref<10x10x128xbf16, #tpu.memory_space<vmem>>, vector<8x8x128xbf16>
    %109 = vector.shape_cast %108 : vector<8x8x128xbf16> to vector<64x128xbf16>
    %c0_131 = arith.constant 0 : index
    %c1_132 = arith.constant 1 : index
    %c0_133 = arith.constant 0 : index
    %110 = vector.load %arg9[%c0_131, %c1_132, %c0_133] : memref<10x10x128xbf16, #tpu.memory_space<vmem>>, vector<8x8x128xbf16>
    %111 = vector.shape_cast %110 : vector<8x8x128xbf16> to vector<64x128xbf16>
    %112 = tpu.concatenate %105, %107, %109, %111 in 1 : vector<64x128xbf16>, vector<64x128xbf16>, vector<64x128xbf16>, vector<64x128xbf16> -> vector<64x512xbf16>
    %c0_134 = arith.constant 0 : index
    %c1_135 = arith.constant 1 : index
    %c0_136 = arith.constant 0 : index
    %c0_137 = arith.constant 0 : index
    %113 = vector.load %arg6[%c0_134, %c1_135, %c0_136, %c0_137] : memref<2x2x512x64xbf16, #tpu.memory_space<vmem>>, vector<1x1x512x64xbf16>
    %114 = vector.shape_cast %113 : vector<1x1x512x64xbf16> to vector<512x64xbf16>
    %cst_138 = arith.constant dense<0.000000e+00> : vector<64x64xf32>
    %115 = tpu.matmul %112, %114, %cst_138 {dimension_numbers = #tpu.dot_dimension_numbers<[1], [0], [0], [1], [0, 0, 1, 1], [], []>} : vector<64x512xbf16>, vector<512x64xbf16>, vector<64x64xf32> -> vector<64x64xf32>
    %cst_139 = arith.constant 0.000000e+00 : f32
    %116 = vector.broadcast %cst_139 : f32 to vector<64x64xf32>
    %117 = arith.cmpf oge, %115, %116 : vector<64x64xf32>
    %cst_140 = arith.constant 1.000000e-01 : f32
    %118 = vector.broadcast %cst_140 : f32 to vector<64x64xf32>
    %119 = arith.mulf %118, %115 : vector<64x64xf32>
    %120 = arith.select %117, %115, %119 : vector<64x64xi1>, vector<64x64xf32>
    %121 = vector.shape_cast %120 : vector<64x64xf32> to vector<8x8x64xf32>
    %122 = arith.truncf %121 : vector<8x8x64xf32> to vector<8x8x64xbf16>
    %c0_141 = arith.constant 0 : index
    %c1_142 = arith.constant 1 : index
    %c1_143 = arith.constant 1 : index
    %c1_144 = arith.constant 1 : index
    %c0_145 = arith.constant 0 : index
    %123 = vector.load %arg10[%c0_141, %c1_142, %c1_143, %c1_144, %c0_145] : memref<2x2x10x10x64xbf16, #tpu.memory_space<vmem>>, vector<1x1x8x8x64xbf16>
    %124 = vector.shape_cast %123 : vector<1x1x8x8x64xbf16> to vector<8x8x64xbf16>
    %125 = vector.shape_cast %122 : vector<8x8x64xbf16> to vector<1x1x8x8x64xbf16>
    tpu.vector_store %arg10[%c0_141, %c1_142, %c1_143, %c1_144, %c0_145], %125 {strides = array<i32>} : memref<2x2x10x10x64xbf16, #tpu.memory_space<vmem>>, vector<1x1x8x8x64xbf16>,
    %c2_146 = arith.constant 2 : index
    %c1_147 = arith.constant 1 : index
    %c0_148 = arith.constant 0 : index
    %126 = vector.load %arg9[%c2_146, %c1_147, %c0_148] : memref<10x10x128xbf16, #tpu.memory_space<vmem>>, vector<8x8x128xbf16>
    %127 = vector.shape_cast %126 : vector<8x8x128xbf16> to vector<64x128xbf16>
    %c2_149 = arith.constant 2 : index
    %c0_150 = arith.constant 0 : index
    %c0_151 = arith.constant 0 : index
    %128 = vector.load %arg9[%c2_149, %c0_150, %c0_151] : memref<10x10x128xbf16, #tpu.memory_space<vmem>>, vector<8x8x128xbf16>
    %129 = vector.shape_cast %128 : vector<8x8x128xbf16> to vector<64x128xbf16>
    %c1_152 = arith.constant 1 : index
    %c1_153 = arith.constant 1 : index
    %c0_154 = arith.constant 0 : index
    %130 = vector.load %arg9[%c1_152, %c1_153, %c0_154] : memref<10x10x128xbf16, #tpu.memory_space<vmem>>, vector<8x8x128xbf16>
    %131 = vector.shape_cast %130 : vector<8x8x128xbf16> to vector<64x128xbf16>
    %c1_155 = arith.constant 1 : index
    %c0_156 = arith.constant 0 : index
    %c0_157 = arith.constant 0 : index
    %132 = vector.load %arg9[%c1_155, %c0_156, %c0_157] : memref<10x10x128xbf16, #tpu.memory_space<vmem>>, vector<8x8x128xbf16>
    %133 = vector.shape_cast %132 : vector<8x8x128xbf16> to vector<64x128xbf16>
    %134 = tpu.concatenate %127, %129, %131, %133 in 1 : vector<64x128xbf16>, vector<64x128xbf16>, vector<64x128xbf16>, vector<64x128xbf16> -> vector<64x512xbf16>
    %c1_158 = arith.constant 1 : index
    %c0_159 = arith.constant 0 : index
    %c0_160 = arith.constant 0 : index
    %c0_161 = arith.constant 0 : index
    %135 = vector.load %arg6[%c1_158, %c0_159, %c0_160, %c0_161] : memref<2x2x512x64xbf16, #tpu.memory_space<vmem>>, vector<1x1x512x64xbf16>
    %136 = vector.shape_cast %135 : vector<1x1x512x64xbf16> to vector<512x64xbf16>
    %cst_162 = arith.constant dense<0.000000e+00> : vector<64x64xf32>
    %137 = tpu.matmul %134, %136, %cst_162 {dimension_numbers = #tpu.dot_dimension_numbers<[1], [0], [0], [1], [0, 0, 1, 1], [], []>} : vector<64x512xbf16>, vector<512x64xbf16>, vector<64x64xf32> -> vector<64x64xf32>
    %cst_163 = arith.constant 0.000000e+00 : f32
    %138 = vector.broadcast %cst_163 : f32 to vector<64x64xf32>
    %139 = arith.cmpf oge, %137, %138 : vector<64x64xf32>
    %cst_164 = arith.constant 1.000000e-01 : f32
    %140 = vector.broadcast %cst_164 : f32 to vector<64x64xf32>
    %141 = arith.mulf %140, %137 : vector<64x64xf32>
    %142 = arith.select %139, %137, %141 : vector<64x64xi1>, vector<64x64xf32>
    %143 = vector.shape_cast %142 : vector<64x64xf32> to vector<8x8x64xf32>
    %144 = arith.truncf %143 : vector<8x8x64xf32> to vector<8x8x64xbf16>
    %c1_165 = arith.constant 1 : index
    %c0_166 = arith.constant 0 : index
    %c1_167 = arith.constant 1 : index
    %c1_168 = arith.constant 1 : index
    %c0_169 = arith.constant 0 : index
    %145 = vector.load %arg10[%c1_165, %c0_166, %c1_167, %c1_168, %c0_169] : memref<2x2x10x10x64xbf16, #tpu.memory_space<vmem>>, vector<1x1x8x8x64xbf16>
    %146 = vector.shape_cast %145 : vector<1x1x8x8x64xbf16> to vector<8x8x64xbf16>
    %147 = vector.shape_cast %144 : vector<8x8x64xbf16> to vector<1x1x8x8x64xbf16>
    tpu.vector_store %arg10[%c1_165, %c0_166, %c1_167, %c1_168, %c0_169], %147 {strides = array<i32>} : memref<2x2x10x10x64xbf16, #tpu.memory_space<vmem>>, vector<1x1x8x8x64xbf16>,
    %c2_170 = arith.constant 2 : index
    %c2_171 = arith.constant 2 : index
    %c0_172 = arith.constant 0 : index
    %148 = vector.load %arg9[%c2_170, %c2_171, %c0_172] : memref<10x10x128xbf16, #tpu.memory_space<vmem>>, vector<8x8x128xbf16>
    %149 = vector.shape_cast %148 : vector<8x8x128xbf16> to vector<64x128xbf16>
    %c2_173 = arith.constant 2 : index
    %c1_174 = arith.constant 1 : index
    %c0_175 = arith.constant 0 : index
    %150 = vector.load %arg9[%c2_173, %c1_174, %c0_175] : memref<10x10x128xbf16, #tpu.memory_space<vmem>>, vector<8x8x128xbf16>
    %151 = vector.shape_cast %150 : vector<8x8x128xbf16> to vector<64x128xbf16>
    %c1_176 = arith.constant 1 : index
    %c2_177 = arith.constant 2 : index
    %c0_178 = arith.constant 0 : index
    %152 = vector.load %arg9[%c1_176, %c2_177, %c0_178] : memref<10x10x128xbf16, #tpu.memory_space<vmem>>, vector<8x8x128xbf16>
    %153 = vector.shape_cast %152 : vector<8x8x128xbf16> to vector<64x128xbf16>
    %c1_179 = arith.constant 1 : index
    %c1_180 = arith.constant 1 : index
    %c0_181 = arith.constant 0 : index
    %154 = vector.load %arg9[%c1_179, %c1_180, %c0_181] : memref<10x10x128xbf16, #tpu.memory_space<vmem>>, vector<8x8x128xbf16>
    %155 = vector.shape_cast %154 : vector<8x8x128xbf16> to vector<64x128xbf16>
    %156 = tpu.concatenate %149, %151, %153, %155 in 1 : vector<64x128xbf16>, vector<64x128xbf16>, vector<64x128xbf16>, vector<64x128xbf16> -> vector<64x512xbf16>
    %c1_182 = arith.constant 1 : index
    %c1_183 = arith.constant 1 : index
    %c0_184 = arith.constant 0 : index
    %c0_185 = arith.constant 0 : index
    %157 = vector.load %arg6[%c1_182, %c1_183, %c0_184, %c0_185] : memref<2x2x512x64xbf16, #tpu.memory_space<vmem>>, vector<1x1x512x64xbf16>
    %158 = vector.shape_cast %157 : vector<1x1x512x64xbf16> to vector<512x64xbf16>
    %cst_186 = arith.constant dense<0.000000e+00> : vector<64x64xf32>
    %159 = tpu.matmul %156, %158, %cst_186 {dimension_numbers = #tpu.dot_dimension_numbers<[1], [0], [0], [1], [0, 0, 1, 1], [], []>} : vector<64x512xbf16>, vector<512x64xbf16>, vector<64x64xf32> -> vector<64x64xf32>
    %cst_187 = arith.constant 0.000000e+00 : f32
    %160 = vector.broadcast %cst_187 : f32 to vector<64x64xf32>
    %161 = arith.cmpf oge, %159, %160 : vector<64x64xf32>
    %cst_188 = arith.constant 1.000000e-01 : f32
    %162 = vector.broadcast %cst_188 : f32 to vector<64x64xf32>
    %163 = arith.mulf %162, %159 : vector<64x64xf32>
    %164 = arith.select %161, %159, %163 : vector<64x64xi1>, vector<64x64xf32>
    %165 = vector.shape_cast %164 : vector<64x64xf32> to vector<8x8x64xf32>
    %166 = arith.truncf %165 : vector<8x8x64xf32> to vector<8x8x64xbf16>
    %c1_189 = arith.constant 1 : index
    %c1_190 = arith.constant 1 : index
    %c1_191 = arith.constant 1 : index
    %c1_192 = arith.constant 1 : index
    %c0_193 = arith.constant 0 : index
    %167 = vector.load %arg10[%c1_189, %c1_190, %c1_191, %c1_192, %c0_193] : memref<2x2x10x10x64xbf16, #tpu.memory_space<vmem>>, vector<1x1x8x8x64xbf16>
    %168 = vector.shape_cast %167 : vector<1x1x8x8x64xbf16> to vector<8x8x64xbf16>
    %169 = vector.shape_cast %166 : vector<8x8x64xbf16> to vector<1x1x8x8x64xbf16>
    tpu.vector_store %arg10[%c1_189, %c1_190, %c1_191, %c1_192, %c0_193], %169 {strides = array<i32>} : memref<2x2x10x10x64xbf16, #tpu.memory_space<vmem>>, vector<1x1x8x8x64xbf16>,
    %c1_194 = arith.constant 1 : index
    %c1_195 = arith.constant 1 : index
    %c0_196 = arith.constant 0 : index
    %c0_197 = arith.constant 0 : index
    %c0_198 = arith.constant 0 : index
    %170 = vector.load %arg10[%c1_194, %c1_195, %c0_196, %c0_197, %c0_198] : memref<2x2x10x10x64xbf16, #tpu.memory_space<vmem>>, vector<1x1x8x8x64xbf16>
    %171 = vector.shape_cast %170 : vector<1x1x8x8x64xbf16> to vector<8x8x64xbf16>
    %172 = vector.shape_cast %171 : vector<8x8x64xbf16> to vector<64x64xbf16>
    %c1_199 = arith.constant 1 : index
    %c0_200 = arith.constant 0 : index
    %c0_201 = arith.constant 0 : index
    %c1_202 = arith.constant 1 : index
    %c0_203 = arith.constant 0 : index
    %173 = vector.load %arg10[%c1_199, %c0_200, %c0_201, %c1_202, %c0_203] : memref<2x2x10x10x64xbf16, #tpu.memory_space<vmem>>, vector<1x1x8x8x64xbf16>
    %174 = vector.shape_cast %173 : vector<1x1x8x8x64xbf16> to vector<8x8x64xbf16>
    %175 = vector.shape_cast %174 : vector<8x8x64xbf16> to vector<64x64xbf16>
    %c1_204 = arith.constant 1 : index
    %c1_205 = arith.constant 1 : index
    %c0_206 = arith.constant 0 : index
    %c1_207 = arith.constant 1 : index
    %c0_208 = arith.constant 0 : index
    %176 = vector.load %arg10[%c1_204, %c1_205, %c0_206, %c1_207, %c0_208] : memref<2x2x10x10x64xbf16, #tpu.memory_space<vmem>>, vector<1x1x8x8x64xbf16>
    %177 = vector.shape_cast %176 : vector<1x1x8x8x64xbf16> to vector<8x8x64xbf16>
    %178 = vector.shape_cast %177 : vector<8x8x64xbf16> to vector<64x64xbf16>
    %c0_209 = arith.constant 0 : index
    %c1_210 = arith.constant 1 : index
    %c1_211 = arith.constant 1 : index
    %c0_212 = arith.constant 0 : index
    %c0_213 = arith.constant 0 : index
    %179 = vector.load %arg10[%c0_209, %c1_210, %c1_211, %c0_212, %c0_213] : memref<2x2x10x10x64xbf16, #tpu.memory_space<vmem>>, vector<1x1x8x8x64xbf16>
    %180 = vector.shape_cast %179 : vector<1x1x8x8x64xbf16> to vector<8x8x64xbf16>
    %181 = vector.shape_cast %180 : vector<8x8x64xbf16> to vector<64x64xbf16>
    %c0_214 = arith.constant 0 : index
    %c0_215 = arith.constant 0 : index
    %c1_216 = arith.constant 1 : index
    %c1_217 = arith.constant 1 : index
    %c0_218 = arith.constant 0 : index
    %182 = vector.load %arg10[%c0_214, %c0_215, %c1_216, %c1_217, %c0_218] : memref<2x2x10x10x64xbf16, #tpu.memory_space<vmem>>, vector<1x1x8x8x64xbf16>
    %183 = vector.shape_cast %182 : vector<1x1x8x8x64xbf16> to vector<8x8x64xbf16>
    %184 = vector.shape_cast %183 : vector<8x8x64xbf16> to vector<64x64xbf16>
    %c0_219 = arith.constant 0 : index
    %c1_220 = arith.constant 1 : index
    %c1_221 = arith.constant 1 : index
    %c1_222 = arith.constant 1 : index
    %c0_223 = arith.constant 0 : index
    %185 = vector.load %arg10[%c0_219, %c1_220, %c1_221, %c1_222, %c0_223] : memref<2x2x10x10x64xbf16, #tpu.memory_space<vmem>>, vector<1x1x8x8x64xbf16>
    %186 = vector.shape_cast %185 : vector<1x1x8x8x64xbf16> to vector<8x8x64xbf16>
    %187 = vector.shape_cast %186 : vector<8x8x64xbf16> to vector<64x64xbf16>
    %c1_224 = arith.constant 1 : index
    %c1_225 = arith.constant 1 : index
    %c1_226 = arith.constant 1 : index
    %c0_227 = arith.constant 0 : index
    %c0_228 = arith.constant 0 : index
    %188 = vector.load %arg10[%c1_224, %c1_225, %c1_226, %c0_227, %c0_228] : memref<2x2x10x10x64xbf16, #tpu.memory_space<vmem>>, vector<1x1x8x8x64xbf16>
    %189 = vector.shape_cast %188 : vector<1x1x8x8x64xbf16> to vector<8x8x64xbf16>
    %190 = vector.shape_cast %189 : vector<8x8x64xbf16> to vector<64x64xbf16>
    %c1_229 = arith.constant 1 : index
    %c0_230 = arith.constant 0 : index
    %c1_231 = arith.constant 1 : index
    %c1_232 = arith.constant 1 : index
    %c0_233 = arith.constant 0 : index
    %191 = vector.load %arg10[%c1_229, %c0_230, %c1_231, %c1_232, %c0_233] : memref<2x2x10x10x64xbf16, #tpu.memory_space<vmem>>, vector<1x1x8x8x64xbf16>
    %192 = vector.shape_cast %191 : vector<1x1x8x8x64xbf16> to vector<8x8x64xbf16>
    %193 = vector.shape_cast %192 : vector<8x8x64xbf16> to vector<64x64xbf16>
    %c1_234 = arith.constant 1 : index
    %c1_235 = arith.constant 1 : index
    %c1_236 = arith.constant 1 : index
    %c1_237 = arith.constant 1 : index
    %c0_238 = arith.constant 0 : index
    %194 = vector.load %arg10[%c1_234, %c1_235, %c1_236, %c1_237, %c0_238] : memref<2x2x10x10x64xbf16, #tpu.memory_space<vmem>>, vector<1x1x8x8x64xbf16>
    %195 = vector.shape_cast %194 : vector<1x1x8x8x64xbf16> to vector<8x8x64xbf16>
    %196 = vector.shape_cast %195 : vector<8x8x64xbf16> to vector<64x64xbf16>
    %197 = tpu.concatenate %172, %175, %178, %181, %184, %187, %190, %193, %196 in 1 : vector<64x64xbf16>, vector<64x64xbf16>, vector<64x64xbf16>, vector<64x64xbf16>, vector<64x64xbf16>, vector<64x64xbf16>, vector<64x64xbf16>, vector<64x64xbf16>, vector<64x64xbf16> -> vector<64x576xbf16>
    %c1_239 = arith.constant 1 : index
    %c0_240 = arith.constant 0 : index
    %c0_241 = arith.constant 0 : index
    %c1_242 = arith.constant 1 : index
    %c0_243 = arith.constant 0 : index
    %198 = vector.load %arg10[%c1_239, %c0_240, %c0_241, %c1_242, %c0_243] : memref<2x2x10x10x64xbf16, #tpu.memory_space<vmem>>, vector<1x1x8x8x64xbf16>
    %199 = vector.shape_cast %198 : vector<1x1x8x8x64xbf16> to vector<8x8x64xbf16>
    %200 = vector.shape_cast %199 : vector<8x8x64xbf16> to vector<64x64xbf16>
    %c1_244 = arith.constant 1 : index
    %c1_245 = arith.constant 1 : index
    %c0_246 = arith.constant 0 : index
    %c1_247 = arith.constant 1 : index
    %c0_248 = arith.constant 0 : index
    %201 = vector.load %arg10[%c1_244, %c1_245, %c0_246, %c1_247, %c0_248] : memref<2x2x10x10x64xbf16, #tpu.memory_space<vmem>>, vector<1x1x8x8x64xbf16>
    %202 = vector.shape_cast %201 : vector<1x1x8x8x64xbf16> to vector<8x8x64xbf16>
    %203 = vector.shape_cast %202 : vector<8x8x64xbf16> to vector<64x64xbf16>
    %c1_249 = arith.constant 1 : index
    %c0_250 = arith.constant 0 : index
    %c0_251 = arith.constant 0 : index
    %c2_252 = arith.constant 2 : index
    %c0_253 = arith.constant 0 : index
    %204 = vector.load %arg10[%c1_249, %c0_250, %c0_251, %c2_252, %c0_253] : memref<2x2x10x10x64xbf16, #tpu.memory_space<vmem>>, vector<1x1x8x8x64xbf16>
    %205 = vector.shape_cast %204 : vector<1x1x8x8x64xbf16> to vector<8x8x64xbf16>
    %206 = vector.shape_cast %205 : vector<8x8x64xbf16> to vector<64x64xbf16>
    %c0_254 = arith.constant 0 : index
    %c0_255 = arith.constant 0 : index
    %c1_256 = arith.constant 1 : index
    %c1_257 = arith.constant 1 : index
    %c0_258 = arith.constant 0 : index
    %207 = vector.load %arg10[%c0_254, %c0_255, %c1_256, %c1_257, %c0_258] : memref<2x2x10x10x64xbf16, #tpu.memory_space<vmem>>, vector<1x1x8x8x64xbf16>
    %208 = vector.shape_cast %207 : vector<1x1x8x8x64xbf16> to vector<8x8x64xbf16>
    %209 = vector.shape_cast %208 : vector<8x8x64xbf16> to vector<64x64xbf16>
    %c0_259 = arith.constant 0 : index
    %c1_260 = arith.constant 1 : index
    %c1_261 = arith.constant 1 : index
    %c1_262 = arith.constant 1 : index
    %c0_263 = arith.constant 0 : index
    %210 = vector.load %arg10[%c0_259, %c1_260, %c1_261, %c1_262, %c0_263] : memref<2x2x10x10x64xbf16, #tpu.memory_space<vmem>>, vector<1x1x8x8x64xbf16>
    %211 = vector.shape_cast %210 : vector<1x1x8x8x64xbf16> to vector<8x8x64xbf16>
    %212 = vector.shape_cast %211 : vector<8x8x64xbf16> to vector<64x64xbf16>
    %c0_264 = arith.constant 0 : index
    %c0_265 = arith.constant 0 : index
    %c1_266 = arith.constant 1 : index
    %c2_267 = arith.constant 2 : index
    %c0_268 = arith.constant 0 : index
    %213 = vector.load %arg10[%c0_264, %c0_265, %c1_266, %c2_267, %c0_268] : memref<2x2x10x10x64xbf16, #tpu.memory_space<vmem>>, vector<1x1x8x8x64xbf16>
    %214 = vector.shape_cast %213 : vector<1x1x8x8x64xbf16> to vector<8x8x64xbf16>
    %215 = vector.shape_cast %214 : vector<8x8x64xbf16> to vector<64x64xbf16>
    %c1_269 = arith.constant 1 : index
    %c0_270 = arith.constant 0 : index
    %c1_271 = arith.constant 1 : index
    %c1_272 = arith.constant 1 : index
    %c0_273 = arith.constant 0 : index
    %216 = vector.load %arg10[%c1_269, %c0_270, %c1_271, %c1_272, %c0_273] : memref<2x2x10x10x64xbf16, #tpu.memory_space<vmem>>, vector<1x1x8x8x64xbf16>
    %217 = vector.shape_cast %216 : vector<1x1x8x8x64xbf16> to vector<8x8x64xbf16>
    %218 = vector.shape_cast %217 : vector<8x8x64xbf16> to vector<64x64xbf16>
    %c1_274 = arith.constant 1 : index
    %c1_275 = arith.constant 1 : index
    %c1_276 = arith.constant 1 : index
    %c1_277 = arith.constant 1 : index
    %c0_278 = arith.constant 0 : index
    %219 = vector.load %arg10[%c1_274, %c1_275, %c1_276, %c1_277, %c0_278] : memref<2x2x10x10x64xbf16, #tpu.memory_space<vmem>>, vector<1x1x8x8x64xbf16>
    %220 = vector.shape_cast %219 : vector<1x1x8x8x64xbf16> to vector<8x8x64xbf16>
    %221 = vector.shape_cast %220 : vector<8x8x64xbf16> to vector<64x64xbf16>
    %c1_279 = arith.constant 1 : index
    %c0_280 = arith.constant 0 : index
    %c1_281 = arith.constant 1 : index
    %c2_282 = arith.constant 2 : index
    %c0_283 = arith.constant 0 : index
    %222 = vector.load %arg10[%c1_279, %c0_280, %c1_281, %c2_282, %c0_283] : memref<2x2x10x10x64xbf16, #tpu.memory_space<vmem>>, vector<1x1x8x8x64xbf16>
    %223 = vector.shape_cast %222 : vector<1x1x8x8x64xbf16> to vector<8x8x64xbf16>
    %224 = vector.shape_cast %223 : vector<8x8x64xbf16> to vector<64x64xbf16>
    %225 = tpu.concatenate %200, %203, %206, %209, %212, %215, %218, %221, %224 in 1 : vector<64x64xbf16>, vector<64x64xbf16>, vector<64x64xbf16>, vector<64x64xbf16>, vector<64x64xbf16>, vector<64x64xbf16>, vector<64x64xbf16>, vector<64x64xbf16>, vector<64x64xbf16> -> vector<64x576xbf16>
    %c0_284 = arith.constant 0 : index
    %c1_285 = arith.constant 1 : index
    %c1_286 = arith.constant 1 : index
    %c0_287 = arith.constant 0 : index
    %c0_288 = arith.constant 0 : index
    %226 = vector.load %arg10[%c0_284, %c1_285, %c1_286, %c0_287, %c0_288] : memref<2x2x10x10x64xbf16, #tpu.memory_space<vmem>>, vector<1x1x8x8x64xbf16>
    %227 = vector.shape_cast %226 : vector<1x1x8x8x64xbf16> to vector<8x8x64xbf16>
    %228 = vector.shape_cast %227 : vector<8x8x64xbf16> to vector<64x64xbf16>
    %c0_289 = arith.constant 0 : index
    %c0_290 = arith.constant 0 : index
    %c1_291 = arith.constant 1 : index
    %c1_292 = arith.constant 1 : index
    %c0_293 = arith.constant 0 : index
    %229 = vector.load %arg10[%c0_289, %c0_290, %c1_291, %c1_292, %c0_293] : memref<2x2x10x10x64xbf16, #tpu.memory_space<vmem>>, vector<1x1x8x8x64xbf16>
    %230 = vector.shape_cast %229 : vector<1x1x8x8x64xbf16> to vector<8x8x64xbf16>
    %231 = vector.shape_cast %230 : vector<8x8x64xbf16> to vector<64x64xbf16>
    %c0_294 = arith.constant 0 : index
    %c1_295 = arith.constant 1 : index
    %c1_296 = arith.constant 1 : index
    %c1_297 = arith.constant 1 : index
    %c0_298 = arith.constant 0 : index
    %232 = vector.load %arg10[%c0_294, %c1_295, %c1_296, %c1_297, %c0_298] : memref<2x2x10x10x64xbf16, #tpu.memory_space<vmem>>, vector<1x1x8x8x64xbf16>
    %233 = vector.shape_cast %232 : vector<1x1x8x8x64xbf16> to vector<8x8x64xbf16>
    %234 = vector.shape_cast %233 : vector<8x8x64xbf16> to vector<64x64xbf16>
    %c1_299 = arith.constant 1 : index
    %c1_300 = arith.constant 1 : index
    %c1_301 = arith.constant 1 : index
    %c0_302 = arith.constant 0 : index
    %c0_303 = arith.constant 0 : index
    %235 = vector.load %arg10[%c1_299, %c1_300, %c1_301, %c0_302, %c0_303] : memref<2x2x10x10x64xbf16, #tpu.memory_space<vmem>>, vector<1x1x8x8x64xbf16>
    %236 = vector.shape_cast %235 : vector<1x1x8x8x64xbf16> to vector<8x8x64xbf16>
    %237 = vector.shape_cast %236 : vector<8x8x64xbf16> to vector<64x64xbf16>
    %c1_304 = arith.constant 1 : index
    %c0_305 = arith.constant 0 : index
    %c1_306 = arith.constant 1 : index
    %c1_307 = arith.constant 1 : index
    %c0_308 = arith.constant 0 : index
    %238 = vector.load %arg10[%c1_304, %c0_305, %c1_306, %c1_307, %c0_308] : memref<2x2x10x10x64xbf16, #tpu.memory_space<vmem>>, vector<1x1x8x8x64xbf16>
    %239 = vector.shape_cast %238 : vector<1x1x8x8x64xbf16> to vector<8x8x64xbf16>
    %240 = vector.shape_cast %239 : vector<8x8x64xbf16> to vector<64x64xbf16>
    %c1_309 = arith.constant 1 : index
    %c1_310 = arith.constant 1 : index
    %c1_311 = arith.constant 1 : index
    %c1_312 = arith.constant 1 : index
    %c0_313 = arith.constant 0 : index
    %241 = vector.load %arg10[%c1_309, %c1_310, %c1_311, %c1_312, %c0_313] : memref<2x2x10x10x64xbf16, #tpu.memory_space<vmem>>, vector<1x1x8x8x64xbf16>
    %242 = vector.shape_cast %241 : vector<1x1x8x8x64xbf16> to vector<8x8x64xbf16>
    %243 = vector.shape_cast %242 : vector<8x8x64xbf16> to vector<64x64xbf16>
    %c0_314 = arith.constant 0 : index
    %c1_315 = arith.constant 1 : index
    %c2_316 = arith.constant 2 : index
    %c0_317 = arith.constant 0 : index
    %c0_318 = arith.constant 0 : index
    %244 = vector.load %arg10[%c0_314, %c1_315, %c2_316, %c0_317, %c0_318] : memref<2x2x10x10x64xbf16, #tpu.memory_space<vmem>>, vector<1x1x8x8x64xbf16>
    %245 = vector.shape_cast %244 : vector<1x1x8x8x64xbf16> to vector<8x8x64xbf16>
    %246 = vector.shape_cast %245 : vector<8x8x64xbf16> to vector<64x64xbf16>
    %c0_319 = arith.constant 0 : index
    %c0_320 = arith.constant 0 : index
    %c2_321 = arith.constant 2 : index
    %c1_322 = arith.constant 1 : index
    %c0_323 = arith.constant 0 : index
    %247 = vector.load %arg10[%c0_319, %c0_320, %c2_321, %c1_322, %c0_323] : memref<2x2x10x10x64xbf16, #tpu.memory_space<vmem>>, vector<1x1x8x8x64xbf16>
    %248 = vector.shape_cast %247 : vector<1x1x8x8x64xbf16> to vector<8x8x64xbf16>
    %249 = vector.shape_cast %248 : vector<8x8x64xbf16> to vector<64x64xbf16>
    %c0_324 = arith.constant 0 : index
    %c1_325 = arith.constant 1 : index
    %c2_326 = arith.constant 2 : index
    %c1_327 = arith.constant 1 : index
    %c0_328 = arith.constant 0 : index
    %250 = vector.load %arg10[%c0_324, %c1_325, %c2_326, %c1_327, %c0_328] : memref<2x2x10x10x64xbf16, #tpu.memory_space<vmem>>, vector<1x1x8x8x64xbf16>
    %251 = vector.shape_cast %250 : vector<1x1x8x8x64xbf16> to vector<8x8x64xbf16>
    %252 = vector.shape_cast %251 : vector<8x8x64xbf16> to vector<64x64xbf16>
    %253 = tpu.concatenate %228, %231, %234, %237, %240, %243, %246, %249, %252 in 1 : vector<64x64xbf16>, vector<64x64xbf16>, vector<64x64xbf16>, vector<64x64xbf16>, vector<64x64xbf16>, vector<64x64xbf16>, vector<64x64xbf16>, vector<64x64xbf16>, vector<64x64xbf16> -> vector<64x576xbf16>
    %c0_329 = arith.constant 0 : index
    %c0_330 = arith.constant 0 : index
    %c1_331 = arith.constant 1 : index
    %c1_332 = arith.constant 1 : index
    %c0_333 = arith.constant 0 : index
    %254 = vector.load %arg10[%c0_329, %c0_330, %c1_331, %c1_332, %c0_333] : memref<2x2x10x10x64xbf16, #tpu.memory_space<vmem>>, vector<1x1x8x8x64xbf16>
    %255 = vector.shape_cast %254 : vector<1x1x8x8x64xbf16> to vector<8x8x64xbf16>
    %256 = vector.shape_cast %255 : vector<8x8x64xbf16> to vector<64x64xbf16>
    %c0_334 = arith.constant 0 : index
    %c1_335 = arith.constant 1 : index
    %c1_336 = arith.constant 1 : index
    %c1_337 = arith.constant 1 : index
    %c0_338 = arith.constant 0 : index
    %257 = vector.load %arg10[%c0_334, %c1_335, %c1_336, %c1_337, %c0_338] : memref<2x2x10x10x64xbf16, #tpu.memory_space<vmem>>, vector<1x1x8x8x64xbf16>
    %258 = vector.shape_cast %257 : vector<1x1x8x8x64xbf16> to vector<8x8x64xbf16>
    %259 = vector.shape_cast %258 : vector<8x8x64xbf16> to vector<64x64xbf16>
    %c0_339 = arith.constant 0 : index
    %c0_340 = arith.constant 0 : index
    %c1_341 = arith.constant 1 : index
    %c2_342 = arith.constant 2 : index
    %c0_343 = arith.constant 0 : index
    %260 = vector.load %arg10[%c0_339, %c0_340, %c1_341, %c2_342, %c0_343] : memref<2x2x10x10x64xbf16, #tpu.memory_space<vmem>>, vector<1x1x8x8x64xbf16>
    %261 = vector.shape_cast %260 : vector<1x1x8x8x64xbf16> to vector<8x8x64xbf16>
    %262 = vector.shape_cast %261 : vector<8x8x64xbf16> to vector<64x64xbf16>
    %c1_344 = arith.constant 1 : index
    %c0_345 = arith.constant 0 : index
    %c1_346 = arith.constant 1 : index
    %c1_347 = arith.constant 1 : index
    %c0_348 = arith.constant 0 : index
    %263 = vector.load %arg10[%c1_344, %c0_345, %c1_346, %c1_347, %c0_348] : memref<2x2x10x10x64xbf16, #tpu.memory_space<vmem>>, vector<1x1x8x8x64xbf16>
    %264 = vector.shape_cast %263 : vector<1x1x8x8x64xbf16> to vector<8x8x64xbf16>
    %265 = vector.shape_cast %264 : vector<8x8x64xbf16> to vector<64x64xbf16>
    %c1_349 = arith.constant 1 : index
    %c1_350 = arith.constant 1 : index
    %c1_351 = arith.constant 1 : index
    %c1_352 = arith.constant 1 : index
    %c0_353 = arith.constant 0 : index
    %266 = vector.load %arg10[%c1_349, %c1_350, %c1_351, %c1_352, %c0_353] : memref<2x2x10x10x64xbf16, #tpu.memory_space<vmem>>, vector<1x1x8x8x64xbf16>
    %267 = vector.shape_cast %266 : vector<1x1x8x8x64xbf16> to vector<8x8x64xbf16>
    %268 = vector.shape_cast %267 : vector<8x8x64xbf16> to vector<64x64xbf16>
    %c1_354 = arith.constant 1 : index
    %c0_355 = arith.constant 0 : index
    %c1_356 = arith.constant 1 : index
    %c2_357 = arith.constant 2 : index
    %c0_358 = arith.constant 0 : index
    %269 = vector.load %arg10[%c1_354, %c0_355, %c1_356, %c2_357, %c0_358] : memref<2x2x10x10x64xbf16, #tpu.memory_space<vmem>>, vector<1x1x8x8x64xbf16>
    %270 = vector.shape_cast %269 : vector<1x1x8x8x64xbf16> to vector<8x8x64xbf16>
    %271 = vector.shape_cast %270 : vector<8x8x64xbf16> to vector<64x64xbf16>
    %c0_359 = arith.constant 0 : index
    %c0_360 = arith.constant 0 : index
    %c2_361 = arith.constant 2 : index
    %c1_362 = arith.constant 1 : index
    %c0_363 = arith.constant 0 : index
    %272 = vector.load %arg10[%c0_359, %c0_360, %c2_361, %c1_362, %c0_363] : memref<2x2x10x10x64xbf16, #tpu.memory_space<vmem>>, vector<1x1x8x8x64xbf16>
    %273 = vector.shape_cast %272 : vector<1x1x8x8x64xbf16> to vector<8x8x64xbf16>
    %274 = vector.shape_cast %273 : vector<8x8x64xbf16> to vector<64x64xbf16>
    %c0_364 = arith.constant 0 : index
    %c1_365 = arith.constant 1 : index
    %c2_366 = arith.constant 2 : index
    %c1_367 = arith.constant 1 : index
    %c0_368 = arith.constant 0 : index
    %275 = vector.load %arg10[%c0_364, %c1_365, %c2_366, %c1_367, %c0_368] : memref<2x2x10x10x64xbf16, #tpu.memory_space<vmem>>, vector<1x1x8x8x64xbf16>
    %276 = vector.shape_cast %275 : vector<1x1x8x8x64xbf16> to vector<8x8x64xbf16>
    %277 = vector.shape_cast %276 : vector<8x8x64xbf16> to vector<64x64xbf16>
    %c0_369 = arith.constant 0 : index
    %c0_370 = arith.constant 0 : index
    %c2_371 = arith.constant 2 : index
    %c2_372 = arith.constant 2 : index
    %c0_373 = arith.constant 0 : index
    %278 = vector.load %arg10[%c0_369, %c0_370, %c2_371, %c2_372, %c0_373] : memref<2x2x10x10x64xbf16, #tpu.memory_space<vmem>>, vector<1x1x8x8x64xbf16>
    %279 = vector.shape_cast %278 : vector<1x1x8x8x64xbf16> to vector<8x8x64xbf16>
    %280 = vector.shape_cast %279 : vector<8x8x64xbf16> to vector<64x64xbf16>
    %281 = tpu.concatenate %256, %259, %262, %265, %268, %271, %274, %277, %280 in 1 : vector<64x64xbf16>, vector<64x64xbf16>, vector<64x64xbf16>, vector<64x64xbf16>, vector<64x64xbf16>, vector<64x64xbf16>, vector<64x64xbf16>, vector<64x64xbf16>, vector<64x64xbf16> -> vector<64x576xbf16>
    %282 = tpu.concatenate %197, %225, %253, %281 in 0 : vector<64x576xbf16>, vector<64x576xbf16>, vector<64x576xbf16>, vector<64x576xbf16> -> vector<256x576xbf16>
    %c0_374 = arith.constant 0 : index
    %c0_375 = arith.constant 0 : index
    %283 = vector.load %arg7[%c0_374, %c0_375] : memref<576x3xbf16, #tpu.memory_space<vmem>>, vector<576x3xbf16>
    %cst_376 = arith.constant dense<0.000000e+00> : vector<256x3xf32>
    %284 = tpu.matmul %282, %283, %cst_376 {dimension_numbers = #tpu.dot_dimension_numbers<[1], [0], [0], [1], [0, 0, 1, 1], [], []>} : vector<256x576xbf16>, vector<576x3xbf16>, vector<256x3xf32> -> vector<256x3xf32>
    %285 = arith.mulf %284, %284 : vector<256x3xf32>
    %cst_377 = arith.constant dense<0.000000e+00> : vector<256xf32>
    %286 = vector.multi_reduction <add>, %285, %cst_377 [1] : vector<256x3xf32> to vector<256xf32>
    %287 = vector.shape_cast %286 : vector<256xf32> to vector<256x1xf32>
    %cst_378 = arith.constant 1.000000e-24 : f32
    %288 = vector.broadcast %cst_378 : f32 to vector<256x1xf32>
    %289 = arith.maximumf %287, %288 : vector<256x1xf32>
    %290 = math.rsqrt %289 : vector<256x1xf32>
    %291 = vector.broadcast %290 : vector<256x1xf32> to vector<256x3xf32>
    %292 = arith.mulf %284, %291 : vector<256x3xf32>
    %c0_379 = arith.constant 0 : index
    %c0_380 = arith.constant 0 : index
    %c0_381 = arith.constant 0 : index
    %293 = vector.load %arg8[%c0_379, %c0_380, %c0_381] : memref<1x256x3xf32, #tpu.memory_space<vmem>>, vector<1x256x3xf32>
    %294 = vector.shape_cast %293 : vector<1x256x3xf32> to vector<256x3xf32>
    %295 = vector.shape_cast %292 : vector<256x3xf32> to vector<1x256x3xf32>
    tpu.vector_store %arg8[%c0_379, %c0_380, %c0_381], %295 {strides = array<i32>} : memref<1x256x3xf32, #tpu.memory_space<vmem>>, vector<1x256x3xf32>,
    return
  }
  func.func @transform_0(%arg0: i32) -> (i32, i32, i32, i32) {
    %c0_i32 = arith.constant 0 : i32
    %c0_i32_0 = arith.constant 0 : i32
    %c0_i32_1 = arith.constant 0 : i32
    %c0_i32_2 = arith.constant 0 : i32
    return %arg0, %c0_i32, %c0_i32_0, %c0_i32_1 : i32, i32, i32, i32
  }
  func.func @transform_1(%arg0: i32) -> (i32, i32) {
    %c0_i32 = arith.constant 0 : i32
    %c0_i32_0 = arith.constant 0 : i32
    %c0_i32_1 = arith.constant 0 : i32
    return %c0_i32, %c0_i32_0 : i32, i32
  }
  func.func @transform_2(%arg0: i32) -> (i32, i32) {
    %c0_i32 = arith.constant 0 : i32
    %c0_i32_0 = arith.constant 0 : i32
    %c0_i32_1 = arith.constant 0 : i32
    return %c0_i32, %c0_i32_0 : i32, i32
  }
  func.func @transform_3(%arg0: i32) -> (i32, i32) {
    %c0_i32 = arith.constant 0 : i32
    %c0_i32_0 = arith.constant 0 : i32
    %c0_i32_1 = arith.constant 0 : i32
    return %c0_i32, %c0_i32_0 : i32, i32
  }
  func.func @transform_4(%arg0: i32) -> (i32, i32) {
    %c0_i32 = arith.constant 0 : i32
    %c0_i32_0 = arith.constant 0 : i32
    %c0_i32_1 = arith.constant 0 : i32
    return %c0_i32, %c0_i32_0 : i32, i32
  }
  func.func @transform_5(%arg0: i32) -> (i32, i32, i32, i32) {
    %c0_i32 = arith.constant 0 : i32
    %c0_i32_0 = arith.constant 0 : i32
    %c0_i32_1 = arith.constant 0 : i32
    %c0_i32_2 = arith.constant 0 : i32
    %c0_i32_3 = arith.constant 0 : i32
    return %c0_i32, %c0_i32_0, %c0_i32_1, %c0_i32_2 : i32, i32, i32, i32
  }
  func.func @transform_6(%arg0: i32) -> (i32, i32) {
    %c0_i32 = arith.constant 0 : i32
    %c0_i32_0 = arith.constant 0 : i32
    %c0_i32_1 = arith.constant 0 : i32
    return %c0_i32, %c0_i32_0 : i32, i32
  }
  func.func @transform_7(%arg0: i32) -> (i32, i32, i32) {
    %c0_i32 = arith.constant 0 : i32
    %c0_i32_0 = arith.constant 0 : i32
    %c0_i32_1 = arith.constant 0 : i32
    return %arg0, %c0_i32, %c0_i32_0 : i32, i32, i32
  }
}

</mosaic_0001>

<bundles_post_ra>
// kernel: regressor_forward.1
= control target key start
LH: loop header
LB: loop body
LE: loop exit
PB: predicated region body
PF: predicated region fallthrough
CT: control target
= control target key end

     0   :  { %s13209_s24 = smov 0   ;;  %s17138_s0 = inlined_call_operand.vmem [shape: f32[2,4,64,128], index: 0, kind: input, shape index: {}]   ;;  %s17139_s1 = inlined_call_operand.vmem [shape: bf16[1152,128], index: 1, kind: input, shape index: {}]   ;;  %s17140_s2 = inlined_call_operand.vmem [shape: f32[1,128], index: 2, kind: input, shape index: {}]   ;;  %s17141_s3 = inlined_call_operand.vmem [shape: bf16[1152,128], index: 3, kind: input, shape index: {}]   ;;  %s17142_s4 = inlined_call_operand.vmem [shape: f32[1,128], index: 4, kind: input, shape index: {}]   ;;  %s17143_s5 = inlined_call_operand.vmem [shape: bf16[2,2,512,64], index: 5, kind: input, shape index: {}]   ;;  %s17144_s6 = inlined_call_operand.vmem [shape: bf16[576,3], index: 6, kind: input, shape index: {}]   ;;  %s17145_s7 = inlined_call_operand.vmem [shape: f32[2,256,3], index: 7, kind: output, shape index: {}]  }
   0x1 LB: > { %s10868_s25 = sadd.s32 4294967295, %s13165_s24   ;;  %p10872_p0 = scmp.ge.s32.totalorder %s13165_s24, 1  ;;  %s13165_s24 = sphi %s13209_s24, %s17_s24  }
   0x2   : > { %p237_p1 = scmp.lt.s32.totalorder %s13165_s24, 3 }
   0x4   : > { %p238_p2 = pnand %p10872_p0, %p237_p1 }
   0x6   : > { %241 = sbr.rel (%p238_p2) target bundleno = 1916 (0x77c), region = 48 }
   0xb   : > { %v12700_v0 = vld [vmem:[%s17139_s1 + $0x38] sm:$0xff]  ;;  %p269_p3 = scmp.lt.s32.totalorder %s10868_s25, 1  ;;  %v13167_v1 = vmov 0   ;;  %v12699_v2 = vld [vmem:[%s17139_s1 + $0x30] sm:$0xff]  ;;  %vm449_vm0 = vsmask.f32 7938 }
   0xc   : > { %339 = vst [vmem:[#allocation2] sm:$0xf] %v13167_v1  ;;  %1809 = vmatpush.bf16.msra.mxu0 %v12700_v0  ;;  %13045 = vmatpush.bf16.msra.mxu1 %v12700_v0  ;;  %v12716_v3 = vld [vmem:[%s17139_s1 + $0xb8] sm:$0xff]  ;;  %vm3949_vm1 = vcmask 519168   ;;  %v12698_v4 = vld [vmem:[%s17139_s1 + $0x28] sm:$0xff]  ;;  %v17173_v5 = vmov 0 }
   0xd   : > { %s17258_s25 = smov (!%p269_p3, %s10868_s25), 1  ;;  %341 = vst [vmem:[#allocation2 + $0x8] sm:$0xf] %v13167_v1  ;;  %1867 = vmatpush.bf16.msra.mxu2 %v12716_v3  ;;  %vm13245_vm2 = vmand %vm3949_vm1, %vm449_vm0  ;;  %v12697_v12 = vld [vmem:[%s17139_s1 + $0x20] sm:$0xff]  ;;  %v12696_v15 = vld [vmem:[%s17139_s1 + $0x18] sm:$0xff]  ;;  %vm448_vm3 = vcmask 1043456  }
   0xe   : > { %340 = vst [vmem:[#allocation2 + $0x4] sm:$0x1] %v13167_v1  ;;  %s12679_s9 = sshll.u32 %s17258_s25, 8  ;;  %v17174_v5 = vsel %vm13245_vm2, 4294967295, %v17173_v5  ;;  %v12695_v19 = vld [vmem:[%s17139_s1 + $0x10] sm:$0xff]  ;;  %vm13278_vm4 = vmand %vm448_vm3, %vm449_vm0  ;;  %v12694_v24 = vld [vmem:[%s17139_s1 + $0x8] sm:$0xff] }
   0xf   : > { %342 = vst [vmem:[#allocation2 + $0xc] sm:$0x1] %v13167_v1  ;;  %s13241_s14 = scalar_lea.vmem %s17138_s0, %s12679_s9  ;;  %v12693_v25 = vld [vmem:[%s17139_s1] sm:$0xff]  ;;  %v12708_v3 = vld [vmem:[%s17139_s1 + $0x78] sm:$0xff]  ;;  %vm454_vm5 = vcmask 1040384   ;;  %vm3951_vm8 = vcmask 516096   ;;  %s16934_s15 = scalar_lea.vmem %s17145_s7, %s12679_s9 }
  0x10   : > { %17175 = vst [vmem:[#allocation4_spill] sm:$0xff] %v17174_v5  ;;  %1810 = vmatpush.bf16.msra.mxu0 %v12699_v2  ;;  %13046 = vmatpush.bf16.msra.mxu1 %v12699_v2  ;;  %v280_v6 = vld [vmem:[%s13241_s14] sm:$0xff]  ;;  %v283_v27 = vld [vmem:[%s13241_s14 + $0x18] sm:$0xff]  ;;  %v281_v34 = vld [vmem:[%s13241_s14 + $0x8] sm:$0xff]  ;;  %vm455_vm6 = vsmask.f32 256 }
  0x11   : > { %343 = vst [vmem:[#allocation2 + $0x10] sm:$0xf] %v13167_v1  ;;  %v10877_v7 = vld [vmem:[%s13241_s14 + $0x40] sm:$0xff]  ;;  %v10880_v28 = vld [vmem:[%s13241_s14 + $0x58] sm:$0xff]  ;;  %v282_v35 = vld [vmem:[%s13241_s14 + $0x10] sm:$0xff]  ;;  %vm657_vm10 = vcmask 1042432  }
  0x12   : > { %v10885_v8 = vld [vmem:[%s13241_s14 + $0x80] sm:$0xff]  ;;  %344 = vst [vmem:[#allocation2 + $0x14] sm:$0x1] %v13167_v1  ;;  %v297_v9 = vmax.f32 %v280_v6, %v10877_v7  ;;  %v300_v33 = vmax.f32 %v283_v27, %v10880_v28  ;;  %v10878_v36 = vld [vmem:[%s13241_s14 + $0x48] sm:$0xff]  ;;  %v10888_v38 = vld [vmem:[%s13241_s14 + $0x98] sm:$0xff]  ;;  %vm658_vm11 = vcmask 1046532  }
  0x13   : > { %345 = vst [vmem:[#allocation2 + $0x18] sm:$0xf] %v13167_v1  ;;  %v10893_v10 = vld [vmem:[%s13241_s14 + $0xc0] sm:$0xff]  ;;  %v10879_v39 = vld [vmem:[%s13241_s14 + $0x50] sm:$0xff]  ;;  %v285_v40 = vld [vmem:[%s13241_s14 + $0x28] sm:$0xff]  ;;  %v298_v42 = vmax.f32 %v281_v34, %v10878_v36  ;;  %s13168_s18 = smov 64  }
  0x14   : > { %346 = vst [vmem:[#allocation2 + $0x1c] sm:$0x1] %v13167_v1  ;;  %v314_v11 = vmax.f32 %v297_v9, %v10885_v8  ;;  %1811 = vmatpush.bf16.msra.mxu0 %v12698_v4  ;;  %13047 = vmatpush.bf16.msra.mxu1 %v12698_v4  ;;  %v451_v21 = vld [vmem:[#allocation2 + $0x8] sm:$0xf]  ;;  %v10927_v26 = vld [vmem:[#allocation2] sm:$0xf]  ;;  %v299_v45 = vmax.f32 %v282_v35, %v10879_v39  ;;  %vm13471_vm7 = vmand %vm454_vm5, %vm455_vm6 }
  0x15   : > { %347 = vst [vmem:[#allocation2 + $0x20] sm:$0xf] %v13167_v1  ;;  %v284_v30 = vld [vmem:[%s13241_s14 + $0x20] sm:$0xff]  ;;  %v286_v43 = vld [vmem:[%s13241_s14 + $0x30] sm:$0xff]  ;;  %v10882_v44 = vld [vmem:[%s13241_s14 + $0x68] sm:$0xff]  ;;  %v317_v48 = vmax.f32 %v300_v33, %v10888_v38 }
  0x16   : > { %348 = vst [vmem:[#allocation2 + $0x24] sm:$0x1] %v13167_v1  ;;  %v331_v13 = vmax.f32 %v314_v11, %v10893_v10  ;;  %v10881_v31 = vld [vmem:[%s13241_s14 + $0x60] sm:$0xff]  ;;  %v10886_v46 = vld [vmem:[%s13241_s14 + $0x88] sm:$0xff]  ;;  %v10883_v47 = vld [vmem:[%s13241_s14 + $0x70] sm:$0xff]  ;;  %v302_v50 = vmax.f32 %v285_v40, %v10882_v44 }
  0x17   : > { %349 = vst [vmem:[#allocation2 + $0x28] sm:$0xf] %v13167_v1  ;;  %v301_v37 = vmax.f32 %v284_v30, %v10881_v31  ;;  %v10889_v41 = vld [vmem:[%s13241_s14 + $0xa0] sm:$0xff]  ;;  %v10887_v49 = vld [vmem:[%s13241_s14 + $0x90] sm:$0xff]  ;;  %v10896_v52 = vld [vmem:[%s13241_s14 + $0xd8] sm:$0xff]  ;;  %v303_v53 = vmax.f32 %v286_v43, %v10883_v47  ;;  %v315_v56 = vmax.f32 %v298_v42, %v10886_v46 }
  0x18   : > { %350 = vst [vmem:[#allocation2 + $0x2c] sm:$0x1] %v13167_v1  ;;  %v359_v14 = vpack.c.bf16 %v331_v13, %v331_v13  ;;  %1812 = vmatpush.bf16.msra.mxu0 %v12697_v12  ;;  %13048 = vmatpush.bf16.msra.mxu1 %v12697_v12  ;;  %v10890_v54 = vld [vmem:[%s13241_s14 + $0xa8] sm:$0xff]  ;;  %v10897_v55 = vld [vmem:[%s13241_s14 + $0xe0] sm:$0xff]  ;;  %v10891_v57 = vld [vmem:[%s13241_s14 + $0xb0] sm:$0xff]  ;;  %v316_v58 = vmax.f32 %v299_v45, %v10887_v49 }
  0x19   : > { %351 = vst [vmem:[#allocation2 + $0x30] sm:$0xf] %v13167_v1  ;;  %v318_v51 = vmax.f32 %v301_v37, %v10889_v41  ;;  %v10894_v59 = vld [vmem:[%s13241_s14 + $0xc8] sm:$0xff]  ;;  %v334_v60 = vmax.f32 %v317_v48, %v10896_v52  ;;  %v10895_v61 = vld [vmem:[%s13241_s14 + $0xd0] sm:$0xff]  ;;  %v319_v62 = vmax.f32 %v302_v50, %v10890_v54  ;;  %v12724_v2 = vld [vmem:[%s17139_s1 + $0xf8] sm:$0xff]  ;;  %v320_v6 = vmax.f32 %v303_v53, %v10891_v57 }
  0x1a   : > { %352 = vst [vmem:[#allocation2 + $0x34] sm:$0x1] %v13167_v1  ;;  %v368_v16 = vshrl.u32 %v359_v14, 16  ;;  %v371_v17 = vshll.u32 %v359_v14, 16  ;;  %v10898_v63 = vld [vmem:[%s13241_s14 + $0xe8] sm:$0xff]  ;;  %v12715_v4 = vld [vmem:[%s17139_s1 + $0xb0] sm:$0xff]  ;;  %v332_v7 = vmax.f32 %v315_v56, %v10894_v59  ;;  %v333_v11 = vmax.f32 %v316_v58, %v10895_v61  ;;  %vm13485_vm9 = vmand %vm3951_vm8, %vm455_vm6 }
  0x1b   : > { %353 = vst [vmem:[#allocation2 + $0x38] sm:$0xf] %v13167_v1  ;;  %v335_v0 = vmax.f32 %v318_v51, %v10897_v55  ;;  %v10899_v8 = vld [vmem:[%s13241_s14 + $0xf0] sm:$0xff]  ;;  %v362_v12 = vpack.c.bf16 %v334_v60, %v334_v60  ;;  %1868 = vmatpush.bf16.msra.mxu2 %v12715_v4  ;;  %v12714_v13 = vld [vmem:[%s17139_s1 + $0xa8] sm:$0xff]  ;;  %v336_v14 = vmax.f32 %v319_v62, %v10898_v63  ;;  %v12705_v30 = vld [vmem:[%s17139_s1 + $0x60] sm:$0xff] }
  0x1c   : > { %354 = vst [vmem:[#allocation2 + $0x3c] sm:$0x1] %v13167_v1  ;;  %v13271_v18 = vrot.slane %v368_v16, 7  ;;  %1813 = vmatpush.bf16.msra.mxu0 %v12696_v15  ;;  %13049 = vmatpush.bf16.msra.mxu1 %v12696_v15  ;;  %v12723_v9 = vld [vmem:[%s17139_s1 + $0xf0] sm:$0xff]  ;;  %v337_v16 = vmax.f32 %v320_v6, %v10899_v8  ;;  %v12712_v34 = vld [vmem:[%s17139_s1 + $0x98] sm:$0xff]  ;;  %v12710_v62 = vld [vmem:[%s17139_s1 + $0x88] sm:$0xff] }
  0x1d   : > { %355 = vst [vmem:[#allocation2 + $0x40] sm:$0xf] %v13167_v1  ;;  %v12707_v10 = vld [vmem:[%s17139_s1 + $0x70] sm:$0xff]  ;;  %v363_v15 = vpack.c.bf16 %v335_v0, %v335_v0  ;;  %v395_v33 = vshll.u32 %v362_v12, 16  ;;  %v472_v41 = vld [vmem:[#allocation2 + $0x20] sm:$0xf]  ;;  %vm13509_vm12 = vmor %vm657_vm10, %vm658_vm11 }
  0x1e   : > { %356 = vst [vmem:[#allocation2 + $0x44] sm:$0x1] %v13167_v1  ;;  %v373_v22 = vor.u32 %v371_v17, %v13271_v18  ;;  %v360_v17 = vpack.c.bf16 %v332_v7, %v332_v7  ;;  %v365_v27 = vpack.c.bf16 %v337_v16, %v337_v16  ;;  %v478_v45 = vld [vmem:[#allocation2 + $0x28] sm:$0xf]  ;;  %v12720_v51 = vld [vmem:[%s17139_s1 + $0xd8] sm:$0xff]  ;;  %v12711_v53 = vld [vmem:[%s17139_s1 + $0x90] sm:$0xff] }
  0x1f   : > { %357 = vst [vmem:[#allocation2 + $0x48] sm:$0xf] %v13167_v1  ;;  %1869 = vmatpush.bf16.msra.mxu2 %v12714_v13  ;;  %v403_v37 = vshll.u32 %v363_v15, 16  ;;  %v12704_v52 = vld [vmem:[%s17139_s1 + $0x58] sm:$0xff]  ;;  %v460_v55 = vld [vmem:[#allocation2 + $0x10] sm:$0xf] }
  0x20   : > { %358 = vst [vmem:[#allocation2 + $0x4c] sm:$0x1] %v13167_v1  ;;  %v452_v23 = vsel %vm13278_vm4, %v373_v22, %v451_v21  ;;  %1814 = vmatpush.bf16.msra.mxu0 %v12695_v19  ;;  %13050 = vmatpush.bf16.msra.mxu1 %v12695_v19  ;;  %v12722_v19 = vld [vmem:[%s17139_s1 + $0xe8] sm:$0xff]  ;;  %v361_v22 = vpack.c.bf16 %v333_v11, %v333_v11  ;;  %v376_v28 = vshrl.u32 %v360_v17, 16  ;;  %v416_v38 = vshrl.u32 %v365_v27, 16  ;;  %v12719_v57 = vld [vmem:[%s17139_s1 + $0xd0] sm:$0xff] }
  0x21   : > { %453 = vst [vmem:[#allocation2 + $0x8] sm:$0xf] %v452_v23  ;;  %v12706_v21 = vld [vmem:[%s17139_s1 + $0x68] sm:$0xff]  ;;  %v392_v23 = vshrl.u32 %v362_v12, 16  ;;  %v379_v40 = vshll.u32 %v360_v17, 16  ;;  %v419_v48 = vshll.u32 %v365_v27, 16 }
  0x22   : > { %3953 = vst.msk [vmem:[#allocation3 + $0x8] sm:$0xf] %vm3949_vm1, %v13167_v1  ;;  %v384_v31 = vshrl.u32 %v361_v22, 16  ;;  %v13416_v39 = vrot.slane %v376_v28, 7  ;;  %v387_v43 = vshll.u32 %v361_v22, 16  ;;  %v13430_v50 = vrot.slane %v416_v38, 7 }
  0x23   : > { %3955 = vst.msk [vmem:[#allocation3 + $0x10] sm:$0xf] %vm3949_vm1, %v13167_v1  ;;  %v12703_v58 = vld [vmem:[%s17139_s1 + $0x50] sm:$0xff]  ;;  %v466_v60 = vld [vmem:[#allocation2 + $0x18] sm:$0xf]  ;;  %v374_v4 = vrot.slane %v13271_v18, 4 }
  0x24   : > { %3957 = vst.msk [vmem:[#allocation3 + $0x18] sm:$0xf] %vm3949_vm1, %v13167_v1  ;;  %1815 = vmatpush.bf16.msra.mxu0 %v12694_v24  ;;  %13051 = vmatpush.bf16.msra.mxu1 %v12694_v24  ;;  %v12713_v24 = vld [vmem:[%s17139_s1 + $0xa0] sm:$0xff]  ;;  %v13420_v42 = vrot.slane %v384_v31, 7  ;;  %v381_v54 = vor.u32 %v379_v40, %v13416_v39  ;;  %v421_v0 = vor.u32 %v419_v48, %v13430_v50  ;;  %v457_v8 = vld [vmem:[#allocation2 + $0xc] sm:$0x1] }
  0x25   : > { %3959 = vst.msk [vmem:[#allocation3 + $0x20] sm:$0xf] %vm3949_vm1, %v13167_v1  ;;  %1870 = vmatpush.bf16.msra.mxu2 %v12713_v24  ;;  %v12718_v18 = vld [vmem:[%s17139_s1 + $0xc8] sm:$0xff]  ;;  %v17180_v11 = vmov 0  ;;  %v12709_v13 = vld [vmem:[%s17139_s1 + $0x80] sm:$0xff] }
  0x26   : > { %3961 = vst.msk [vmem:[#allocation3 + $0x28] sm:$0xf] %vm3949_vm1, %v13167_v1  ;;  %v389_v56 = vor.u32 %v387_v43, %v13420_v42  ;;  %v461_v6 = vsel %vm13278_vm4, %v381_v54, %v460_v55  ;;  %v17181_v11 = vsel %vm13485_vm9, 4294967295, %v17180_v11  ;;  %v13498_v16 = vld [vmem:[#allocation2 + $0x4] sm:$0x1]  ;;  %v12732_v43 = vld [vmem:[%s17139_s1 + $0x138] sm:$0xff] }
  0x27   : > { %3963 = vst.msk [vmem:[#allocation3 + $0x30] sm:$0xf] %vm3949_vm1, %v13167_v1  ;;  %v633_v17 = vld [vmem:[#allocation2] sm:$0xe]  ;;  %vm518_vm13 = vsmask.f32 3328 }
  0x28   : > { %v12681_v29 = vld [vmem:[#allocation2 + $0x4] sm:$0xf0]  ;;  %3965 = vst.msk [vmem:[#allocation3 + $0x38] sm:$0xf] %vm3949_vm1, %v13167_v1  ;;  %1816 = vmatpush.bf16.msra.mxu0 %v12693_v25  ;;  %13052 = vmatpush.bf16.msra.mxu1 %v12693_v25  ;;  %v364_v25 = vpack.c.bf16 %v336_v14, %v336_v14  ;;  %v10901_v24 = vrot.slane %v633_v17, 9 }
  0x29   : > { %v10928_v32 = vor.u32 %v12681_v29, %v10927_v26  ;;  %3967 = vst.msk [vmem:[#allocation3 + $0x40] sm:$0xf] %vm3949_vm1, %v13167_v1  ;;  %v400_v26 = vshrl.u32 %v363_v15, 16  ;;  %v12721_v29 = vld [vmem:[%s17139_s1 + $0xe0] sm:$0xff]  ;;  %1871 = vmatpush.bf16.msra.mxu2 %v12712_v34  ;;  %v458_v15 = vsel %vm13471_vm7, %v374_v4, %v457_v8  ;;  %v634_v28 = vld [vmem:[#allocation2 + $0x8] sm:$0xe] }
  0x2a   : > { %3969 = vst.msk [vmem:[#allocation3 + $0x48] sm:$0xf] %vm3949_vm1, %v13167_v1  ;;  %v408_v35 = vshrl.u32 %v364_v25, 16  ;;  %v411_v47 = vshll.u32 %v364_v25, 16  ;;  %v662_v25 = vrot.slane %v13498_v16, 5 }
  0x2b   : > { %1817 = vmatmul.bf16.vlgmr.msra.gmra.mxu0 %v10928_v32  ;;  %3973 = vst.msk [vmem:[#allocation3 + $0x58] sm:$0xf] %vm3949_vm1, %v13167_v1  ;;  %v13405_v32 = vrot.slane %v392_v23, 7  ;;  %v13412_v36 = vrot.slane %v400_v26, 7  ;;  %vm519_vm14 = vsmask.f32 7440 }
  0x2c   : > { %3975 = vst.msk [vmem:[#allocation3 + $0x60] sm:$0xf] %vm3949_vm1, %v13167_v1  ;;  %1896 = vmatpush.bf16.msrb.mxu0 %v12724_v2  ;;  %1838 = vmatpush.bf16.msrb.mxu1 %v12708_v3  ;;  %v13425_v46 = vrot.slane %v408_v35, 7  ;;  %v484_v2 = vld [vmem:[#allocation2 + $0x30] sm:$0xf]  ;;  %v663_v34 = vsel %vm13509_vm12, %v10901_v24, %v662_v25  ;;  %v10902_v35 = vrot.slane %v634_v28, 9  ;;  %vm13564_vm15 = vmor %vm518_vm13, %vm519_vm14 }
  0x2d   : > { %3977 = vst.msk [vmem:[#allocation3 + $0x68] sm:$0xf] %vm3949_vm1, %v13167_v1  ;;  %v397_v44 = vor.u32 %v395_v33, %v13405_v32  ;;  %v405_v49 = vor.u32 %v403_v37, %v13412_v36  ;;  %1872 = vmatpush.bf16.msra.mxu2 %v12711_v53  ;;  %v490_v3 = vld [vmem:[#allocation2 + $0x38] sm:$0xf]  ;;  %v502_v33 = vld [vmem:[#allocation2] sm:$0xf] }
  0x2e   : > { %3979 = vst.msk [vmem:[#allocation3 + $0x70] sm:$0xf] %vm3949_vm1, %v13167_v1  ;;  %v413_v61 = vor.u32 %v411_v47, %v13425_v46  ;;  %v491_v14 = vsel %vm13278_vm4, %v421_v0, %v490_v3  ;;  %v503_v37 = vld [vmem:[#allocation2 + $0x8] sm:$0xf]  ;;  %v390_v28 = vrot.slane %v13420_v42, 4  ;;  %v287_v42 = vld [vmem:[%s13241_s14 + $0x38] sm:$0xff] }
  0x2f   : > { %3981 = vst.msk [vmem:[#allocation3 + $0x78] sm:$0xf] %vm3949_vm1, %v13167_v1  ;;  %v473_v59 = vsel %vm13278_vm4, %v397_v44, %v472_v41  ;;  %v479_v63 = vsel %vm13278_vm4, %v405_v49, %v478_v45  ;;  %v522_v41 = vshrl.u32 %v502_v33, 16  ;;  %v1101_v44 = vunpack.c.l.b16 %v663_v34 }
  0x30   : > { %3983 = vst.msk [vmem:[#allocation3 + $0x80] sm:$0xf] %vm3949_vm1, %v13167_v1  ;;  %1897 = vmatpush.bf16.msrb.mxu0 %v12723_v9  ;;  %1839 = vmatpush.bf16.msrb.mxu1 %v12707_v10  ;;  %v467_v9 = vsel %vm13278_vm4, %v389_v56, %v466_v60  ;;  %v12702_v10 = vld [vmem:[%s17139_s1 + $0x48] sm:$0xff]  ;;  %v485_v12 = vsel %vm13278_vm4, %v413_v61, %v484_v2  ;;  %v525_v45 = vshll.u32 %v502_v33, 16  ;;  %v536_v47 = vshrl.u32 %v503_v37, 16 }
  0x31   : > { %3985 = vst.msk [vmem:[#allocation3 + $0x88] sm:$0xf] %vm3949_vm1, %v13167_v1  ;;  %1873 = vmatpush.bf16.msra.mxu2 %v12710_v62  ;;  %v539_v48 = vshll.u32 %v503_v37, 16  ;;  %v524_v53 = vrot.slane %v522_v41, 4  ;;  %v10943_v60 = vld [vmem:[#allocation2 + $0x8] sm:$0xf] }
  0x32   : > { %3987 = vst.msk [vmem:[#allocation3 + $0x90] sm:$0xf] %vm3949_vm1, %v13167_v1  ;;  %v527_v55 = vrot.slane %v525_v45, 5  ;;  %v538_v56 = vrot.slane %v536_v47, 4  ;;  %v10884_v37 = vld [vmem:[%s13241_s14 + $0x78] sm:$0xff] }
  0x33   : > { %3989 = vst.msk [vmem:[#allocation3 + $0x98] sm:$0xf] %vm3949_vm1, %v13167_v1  ;;  %v475_v41 = vld [vmem:[#allocation2 + $0x24] sm:$0x1] }
  0x34   : > { %3991 = vst.msk [vmem:[#allocation3 + $0xa0] sm:$0xf] %vm3949_vm1, %v13167_v1  ;;  %1898 = vmatpush.bf16.msrb.mxu0 %v12722_v19  ;;  %1840 = vmatpush.bf16.msrb.mxu1 %v12706_v21  ;;  %v12717_v19 = vld [vmem:[%s17139_s1 + $0xc0] sm:$0xff]  ;;  %v528_v0 = vor.u32 %v527_v55, %v524_v53  ;;  %v10892_v55 = vld [vmem:[%s13241_s14 + $0xb8] sm:$0xff] }
  0x35   : > { %3993 = vst.msk [vmem:[#allocation3 + $0xa8] sm:$0xf] %vm3949_vm1, %v13167_v1  ;;  %1874 = vmatpush.bf16.msra.mxu2 %v12709_v13  ;;  %v12701_v21 = vld [vmem:[%s17139_s1 + $0x40] sm:$0xff] }
  0x36   : > { %3995 = vst.msk [vmem:[#allocation3 + $0xb0] sm:$0xf] %vm3949_vm1, %v13167_v1 }
  0x37   : > { %3997 = vst.msk [vmem:[#allocation3 + $0xb8] sm:$0xf] %vm3949_vm1, %v13167_v1 }
  0x38   : > { %3999 = vst.msk [vmem:[#allocation3 + $0xc0] sm:$0xf] %vm3949_vm1, %v13167_v1  ;;  %1899 = vmatpush.bf16.msrb.mxu0 %v12721_v29  ;;  %1841 = vmatpush.bf16.msrb.mxu1 %v12705_v30 }
  0x39   : > { %4001 = vst.msk [vmem:[#allocation3 + $0xc8] sm:$0xf] %vm3949_vm1, %v13167_v1 }
  0x3a   : > { %4003 = vst.msk [vmem:[#allocation3 + $0xd0] sm:$0xf] %vm3949_vm1, %v13167_v1 }
  0x3b   : > { %4005 = vst.msk [vmem:[#allocation3 + $0xd8] sm:$0xf] %vm3949_vm1, %v13167_v1 }
  0x3c   : > { %4007 = vst.msk [vmem:[#allocation3 + $0xe0] sm:$0xf] %vm3949_vm1, %v13167_v1  ;;  %1900 = vmatpush.bf16.msrb.mxu0 %v12720_v51  ;;  %1842 = vmatpush.bf16.msrb.mxu1 %v12704_v52  ;;  %v12731_v51 = vld [vmem:[%s17139_s1 + $0x130] sm:$0xff] }
  0x3d   : > { %4011 = vst.msk [vmem:[#allocation3 + $0xf0] sm:$0xf] %vm3949_vm1, %v13167_v1 }
  0x3e   : > { %4013 = vst.msk [vmem:[#allocation3 + $0xf8] sm:$0xf] %vm3949_vm1, %v13167_v1 }
  0x3f   : > { %4015 = vst.msk [vmem:[#allocation3 + $0x100] sm:$0xf] %vm3949_vm1, %v13167_v1 }
  0x40   : > { %4017 = vst.msk [vmem:[#allocation3 + $0x108] sm:$0xf] %vm3949_vm1, %v13167_v1  ;;  %1901 = vmatpush.bf16.msrb.mxu0 %v12719_v57  ;;  %1843 = vmatpush.bf16.msrb.mxu1 %v12703_v58  ;;  %v541_v57 = vrot.slane %v539_v48, 5  ;;  %v304_v48 = vmax.f32 %v287_v42, %v10884_v37 }
  0x41   : > { %4019 = vst.msk [vmem:[#allocation3 + $0x110] sm:$0xf] %vm3949_vm1, %v13167_v1 }
  0x42   : > { %4021 = vst.msk [vmem:[#allocation3 + $0x118] sm:$0xf] %vm3949_vm1, %v13167_v1  ;;  %v542_v2 = vor.u32 %v541_v57, %v538_v56  ;;  %v487_v57 = vld [vmem:[#allocation2 + $0x34] sm:$0x1] }
  0x43   : > { %4023 = vst.msk [vmem:[#allocation3 + $0x120] sm:$0xf] %vm3949_vm1, %v13167_v1 }
  0x44   : > { %4025 = vst.msk [vmem:[#allocation3 + $0x128] sm:$0xf] %vm3949_vm1, %v13167_v1  ;;  %1902 = vmatpush.bf16.msrb.mxu0 %v12718_v18  ;;  %1844 = vmatpush.bf16.msrb.mxu1 %v12702_v10 }
  0x45   : > { %4027 = vst.msk [vmem:[#allocation3 + $0x130] sm:$0xf] %vm3949_vm1, %v13167_v1 }
  0x46   : > { %474 = vst [vmem:[#allocation2 + $0x20] sm:$0xf] %v473_v59 }
  0x47   : > { %17182 = vst [vmem:[#allocation5_spill] sm:$0xff] %v17181_v11 }
  0x48   : > { %480 = vst [vmem:[#allocation2 + $0x28] sm:$0xf] %v479_v63  ;;  %1903 = vmatpush.bf16.msrb.mxu0 %v12717_v19  ;;  %1845 = vmatpush.bf16.msrb.mxu1 %v12701_v21  ;;  %v531_v63 = vshll.u32 %v13498_v16, 16  ;;  %v12729_v19 = vld [vmem:[%s17139_s1 + $0x120] sm:$0xff]  ;;  %v398_v21 = vrot.slane %v13405_v32, 4 }
  0x49   : > { %462 = vst [vmem:[#allocation2 + $0x10] sm:$0xf] %v461_v6  ;;  %v529_v6 = vrot.slane %v528_v0, 4 }
  0x4a   : > { %468 = vst [vmem:[#allocation2 + $0x18] sm:$0xf] %v467_v9  ;;  %v533_v8 = vrot.slane %v531_v63, 5  ;;  %v543_v9 = vrot.slane %v542_v2, 4  ;;  %v476_v56 = vsel %vm13471_vm7, %v398_v21, %v475_v41  ;;  %v321_v2 = vmax.f32 %v304_v48, %v10892_v55  ;;  %v12727_v21 = vld [vmem:[%s17139_s1 + $0x110] sm:$0xff] }
  0x4b   : > { %486 = vst [vmem:[#allocation2 + $0x30] sm:$0xf] %v485_v12 }
  0x4c   : > { %492 = vst [vmem:[#allocation2 + $0x38] sm:$0xf] %v491_v14  ;;  %1925 = vmatpush.bf16.msra.mxu0 %v12732_v43  ;;  %v534_v12 = vsel %vm13564_vm15, %v529_v6, %v533_v8  ;;  %v12730_v14 = vld [vmem:[%s17139_s1 + $0x128] sm:$0xff] }
  0x4d   : > { %459 = vst [vmem:[#allocation2 + $0xc] sm:$0x1] %v458_v15  ;;  %v10935_v22 = vld [vmem:[#allocation2 + $0x20] sm:$0xf]  ;;  %v1085_v16 = vunpack.c.l.b16 %v534_v12  ;;  %v481_v43 = vld [vmem:[#allocation2 + $0x2c] sm:$0x1] }
  0x4e   : > { %3954 = vst.msk [vmem:[#allocation3 + $0xc] sm:$0x1] %vm3951_vm8, %v13167_v1  ;;  %v12740_v12 = vld [vmem:[%s17139_s1 + $0x178] sm:$0xff] }
  0x4f   : > { %v12683_v23 = vld [vmem:[#allocation2 + $0x24] sm:$0xf0]  ;;  %3956 = vst.msk [vmem:[#allocation3 + $0x14] sm:$0x1] %vm3951_vm8, %v13167_v1 }
  0x50   : > { %v10936_v26 = vor.u32 %v12683_v23, %v10935_v22  ;;  %v10931_v27 = vld [vmem:[#allocation2 + $0x10] sm:$0xf]  ;;  %3958 = vst.msk [vmem:[#allocation3 + $0x1c] sm:$0x1] %vm3951_vm8, %v13167_v1  ;;  %1926 = vmatpush.bf16.msra.mxu0 %v12731_v51  ;;  %v406_v22 = vrot.slane %v13412_v36, 4 }
  0x51   : > { %v12682_v30 = vld [vmem:[#allocation2 + $0x14] sm:$0xf0]  ;;  %3960 = vst.msk [vmem:[#allocation3 + $0x24] sm:$0x1] %vm3951_vm8, %v13167_v1  ;;  %v12685_v61 = vld [vmem:[#allocation2 + $0xc] sm:$0xf0] }
  0x52   : > { %1827 = vmatmul.bf16.vlgmr.msra.gmra.mxu1 %v10936_v26  ;;  %v10932_v31 = vor.u32 %v12682_v30, %v10931_v27  ;;  %3962 = vst.msk [vmem:[#allocation3 + $0x2c] sm:$0x1] %vm3951_vm8, %v13167_v1  ;;  %v10939_v58 = vld [vmem:[#allocation2 + $0x30] sm:$0xf]  ;;  %v10944_v4 = vor.u32 %v12685_v61, %v10943_v60  ;;  %v505_v23 = vld [vmem:[#allocation2 + $0x18] sm:$0xf] }
  0x53   : > { %3964 = vst.msk [vmem:[#allocation3 + $0x34] sm:$0x1] %vm3951_vm8, %v13167_v1  ;;  %v12684_v59 = vld [vmem:[#allocation2 + $0x34] sm:$0xf0]  ;;  %v504_v15 = vld [vmem:[#allocation2 + $0x10] sm:$0xf]  ;;  %1954 = vmatpush.bf16.msra.mxu1 %v12740_v12 }
  0x54   : > { %1822 = vmatmul.bf16.gmra.mxu0 %v10932_v31  ;;  %v511_v38 = vld [vmem:[#allocation2 + $0xc] sm:$0x1]  ;;  %3966 = vst.msk [vmem:[#allocation3 + $0x3c] sm:$0x1] %vm3951_vm8, %v13167_v1  ;;  %v10940_v62 = vor.u32 %v12684_v59, %v10939_v58  ;;  %v550_v24 = vshrl.u32 %v504_v15, 16  ;;  %v382_v27 = vrot.slane %v13416_v39, 4 }
  0x55   : > { %v666_v40 = vrot.slane %v511_v38, 5  ;;  %3968 = vst.msk [vmem:[#allocation3 + $0x44] sm:$0x1] %vm3951_vm8, %v13167_v1  ;;  %v545_v3 = vshll.u32 %v511_v38, 16  ;;  %1927 = vmatpush.bf16.msra.mxu0 %v12730_v14  ;;  %v10947_v25 = vld [vmem:[#allocation2 + $0x18] sm:$0xf] }
  0x56   : > { %3970 = vst.msk [vmem:[#allocation3 + $0x4c] sm:$0x1] %vm3951_vm8, %v13167_v1  ;;  %v12686_v26 = vld [vmem:[#allocation2 + $0x1c] sm:$0xf0]  ;;  %v463_v36 = vld [vmem:[#allocation2 + $0x14] sm:$0x1] }
  0x57   : > { %v667_v49 = vsel %vm13509_vm12, %v10902_v35, %v666_v40  ;;  %3974 = vst.msk [vmem:[#allocation3 + $0x5c] sm:$0x1] %vm3951_vm8, %v13167_v1  ;;  %v547_v18 = vrot.slane %v545_v3, 5  ;;  %v414_v30 = vrot.slane %v13425_v46, 4  ;;  %v553_v31 = vshll.u32 %v504_v15, 16  ;;  %v12748_v60 = vld [vmem:[%s17139_s1 + $0x1b8] sm:$0xff] }
  0x58   : > { %v1102_v52 = vunpack.c.l.b16 %v667_v49  ;;  %3976 = vst.msk [vmem:[#allocation3 + $0x64] sm:$0x1] %vm3951_vm8, %v13167_v1  ;;  %v564_v33 = vshrl.u32 %v505_v23, 16  ;;  %v567_v34 = vshll.u32 %v505_v23, 16  ;;  %v10948_v39 = vor.u32 %v12686_v26, %v10947_v25  ;;  %v506_v35 = vld [vmem:[#allocation2 + $0x20] sm:$0xf]  ;;  %1983 = vmatpush.bf16.msrb.mxu2 %v12748_v60 }
  0x59   : > { %3978 = vst.msk [vmem:[#allocation3 + $0x6c] sm:$0x1] %vm3951_vm8, %v13167_v1  ;;  %v548_v13 = vsel %vm13564_vm15, %v543_v9, %v547_v18  ;;  %1928 = vmatpush.bf16.msra.mxu0 %v12729_v19  ;;  %v422_v38 = vrot.slane %v13430_v50, 4  ;;  %v469_v40 = vld [vmem:[#allocation2 + $0x1c] sm:$0x1]  ;;  %v552_v46 = vrot.slane %v550_v24, 4  ;;  %v488_v0 = vsel %vm13471_vm7, %v414_v30, %v487_v57 }
  0x5a   : > { %v1109_v54 = vpack.c.b16 %v1102_v52, %v1101_v44  ;;  %3980 = vst.msk [vmem:[#allocation3 + $0x74] sm:$0x1] %vm3951_vm8, %v13167_v1  ;;  %v1086_v17 = vunpack.c.l.b16 %v548_v13  ;;  %v464_v44 = vsel %vm13471_vm7, %v382_v27, %v463_v36  ;;  %v555_v45 = vrot.slane %v553_v31, 5  ;;  %v507_v50 = vld [vmem:[#allocation2 + $0x28] sm:$0xf]  ;;  %v10900_v3 = vld [vmem:[%s13241_s14 + $0xf8] sm:$0xff] }
  0x5b   : > { %3982 = vst.msk [vmem:[#allocation3 + $0x7c] sm:$0x1] %vm3951_vm8, %v13167_v1  ;;  %v578_v47 = vshrl.u32 %v506_v35, 16  ;;  %v470_v49 = vsel %vm13471_vm7, %v390_v28, %v469_v40  ;;  %v13620_v51 = vld [vmem:[#allocation2 + $0x10] sm:$0xe]  ;;  %v566_v52 = vrot.slane %v564_v33, 4  ;;  %v338_v26 = vmax.f32 %v321_v2, %v10900_v3 }
  0x5c   : > { %1875 = vmatmul.bf16.vlgmr.msra.gmra.mxu2 %v1109_v54  ;;  %3984 = vst.msk [vmem:[#allocation3 + $0x84] sm:$0x1] %vm3951_vm8, %v13167_v1  ;;  %v1093_v32 = vpack.c.b16 %v1086_v17, %v1085_v16  ;;  %v569_v53 = vrot.slane %v567_v34, 5  ;;  %v581_v54 = vshll.u32 %v506_v35, 16  ;;  %v493_v58 = vld [vmem:[#allocation2 + $0x3c] sm:$0x1] }
  0x5d   : > { %3986 = vst.msk [vmem:[#allocation3 + $0x8c] sm:$0x1] %vm3951_vm8, %v13167_v1  ;;  %v13625_v59 = vld [vmem:[#allocation2 + $0x18] sm:$0xe]  ;;  %v592_v61 = vshrl.u32 %v507_v50, 16  ;;  %v595_v63 = vshll.u32 %v507_v50, 16  ;;  %v494_v13 = vsel %vm13471_vm7, %v422_v38, %v493_v58 }
  0x5e   : > { %3988 = vst.msk [vmem:[#allocation3 + $0x94] sm:$0x1] %vm3951_vm8, %v13167_v1  ;;  %v570_v6 = vor.u32 %v569_v53, %v566_v52  ;;  %v583_v8 = vrot.slane %v581_v54, 5  ;;  %v12728_v9 = vld [vmem:[%s17139_s1 + $0x118] sm:$0xff]  ;;  %v10903_v14 = vrot.slane %v13620_v51, 9  ;;  %v12747_v16 = vld [vmem:[%s17139_s1 + $0x1b0] sm:$0xff] }
  0x5f   : > { %3990 = vst.msk [vmem:[#allocation3 + $0x9c] sm:$0x1] %vm3951_vm8, %v13167_v1  ;;  %v12756_v18 = vld [vmem:[%s17139_s1 + $0x1f8] sm:$0xff]  ;;  %v13647_v15 = vld [vmem:[#allocation2 + $0x20] sm:$0xe]  ;;  %1929 = vmatpush.bf16.msra.mxu0 %v12728_v9  ;;  %v12755_v19 = vld [vmem:[%s17139_s1 + $0x1f0] sm:$0xff]  ;;  %1984 = vmatpush.bf16.msrb.mxu2 %v12747_v16 }
  0x60   : > { %3992 = vst.msk [vmem:[#allocation3 + $0xa4] sm:$0x1] %vm3951_vm8, %v13167_v1  ;;  %v13652_v17 = vld [vmem:[#allocation2 + $0x28] sm:$0xe]  ;;  %2012 = vmatpush.bf16.msra.mxu3 %v12756_v18  ;;  %v594_v23 = vrot.slane %v592_v61, 4  ;;  %v597_v24 = vrot.slane %v595_v63, 5 }
  0x61   : > { %3994 = vst.msk [vmem:[#allocation3 + $0xac] sm:$0x1] %vm3951_vm8, %v13167_v1  ;;  %v12739_v25 = vld [vmem:[%s17139_s1 + $0x170] sm:$0xff]  ;;  %v571_v28 = vrot.slane %v570_v6, 4  ;;  %v10951_v30 = vld [vmem:[#allocation2 + $0x28] sm:$0xf] }
  0x62   : > { %1832 = vmatmul.bf16.gmra.mxu1 %v10940_v62  ;;  %3996 = vst.msk [vmem:[#allocation3 + $0xb4] sm:$0x1] %vm3951_vm8, %v13167_v1  ;;  %v580_v62 = vrot.slane %v578_v47, 4  ;;  %v12746_v31 = vld [vmem:[%s17139_s1 + $0x1a8] sm:$0xff]  ;;  %v10906_v34 = vrot.slane %v13652_v17, 9  ;;  %v12745_v51 = vld [vmem:[%s17139_s1 + $0x1a0] sm:$0xff] }
  0x63   : > { %3998 = vst.msk [vmem:[#allocation3 + $0xbc] sm:$0x1] %vm3951_vm8, %v13167_v1  ;;  %v12754_v35 = vld [vmem:[%s17139_s1 + $0x1e8] sm:$0xff]  ;;  %1930 = vmatpush.bf16.msra.mxu0 %v12727_v21  ;;  %v508_v40 = vld [vmem:[#allocation2 + $0x30] sm:$0xf]  ;;  %1955 = vmatpush.bf16.msra.mxu1 %v12739_v25 }
  0x64   : > { %1904 = vmatmul.bf16.vlgmr.msrb.gmra.mxu0 %v10944_v4  ;;  %4000 = vst.msk [vmem:[#allocation3 + $0xc4] sm:$0x1] %vm3951_vm8, %v13167_v1  ;;  %v556_v4 = vor.u32 %v555_v45, %v552_v46  ;;  %v584_v36 = vor.u32 %v583_v8, %v580_v62  ;;  %2013 = vmatpush.bf16.msra.mxu3 %v12755_v19  ;;  %v509_v52 = vld [vmem:[#allocation2 + $0x38] sm:$0xf]  ;;  %v606_v57 = vshrl.u32 %v508_v40, 16  ;;  %v609_v61 = vshll.u32 %v508_v40, 16 }
  0x65   : > { %4002 = vst.msk [vmem:[#allocation3 + $0xcc] sm:$0x1] %vm3951_vm8, %v13167_v1  ;;  %v13675_v45 = vpack.c.bf16 %v338_v26, %v338_v26  ;;  %1985 = vmatpush.bf16.msrb.mxu2 %v12746_v31  ;;  %v13691_v12 = vld [vmem:[#allocation2 + $0x30] sm:$0xe]  ;;  %v623_v16 = vshll.u32 %v509_v52, 16 }
  0x66   : > { %4004 = vst.msk [vmem:[#allocation3 + $0xd4] sm:$0x1] %vm3951_vm8, %v13167_v1  ;;  %v557_v27 = vrot.slane %v556_v4, 4  ;;  %v13679_v48 = vrot.slane %v584_v36, 4  ;;  %v611_v25 = vrot.slane %v609_v61, 5  ;;  %v12743_v40 = vld [vmem:[%s17139_s1 + $0x190] sm:$0xff] }
  0x67   : > { %4006 = vst.msk [vmem:[#allocation3 + $0xdc] sm:$0x1] %vm3951_vm8, %v13167_v1  ;;  %v424_v2 = vshrl.u32 %v13675_v45, 16  ;;  %v12750_v61 = vld [vmem:[%s17139_s1 + $0x1c8] sm:$0xff] }
  0x68   : > { %4008 = vst.msk [vmem:[#allocation3 + $0xe4] sm:$0x1] %vm3951_vm8, %v13167_v1  ;;  %2014 = vmatpush.bf16.msra.mxu3 %v12754_v35 }
  0x69   : > { %4012 = vst.msk [vmem:[#allocation3 + $0xf4] sm:$0x1] %vm3951_vm8, %v13167_v1  ;;  %1986 = vmatpush.bf16.msrb.mxu2 %v12745_v51  ;;  %v13706_v36 = vrot.slane %v424_v2, 7 }
  0x6a   : > { %4014 = vst.msk [vmem:[#allocation3 + $0xfc] sm:$0x1] %vm3951_vm8, %v13167_v1 }
  0x6b   : > { %4016 = vst.msk [vmem:[#allocation3 + $0x104] sm:$0x1] %vm3951_vm8, %v13167_v1 }
  0x6c   : > { %4018 = vst.msk [vmem:[#allocation3 + $0x10c] sm:$0x1] %vm3951_vm8, %v13167_v1 }
  0x6d   : > { %4020 = vst.msk [vmem:[#allocation3 + $0x114] sm:$0x1] %vm3951_vm8, %v13167_v1 }
  0x6e   : > { %4022 = vst.msk [vmem:[#allocation3 + $0x11c] sm:$0x1] %vm3951_vm8, %v13167_v1 }
  0x6f   : > { %4024 = vst.msk [vmem:[#allocation3 + $0x124] sm:$0x1] %vm3951_vm8, %v13167_v1 }
  0x70   : > { %4026 = vst.msk [vmem:[#allocation3 + $0x12c] sm:$0x1] %vm3951_vm8, %v13167_v1 }
  0x71   : > { %4028 = vst.msk [vmem:[#allocation3 + $0x134] sm:$0x1] %vm3951_vm8, %v13167_v1  ;;  %v482_v1 = vsel %vm13471_vm7, %v406_v22, %v481_v43  ;;  %v10904_v22 = vrot.slane %v13625_v59, 9  ;;  %v598_v43 = vor.u32 %v597_v24, %v594_v23  ;;  %v12737_v23 = vld [vmem:[%s17139_s1 + $0x160] sm:$0xff]  ;;  %v12744_v24 = vld [vmem:[%s17139_s1 + $0x198] sm:$0xff] }
  0x72   : > { %1846 = vmatmul.bf16.vlgmr.msrb.gmra.mxu1 %v1093_v32  ;;  %465 = vst [vmem:[#allocation2 + $0x14] sm:$0x1] %v464_v44  ;;  %v10905_v32 = vrot.slane %v13647_v15, 9  ;;  %v12738_v44 = vld [vmem:[%s17139_s1 + $0x168] sm:$0xff]  ;;  %1987 = vmatpush.bf16.msrb.mxu2 %v12744_v24 }
  0x73   : > { %471 = vst [vmem:[#allocation2 + $0x1c] sm:$0x1] %v470_v49  ;;  %1956 = vmatpush.bf16.msra.mxu1 %v12738_v44  ;;  %v599_v8 = vrot.slane %v598_v43, 4  ;;  %v496_v43 = vld [vmem:[#allocation2 + $0x40] sm:$0xf] }
  0x74   : > { %1909 = vmatmul.bf16.gmra.mxu0 %v10948_v39  ;;  %477 = vst [vmem:[#allocation2 + $0x24] sm:$0x1] %v476_v56  ;;  %v12687_v39 = vld [vmem:[#allocation2 + $0x2c] sm:$0xf0]  ;;  %v12725_v44 = vld [vmem:[%s17139_s1 + $0x100] sm:$0xff] }
  0x75   : > { %483 = vst [vmem:[#allocation2 + $0x2c] sm:$0x1] %v482_v1  ;;  %v10952_v49 = vor.u32 %v12687_v39, %v10951_v30  ;;  %v12752_v39 = vld [vmem:[%s17139_s1 + $0x1d8] sm:$0xff] }
  0x76   : > { %489 = vst [vmem:[#allocation2 + $0x34] sm:$0x1] %v488_v0  ;;  %v620_v0 = vshrl.u32 %v509_v52, 16  ;;  %1988 = vmatpush.bf16.msrb.mxu2 %v12743_v40 }
  0x77   : > { %495 = vst [vmem:[#allocation2 + $0x3c] sm:$0x1] %v494_v13  ;;  %v12753_v13 = vld [vmem:[%s17139_s1 + $0x1e0] sm:$0xff]  ;;  %1957 = vmatpush.bf16.msra.mxu1 %v12737_v23 }
  0x78   : > { %2015 = vmatpush.bf16.msra.mxu3 %v12753_v13 }
  0x79   : > { %v512_v33 = vld [vmem:[#allocation2 + $0x14] sm:$0x1] }
  0x7a   : > { %v513_v42 = vld [vmem:[#allocation2 + $0x1c] sm:$0x1]  ;;  %v670_v37 = vrot.slane %v512_v33, 5  ;;  %v559_v38 = vshll.u32 %v512_v33, 16  ;;  %v12726_v33 = vld [vmem:[%s17139_s1 + $0x108] sm:$0xff] }
  0x7b   : > { %v674_v46 = vrot.slane %v513_v42, 5  ;;  %v573_v41 = vshll.u32 %v513_v42, 16  ;;  %v514_v56 = vld [vmem:[#allocation2 + $0x24] sm:$0x1]  ;;  %v625_v42 = vrot.slane %v623_v16, 5  ;;  %1931 = vmatpush.bf16.msra.mxu0 %v12726_v33 }
  0x7c   : > { %v671_v50 = vsel %vm13509_vm12, %v10903_v14, %v670_v37  ;;  %v561_v47 = vrot.slane %v559_v38, 5  ;;  %v515_v1 = vld [vmem:[#allocation2 + $0x2c] sm:$0x1]  ;;  %v587_v60 = vshll.u32 %v514_v56, 16  ;;  %v678_v6 = vrot.slane %v514_v56, 5  ;;  %v12736_v38 = vld [vmem:[%s17139_s1 + $0x158] sm:$0xff]  ;;  %2016 = vmatpush.bf16.msra.mxu3 %v12752_v39 }
  0x7d   : > { %v675_v53 = vsel %vm13509_vm12, %v10904_v22, %v674_v46  ;;  %v1103_v54 = vunpack.c.l.b16 %v671_v50  ;;  %v575_v55 = vrot.slane %v573_v41, 5  ;;  %v682_v9 = vrot.slane %v515_v1, 5  ;;  %v13696_v22 = vld [vmem:[#allocation2 + $0x38] sm:$0xe]  ;;  %v12742_v56 = vld [vmem:[%s17139_s1 + $0x188] sm:$0xff]  ;;  %1958 = vmatpush.bf16.msra.mxu1 %v12736_v38 }
  0x7e   : > { %v1104_v58 = vunpack.c.l.b16 %v675_v53  ;;  %v562_v59 = vsel %vm13564_vm15, %v557_v27, %v561_v47  ;;  %v601_v18 = vshll.u32 %v515_v1, 16  ;;  %v608_v14 = vrot.slane %v606_v57, 4  ;;  %v13704_v27 = vld [vmem:[#allocation2 + $0x34] sm:$0x1]  ;;  %v13723_v15 = vld [vmem:[#allocation2 + $0x3c] sm:$0x1]  ;;  %1989 = vmatpush.bf16.msrb.mxu2 %v12742_v56 }
  0x7f   : > { %v576_v62 = vsel %vm13564_vm15, %v571_v28, %v575_v55  ;;  %v1087_v63 = vunpack.c.l.b16 %v562_v59  ;;  %v589_v21 = vrot.slane %v587_v60, 5  ;;  %v622_v28 = vrot.slane %v620_v0, 4  ;;  %v12735_v55 = vld [vmem:[%s17139_s1 + $0x150] sm:$0xff]  ;;  %v692_v57 = vld [vmem:[#allocation2 + $0x8] sm:$0xf]  ;;  %1932 = vmatpush.bf16.msra.mxu0 %v12725_v44 }
  0x80   : > { %v1110_v3 = vpack.c.b16 %v1104_v58, %v1103_v54  ;;  %v1088_v4 = vunpack.c.l.b16 %v576_v62  ;;  %v603_v26 = vrot.slane %v601_v18, 5  ;;  %v679_v30 = vsel %vm13509_vm12, %v10905_v32, %v678_v6  ;;  %v693_v62 = vld [vmem:[#allocation2 + $0x10] sm:$0xf]  ;;  %v12741_v18 = vld [vmem:[%s17139_s1 + $0x180] sm:$0xff]  ;;  %v13776_v16 = vld [vmem:[#allocation2 + $0x14] sm:$0x1] }
  0x81   : > { %v615_v31 = vshll.u32 %v13704_v27, 16  ;;  %v683_v35 = vsel %vm13509_vm12, %v10906_v34, %v682_v9  ;;  %v612_v32 = vor.u32 %v611_v25, %v608_v14  ;;  %v427_v37 = vshll.u32 %v13675_v45, 16  ;;  %v12734_v9 = vld [vmem:[%s17139_s1 + $0x148] sm:$0xff]  ;;  %1959 = vmatpush.bf16.msra.mxu1 %v12735_v55 }
  0x82   : > { %1880 = vmatmul.bf16.gmra.mxu2 %v1110_v3  ;;  %v1094_v19 = vpack.c.b16 %v1088_v4, %v1087_v63  ;;  %v590_v17 = vsel %vm13564_vm15, %v13679_v48, %v589_v21  ;;  %v604_v34 = vsel %vm13564_vm15, %v599_v8, %v603_v26  ;;  %v10907_v46 = vrot.slane %v13691_v12, 9  ;;  %v877_v63 = vld [vmem:[#allocation2 + $0x10] sm:$0xf]  ;;  %v13774_v14 = vld [vmem:[#allocation2 + $0xc] sm:$0x1] }
  0x83   : > { %v10908_v41 = vrot.slane %v13696_v22, 9  ;;  %v686_v45 = vrot.slane %v13704_v27, 5  ;;  %v626_v50 = vor.u32 %v625_v42, %v622_v28  ;;  %v629_v47 = vshll.u32 %v13723_v15, 16  ;;  %v878_v26 = vld [vmem:[#allocation2 + $0x18] sm:$0xf]  ;;  %1990 = vmatpush.bf16.msrb.mxu2 %v12741_v18 }
  0x84   : > { %1914 = vmatmul.bf16.gmra.mxu0 %v10952_v49  ;;  %1851 = vmatmul.bf16.gmra.mxu1 %v1094_v19  ;;  %v429_v48 = vor.u32 %v427_v37, %v13706_v36  ;;  %v12751_v49 = vld [vmem:[%s17139_s1 + $0x1d0] sm:$0xff]  ;;  %v1105_v51 = vunpack.c.l.b16 %v679_v30  ;;  %v1106_v52 = vunpack.c.l.b16 %v683_v35  ;;  %v690_v53 = vrot.slane %v13723_v15, 5  ;;  %v10955_v35 = vld [vmem:[#allocation2 + $0x38] sm:$0xf]  ;;  %v12749_v15 = vld [vmem:[%s17139_s1 + $0x1c0] sm:$0xff] }
  0x85   : > { %v13749_v54 = vrot.slane %v615_v31, 5  ;;  %v13757_v58 = vunpack.c.l.b16 %v590_v17  ;;  %v13759_v59 = vunpack.c.l.b16 %v604_v34  ;;  %v13761_v1 = vrot.slane %v612_v32, 4  ;;  %2017 = vmatpush.bf16.msra.mxu3 %v12751_v49  ;;  %v13780_v27 = vld [vmem:[#allocation2 + $0x14] sm:$0x1]  ;;  %v13786_v31 = vld [vmem:[#allocation2 + $0x1c] sm:$0x1]  ;;  %1960 = vmatpush.bf16.msra.mxu1 %v12734_v9 }
  0x86   : > { %v497_v60 = vsel %vm13278_vm4, %v429_v48, %v496_v43  ;;  %v709_v0 = vshrl.u32 %v692_v57, 16  ;;  %v712_v2 = vshll.u32 %v692_v57, 16  ;;  %v723_v3 = vshrl.u32 %v693_v62, 16  ;;  %v12733_v49 = vld [vmem:[%s17139_s1 + $0x140] sm:$0xff]  ;;  %v694_v18 = vld [vmem:[#allocation2 + $0x18] sm:$0xf] }
  0x87   : > { %498 = vst [vmem:[#allocation2 + $0x40] sm:$0xf] %v497_v60  ;;  %v726_v4 = vshll.u32 %v693_v62, 16  ;;  %v627_v6 = vrot.slane %v626_v50, 4  ;;  %v631_v8 = vrot.slane %v629_v47, 5  ;;  %v894_v12 = vshrl.u32 %v877_v63, 16 }
  0x88   : > { %v897_v13 = vshll.u32 %v877_v63, 16  ;;  %v711_v19 = vrot.slane %v709_v0, 4  ;;  %v714_v21 = vrot.slane %v712_v2, 5  ;;  %v1111_v22 = vpack.c.b16 %v1106_v52, %v1105_v51  ;;  %v12763_v0 = vld [vmem:[%s17139_s1 + $0x230] sm:$0xff] }
  0x89   : > { %v687_v23 = vsel %vm13509_vm12, %v10907_v46, %v686_v45  ;;  %v725_v24 = vrot.slane %v723_v3, 4  ;;  %v728_v25 = vrot.slane %v726_v4, 5  ;;  %v1095_v28 = vpack.c.b16 %v13759_v59, %v13757_v58  ;;  %2018 = vmatpush.bf16.msra.mxu3 %v12750_v61  ;;  %1961 = vmatpush.bf16.msra.mxu1 %v12733_v49 }
  0x8a   : > { %v691_v30 = vsel %vm13509_vm12, %v10908_v41, %v690_v53  ;;  %v896_v33 = vrot.slane %v894_v12, 4  ;;  %v899_v39 = vrot.slane %v897_v13, 5  ;;  %v715_v32 = vor.u32 %v714_v21, %v711_v19  ;;  %v12764_v53 = vld [vmem:[%s17139_s1 + $0x238] sm:$0xff]  ;;  %v695_v12 = vld [vmem:[#allocation2 + $0x20] sm:$0xf] }
  0x8b   : > { %v718_v42 = vshll.u32 %v13774_v14, 16  ;;  %v732_v37 = vshll.u32 %v13776_v16, 16  ;;  %v903_v38 = vshll.u32 %v13780_v27, 16  ;;  %v729_v40 = vor.u32 %v728_v25, %v725_v24  ;;  %2041 = vmatpush.bf16.msrb.mxu0 %v12764_v53  ;;  %v879_v13 = vld [vmem:[#allocation2 + $0x20] sm:$0xf] }
  0x8c   : > { %v900_v17 = vor.u32 %v899_v39, %v896_v33  ;;  %v908_v34 = vshrl.u32 %v878_v26, 16  ;;  %v911_v46 = vshll.u32 %v878_v26, 16  ;;  %v618_v41 = vsel %vm13564_vm15, %v13761_v1, %v13749_v54  ;;  %v820_v26 = vld [vmem:[#allocation2 + $0x8] sm:$0xe] }
  0x8d   : > { %v632_v43 = vsel %vm13564_vm15, %v627_v6, %v631_v8  ;;  %v905_v45 = vrot.slane %v903_v38, 5  ;;  %v917_v50 = vshll.u32 %v13786_v31, 16  ;;  %v1107_v47 = vunpack.c.l.b16 %v687_v23  ;;  %2019 = vmatpush.bf16.msra.mxu3 %v12749_v15 }
  0x8e   : > { %v12688_v44 = vld [vmem:[#allocation2 + $0x3c] sm:$0xf0]  ;;  %v901_v51 = vrot.slane %v900_v17, 4  ;;  %v910_v52 = vrot.slane %v908_v34, 4  ;;  %v1108_v54 = vunpack.c.l.b16 %v691_v30  ;;  %v716_v55 = vrot.slane %v715_v32, 4 }
  0x8f   : > { %v10956_v48 = vor.u32 %v12688_v44, %v10955_v35  ;;  %v720_v56 = vrot.slane %v718_v42, 5  ;;  %v913_v57 = vrot.slane %v911_v46, 5  ;;  %v13807_v58 = vunpack.c.l.b16 %v618_v41  ;;  %2042 = vmatpush.bf16.msrb.mxu0 %v12763_v0  ;;  %v880_v32 = vld [vmem:[#allocation2 + $0x28] sm:$0xf]  ;;  %v13826_v17 = vld [vmem:[#allocation2 + $0x24] sm:$0x1] }
  0x90   : > { %v13809_v59 = vunpack.c.l.b16 %v632_v43  ;;  %v730_v1 = vrot.slane %v729_v40, 4  ;;  %v734_v60 = vrot.slane %v732_v37, 5  ;;  %v906_v61 = vsel %vm13564_vm15, %v901_v51, %v905_v45  ;;  %v13824_v40 = vld [vmem:[#allocation2 + $0x1c] sm:$0x1] }
  0x91   : > { %v914_v62 = vor.u32 %v913_v57, %v910_v52  ;;  %v919_v63 = vrot.slane %v917_v50, 5  ;;  %v721_v2 = vsel %vm13564_vm15, %v716_v55, %v720_v56  ;;  %v1112_v4 = vpack.c.b16 %v1108_v54, %v1107_v47  ;;  %v13830_v50 = vld [vmem:[#allocation2 + $0x24] sm:$0x1] }
  0x92   : > { %1885 = vmatmul.bf16.gmra.mxu2 %v1111_v22  ;;  %v1096_v6 = vpack.c.b16 %v13809_v59, %v13807_v58  ;;  %v735_v8 = vsel %vm13564_vm15, %v730_v1, %v734_v60  ;;  %v1197_v9 = vunpack.c.l.b16 %v906_v61  ;;  %v737_v21 = vshrl.u32 %v694_v18, 16 }
  0x93   : > { %v915_v3 = vrot.slane %v914_v62, 4  ;;  %v740_v22 = vshll.u32 %v694_v18, 16  ;;  %v751_v23 = vshrl.u32 %v695_v12, 16  ;;  %v1141_v24 = vunpack.c.l.b16 %v721_v2 }
  0x94   : > { %1856 = vmatmul.bf16.gmra.mxu1 %v1095_v28  ;;  %1919 = vmatmul.bf16.gmra.mxu0 %v10956_v48  ;;  %v821_v28 = vld [vmem:[#allocation2 + $0x10] sm:$0xe]  ;;  %v754_v30 = vshll.u32 %v695_v12, 16  ;;  %v922_v33 = vshrl.u32 %v879_v13, 16  ;;  %v739_v39 = vrot.slane %v737_v21, 4  ;;  %v925_v42 = vshll.u32 %v879_v13, 16 }
  0x95   : > { %v920_v19 = vsel %vm13564_vm15, %v915_v3, %v919_v63  ;;  %v742_v35 = vrot.slane %v740_v22, 5  ;;  %v753_v15 = vrot.slane %v751_v23, 4  ;;  %v1142_v37 = vunpack.c.l.b16 %v735_v8  ;;  %v13832_v48 = vld [vmem:[#allocation2 + $0x2c] sm:$0x1]  ;;  %v10959_v23 = vld [vmem:[#allocation2 + $0x10] sm:$0xf] }
  0x96   : > { %v1198_v25 = vunpack.c.l.b16 %v920_v19  ;;  %v756_v34 = vrot.slane %v754_v30, 5  ;;  %v924_v46 = vrot.slane %v922_v33, 4  ;;  %v10909_v41 = vrot.slane %v820_v26, 9  ;;  %v12761_v19 = vld [vmem:[%s17139_s1 + $0x220] sm:$0xff]  ;;  %v696_v33 = vld [vmem:[#allocation2 + $0x28] sm:$0xf] }
  0x97   : > { %v743_v43 = vor.u32 %v742_v35, %v739_v39  ;;  %v746_v44 = vshll.u32 %v13824_v40, 16  ;;  %v760_v45 = vshll.u32 %v13826_v17, 16  ;;  %v927_v49 = vrot.slane %v925_v42, 5  ;;  %v697_v39 = vld [vmem:[#allocation2 + $0x30] sm:$0xf] }
  0x98   : > { %v1205_v38 = vpack.c.b16 %v1198_v25, %v1197_v9  ;;  %v757_v47 = vor.u32 %v756_v34, %v753_v15  ;;  %v931_v51 = vshll.u32 %v13830_v50, 16  ;;  %v936_v52 = vshrl.u32 %v880_v32, 16  ;;  %v881_v35 = vld [vmem:[#allocation2 + $0x30] sm:$0xf] }
  0x99   : > { %v846_v53 = vrot.slane %v13774_v14, 5  ;;  %v10910_v54 = vrot.slane %v821_v28, 9  ;;  %v850_v55 = vrot.slane %v13776_v16, 5  ;;  %v939_v56 = vshll.u32 %v880_v32, 16  ;;  %v12762_v14 = vld [vmem:[%s17139_s1 + $0x228] sm:$0xff] }
  0x9a   : > { %2020 = vmatmul.bf16.vlgmr.msra.gmra.mxu3 %v1205_v38  ;;  %v1149_v57 = vpack.c.b16 %v1142_v37, %v1141_v24  ;;  %v928_v58 = vor.u32 %v927_v49, %v924_v46  ;;  %v933_v59 = vrot.slane %v931_v51, 5  ;;  %v938_v1 = vrot.slane %v936_v52, 4  ;;  %2043 = vmatpush.bf16.msrb.mxu0 %v12762_v14  ;;  %v12689_v24 = vld [vmem:[#allocation2 + $0x14] sm:$0xf0]  ;;  %v823_v51 = vld [vmem:[#allocation2 + $0x20] sm:$0xe] }
  0x9b   : > { %v744_v60 = vrot.slane %v743_v43, 4  ;;  %v748_v61 = vrot.slane %v746_v44, 5  ;;  %v941_v62 = vrot.slane %v939_v56, 5  ;;  %v945_v63 = vshll.u32 %v13832_v48, 16  ;;  %v882_v38 = vld [vmem:[#allocation2 + $0x38] sm:$0xf] }
  0x9c   : > { %v758_v0 = vrot.slane %v757_v47, 4  ;;  %v762_v2 = vrot.slane %v760_v45, 5  ;;  %v929_v3 = vrot.slane %v928_v58, 4  ;;  %v847_v18 = vsel %vm13509_vm12, %v10909_v41, %v846_v53  ;;  %v822_v46 = vld [vmem:[#allocation2 + $0x18] sm:$0xe] }
  0x9d   : > { %v942_v8 = vor.u32 %v941_v62, %v938_v1  ;;  %v947_v16 = vrot.slane %v945_v63, 5  ;;  %v749_v12 = vsel %vm13564_vm15, %v744_v60, %v748_v61  ;;  %v1157_v25 = vunpack.c.l.b16 %v847_v18  ;;  %v13856_v52 = vld [vmem:[#allocation2 + $0x2c] sm:$0x1]  ;;  %v13862_v60 = vld [vmem:[#allocation2 + $0x3c] sm:$0x1] }
  0x9e   : > { %v934_v9 = vsel %vm13564_vm15, %v929_v3, %v933_v59  ;;  %v1143_v28 = vunpack.c.l.b16 %v749_v12  ;;  %2044 = vmatpush.bf16.msrb.mxu0 %v12761_v19  ;;  %v765_v32 = vshrl.u32 %v696_v33, 16  ;;  %v768_v42 = vshll.u32 %v696_v33, 16  ;;  %v13860_v59 = vld [vmem:[#allocation2 + $0x34] sm:$0x1] }
  0x9f   : > { %v943_v13 = vrot.slane %v942_v8, 4  ;;  %v1199_v21 = vunpack.c.l.b16 %v934_v9  ;;  %v779_v37 = vshrl.u32 %v697_v39, 16  ;;  %v782_v41 = vshll.u32 %v697_v39, 16 }
  0xa0   : > { %v950_v43 = vshrl.u32 %v881_v35, 16  ;;  %v953_v44 = vshll.u32 %v881_v35, 16  ;;  %v767_v45 = vrot.slane %v765_v32, 4  ;;  %v770_v47 = vrot.slane %v768_v42, 5  ;;  %v12759_v35 = vld [vmem:[%s17139_s1 + $0x210] sm:$0xff] }
  0xa1   : > { %v948_v22 = vsel %vm13564_vm15, %v943_v13, %v947_v16  ;;  %v781_v49 = vrot.slane %v779_v37, 4  ;;  %v964_v53 = vshrl.u32 %v882_v38, 16  ;;  %v10911_v56 = vrot.slane %v822_v46, 9 }
  0xa2   : > { %1890 = vmatmul.bf16.gmra.mxu2 %v1112_v4  ;;  %v851_v4 = vsel %vm13509_vm12, %v10910_v54, %v850_v55  ;;  %v1200_v30 = vunpack.c.l.b16 %v948_v22  ;;  %v10960_v54 = vor.u32 %v12689_v24, %v10959_v23  ;;  %v784_v58 = vrot.slane %v782_v41, 5  ;;  %v12760_v23 = vld [vmem:[%s17139_s1 + $0x218] sm:$0xff] }
  0xa3   : > { %v1158_v26 = vunpack.c.l.b16 %v851_v4  ;;  %v952_v61 = vrot.slane %v950_v43, 4  ;;  %v955_v62 = vrot.slane %v953_v44, 5  ;;  %v959_v63 = vshll.u32 %v13860_v59, 16  ;;  %2045 = vmatpush.bf16.msrb.mxu0 %v12760_v23  ;;  %v698_v43 = vld [vmem:[#allocation2 + $0x38] sm:$0xf] }
  0xa4   : > { %1861 = vmatmul.bf16.gmra.mxu1 %v1096_v6  ;;  %1933 = vmatmul.bf16.vlgmr.msra.gmra.mxu0 %v1149_v57  ;;  %v763_v6 = vsel %vm13564_vm15, %v758_v0, %v762_v2  ;;  %v1206_v34 = vpack.c.b16 %v1200_v30, %v1199_v21  ;;  %v13858_v57 = vld [vmem:[#allocation2 + $0x34] sm:$0x1]  ;;  %v771_v0 = vor.u32 %v770_v47, %v767_v45  ;;  %v774_v2 = vshll.u32 %v13856_v52, 16  ;;  %v699_v44 = vld [vmem:[#allocation2 + $0x40] sm:$0xf] }
  0xa5   : > { %v1144_v15 = vunpack.c.l.b16 %v763_v6  ;;  %v1165_v55 = vpack.c.b16 %v1158_v26, %v1157_v25  ;;  %v785_v3 = vor.u32 %v784_v58, %v781_v49  ;;  %v788_v14 = vshll.u32 %v13858_v57, 16  ;;  %v883_v45 = vld [vmem:[#allocation2 + $0x40] sm:$0xf] }
  0xa6   : > { %v956_v8 = vor.u32 %v955_v62, %v952_v61  ;;  %v961_v16 = vrot.slane %v959_v63, 5  ;;  %v966_v9 = vrot.slane %v964_v53, 4  ;;  %v967_v18 = vshll.u32 %v882_v38, 16  ;;  %v10963_v62 = vld [vmem:[#allocation2 + $0x20] sm:$0xf] }
  0xa7   : > { %v1150_v1 = vpack.c.b16 %v1144_v15, %v1143_v28  ;;  %v854_v4 = vrot.slane %v13824_v40, 5  ;;  %v10912_v12 = vrot.slane %v823_v51, 9  ;;  %v858_v13 = vrot.slane %v13826_v17, 5  ;;  %v499_v28 = vld [vmem:[#allocation2 + $0x44] sm:$0x1]  ;;  %2046 = vmatpush.bf16.msrb.mxu0 %v12759_v35 }
  0xa8   : > { %v973_v19 = vshll.u32 %v13862_v60, 16  ;;  %v430_v6 = vrot.slane %v13706_v36, 4  ;;  %v957_v21 = vrot.slane %v956_v8, 4  ;;  %v969_v22 = vrot.slane %v967_v18, 5  ;;  %v13891_v47 = vpop.f32.mrf.mxu0  ;;  %v12690_v63 = vld [vmem:[#allocation2 + $0x24] sm:$0xf0] }
  0xa9   : > { %v772_v24 = vrot.slane %v771_v0, 4  ;;  %v776_v25 = vrot.slane %v774_v2, 5  ;;  %v790_v26 = vrot.slane %v788_v14, 5  ;;  %v786_v40 = vrot.slane %v785_v3, 4 }
  0xaa   : > { %2025 = vmatmul.bf16.gmra.mxu3 %v1206_v34  ;;  %v962_v17 = vsel %vm13564_vm15, %v957_v21, %v961_v16  ;;  %v970_v30 = vor.u32 %v969_v22, %v966_v9  ;;  %v975_v33 = vrot.slane %v973_v19, 5  ;;  %v855_v36 = vsel %vm13509_vm12, %v10911_v56, %v854_v4  ;;  %v13893_v16 = vld [vmem:[#allocation2 + $0x3c] sm:$0x1]  ;;  %v13895_v4 = vld [vmem:[#allocation2 + $0x4c] sm:$0x1] }
  0xab   : > { %v859_v39 = vsel %vm13509_vm12, %v10912_v12, %v858_v13  ;;  %v500_v32 = vsel %vm13471_vm7, %v430_v6, %v499_v28  ;;  %v777_v42 = vsel %vm13564_vm15, %v772_v24, %v776_v25  ;;  %v1201_v37 = vunpack.c.l.b16 %v962_v17  ;;  %v824_v24 = vld [vmem:[#allocation2 + $0x28] sm:$0xe] }
  0xac   : > { %v971_v15 = vrot.slane %v970_v30, 4  ;;  %501 = vst [vmem:[#allocation2 + $0x44] sm:$0x1] %v500_v32  ;;  %v1159_v38 = vunpack.c.l.b16 %v855_v36  ;;  %v1160_v34 = vunpack.c.l.b16 %v859_v39  ;;  %v791_v46 = vsel %vm13564_vm15, %v786_v40, %v790_v26  ;;  %v825_v26 = vld [vmem:[#allocation2 + $0x30] sm:$0xe] }
  0xad   : > { %v793_v51 = vshrl.u32 %v698_v43, 16  ;;  %v796_v53 = vshll.u32 %v698_v43, 16  ;;  %v1145_v56 = vunpack.c.l.b16 %v777_v42  ;;  %v810_v58 = vshll.u32 %v699_v44, 16 }
  0xae   : > { %v976_v41 = vsel %vm13564_vm15, %v971_v15, %v975_v33  ;;  %v981_v61 = vshll.u32 %v883_v45, 16  ;;  %v1146_v0 = vunpack.c.l.b16 %v791_v46  ;;  %v10964_v12 = vor.u32 %v12690_v63, %v10963_v62 }
  0xaf   : > { %v1202_v49 = vunpack.c.l.b16 %v976_v41  ;;  %v795_v3 = vrot.slane %v793_v51, 4  ;;  %v798_v14 = vrot.slane %v796_v53, 5  ;;  %v812_v18 = vrot.slane %v810_v58, 5 }
  0xb0   : > { %v983_v21 = vrot.slane %v981_v61, 5  ;;  %v1166_v22 = vpack.c.b16 %v1160_v34, %v1159_v38  ;;  %v1151_v23 = vpack.c.b16 %v1146_v0, %v1145_v56  ;;  %v802_v33 = vshll.u32 %v13893_v16, 16  ;;  %v13909_v41 = vpop.f32.mrf.mxu0 }
  0xb1   : > { %v1207_v2 = vpack.c.b16 %v1202_v49, %v1201_v37  ;;  %v799_v25 = vor.u32 %v798_v14, %v795_v3  ;;  %v1001_v35 = vshll.u32 %v13895_v4, 16  ;;  %v12758_v37 = vld [vmem:[%s17139_s1 + $0x208] sm:$0xff]  ;;  %v10913_v38 = vrot.slane %v824_v24, 9  ;;  %v10967_v3 = vld [vmem:[#allocation2 + $0x30] sm:$0xf] }
  0xb2   : > { %1991 = vmatmul.bf16.vlgmr.msrb.gmra.mxu2 %v10960_v54  ;;  %v807_v54 = vshrl.u32 %v699_v44, 16  ;;  %v862_v34 = vrot.slane %v13856_v52, 5  ;;  %v10914_v46 = vrot.slane %v825_v26, 9  ;;  %v866_v43 = vrot.slane %v13858_v57, 5  ;;  %2047 = vmatpush.bf16.msrb.mxu0 %v12758_v37  ;;  %v12757_v52 = vld [vmem:[%s17139_s1 + $0x200] sm:$0xff] }
  0xb3   : > { %v13897_v13 = vld [vmem:[#allocation2 + $0x44] sm:$0x1]  ;;  %v1003_v49 = vrot.slane %v1001_v35, 5  ;;  %v800_v51 = vrot.slane %v799_v25, 4  ;;  %v804_v53 = vrot.slane %v802_v33, 5  ;;  %v870_v33 = vrot.slane %v13893_v16, 5 }
  0xb4   : > { %1962 = vmatmul.bf16.vlgmr.msra.gmra.mxu1 %v1165_v55  ;;  %1938 = vmatmul.bf16.gmra.mxu0 %v1150_v1  ;;  %v884_v55 = vld [vmem:[#allocation2 + $0x48] sm:$0xf]  ;;  %v978_v1 = vshrl.u32 %v883_v45, 16  ;;  %v809_v9 = vrot.slane %v807_v54, 4  ;;  %v13899_v19 = vld [vmem:[#allocation2 + $0x44] sm:$0x1]  ;;  %v867_v61 = vsel %vm13509_vm12, %v10914_v46, %v866_v43 }
  0xb5   : > { %v992_v8 = vshrl.u32 %v884_v55, 16  ;;  %v987_v40 = vshll.u32 %v13899_v19, 16  ;;  %v995_v30 = vshll.u32 %v884_v55, 16  ;;  %v816_v39 = vshll.u32 %v13897_v13, 16  ;;  %v12691_v14 = vld [vmem:[#allocation2 + $0x34] sm:$0xf0] }
  0xb6   : > { %v980_v6 = vrot.slane %v978_v1, 4  ;;  %v813_v36 = vor.u32 %v812_v18, %v809_v9  ;;  %v863_v1 = vsel %vm13509_vm12, %v10913_v38, %v862_v34  ;;  %v805_v62 = vsel %vm13564_vm15, %v800_v51, %v804_v53  ;;  %2048 = vmatpush.bf16.msrb.mxu0 %v12757_v52  ;;  %v826_v25 = vld [vmem:[#allocation2 + $0x38] sm:$0xe]  ;;  %v827_v26 = vld [vmem:[#allocation2 + $0x40] sm:$0xe] }
  0xb7   : > { %v994_v17 = vrot.slane %v992_v8, 4  ;;  %v989_v32 = vrot.slane %v987_v40, 5  ;;  %v997_v42 = vrot.slane %v995_v30, 5  ;;  %v818_v55 = vrot.slane %v816_v39, 5  ;;  %v1006_v40 = vld [vmem:[#allocation2 + $0x18] sm:$0xe] }
  0xb8   : > { %v984_v28 = vor.u32 %v983_v21, %v980_v6  ;;  %v814_v54 = vrot.slane %v813_v36, 4  ;;  %v1161_v9 = vunpack.c.l.b16 %v863_v1  ;;  %v1162_v18 = vunpack.c.l.b16 %v867_v61  ;;  %v10971_v43 = vld [vmem:[#allocation2 + $0x40] sm:$0xf] }
  0xb9   : > { %v998_v45 = vor.u32 %v997_v42, %v994_v17  ;;  %v10915_v30 = vrot.slane %v826_v25, 9  ;;  %v10916_v36 = vrot.slane %v827_v26, 9  ;;  %v874_v39 = vrot.slane %v13897_v13, 5  ;;  %v1007_v52 = vld [vmem:[#allocation2 + $0x20] sm:$0xe] }
  0xba   : > { %2030 = vmatmul.bf16.gmra.mxu3 %v1207_v2  ;;  %v985_v15 = vrot.slane %v984_v28, 4  ;;  %v819_v63 = vsel %vm13564_vm15, %v814_v54, %v818_v55  ;;  %v1005_v28 = vld [vmem:[#allocation2 + $0x10] sm:$0xe]  ;;  %v10918_v42 = vrot.slane %v1006_v40, 9  ;;  %v1035_v37 = vrot.slane %v13786_v31, 5 }
  0xbb   : > { %v999_v56 = vrot.slane %v998_v45, 4  ;;  %v1148_v6 = vunpack.c.l.b16 %v819_v63  ;;  %v871_v38 = vsel %vm13509_vm12, %v10915_v30, %v870_v33  ;;  %v875_v34 = vsel %vm13509_vm12, %v10916_v36, %v874_v39  ;;  %v1009_v25 = vld [vmem:[#allocation2 + $0x30] sm:$0xe]  ;;  %v1010_v26 = vld [vmem:[#allocation2 + $0x38] sm:$0xe] }
  0xbc   : > { %v990_v44 = vsel %vm13564_vm15, %v985_v15, %v989_v32  ;;  %v10917_v15 = vrot.slane %v1005_v28, 9  ;;  %v1031_v32 = vrot.slane %v13780_v27, 5  ;;  %v1036_v13 = vsel %vm13509_vm12, %v10918_v42, %v1035_v37 }
  0xbd   : > { %v1203_v58 = vunpack.c.l.b16 %v990_v44  ;;  %v1004_v57 = vsel %vm13564_vm15, %v999_v56, %v1003_v49  ;;  %v12692_v44 = vld [vmem:[#allocation2 + $0x44] sm:$0xf0]  ;;  %v1163_v27 = vunpack.c.l.b16 %v871_v38  ;;  %v1164_v45 = vunpack.c.l.b16 %v875_v34 }
  0xbe   : > { %v1204_v0 = vunpack.c.l.b16 %v1004_v57  ;;  %v1032_v16 = vsel %vm13509_vm12, %v10917_v15, %v1031_v32  ;;  %v1214_v31 = vunpack.c.l.b16 %v1036_v13  ;;  %v10972_v53 = vor.u32 %v12692_v44, %v10971_v43  ;;  %v1008_v56 = vld [vmem:[#allocation2 + $0x28] sm:$0xe] }
  0xbf   : > { %v1213_v49 = vunpack.c.l.b16 %v1032_v16  ;;  %v1168_v54 = vpack.c.b16 %v1164_v45, %v1163_v27  ;;  %v10919_v57 = vrot.slane %v1007_v52, 9  ;;  %v1039_v61 = vrot.slane %v13830_v50, 5  ;;  %v1012_v43 = vld [vmem:[#allocation2 + $0x48] sm:$0xe] }
  0xc0   : > { %v1208_v8 = vpack.c.b16 %v1204_v0, %v1203_v58  ;;  %v1043_v63 = vrot.slane %v13832_v48, 5  ;;  %v13958_v0 = vld [vmem:[%s17140_s2] ss:$0 sm:$0xff]  ;;  %v10921_v40 = vrot.slane %v1009_v25, 9  ;;  %v1047_v30 = vrot.slane %v13860_v59, 5 }
  0xc1   : > { %v1221_v55 = vpack.c.b16 %v1214_v31, %v1213_v49  ;;  %v10922_v33 = vrot.slane %v1010_v26, 9  ;;  %v1055_v45 = vrot.slane %v13899_v19, 5  ;;  %v10924_v49 = vrot.slane %v1012_v43, 9  ;;  %v12784_v26 = vld [vmem:[%s17141_s3 + $0x38] sm:$0xff] }
  0xc2   : > { %1996 = vmatmul.bf16.gmra.mxu2 %v10964_v12  ;;  %v1147_v12 = vunpack.c.l.b16 %v805_v62  ;;  %v10920_v62 = vrot.slane %v1008_v56, 9  ;;  %v1048_v39 = vsel %vm13509_vm12, %v10921_v40, %v1047_v30  ;;  %v1059_v31 = vrot.slane %v13895_v4, 5  ;;  %3529 = vmatpush.bf16.msrb.mxu1 %v12784_v26  ;;  %v12796_v26 = vld [vmem:[%s17141_s3 + $0x98] sm:$0xff] }
  0xc3   : > { %v1217_v42 = vunpack.c.l.b16 %v1048_v39  ;;  %v12782_v39 = vld [vmem:[%s17141_s3 + $0x28] sm:$0xff] }
  0xc4   : > { %1967 = vmatmul.bf16.gmra.mxu1 %v1166_v22  ;;  %1943 = vmatmul.bf16.gmra.mxu0 %v1151_v23  ;;  %v10968_v22 = vor.u32 %v12691_v14, %v10967_v3  ;;  %v1167_v23 = vpack.c.b16 %v1162_v18, %v1161_v9  ;;  %v1152_v24 = vpack.c.b16 %v1148_v6, %v1147_v12 }
  0xc5   : > { %v1040_v3 = vsel %vm13509_vm12, %v10919_v57, %v1039_v61  ;;  %v1044_v14 = vsel %vm13509_vm12, %v10920_v62, %v1043_v63  ;;  %v1060_v52 = vsel %vm13509_vm12, %v10924_v49, %v1059_v31  ;;  %v12779_v31 = vld [vmem:[%s17141_s3 + $0x10] sm:$0xff] }
  0xc6   : > { %v1215_v12 = vunpack.c.l.b16 %v1040_v3  ;;  %v1216_v6 = vunpack.c.l.b16 %v1044_v14  ;;  %v1220_v57 = vunpack.c.l.b16 %v1060_v52  ;;  %v12792_v52 = vld [vmem:[%s17141_s3 + $0x78] sm:$0xff] }
  0xc7   : > { %3558 = vmatpush.bf16.msra.mxu2 %v12792_v52 }
  0xca   : > { %2035 = vmatmul.bf16.gmra.mxu3 %v1208_v8  ;;  %v1819_v8 = vadd.f32 %v13958_v0, %v13891_v47  ;;  %v1051_v47 = vrot.slane %v13862_v60, 5  ;;  %v1011_v60 = vld [vmem:[#allocation2 + $0x40] sm:$0xe] }
  0xcb   : > { %v10923_v27 = vrot.slane %v1011_v60, 9 }
  0xcc   : > { %v1052_v15 = vsel %vm13509_vm12, %v10922_v33, %v1051_v47  ;;  %v12783_v33 = vld [vmem:[%s17141_s3 + $0x30] sm:$0xff] }
  0xcd   : > { %v1218_v37 = vunpack.c.l.b16 %v1052_v15  ;;  %3530 = vmatpush.bf16.msrb.mxu1 %v12783_v33 }
  0xcf   : > { %v13927_v2 = vpop.f32.mrf.mxu1  ;;  %v1223_v59 = vpack.c.b16 %v1218_v37, %v1217_v42 }
  0xd0   : > { %v1829_v4 = vadd.f32 %v13958_v0, %v13927_v2 }
  0xd1   : > { %v13929_v21 = vpop.f32.mrf.mxu0  ;;  %3531 = vmatpush.bf16.msrb.mxu1 %v12782_v39 }
  0xd2   : > { %2001 = vmatmul.bf16.gmra.mxu2 %v10968_v22  ;;  %v1824_v34 = vadd.f32 %v13958_v0, %v13929_v21  ;;  %v1056_v21 = vsel %vm13509_vm12, %v10923_v27, %v1055_v45  ;;  %v12800_v27 = vld [vmem:[%s17141_s3 + $0xb8] sm:$0xff] }
  0xd3   : > { %v1219_v56 = vunpack.c.l.b16 %v1056_v21  ;;  %3587 = vmatpush.bf16.msrb.mxu3 %v12800_v27 }
  0xd4   : > { %1972 = vmatmul.bf16.gmra.mxu1 %v1167_v23  ;;  %1948 = vmatmul.bf16.gmra.mxu0 %v1152_v24  ;;  %v1222_v23 = vpack.c.b16 %v1216_v6, %v1215_v12 }
  0xd5   : > { %v1224_v19 = vpack.c.b16 %v1220_v57, %v1219_v56  ;;  %v12807_v57 = vld [vmem:[%s17141_s3 + $0xf0] sm:$0xff] }
  0xd7   : > { %v13931_v17 = vpop.f32.mrf.mxu1 }
  0xd9   : > { %v13935_v35 = vpop.f32.mrf.mxu0 }
  0xda   : > { %v1826_v33 = vadd.f32 %v13958_v0, %v13935_v35  ;;  %v12795_v35 = vld [vmem:[%s17141_s3 + $0x90] sm:$0xff] }
  0xdf   : > { %v13947_v46 = vpop.f32.mrf.mxu1  ;;  %v1876_v18 = vpop.f32.mrf.mxu2 }
  0xe0   : > { %v1834_v6 = vadd.f32 %v13958_v0, %v13947_v46 }
  0xe1   : > { %v1905_v51 = vpop.f32.mrf.mxu0 }
  0xe2   : > { %2006 = vmatmul.bf16.gmra.mxu2 %v10972_v53 }
  0xe4   : > { %1977 = vmatmul.bf16.gmra.mxu1 %v1168_v54  ;;  %2049 = vmatmul.bf16.vlgmr.msrb.gmra.mxu0 %v1221_v55 }
  0xe7   : > { %v13949_v58 = vpop.f32.mrf.mxu1  ;;  %v13978_v32 = vpop.f32.mrf.mxu2 }
  0xe9   : > { %v13951_v1 = vpop.f32.mrf.mxu0 }
  0xef   : > { %v1847_v9 = vpop.f32.mrf.mxu1 }
  0xf0   : > { %v1848_v50 = vadd.f32 %v1847_v9, %v1819_v8 }
  0xf1   : > { %v1910_v48 = vpop.f32.mrf.mxu0 }
  0xf2   : > { %v1877_v22 = vadd.f32 %v1876_v18, %v1848_v50 }
  0xf4   : > { %v13966_v24 = vadd.f32 %v1905_v51, %v1877_v22  ;;  %2054 = vmatmul.bf16.gmra.mxu0 %v1222_v23 }
  0xf7   : > { %v13972_v36 = vpop.f32.mrf.mxu1 }
  0xf9   : > { %v13968_v28 = vpop.f32.mrf.mxu0 }
 0x101   : > { %v1915_v38 = vpop.f32.mrf.mxu0  ;;  %v1852_v16 = vpop.f32.mrf.mxu1 }
 0x102   : > { %v1853_v13 = vadd.f32 %v1852_v16, %v1824_v34  ;;  %v12780_v16 = vld [vmem:[%s17141_s3 + $0x18] sm:$0xff] }
 0x104   : > { %2059 = vmatmul.bf16.gmra.mxu0 %v1223_v59 }
 0x105   : > { %v1881_v44 = vpop.f32.mrf.mxu2 }
 0x106   : > { %v1882_v51 = vadd.f32 %v1881_v44, %v1853_v13  ;;  %v1821_v44 = vadd.f32 %v13958_v0, %v13909_v41  ;;  %v12799_v41 = vld [vmem:[%s17141_s3 + $0xb0] sm:$0xff] }
 0x107   : > { %3588 = vmatpush.bf16.msrb.mxu3 %v12799_v41 }
 0x108   : > { %v13986_v54 = vadd.f32 %v1910_v48, %v1882_v51  ;;  %v12808_v51 = vld [vmem:[%s17141_s3 + $0xf8] sm:$0xff]  ;;  %v1850_v21 = vadd.f32 %v13972_v36, %v1821_v44 }
 0x109   : > { %v13984_v53 = vpop.f32.mrf.mxu0  ;;  %v13988_v55 = vpop.f32.mrf.mxu1  ;;  %3616 = vmatpush.bf16.msra.mxu0 %v12808_v51 }
 0x10a   : > { %v1879_v36 = vadd.f32 %v13978_v32, %v1850_v21  ;;  %v12806_v32 = vld [vmem:[%s17141_s3 + $0xe8] sm:$0xff]  ;;  %v1855_v44 = vadd.f32 %v13988_v55, %v1826_v33  ;;  %v12803_v55 = vld [vmem:[%s17141_s3 + $0xd0] sm:$0xff]  ;;  %v12801_v33 = vld [vmem:[%s17141_s3 + $0xc0] sm:$0xff] }
 0x10d   : > { %v13994_v61 = vpop.f32.mrf.mxu2  ;;  %3617 = vmatpush.bf16.msra.mxu0 %v12807_v57 }
 0x10e   : > { %v1884_v52 = vadd.f32 %v13994_v61, %v1855_v44 }
 0x111   : > { %v1857_v62 = vpop.f32.mrf.mxu1  ;;  %v1920_v63 = vpop.f32.mrf.mxu0  ;;  %3618 = vmatpush.bf16.msra.mxu0 %v12806_v32  ;;  %v1913_v32 = vadd.f32 %v13968_v28, %v1884_v52  ;;  %v12786_v28 = vld [vmem:[%s17141_s3 + $0x48] sm:$0xff] }
 0x112   : > { %v1858_v3 = vadd.f32 %v1857_v62, %v1829_v4 }
 0x114   : > { %2064 = vmatmul.bf16.gmra.mxu0 %v1224_v19  ;;  %v12798_v19 = vld [vmem:[%s17141_s3 + $0xa8] sm:$0xff] }
 0x115   : > { %v1886_v14 = vpop.f32.mrf.mxu2  ;;  %3589 = vmatpush.bf16.msrb.mxu3 %v12798_v19 }
 0x116   : > { %v1887_v8 = vadd.f32 %v1886_v14, %v1858_v3  ;;  %v12778_v14 = vld [vmem:[%s17141_s3 + $0x8] sm:$0xff] }
 0x118   : > { %v13998_v9 = vadd.f32 %v1915_v38, %v1887_v8  ;;  %v12781_v38 = vld [vmem:[%s17141_s3 + $0x20] sm:$0xff]  ;;  %v1908_v8 = vadd.f32 %v13951_v1, %v1879_v36 }
 0x119   : > { %v14000_v18 = vpop.f32.mrf.mxu1  ;;  %v14002_v50 = vpop.f32.mrf.mxu0  ;;  %3532 = vmatpush.bf16.msrb.mxu1 %v12781_v38  ;;  %v12777_v38 = vld [vmem:[%s17141_s3] sm:$0xff] }
 0x11d   : > { %v14004_v12 = vpop.f32.mrf.mxu2  ;;  %3533 = vmatpush.bf16.msrb.mxu1 %v12780_v16  ;;  %v2021_v43 = vpop.f32.mrf.mxu3  ;;  %v12804_v16 = vld [vmem:[%s17141_s3 + $0xd8] sm:$0xff] }
 0x121   : > { %v1862_v48 = vpop.f32.mrf.mxu1  ;;  %v1934_v2 = vpop.f32.mrf.mxu0  ;;  %3534 = vmatpush.bf16.msrb.mxu1 %v12779_v31 }
 0x122   : > { %v1863_v22 = vadd.f32 %v1862_v48, %v1834_v6  ;;  %v1935_v4 = vadd.f32 %v1934_v2, %v13966_v24  ;;  %v12791_v24 = vld [vmem:[%s17141_s3 + $0x70] sm:$0xff]  ;;  %v12797_v6 = vld [vmem:[%s17141_s3 + $0xa0] sm:$0xff]  ;;  %v12790_v2 = vld [vmem:[%s17141_s3 + $0x68] sm:$0xff] }
 0x123   : > { %3559 = vmatpush.bf16.msra.mxu2 %v12791_v24  ;;  %3590 = vmatpush.bf16.msrb.mxu3 %v12797_v6  ;;  %v12787_v24 = vld [vmem:[%s17141_s3 + $0x50] sm:$0xff] }
 0x125   : > { %v1891_v23 = vpop.f32.mrf.mxu2  ;;  %3535 = vmatpush.bf16.msrb.mxu1 %v12778_v14 }
 0x126   : > { %v1892_v25 = vadd.f32 %v1891_v23, %v1863_v22 }
 0x127   : > { %3560 = vmatpush.bf16.msra.mxu2 %v12790_v2  ;;  %3591 = vmatpush.bf16.msrb.mxu3 %v12796_v26 }
 0x128   : > { %v14011_v40 = vadd.f32 %v1920_v63, %v1892_v25  ;;  %v2023_v63 = vpop.f32.mrf.mxu3  ;;  %v12805_v25 = vld [vmem:[%s17141_s3 + $0xe0] sm:$0xff] }
 0x129   : > { %v1936_v30 = vpop.f32.mrf.mxu0  ;;  %v14018_v46 = vpop.f32.mrf.mxu1  ;;  %3619 = vmatpush.bf16.msra.mxu0 %v12805_v25  ;;  %3536 = vmatpush.bf16.msrb.mxu1 %v12777_v38  ;;  %v2184_v25 = vld [vmem:[#allocation2 + $0xc] sm:$0x1] }
 0x12a   : > { %v1937_v23 = vadd.f32 %v1936_v30, %v1908_v8 }
 0x12b   : > { %3592 = vmatpush.bf16.msrb.mxu3 %v12795_v35 }
 0x12d   : > { %v14025_v42 = vpop.f32.mrf.mxu2  ;;  %3620 = vmatpush.bf16.msra.mxu0 %v12804_v16  ;;  %v13137_v16 = vld [vmem:[#allocation2 + $0x8] sm:$0xf] }
 0x131   : > { %v14016_v47 = vpop.f32.mrf.mxu0  ;;  %v1963_v37 = vpop.f32.mrf.mxu1  ;;  %3621 = vmatpush.bf16.msra.mxu0 %v12803_v55 }
 0x132   : > { %v1964_v62 = vadd.f32 %v1963_v37, %v1935_v4  ;;  %v1940_v51 = vadd.f32 %v14016_v47, %v13986_v54  ;;  %v1831_v54 = vadd.f32 %v13958_v0, %v13931_v17  ;;  %v12816_v17 = vld [vmem:[%s17141_s3 + $0x138] sm:$0xff] }
 0x133   : > { %3645 = vmatpush.bf16.msra.mxu1 %v12816_v17  ;;  %v2190_v17 = vld [vmem:[#allocation2 + $0x14] sm:$0x1] }
 0x135   : > { %v1992_v59 = vpop.f32.mrf.mxu2 }
 0x136   : > { %v1993_v22 = vadd.f32 %v1992_v59, %v1964_v62  ;;  %v12789_v59 = vld [vmem:[%s17141_s3 + $0x60] sm:$0xff]  ;;  %v1860_v62 = vadd.f32 %v14000_v18, %v1831_v54 }
 0x137   : > { %3561 = vmatpush.bf16.msra.mxu2 %v12789_v59  ;;  %v12793_v18 = vld [vmem:[%s17141_s3 + $0x80] sm:$0xff] }
 0x138   : > { %v2022_v39 = vadd.f32 %v2021_v43, %v1993_v22  ;;  %v12788_v43 = vld [vmem:[%s17141_s3 + $0x58] sm:$0xff]  ;;  %v12785_v54 = vld [vmem:[%s17141_s3 + $0x40] sm:$0xff] }
 0x139   : > { %v14023_v15 = vpop.f32.mrf.mxu0  ;;  %v1965_v13 = vpop.f32.mrf.mxu1 }
 0x13a   : > { %v1966_v37 = vadd.f32 %v1965_v13, %v1937_v23  ;;  %v2026_v13 = vpop.f32.mrf.mxu3  ;;  %v1942_v23 = vadd.f32 %v14023_v15, %v1913_v32 }
 0x13b   : > { %3562 = vmatpush.bf16.msra.mxu2 %v12788_v43 }
 0x13d   : > { %v1994_v45 = vpop.f32.mrf.mxu2 }
 0x13e   : > { %v1995_v31 = vadd.f32 %v1994_v45, %v1966_v37  ;;  %v12794_v45 = vld [vmem:[%s17141_s3 + $0x88] sm:$0xff] }
 0x13f   : > { %3593 = vmatpush.bf16.msrb.mxu3 %v12794_v45  ;;  %3563 = vmatpush.bf16.msra.mxu2 %v12787_v24 }
 0x140   : > { %v2024_v36 = vadd.f32 %v2023_v63, %v1995_v31  ;;  %v1836_v63 = vadd.f32 %v13958_v0, %v13949_v58  ;;  %v1889_v58 = vadd.f32 %v14004_v12, %v1860_v62  ;;  %v2237_v12 = vld [vmem:[#allocation2 + $0x4] sm:$0x1] }
 0x141   : > { %v14030_v34 = vpop.f32.mrf.mxu0  ;;  %v14057_v56 = vpop.f32.mrf.mxu1 }
 0x142   : > { %v1969_v19 = vadd.f32 %v14057_v56, %v1940_v51  ;;  %v12802_v56 = vld [vmem:[%s17141_s3 + $0xc8] sm:$0xff]  ;;  %v2028_v0 = vpop.f32.mrf.mxu3  ;;  %v1865_v38 = vadd.f32 %v14018_v46, %v1836_v63  ;;  %v1945_v46 = vadd.f32 %v14030_v34, %v13998_v9  ;;  %v2357_v51 = vld [vmem:[#allocation2] sm:$0xe]  ;;  %v1918_v55 = vadd.f32 %v13984_v53, %v1889_v58  ;;  %v2187_v53 = vld [vmem:[#allocation2 + $0x10] sm:$0xf] }
 0x143   : > { %3622 = vmatpush.bf16.msra.mxu0 %v12802_v56  ;;  %3594 = vmatpush.bf16.msrb.mxu3 %v12793_v18  ;;  %v11261_v62 = vrot.slane %v2357_v51, 9  ;;  %v11287_v18 = vld [vmem:[#allocation2] sm:$0xf]  ;;  %v2255_v63 = vshll.u32 %v2237_v12, 16  ;;  %v2193_v51 = vld [vmem:[#allocation2 + $0x18] sm:$0xf] }
 0x144   : > { %3564 = vmatpush.bf16.msra.mxu2 %v12786_v28  ;;  %v1894_v9 = vadd.f32 %v14025_v42, %v1865_v38 }
 0x145   : > { %v1997_v48 = vpop.f32.mrf.mxu2 }
 0x146   : > { %v1998_v22 = vadd.f32 %v1997_v48, %v1969_v19 }
 0x147   : > { %3623 = vmatpush.bf16.msra.mxu0 %v12801_v33 }
 0x148   : > { %v2027_v43 = vadd.f32 %v2026_v13, %v1998_v22  ;;  %3565 = vmatpush.bf16.msra.mxu2 %v12785_v54 }
 0x149   : > { %v14035_v60 = vpop.f32.mrf.mxu0  ;;  %v14088_v1 = vpop.f32.mrf.mxu1 }
 0x14a   : > { %v1971_v31 = vadd.f32 %v14088_v1, %v1942_v23  ;;  %v12815_v1 = vld [vmem:[%s17141_s3 + $0x130] sm:$0xff]  ;;  %v2031_v22 = vpop.f32.mrf.mxu3 }
 0x14b   : > { %3646 = vmatpush.bf16.msra.mxu1 %v12815_v1 }
 0x14d   : > { %v14116_v41 = vpop.f32.mrf.mxu2 }
 0x151   : > { %v14042_v49 = vpop.f32.mrf.mxu0  ;;  %v14124_v47 = vpop.f32.mrf.mxu1 }
 0x152   : > { %v1974_v24 = vadd.f32 %v14124_v47, %v1945_v46 }
 0x155   : > { %v2002_v15 = vpop.f32.mrf.mxu2 }
 0x156   : > { %v2003_v58 = vadd.f32 %v2002_v15, %v1974_v24 }
 0x159   : > { %v14067_v3 = vpop.f32.mrf.mxu0  ;;  %v1975_v52 = vpop.f32.mrf.mxu1 }
 0x15d   : > { %v2004_v38 = vpop.f32.mrf.mxu2 }
 0x161   : > { %v2050_v30 = vpop.f32.mrf.mxu0  ;;  %v1978_v15 = vpop.f32.mrf.mxu1 }
 0x162   : > { %v2051_v27 = vadd.f32 %v2050_v30, %v2022_v39  ;;  %v2229_v30 = vld [vmem:[#allocation2] sm:$0xf] }
 0x163   : > { %v2246_v48 = vshrl.u32 %v2229_v30, 16 }
 0x164   : > { %vm2070_vm0 = vcmp.ge.f32.partialorder %v2051_v27, 0.0  ;;  %v2078_v21 = vmul.f32 0.1, %v2051_v27 }
 0x165   : > { %v2248_v13 = vrot.slane %v2246_v48, 4 }
 0x166   : > { %v2086_v57 = vsel %vm2070_vm0, %v2051_v27, %v2078_v21  ;;  %v2249_v21 = vshll.u32 %v2229_v30, 16 }
 0x167   : > { %v2094_v4 = vpack.c.bf16 %v2086_v57, %v2086_v57 }
 0x169   : > { %v2103_v61 = vshrl.u32 %v2094_v4, 16  ;;  %v2052_v14 = vpop.f32.mrf.mxu0  ;;  %v2106_v2 = vshll.u32 %v2094_v4, 16  ;;  %v2251_v4 = vrot.slane %v2249_v21, 5 }
 0x16a   : > { %v2053_v8 = vadd.f32 %v2052_v14, %v2024_v36  ;;  %v2000_v14 = vadd.f32 %v14116_v41, %v1971_v31 }
 0x16b   : > { %v2105_v6 = vrot.slane %v2103_v61, 7  ;;  %v2383_v61 = vrot.slane %v2237_v12, 5  ;;  %v2252_v28 = vor.u32 %v2251_v4, %v2248_v13 }
 0x16c   : > { %vm2071_vm1 = vcmp.ge.f32.partialorder %v2053_v8, 0.0  ;;  %v2079_v26 = vmul.f32 0.1, %v2053_v8  ;;  %v2029_v33 = vadd.f32 %v2028_v0, %v2000_v14  ;;  %v12814_v0 = vld [vmem:[%s17141_s3 + $0x128] sm:$0xff] }
 0x16d   : > { %v2108_v39 = vor.u32 %v2106_v2, %v2105_v6  ;;  %v2109_v37 = vrot.slane %v2105_v6, 4  ;;  %v1923_v6 = vadd.f32 %v14002_v50, %v1894_v9  ;;  %v2253_v31 = vrot.slane %v2252_v28, 4  ;;  %3647 = vmatpush.bf16.msra.mxu1 %v12814_v0 }
 0x16e   : > { %v2087_v59 = vsel %vm2071_vm1, %v2053_v8, %v2079_v26  ;;  %v1947_v8 = vadd.f32 %v14035_v60, %v1918_v55  ;;  %v2384_v60 = vsel %vm13509_vm12, %v11261_v62, %v2383_v61 }
 0x16f   : > { %v2182_v44 = vsel %vm13278_vm4, %v2108_v39, %v13137_v16  ;;  %v2185_v27 = vsel %vm13471_vm7, %v2109_v37, %v2184_v25  ;;  %v2095_v35 = vpack.c.bf16 %v2087_v59, %v2087_v59  ;;  %v2257_v16 = vrot.slane %v2255_v63, 5 }
 0x170   : > { %2183 = vst [vmem:[#allocation2 + $0x8] sm:$0xf] %v2182_v44  ;;  %v1976_v30 = vadd.f32 %v1975_v52, %v1947_v8  ;;  %v2821_v12 = vunpack.c.l.b16 %v2384_v60  ;;  %v2032_v8 = vadd.f32 %v2031_v22, %v2003_v58 }
 0x171   : > { %2186 = vst [vmem:[#allocation2 + $0xc] sm:$0x1] %v2185_v27  ;;  %v2111_v57 = vshrl.u32 %v2095_v35, 16  ;;  %v2055_v45 = vpop.f32.mrf.mxu0  ;;  %v2114_v19 = vshll.u32 %v2095_v35, 16  ;;  %v2258_v62 = vsel %vm13564_vm15, %v2253_v31, %v2257_v16 }
 0x172   : > { %v2056_v34 = vadd.f32 %v2055_v45, %v2027_v43 }
 0x173   : > { %v2113_v36 = vrot.slane %v2111_v57, 7  ;;  %v2196_v57 = vld [vmem:[#allocation2 + $0x1c] sm:$0x1] }
 0x174   : > { %vm2072_vm3 = vcmp.ge.f32.partialorder %v2056_v34, 0.0  ;;  %v2080_v32 = vmul.f32 0.1, %v2056_v34 }
 0x175   : > { %v2116_v42 = vor.u32 %v2114_v19, %v2113_v36  ;;  %v2117_v56 = vrot.slane %v2113_v36, 4  ;;  %v1950_v36 = vadd.f32 %v14042_v49, %v14011_v40 }
 0x176   : > { %v2088_v2 = vsel %vm2072_vm3, %v2056_v34, %v2080_v32 }
 0x177   : > { %v2188_v23 = vsel %vm13278_vm4, %v2116_v42, %v2187_v53  ;;  %v2191_v41 = vsel %vm13471_vm7, %v2117_v56, %v2190_v17  ;;  %v2096_v47 = vpack.c.bf16 %v2088_v2, %v2088_v2  ;;  %v12765_v25 = vld [vmem:[#allocation2 + $0x4] sm:$0xf0]  ;;  %v2005_v42 = vadd.f32 %v2004_v38, %v1976_v30  ;;  %v2202_v38 = vld [vmem:[#allocation2 + $0x24] sm:$0x1] }
 0x178   : > { %v2358_v26 = vld [vmem:[#allocation2 + $0x8] sm:$0xe]  ;;  %2192 = vst [vmem:[#allocation2 + $0x14] sm:$0x1] %v2191_v41  ;;  %v11288_v39 = vor.u32 %v12765_v25, %v11287_v18  ;;  %v2238_v50 = vld [vmem:[#allocation2 + $0xc] sm:$0x1]  ;;  %v1952_v56 = vadd.f32 %v14067_v3, %v1923_v6  ;;  %v2033_v18 = vpop.f32.mrf.mxu3  ;;  %v1979_v22 = vadd.f32 %v1978_v15, %v1950_v36  ;;  %v2805_v3 = vunpack.c.l.b16 %v2258_v62 }
 0x179   : > { %v11262_v37 = vrot.slane %v2358_v26, 9  ;;  %2189 = vst [vmem:[#allocation2 + $0x10] sm:$0xf] %v2188_v23  ;;  %v2119_v59 = vshrl.u32 %v2096_v47, 16  ;;  %v2057_v48 = vpop.f32.mrf.mxu0  ;;  %v2387_v44 = vrot.slane %v2238_v50, 5  ;;  %v2122_v27 = vshll.u32 %v2096_v47, 16 }
 0x17a   : > { %v2058_v35 = vadd.f32 %v2057_v48, %v2029_v33  ;;  %3537 = vmatmul.bf16.vlgmr.msrb.gmra.mxu1 %v11288_v39  ;;  %v2230_v43 = vld [vmem:[#allocation2 + $0x8] sm:$0xf]  ;;  %v2269_v1 = vshll.u32 %v2238_v50, 16  ;;  %v12813_v47 = vld [vmem:[%s17141_s3 + $0x120] sm:$0xff]  ;;  %v2007_v33 = vpop.f32.mrf.mxu2  ;;  %v2034_v31 = vadd.f32 %v2033_v18, %v2005_v42 }
 0x17b   : > { %v2121_v46 = vrot.slane %v2119_v59, 7  ;;  %v2388_v21 = vsel %vm13509_vm12, %v11262_v37, %v2387_v44  ;;  %v2260_v55 = vshrl.u32 %v2230_v43, 16  ;;  %v2263_v52 = vshll.u32 %v2230_v43, 16  ;;  %v11303_v17 = vld [vmem:[#allocation2 + $0x8] sm:$0xf]  ;;  %3648 = vmatpush.bf16.msra.mxu1 %v12813_v47  ;;  %v1980_v44 = vpop.f32.mrf.mxu1 }
 0x17c   : > { %vm2073_vm5 = vcmp.ge.f32.partialorder %v2058_v35, 0.0  ;;  %v2081_v45 = vmul.f32 0.1, %v2058_v35  ;;  %v2822_v54 = vunpack.c.l.b16 %v2388_v21  ;;  %v2271_v41 = vrot.slane %v2269_v1, 5  ;;  %v2199_v39 = vld [vmem:[#allocation2 + $0x20] sm:$0xf] }
 0x17d   : > { %v2124_v9 = vor.u32 %v2122_v27, %v2121_v46  ;;  %v2125_v34 = vrot.slane %v2121_v46, 4  ;;  %v2262_v13 = vrot.slane %v2260_v55, 4  ;;  %v2265_v4 = vrot.slane %v2263_v52, 5 }
 0x17e   : > { %v2089_v19 = vsel %vm2073_vm5, %v2058_v35, %v2081_v45  ;;  %v2829_v53 = vpack.c.b16 %v2822_v54, %v2821_v12  ;;  %v2008_v54 = vadd.f32 %v2007_v33, %v1979_v22  ;;  %v1981_v1 = vadd.f32 %v1980_v44, %v1952_v56  ;;  %v12811_v22 = vld [vmem:[%s17141_s3 + $0x110] sm:$0xff] }
 0x17f   : > { %v2194_v61 = vsel %vm13278_vm4, %v2124_v9, %v2193_v51  ;;  %v2197_v14 = vsel %vm13471_vm7, %v2125_v34, %v2196_v57  ;;  %v2097_v24 = vpack.c.bf16 %v2089_v19, %v2089_v19  ;;  %v2266_v32 = vor.u32 %v2265_v4, %v2262_v13  ;;  %v14191_v49 = vld [vmem:[#allocation2 + $0x14] sm:$0x1] }
 0x180   : > { %2198 = vst [vmem:[#allocation2 + $0x1c] sm:$0x1] %v2197_v14  ;;  %3595 = vmatmul.bf16.vlgmr.msrb.gmra.mxu3 %v2829_v53  ;;  %v12769_v40 = vld [vmem:[#allocation2 + $0xc] sm:$0xf0]  ;;  %v2391_v37 = vrot.slane %v14191_v49, 5  ;;  %v2283_v45 = vshll.u32 %v14191_v49, 16 }
 0x181   : > { %2195 = vst [vmem:[#allocation2 + $0x18] sm:$0xf] %v2194_v61  ;;  %v2127_v63 = vshrl.u32 %v2097_v24, 16  ;;  %v2060_v2 = vpop.f32.mrf.mxu0  ;;  %v11304_v28 = vor.u32 %v12769_v40, %v11303_v17  ;;  %v2267_v23 = vrot.slane %v2266_v32, 4  ;;  %v2130_v25 = vshll.u32 %v2097_v24, 16  ;;  %v12812_v61 = vld [vmem:[%s17141_s3 + $0x118] sm:$0xff]  ;;  %v2036_v40 = vpop.f32.mrf.mxu3 }
 0x182   : > { %v2061_v26 = vadd.f32 %v2060_v2, %v2032_v8  ;;  %v2359_v6 = vld [vmem:[#allocation2 + $0x10] sm:$0xe]  ;;  %v2205_v24 = vld [vmem:[#allocation2 + $0x28] sm:$0xf]  ;;  %v2208_v17 = vld [vmem:[#allocation2 + $0x2c] sm:$0x1]  ;;  %3649 = vmatpush.bf16.msra.mxu1 %v12812_v61 }
 0x183   : > { %v2231_v60 = vld [vmem:[#allocation2 + $0x10] sm:$0xf]  ;;  %v2129_v58 = vrot.slane %v2127_v63, 7  ;;  %3624 = vmatmul.bf16.vlgmr.msra.gmra.mxu0 %v11304_v28  ;;  %v2272_v50 = vsel %vm13564_vm15, %v2267_v23, %v2271_v41  ;;  %v11263_v12 = vrot.slane %v2359_v6, 9  ;;  %v12832_v28 = vld [vmem:[%s17141_s3 + $0x1b8] sm:$0xff] }
 0x184   : > { %v2274_v30 = vshrl.u32 %v2231_v60, 16  ;;  %vm2074_vm6 = vcmp.ge.f32.partialorder %v2061_v26, 0.0  ;;  %v2082_v59 = vmul.f32 0.1, %v2061_v26  ;;  %v2806_v48 = vunpack.c.l.b16 %v2272_v50  ;;  %v11291_v52 = vld [vmem:[#allocation2 + $0x10] sm:$0xf]  ;;  %3703 = vmatpush.bf16.msra.mxu3 %v12832_v28 }
 0x185   : > { %v2277_v16 = vshll.u32 %v2231_v60, 16  ;;  %v2132_v27 = vor.u32 %v2130_v25, %v2129_v58  ;;  %v2133_v35 = vrot.slane %v2129_v58, 4  ;;  %v2392_v53 = vsel %vm13509_vm12, %v11263_v12, %v2391_v37  ;;  %v12840_v25 = vld [vmem:[%s17141_s3 + $0x1f8] sm:$0xff]  ;;  %v12823_v12 = vld [vmem:[%s17141_s3 + $0x170] sm:$0xff] }
 0x186   : > { %v2276_v43 = vrot.slane %v2274_v30, 4  ;;  %v2090_v0 = vsel %vm2074_vm6, %v2061_v26, %v2082_v59  ;;  %v2813_v15 = vpack.c.b16 %v2806_v48, %v2805_v3  ;;  %v2823_v47 = vunpack.c.l.b16 %v2392_v53  ;;  %v12824_v26 = vld [vmem:[%s17141_s3 + $0x178] sm:$0xff]  ;;  %v2009_v3 = vpop.f32.mrf.mxu2  ;;  %3732 = vmatpush.bf16.msrb.mxu0 %v12840_v25  ;;  %v12831_v30 = vld [vmem:[%s17141_s3 + $0x1b0] sm:$0xff]  ;;  %3650 = vmatpush.bf16.msra.mxu1 %v12811_v22  ;;  %v12829_v22 = vld [vmem:[%s17141_s3 + $0x1a0] sm:$0xff] }
 0x187   : > { %v2279_v46 = vrot.slane %v2277_v16, 5  ;;  %v2200_v51 = vsel %vm13278_vm4, %v2132_v27, %v2199_v39  ;;  %v2203_v21 = vsel %vm13471_vm7, %v2133_v35, %v2202_v38  ;;  %v2098_v55 = vpack.c.bf16 %v2090_v0, %v2090_v0  ;;  %v14203_v57 = vld [vmem:[#allocation2 + $0x1c] sm:$0x1]  ;;  %3674 = vmatpush.bf16.msrb.mxu2 %v12824_v26  ;;  %v12839_v38 = vld [vmem:[%s17141_s3 + $0x1f0] sm:$0xff]  ;;  %v12837_v25 = vld [vmem:[%s17141_s3 + $0x1e0] sm:$0xff] }
 0x188   : > { %2204 = vst [vmem:[#allocation2 + $0x24] sm:$0x1] %v2203_v21  ;;  %3566 = vmatmul.bf16.vlgmr.msra.gmra.mxu2 %v2813_v15  ;;  %v12766_v9 = vld [vmem:[#allocation2 + $0x14] sm:$0xf0]  ;;  %v2395_v8 = vrot.slane %v14203_v57, 5  ;;  %v2297_v2 = vshll.u32 %v14203_v57, 16  ;;  %3704 = vmatpush.bf16.msra.mxu3 %v12831_v30 }
 0x189   : > { %v2360_v34 = vld [vmem:[#allocation2 + $0x18] sm:$0xe]  ;;  %v2280_v13 = vor.u32 %v2279_v46, %v2276_v43  ;;  %2201 = vst [vmem:[#allocation2 + $0x20] sm:$0xf] %v2200_v51  ;;  %v2135_v4 = vshrl.u32 %v2098_v55, 16  ;;  %v2062_v36 = vpop.f32.mrf.mxu0  ;;  %v11292_v19 = vor.u32 %v12766_v9, %v11291_v52  ;;  %v2138_v14 = vshll.u32 %v2098_v55, 16 }
 0x18a   : > { %v11264_v62 = vrot.slane %v2360_v34, 9  ;;  %v2063_v32 = vadd.f32 %v2062_v36, %v2034_v31  ;;  %v2232_v42 = vld [vmem:[#allocation2 + $0x18] sm:$0xf]  ;;  %v2285_v50 = vrot.slane %v2283_v45, 5  ;;  %v2037_v43 = vadd.f32 %v2036_v40, %v2008_v54  ;;  %v12830_v46 = vld [vmem:[%s17141_s3 + $0x1a8] sm:$0xff]  ;;  %3733 = vmatpush.bf16.msrb.mxu0 %v12839_v38  ;;  %v2038_v40 = vpop.f32.mrf.mxu3 }
 0x18b   : > { %v14212_v56 = vrot.slane %v2280_v13, 4  ;;  %v2137_v49 = vrot.slane %v2135_v4, 7  ;;  %3542 = vmatmul.bf16.gmra.mxu1 %v11292_v19  ;;  %v2288_v18 = vshrl.u32 %v2232_v42, 16  ;;  %v2291_v63 = vshll.u32 %v2232_v42, 16  ;;  %v11307_v27 = vld [vmem:[#allocation2 + $0x18] sm:$0xf]  ;;  %3675 = vmatpush.bf16.msrb.mxu2 %v12823_v12 }
 0x18c   : > { %vm2075_vm8 = vcmp.ge.f32.partialorder %v2063_v32, 0.0  ;;  %v2083_v23 = vmul.f32 0.1, %v2063_v32  ;;  %v2396_v41 = vsel %vm13509_vm12, %v11264_v62, %v2395_v8  ;;  %v2010_v31 = vadd.f32 %v2009_v3, %v1981_v1  ;;  %v12810_v51 = vld [vmem:[%s17141_s3 + $0x108] sm:$0xff]  ;;  %v2211_v1 = vld [vmem:[#allocation2 + $0x30] sm:$0xf]  ;;  %3705 = vmatpush.bf16.msra.mxu3 %v12830_v46 }
 0x18d   : > { %v2140_v6 = vor.u32 %v2138_v14, %v2137_v49  ;;  %v2141_v60 = vrot.slane %v2137_v49, 4  ;;  %v2824_v33 = vunpack.c.l.b16 %v2396_v41  ;;  %v2290_v58 = vrot.slane %v2288_v18, 4  ;;  %v12838_v19 = vld [vmem:[%s17141_s3 + $0x1e8] sm:$0xff]  ;;  %3651 = vmatpush.bf16.msra.mxu1 %v12810_v51  ;;  %v2220_v12 = vld [vmem:[#allocation2 + $0x3c] sm:$0x1] }
 0x18e   : > { %v2091_v39 = vsel %vm2075_vm8, %v2063_v32, %v2083_v23  ;;  %v2293_v37 = vrot.slane %v2291_v63, 5  ;;  %v2286_v57 = vsel %vm13564_vm15, %v14212_v56, %v2285_v50  ;;  %v2299_v45 = vrot.slane %v2297_v2, 5  ;;  %v12809_v56 = vld [vmem:[%s17141_s3 + $0x100] sm:$0xff]  ;;  %3734 = vmatpush.bf16.msrb.mxu0 %v12838_v19  ;;  %v14276_v26 = vld [vmem:[#allocation2 + $0x8] sm:$0xf]  ;;  %v12828_v51 = vld [vmem:[%s17141_s3 + $0x198] sm:$0xff] }
 0x18f   : > { %v2206_v59 = vsel %vm13278_vm4, %v2140_v6, %v2205_v24  ;;  %v2209_v48 = vsel %vm13471_vm7, %v2141_v60, %v2208_v17  ;;  %v2099_v16 = vpack.c.bf16 %v2091_v39, %v2091_v39  ;;  %v2830_v44 = vpack.c.b16 %v2824_v33, %v2823_v47  ;;  %v14239_v35 = vld [vmem:[#allocation2 + $0x24] sm:$0x1]  ;;  %v12822_v24 = vld [vmem:[%s17141_s3 + $0x168] sm:$0xff]  ;;  %v2214_v17 = vld [vmem:[#allocation2 + $0x34] sm:$0x1] }
 0x190   : > { %2210 = vst [vmem:[#allocation2 + $0x2c] sm:$0x1] %v2209_v48  ;;  %v12770_v0 = vld [vmem:[#allocation2 + $0x1c] sm:$0xf0]  ;;  %v2294_v15 = vor.u32 %v2293_v37, %v2290_v58  ;;  %v2399_v4 = vrot.slane %v14239_v35, 5  ;;  %v2807_v42 = vunpack.c.l.b16 %v2286_v57  ;;  %v2311_v2 = vshll.u32 %v14239_v35, 16  ;;  %3676 = vmatpush.bf16.msrb.mxu2 %v12822_v24  ;;  %3706 = vmatpush.bf16.msra.mxu3 %v12829_v22 }
 0x191   : > { %2207 = vst [vmem:[#allocation2 + $0x28] sm:$0xf] %v2206_v59  ;;  %v2143_v21 = vshrl.u32 %v2099_v16, 16  ;;  %3600 = vmatmul.bf16.gmra.mxu3 %v2830_v44  ;;  %v2065_v55 = vpop.f32.mrf.mxu0  ;;  %v11308_v52 = vor.u32 %v12770_v0, %v11307_v27  ;;  %v2361_v54 = vld [vmem:[#allocation2 + $0x20] sm:$0xe]  ;;  %v2146_v62 = vshll.u32 %v2099_v16, 16  ;;  %v2039_v37 = vadd.f32 %v2038_v40, %v2010_v31  ;;  %3652 = vmatpush.bf16.msra.mxu1 %v12809_v56 }
 0x192   : > { %v2066_v9 = vadd.f32 %v2065_v55, %v2037_v43  ;;  %v2295_v34 = vrot.slane %v2294_v15, 4  ;;  %v11265_v13 = vrot.slane %v2361_v54, 9  ;;  %v2233_v36 = vld [vmem:[#allocation2 + $0x20] sm:$0xf]  ;;  %v2430_v27 = vshrl.u32 %v14276_v26, 16  ;;  %3735 = vmatpush.bf16.msrb.mxu0 %v12837_v25  ;;  %v12820_v54 = vld [vmem:[%s17141_s3 + $0x158] sm:$0xff] }
 0x193   : > { %v2145_v53 = vrot.slane %v2143_v21, 7  ;;  %3629 = vmatmul.bf16.gmra.mxu0 %v11308_v52  ;;  %v2302_v61 = vshrl.u32 %v2233_v36, 16  ;;  %v2305_v14 = vshll.u32 %v2233_v36, 16  ;;  %v11295_v58 = vld [vmem:[#allocation2 + $0x20] sm:$0xf]  ;;  %v12836_v21 = vld [vmem:[%s17141_s3 + $0x1d8] sm:$0xff] }
 0x194   : > { %vm2076_vm10 = vcmp.ge.f32.partialorder %v2066_v9, 0.0  ;;  %v2084_v32 = vmul.f32 0.1, %v2066_v9  ;;  %v2300_v8 = vsel %vm13564_vm15, %v2295_v34, %v2299_v45  ;;  %v14268_v23 = vsel %vm13509_vm12, %v11265_v13, %v2399_v4  ;;  %v12821_v50 = vld [vmem:[%s17141_s3 + $0x160] sm:$0xff]  ;;  %v2217_v35 = vld [vmem:[#allocation2 + $0x38] sm:$0xf]  ;;  %3707 = vmatpush.bf16.msra.mxu3 %v12828_v51 }
 0x195   : > { %v2148_v49 = vor.u32 %v2146_v62, %v2145_v53  ;;  %v2149_v18 = vrot.slane %v2145_v53, 4  ;;  %v2808_v63 = vunpack.c.l.b16 %v2300_v8  ;;  %v2304_v41 = vrot.slane %v2302_v61, 4  ;;  %3677 = vmatpush.bf16.msrb.mxu2 %v12821_v50  ;;  %v12848_v13 = vld [vmem:[%s17141_s3 + $0x238] sm:$0xff]  ;;  %v12826_v22 = vld [vmem:[%s17141_s3 + $0x188] sm:$0xff]  ;;  %v2414_v51 = vld [vmem:[#allocation2 + $0x10] sm:$0xf] }
 0x196   : > { %v2092_v28 = vsel %vm2076_vm10, %v2066_v9, %v2084_v32  ;;  %v2307_v47 = vrot.slane %v2305_v14, 5  ;;  %v2825_v15 = vunpack.c.l.b16 %v14268_v23  ;;  %v2313_v34 = vrot.slane %v2311_v2, 5  ;;  %3736 = vmatpush.bf16.msrb.mxu0 %v12836_v21  ;;  %v12835_v32 = vld [vmem:[%s17141_s3 + $0x1d0] sm:$0xff]  ;;  %3761 = vmatpush.bf16.msrb.mxu1 %v12848_v13  ;;  %v14340_v21 = vld [vmem:[#allocation2 + $0xc] sm:$0x1] }
 0x197   : > { %v2212_v3 = vsel %vm13278_vm4, %v2148_v49, %v2211_v1  ;;  %v2215_v6 = vsel %vm13471_vm7, %v2149_v18, %v2214_v17  ;;  %v2100_v60 = vpack.c.bf16 %v2092_v28, %v2092_v28  ;;  %v2814_v33 = vpack.c.b16 %v2808_v63, %v2807_v42  ;;  %v14282_v39 = vld [vmem:[#allocation2 + $0x2c] sm:$0x1]  ;;  %v12827_v17 = vld [vmem:[%s17141_s3 + $0x190] sm:$0xff] }
 0x198   : > { %2216 = vst [vmem:[#allocation2 + $0x34] sm:$0x1] %v2215_v6  ;;  %v12767_v30 = vld [vmem:[#allocation2 + $0x24] sm:$0xf0]  ;;  %v2403_v0 = vrot.slane %v14282_v39, 5  ;;  %v2308_v46 = vor.u32 %v2307_v47, %v2304_v41  ;;  %v2325_v24 = vshll.u32 %v14282_v39, 16  ;;  %3708 = vmatpush.bf16.msra.mxu3 %v12827_v17 }
 0x199   : > { %v2362_v38 = vld [vmem:[#allocation2 + $0x28] sm:$0xe]  ;;  %2213 = vst [vmem:[#allocation2 + $0x30] sm:$0xf] %v2212_v3  ;;  %v2151_v59 = vshrl.u32 %v2100_v60, 16  ;;  %3571 = vmatmul.bf16.gmra.mxu2 %v2814_v33  ;;  %v2067_v48 = vpop.f32.mrf.mxu0  ;;  %v11296_v16 = vor.u32 %v12767_v30, %v11295_v58  ;;  %v2154_v52 = vshll.u32 %v2100_v60, 16 }
 0x19a   : > { %v11266_v44 = vrot.slane %v2362_v38, 9  ;;  %v2068_v43 = vadd.f32 %v2067_v48, %v2039_v37  ;;  %v2234_v31 = vld [vmem:[#allocation2 + $0x28] sm:$0xf]  ;;  %v2309_v61 = vrot.slane %v2308_v46, 4  ;;  %3678 = vmatpush.bf16.msrb.mxu2 %v12820_v54  ;;  %v12819_v18 = vld [vmem:[%s17141_s3 + $0x150] sm:$0xff]  ;;  %v2327_v33 = vrot.slane %v2325_v24, 5  ;;  %3737 = vmatpush.bf16.msrb.mxu0 %v12835_v32 }
 0x19b   : > { %v2153_v55 = vrot.slane %v2151_v59, 7  ;;  %3547 = vmatmul.bf16.gmra.mxu1 %v11296_v16  ;;  %v2316_v57 = vshrl.u32 %v2234_v31, 16  ;;  %v2319_v45 = vshll.u32 %v2234_v31, 16  ;;  %v11311_v49 = vld [vmem:[#allocation2 + $0x28] sm:$0xf]  ;;  %v2444_v32 = vshrl.u32 %v2414_v51, 16 }
 0x19c   : > { %vm2077_vm11 = vcmp.ge.f32.partialorder %v2068_v43, 0.0  ;;  %v2085_v1 = vmul.f32 0.1, %v2068_v43  ;;  %v2404_v9 = vsel %vm13509_vm12, %v11266_v44, %v2403_v0  ;;  %v2223_v3 = vld [vmem:[#allocation2 + $0x40] sm:$0xf]  ;;  %v2314_v6 = vsel %vm13564_vm15, %v2309_v61, %v2313_v34  ;;  %v12834_v39 = vld [vmem:[%s17141_s3 + $0x1c8] sm:$0xff]  ;;  %3709 = vmatpush.bf16.msra.mxu3 %v12826_v22 }
 0x19d   : > { %v2156_v4 = vor.u32 %v2154_v52, %v2153_v55  ;;  %v2157_v36 = vrot.slane %v2153_v55, 4  ;;  %v2826_v19 = vunpack.c.l.b16 %v2404_v9  ;;  %v2318_v53 = vrot.slane %v2316_v57, 4  ;;  %v12818_v59 = vld [vmem:[%s17141_s3 + $0x148] sm:$0xff]  ;;  %v2226_v48 = vld [vmem:[#allocation2 + $0x44] sm:$0x1] }
 0x19e   : > { %v2093_v62 = vsel %vm2077_vm11, %v2068_v43, %v2085_v1  ;;  %v2321_v14 = vrot.slane %v2319_v45, 5  ;;  %3679 = vmatpush.bf16.msrb.mxu2 %v12819_v18  ;;  %v12847_v43 = vld [vmem:[%s17141_s3 + $0x230] sm:$0xff]  ;;  %v2809_v31 = vunpack.c.l.b16 %v2314_v6  ;;  %3738 = vmatpush.bf16.msrb.mxu0 %v12834_v39 }
 0x19f   : > { %v2218_v8 = vsel %vm13278_vm4, %v2156_v4, %v2217_v35  ;;  %v2221_v42 = vsel %vm13471_vm7, %v2157_v36, %v2220_v12  ;;  %v2101_v56 = vpack.c.bf16 %v2093_v62, %v2093_v62  ;;  %v2831_v40 = vpack.c.b16 %v2826_v19, %v2825_v15  ;;  %v14318_v28 = vld [vmem:[#allocation2 + $0x34] sm:$0x1]  ;;  %v12817_v4 = vld [vmem:[%s17141_s3 + $0x140] sm:$0xff]  ;;  %3762 = vmatpush.bf16.msrb.mxu1 %v12847_v43 }
 0x1a0   : > { %2222 = vst [vmem:[#allocation2 + $0x3c] sm:$0x1] %v2221_v42  ;;  %v12771_v63 = vld [vmem:[#allocation2 + $0x2c] sm:$0xf0]  ;;  %v2322_v2 = vor.u32 %v2321_v14, %v2318_v53  ;;  %v2407_v44 = vrot.slane %v14318_v28, 5  ;;  %v2432_v35 = vrot.slane %v2430_v27, 4 }
 0x1a1   : > { %2219 = vst [vmem:[#allocation2 + $0x38] sm:$0xf] %v2218_v8  ;;  %v2159_v23 = vshrl.u32 %v2101_v56, 16  ;;  %3605 = vmatmul.bf16.gmra.mxu3 %v2831_v40  ;;  %v11312_v41 = vor.u32 %v12771_v63, %v11311_v49  ;;  %v2363_v47 = vld [vmem:[#allocation2 + $0x30] sm:$0xe]  ;;  %v2162_v25 = vshll.u32 %v2101_v56, 16 }
 0x1a2   : > { %v2323_v60 = vrot.slane %v2322_v2, 4  ;;  %v2235_v58 = vld [vmem:[#allocation2 + $0x30] sm:$0xf]  ;;  %v11267_v37 = vrot.slane %v2363_v47, 9  ;;  %v2433_v12 = vshll.u32 %v14276_v26, 16  ;;  %v12825_v26 = vld [vmem:[%s17141_s3 + $0x180] sm:$0xff]  ;;  %3680 = vmatpush.bf16.msrb.mxu2 %v12818_v59 }
 0x1a3   : > { %v2161_v50 = vrot.slane %v2159_v23, 7  ;;  %3634 = vmatmul.bf16.gmra.mxu0 %v11312_v41  ;;  %v2330_v30 = vshrl.u32 %v2235_v58, 16  ;;  %v2333_v38 = vshll.u32 %v2235_v58, 16  ;;  %v12833_v27 = vld [vmem:[%s17141_s3 + $0x1c0] sm:$0xff]  ;;  %v11299_v9 = vld [vmem:[#allocation2 + $0x30] sm:$0xf]  ;;  %3710 = vmatpush.bf16.msra.mxu3 %v12825_v26 }
 0x1a4   : > { %v2328_v16 = vsel %vm13564_vm15, %v2323_v60, %v2327_v33  ;;  %v2435_v57 = vrot.slane %v2433_v12, 5  ;;  %v2339_v13 = vshll.u32 %v14318_v28, 16  ;;  %v2408_v53 = vsel %vm13509_vm12, %v11267_v37, %v2407_v44  ;;  %3739 = vmatpush.bf16.msrb.mxu0 %v12833_v27  ;;  %v2597_v2 = vld [vmem:[#allocation2 + $0x10] sm:$0xf]  ;;  %v12846_v28 = vld [vmem:[%s17141_s3 + $0x228] sm:$0xff] }
 0x1a5   : > { %v2164_v0 = vor.u32 %v2162_v25, %v2161_v50  ;;  %v2165_v15 = vrot.slane %v2161_v50, 4  ;;  %v2810_v46 = vunpack.c.l.b16 %v2328_v16  ;;  %v2332_v55 = vrot.slane %v2330_v30, 4  ;;  %v14364_v22 = vld [vmem:[#allocation2 + $0x14] sm:$0x1]  ;;  %v2598_v58 = vld [vmem:[#allocation2 + $0x18] sm:$0xf]  ;;  %3763 = vmatpush.bf16.msrb.mxu1 %v12846_v28 }
 0x1a6   : > { %v2335_v52 = vrot.slane %v2333_v38, 5  ;;  %v2436_v61 = vor.u32 %v2435_v57, %v2432_v35  ;;  %v2439_v56 = vshll.u32 %v14340_v21, 16  ;;  %v2341_v49 = vrot.slane %v2339_v13, 5  ;;  %3681 = vmatpush.bf16.msrb.mxu2 %v12817_v4  ;;  %v14368_v30 = vld [vmem:[#allocation2 + $0x14] sm:$0x1]  ;;  %v12845_v4 = vld [vmem:[%s17141_s3 + $0x220] sm:$0xff] }
 0x1a7   : > { %v2224_v45 = vsel %vm13278_vm4, %v2164_v0, %v2223_v3  ;;  %v2227_v54 = vsel %vm13471_vm7, %v2165_v15, %v2226_v48  ;;  %v2815_v1 = vpack.c.b16 %v2810_v46, %v2809_v31  ;;  %v2244_v34 = vld [vmem:[#allocation2 + $0x3c] sm:$0x1]  ;;  %v2827_v23 = vunpack.c.l.b16 %v2408_v53 }
 0x1a8   : > { %2228 = vst [vmem:[#allocation2 + $0x44] sm:$0x1] %v2227_v54  ;;  %v12768_v36 = vld [vmem:[#allocation2 + $0x34] sm:$0xf0]  ;;  %v2336_v62 = vor.u32 %v2335_v52, %v2332_v55  ;;  %v2411_v17 = vrot.slane %v2244_v34, 5  ;;  %v2353_v47 = vshll.u32 %v2244_v34, 16 }
 0x1a9   : > { %v2364_v19 = vld [vmem:[#allocation2 + $0x38] sm:$0xe]  ;;  %2225 = vst [vmem:[#allocation2 + $0x40] sm:$0xf] %v2224_v45  ;;  %3576 = vmatmul.bf16.gmra.mxu2 %v2815_v1  ;;  %v11300_v14 = vor.u32 %v12768_v36, %v11299_v9  ;;  %v2437_v25 = vrot.slane %v2436_v61, 4  ;;  %v2446_v60 = vrot.slane %v2444_v32, 4  ;;  %3764 = vmatpush.bf16.msrb.mxu1 %v12845_v4 }
 0x1aa   : > { %v11268_v24 = vrot.slane %v2364_v19, 9  ;;  %v2236_v8 = vld [vmem:[#allocation2 + $0x38] sm:$0xf]  ;;  %v2337_v42 = vrot.slane %v2336_v62, 4  ;;  %v2447_v33 = vshll.u32 %v2414_v51, 16  ;;  %v2441_v37 = vrot.slane %v2439_v56, 5 }
 0x1ab   : > { %3552 = vmatmul.bf16.gmra.mxu1 %v11300_v14  ;;  %v2344_v18 = vshrl.u32 %v2236_v8, 16  ;;  %v2347_v63 = vshll.u32 %v2236_v8, 16  ;;  %v2614_v38 = vshrl.u32 %v2597_v2, 16  ;;  %v11315_v59 = vld [vmem:[#allocation2 + $0x38] sm:$0xf]  ;;  %v2453_v44 = vshll.u32 %v14364_v22, 16 }
 0x1ac   : > { %v2412_v40 = vsel %vm13509_vm12, %v11268_v24, %v2411_v17  ;;  %v2342_v50 = vsel %vm13564_vm15, %v2337_v42, %v2341_v49  ;;  %v2449_v16 = vrot.slane %v2447_v33, 5  ;;  %v2617_v35 = vshll.u32 %v2597_v2, 16  ;;  %v14371_v52 = vld [vmem:[#allocation2 + $0x1c] sm:$0x1]  ;;  %v2415_v61 = vld [vmem:[#allocation2 + $0x18] sm:$0xf] }
 0x1ad   : > { %v2828_v41 = vunpack.c.l.b16 %v2412_v40  ;;  %v2346_v3 = vrot.slane %v2344_v18, 4  ;;  %v2349_v6 = vrot.slane %v2347_v63, 5  ;;  %v2355_v43 = vrot.slane %v2353_v47, 5  ;;  %v12773_v24 = vld [vmem:[#allocation2 + $0x14] sm:$0xf0] }
 0x1ae   : > { %v2616_v0 = vrot.slane %v2614_v38, 4  ;;  %v2628_v15 = vshrl.u32 %v2598_v58, 16  ;;  %v2631_v31 = vshll.u32 %v2598_v58, 16  ;;  %v2450_v55 = vor.u32 %v2449_v16, %v2446_v60  ;;  %v11319_v8 = vld [vmem:[#allocation2 + $0x10] sm:$0xf] }
 0x1af   : > { %v2832_v39 = vpack.c.b16 %v2828_v41, %v2827_v23  ;;  %v2350_v48 = vor.u32 %v2349_v6, %v2346_v3  ;;  %v2619_v57 = vrot.slane %v2617_v35, 5  ;;  %v2811_v26 = vunpack.c.l.b16 %v2342_v50  ;;  %v2542_v56 = vld [vmem:[#allocation2 + $0x10] sm:$0xe]  ;;  %v2541_v49 = vld [vmem:[#allocation2 + $0x8] sm:$0xe] }
 0x1b0   : > { %v12772_v12 = vld [vmem:[#allocation2 + $0x3c] sm:$0xf0]  ;;  %v2442_v27 = vsel %vm13564_vm15, %v2437_v25, %v2441_v37  ;;  %v2630_v45 = vrot.slane %v2628_v15, 4  ;;  %v2633_v54 = vrot.slane %v2631_v31, 5  ;;  %v2451_v9 = vrot.slane %v2450_v55, 4 }
 0x1b1   : > { %3610 = vmatmul.bf16.gmra.mxu3 %v2832_v39  ;;  %v11316_v46 = vor.u32 %v12772_v12, %v11315_v59  ;;  %v2351_v51 = vrot.slane %v2350_v48, 4  ;;  %v2455_v34 = vrot.slane %v2453_v44, 5  ;;  %v2623_v13 = vshll.u32 %v14368_v30, 16  ;;  %v2416_v18 = vld [vmem:[#allocation2 + $0x20] sm:$0xf]  ;;  %v12844_v12 = vld [vmem:[%s17141_s3 + $0x218] sm:$0xff] }
 0x1b2   : > { %v2620_v19 = vor.u32 %v2619_v57, %v2616_v0  ;;  %v2634_v53 = vor.u32 %v2633_v54, %v2630_v45  ;;  %v2637_v62 = vshll.u32 %v14371_v52, 16  ;;  %v2861_v40 = vunpack.c.l.b16 %v2442_v27  ;;  %v14384_v47 = vld [vmem:[#allocation2 + $0x24] sm:$0x1]  ;;  %v14386_v6 = vld [vmem:[#allocation2 + $0x1c] sm:$0x1]  ;;  %3765 = vmatpush.bf16.msrb.mxu1 %v12844_v12 }
 0x1b3   : > { %3639 = vmatmul.bf16.gmra.mxu0 %v11316_v46  ;;  %v2356_v1 = vsel %vm13564_vm15, %v2351_v51, %v2355_v43  ;;  %v2456_v14 = vsel %vm13564_vm15, %v2451_v9, %v2455_v34  ;;  %v2458_v63 = vshrl.u32 %v2415_v61, 16  ;;  %v11320_v2 = vor.u32 %v12773_v24, %v11319_v8  ;;  %v2599_v58 = vld [vmem:[#allocation2 + $0x20] sm:$0xf]  ;;  %v2600_v59 = vld [vmem:[#allocation2 + $0x28] sm:$0xf] }
 0x1b4   : > { %v2812_v36 = vunpack.c.l.b16 %v2356_v1  ;;  %v2862_v32 = vunpack.c.l.b16 %v2456_v14  ;;  %v2635_v42 = vrot.slane %v2634_v53, 4  ;;  %v2621_v28 = vrot.slane %v2620_v19, 4  ;;  %v2417_v19 = vld [vmem:[#allocation2 + $0x28] sm:$0xf]  ;;  %v14407_v8 = vld [vmem:[#allocation2 + $0x24] sm:$0x1] }
 0x1b5   : > { %v2625_v23 = vrot.slane %v2623_v13, 5  ;;  %v2639_v41 = vrot.slane %v2637_v62, 5  ;;  %v11270_v3 = vrot.slane %v2542_v56, 9  ;;  %v2460_v60 = vrot.slane %v2458_v63, 4  ;;  %v14401_v62 = vld [vmem:[#allocation2 + $0x2c] sm:$0x1] }
 0x1b6   : > { %v2816_v17 = vpack.c.b16 %v2812_v36, %v2811_v26  ;;  %v2869_v25 = vpack.c.b16 %v2862_v32, %v2861_v40  ;;  %v2461_v33 = vshll.u32 %v2415_v61, 16  ;;  %v2571_v50 = vrot.slane %v14364_v22, 5  ;;  %v12843_v56 = vld [vmem:[%s17141_s3 + $0x210] sm:$0xff] }
 0x1b7   : > { %v2640_v39 = vsel %vm13564_vm15, %v2635_v42, %v2639_v41  ;;  %v2472_v37 = vshrl.u32 %v2416_v18, 16  ;;  %v2475_v38 = vshll.u32 %v2416_v18, 16  ;;  %v11269_v48 = vrot.slane %v2541_v49, 9  ;;  %v2418_v63 = vld [vmem:[#allocation2 + $0x30] sm:$0xf]  ;;  %3766 = vmatpush.bf16.msrb.mxu1 %v12843_v56 }
 0x1b8   : > { %v2567_v16 = vrot.slane %v14340_v21, 5  ;;  %v2463_v44 = vrot.slane %v2461_v33, 5  ;;  %v2481_v35 = vshll.u32 %v14384_v47, 16  ;;  %v2626_v43 = vsel %vm13564_vm15, %v2621_v28, %v2625_v23 }
 0x1b9   : > { %3581 = vmatmul.bf16.gmra.mxu2 %v2816_v17  ;;  %v2474_v0 = vrot.slane %v2472_v37, 4  ;;  %v2477_v15 = vrot.slane %v2475_v38, 5  ;;  %v2642_v22 = vshrl.u32 %v2599_v58, 16  ;;  %v2918_v31 = vunpack.c.l.b16 %v2640_v39  ;;  %v2601_v37 = vld [vmem:[#allocation2 + $0x30] sm:$0xf] }
 0x1ba   : > { %v2464_v46 = vor.u32 %v2463_v44, %v2460_v60  ;;  %v2645_v51 = vshll.u32 %v2599_v58, 16  ;;  %v2656_v55 = vshrl.u32 %v2600_v59, 16  ;;  %v2572_v21 = vsel %vm13509_vm12, %v11270_v3, %v2571_v50  ;;  %v2544_v44 = vld [vmem:[#allocation2 + $0x20] sm:$0xe] }
 0x1bb   : > { %3653 = vmatmul.bf16.vlgmr.msra.gmra.mxu1 %v2869_v25  ;;  %v2467_v57 = vshll.u32 %v14386_v6, 16  ;;  %v2478_v26 = vor.u32 %v2477_v15, %v2474_v0  ;;  %v2659_v27 = vshll.u32 %v2600_v59, 16  ;;  %v2917_v45 = vunpack.c.l.b16 %v2626_v43 }
 0x1bc   : > { %v2483_v54 = vrot.slane %v2481_v35, 5  ;;  %v2644_v1 = vrot.slane %v2642_v22, 4  ;;  %v2658_v9 = vrot.slane %v2656_v55, 4  ;;  %v2465_v34 = vrot.slane %v2464_v46, 4  ;;  %v14416_v35 = vld [vmem:[#allocation2 + $0x34] sm:$0x1] }
 0x1bd   : > { %v2479_v13 = vrot.slane %v2478_v26, 4  ;;  %v2647_v4 = vrot.slane %v2645_v51, 5  ;;  %v2661_v36 = vrot.slane %v2659_v27, 5  ;;  %v2925_v53 = vpack.c.b16 %v2918_v31, %v2917_v45  ;;  %v2543_v22 = vld [vmem:[#allocation2 + $0x18] sm:$0xe]  ;;  %v12842_v45 = vld [vmem:[%s17141_s3 + $0x208] sm:$0xff] }
 0x1be   : > { %v2568_v61 = vsel %vm13509_vm12, %v11269_v48, %v2567_v16  ;;  %v2469_v14 = vrot.slane %v2467_v57, 5  ;;  %v2878_v32 = vunpack.c.l.b16 %v2572_v21  ;;  %v2486_v42 = vshrl.u32 %v2417_v19, 16  ;;  %v2602_v48 = vld [vmem:[#allocation2 + $0x38] sm:$0xf]  ;;  %v14420_v31 = vld [vmem:[#allocation2 + $0x2c] sm:$0x1]  ;;  %3767 = vmatpush.bf16.msrb.mxu1 %v12842_v45 }
 0x1bf   : > { %v2484_v24 = vsel %vm13564_vm15, %v2479_v13, %v2483_v54  ;;  %v2662_v17 = vor.u32 %v2661_v36, %v2658_v9  ;;  %v2648_v49 = vor.u32 %v2647_v4, %v2644_v1  ;;  %v2665_v18 = vshll.u32 %v14401_v62, 16  ;;  %v12774_v55 = vld [vmem:[#allocation2 + $0x24] sm:$0xf0]  ;;  %v11323_v13 = vld [vmem:[#allocation2 + $0x20] sm:$0xf] }
 0x1c0   : > { %v2470_v40 = vsel %vm13564_vm15, %v2465_v34, %v2469_v14  ;;  %v2877_v28 = vunpack.c.l.b16 %v2568_v61  ;;  %v2864_v23 = vunpack.c.l.b16 %v2484_v24  ;;  %v2651_v41 = vshll.u32 %v14407_v8, 16 }
 0x1c1   : > { %3711 = vmatmul.bf16.vlgmr.msra.gmra.mxu3 %v11320_v2  ;;  %v2489_v2 = vshll.u32 %v2417_v19, 16  ;;  %v2663_v25 = vrot.slane %v2662_v17, 4  ;;  %v2488_v3 = vrot.slane %v2486_v42, 4  ;;  %v2863_v58 = vunpack.c.l.b16 %v2470_v40 }
 0x1c2   : > { %v2885_v33 = vpack.c.b16 %v2878_v32, %v2877_v28  ;;  %v2500_v39 = vshrl.u32 %v2418_v63, 16  ;;  %v2503_v50 = vshll.u32 %v2418_v63, 16  ;;  %v2649_v38 = vrot.slane %v2648_v49, 4 }
 0x1c3   : > { %3740 = vmatmul.bf16.vlgmr.msrb.gmra.mxu0 %v2925_v53  ;;  %v2491_v60 = vrot.slane %v2489_v2, 5  ;;  %v2667_v59 = vrot.slane %v2665_v18, 5  ;;  %v2870_v16 = vpack.c.b16 %v2864_v23, %v2863_v58  ;;  %v2653_v0 = vrot.slane %v2651_v41, 5  ;;  %v14433_v18 = vld [vmem:[#allocation2 + $0x3c] sm:$0x1] }
 0x1c4   : > { %v2502_v12 = vrot.slane %v2500_v39, 4  ;;  %v2505_v43 = vrot.slane %v2503_v50, 5  ;;  %v2670_v51 = vshrl.u32 %v2601_v37, 16  ;;  %v2673_v57 = vshll.u32 %v2601_v37, 16  ;;  %v2419_v23 = vld [vmem:[#allocation2 + $0x38] sm:$0xf] }
 0x1c5   : > { %v2668_v15 = vsel %vm13564_vm15, %v2663_v25, %v2667_v59  ;;  %v2492_v46 = vor.u32 %v2491_v60, %v2488_v3  ;;  %v2684_v26 = vshrl.u32 %v2602_v48, 16  ;;  %v2687_v27 = vshll.u32 %v2602_v48, 16  ;;  %v2420_v41 = vld [vmem:[#allocation2 + $0x40] sm:$0xf]  ;;  %v14439_v3 = vld [vmem:[#allocation2 + $0x34] sm:$0x1] }
 0x1c6   : > { %v2506_v21 = vor.u32 %v2505_v43, %v2502_v12  ;;  %v2654_v54 = vsel %vm13564_vm15, %v2649_v38, %v2653_v0  ;;  %v11272_v1 = vrot.slane %v2544_v44, 9  ;;  %v2579_v9 = vrot.slane %v14384_v47, 5  ;;  %v12841_v50 = vld [vmem:[%s17141_s3 + $0x200] sm:$0xff] }
 0x1c7   : > { %v2509_v34 = vshll.u32 %v14416_v35, 16  ;;  %v2920_v4 = vunpack.c.l.b16 %v2668_v15  ;;  %v2495_v36 = vshll.u32 %v14420_v31, 16  ;;  %v2686_v19 = vrot.slane %v2684_v26, 4  ;;  %3768 = vmatpush.bf16.msrb.mxu1 %v12841_v50 }
 0x1c8   : > { %v2689_v53 = vrot.slane %v2687_v27, 5  ;;  %v11324_v61 = vor.u32 %v12774_v55, %v11323_v13  ;;  %v11271_v14 = vrot.slane %v2543_v22, 9  ;;  %v2575_v24 = vrot.slane %v14386_v6, 5  ;;  %v2603_v22 = vld [vmem:[#allocation2 + $0x40] sm:$0xf] }
 0x1c9   : > { %3682 = vmatmul.bf16.vlgmr.msrb.gmra.mxu2 %v2885_v33  ;;  %v2507_v17 = vrot.slane %v2506_v21, 4  ;;  %v2919_v32 = vunpack.c.l.b16 %v2654_v54  ;;  %v2493_v42 = vrot.slane %v2492_v46, 4  ;;  %v2672_v56 = vrot.slane %v2670_v51, 4  ;;  %v2545_v21 = vld [vmem:[#allocation2 + $0x28] sm:$0xe] }
 0x1ca   : > { %v2675_v40 = vrot.slane %v2673_v57, 5  ;;  %v2580_v47 = vsel %vm13509_vm12, %v11272_v1, %v2579_v9  ;;  %v2511_v49 = vrot.slane %v2509_v34, 5  ;;  %v2497_v2 = vrot.slane %v2495_v36, 5  ;;  %v2604_v57 = vld [vmem:[#allocation2 + $0x48] sm:$0xf] }
 0x1cb   : > { %3658 = vmatmul.bf16.gmra.mxu1 %v2870_v16  ;;  %v2926_v63 = vpack.c.b16 %v2920_v4, %v2919_v32  ;;  %v2690_v28 = vor.u32 %v2689_v53, %v2686_v19  ;;  %v2576_v6 = vsel %vm13509_vm12, %v11271_v14, %v2575_v24  ;;  %v2880_v60 = vunpack.c.l.b16 %v2580_v47  ;;  %v2546_v27 = vld [vmem:[#allocation2 + $0x30] sm:$0xe]  ;;  %v14450_v13 = vld [vmem:[#allocation2 + $0x44] sm:$0x1]  ;;  %v14452_v36 = vld [vmem:[#allocation2 + $0x3c] sm:$0x1] }
 0x1cc   : > { %v2512_v25 = vsel %vm13564_vm15, %v2507_v17, %v2511_v49  ;;  %v2498_v33 = vsel %vm13564_vm15, %v2493_v42, %v2497_v2  ;;  %v2676_v58 = vor.u32 %v2675_v40, %v2672_v56  ;;  %v2693_v39 = vshll.u32 %v14433_v18, 16  ;;  %v12775_v32 = vld [vmem:[#allocation2 + $0x34] sm:$0xf0] }
 0x1cd   : > { %v2514_v37 = vshrl.u32 %v2419_v23, 16  ;;  %v2517_v38 = vshll.u32 %v2419_v23, 16  ;;  %v2528_v59 = vshrl.u32 %v2420_v41, 16  ;;  %v2531_v48 = vshll.u32 %v2420_v41, 16  ;;  %v11327_v23 = vld [vmem:[#allocation2 + $0x30] sm:$0xf] }
 0x1ce   : > { %v2879_v16 = vunpack.c.l.b16 %v2576_v6  ;;  %v2866_v44 = vunpack.c.l.b16 %v2512_v25  ;;  %v2679_v12 = vshll.u32 %v14439_v3, 16  ;;  %v2691_v43 = vrot.slane %v2690_v28, 4 }
 0x1cf   : > { %v2530_v0 = vrot.slane %v2528_v59, 4  ;;  %v2533_v15 = vrot.slane %v2531_v48, 5  ;;  %v2865_v51 = vunpack.c.l.b16 %v2498_v33  ;;  %v2695_v55 = vrot.slane %v2693_v39, 5  ;;  %v14464_v59 = vld [vmem:[#allocation2 + $0x44] sm:$0x1] }
 0x1d0   : > { %v2886_v46 = vpack.c.b16 %v2880_v60, %v2879_v16  ;;  %v2677_v26 = vrot.slane %v2676_v58, 4  ;;  %v2516_v45 = vrot.slane %v2514_v37, 4  ;;  %v2519_v54 = vrot.slane %v2517_v38, 5  ;;  %v14466_v48 = vld [vmem:[#allocation2 + $0x4c] sm:$0x1] }
 0x1d1   : > { %3716 = vmatmul.bf16.gmra.mxu3 %v11324_v61  ;;  %v2871_v1 = vpack.c.b16 %v2866_v44, %v2865_v51  ;;  %v2681_v9 = vrot.slane %v2679_v12, 5  ;;  %v2696_v34 = vsel %vm13564_vm15, %v2691_v43, %v2695_v55  ;;  %v2698_v4 = vshrl.u32 %v2603_v22, 16 }
 0x1d2   : > { %v2534_v19 = vor.u32 %v2533_v15, %v2530_v0  ;;  %v2701_v53 = vshll.u32 %v2603_v22, 16  ;;  %v2712_v61 = vshrl.u32 %v2604_v57, 16  ;;  %v2715_v14 = vshll.u32 %v2604_v57, 16 }
 0x1d3   : > { %3745 = vmatmul.bf16.gmra.mxu0 %v2926_v63  ;;  %v11273_v24 = vrot.slane %v2545_v21, 9  ;;  %v11274_v17 = vrot.slane %v2546_v27, 9  ;;  %v2682_v42 = vsel %vm13564_vm15, %v2677_v26, %v2681_v9  ;;  %v2587_v56 = vrot.slane %v14416_v35, 5 }
 0x1d4   : > { %v2520_v40 = vor.u32 %v2519_v54, %v2516_v45  ;;  %v2537_v47 = vshll.u32 %v14450_v13, 16  ;;  %v2922_v49 = vunpack.c.l.b16 %v2696_v34  ;;  %v2583_v63 = vrot.slane %v14420_v31, 5 }
 0x1d5   : > { %v2523_v2 = vshll.u32 %v14452_v36, 16  ;;  %v2700_v28 = vrot.slane %v2698_v4, 4  ;;  %v2535_v41 = vrot.slane %v2534_v19, 4  ;;  %v2703_v6 = vrot.slane %v2701_v53, 5  ;;  %v2547_v4 = vld [vmem:[#allocation2 + $0x38] sm:$0xe] }
 0x1d6   : > { %v2714_v25 = vrot.slane %v2712_v61, 4  ;;  %v2717_v60 = vrot.slane %v2715_v14, 5  ;;  %v11328_v33 = vor.u32 %v12775_v32, %v11327_v23  ;;  %v2921_v58 = vunpack.c.l.b16 %v2682_v42  ;;  %v2726_v19 = vld [vmem:[#allocation2 + $0x18] sm:$0xe]  ;;  %v11331_v53 = vld [vmem:[#allocation2 + $0x40] sm:$0xf] }
 0x1d7   : > { %v2588_v39 = vsel %vm13509_vm12, %v11274_v17, %v2587_v56  ;;  %v2521_v35 = vrot.slane %v2520_v40, 4  ;;  %v2539_v50 = vrot.slane %v2537_v47, 5  ;;  %v2584_v31 = vsel %vm13509_vm12, %v11273_v24, %v2583_v63  ;;  %v12776_v61 = vld [vmem:[#allocation2 + $0x44] sm:$0xf0]  ;;  %v2725_v42 = vld [vmem:[#allocation2 + $0x10] sm:$0xe] }
 0x1d8   : > { %v2927_v37 = vpack.c.b16 %v2922_v49, %v2921_v58  ;;  %v2525_v38 = vrot.slane %v2523_v2, 5  ;;  %v2704_v44 = vor.u32 %v2703_v6, %v2700_v28  ;;  %v2718_v12 = vor.u32 %v2717_v60, %v2714_v25 }
 0x1d9   : > { %3687 = vmatmul.bf16.gmra.mxu2 %v2886_v46  ;;  %v2540_v16 = vsel %vm13564_vm15, %v2535_v41, %v2539_v50  ;;  %v2721_v43 = vshll.u32 %v14466_v48, 16  ;;  %v2882_v0 = vunpack.c.l.b16 %v2588_v39  ;;  %v2707_v22 = vshll.u32 %v14464_v59, 16  ;;  %v2727_v50 = vld [vmem:[#allocation2 + $0x20] sm:$0xe] }
 0x1da   : > { %v2526_v15 = vsel %vm13564_vm15, %v2521_v35, %v2525_v38  ;;  %v2881_v46 = vunpack.c.l.b16 %v2584_v31  ;;  %v2868_v51 = vunpack.c.l.b16 %v2540_v16  ;;  %v2705_v55 = vrot.slane %v2704_v44, 4  ;;  %v2728_v35 = vld [vmem:[#allocation2 + $0x28] sm:$0xe] }
 0x1db   : > { %3663 = vmatmul.bf16.gmra.mxu1 %v2871_v1  ;;  %v2719_v21 = vrot.slane %v2718_v12, 4  ;;  %v2723_v57 = vrot.slane %v2721_v43, 5  ;;  %v2867_v27 = vunpack.c.l.b16 %v2526_v15  ;;  %v2709_v45 = vrot.slane %v2707_v22, 5  ;;  %v2548_v1 = vld [vmem:[#allocation2 + $0x40] sm:$0xe] }
 0x1dc   : > { %v2887_v26 = vpack.c.b16 %v2882_v0, %v2881_v46  ;;  %v11276_v14 = vrot.slane %v2548_v1, 9  ;;  %v2595_v24 = vrot.slane %v14450_v13, 5  ;;  %v11275_v56 = vrot.slane %v2547_v4, 9 }
 0x1dd   : > { %v2872_v54 = vpack.c.b16 %v2868_v51, %v2867_v27  ;;  %v2710_v9 = vsel %vm13564_vm15, %v2705_v55, %v2709_v45  ;;  %v2724_v34 = vsel %vm13564_vm15, %v2719_v21, %v2723_v57  ;;  %v2591_v40 = vrot.slane %v14452_v36, 5  ;;  %v2729_v57 = vld [vmem:[#allocation2 + $0x30] sm:$0xe] }
 0x1de   : > { %v2923_v17 = vunpack.c.l.b16 %v2710_v9  ;;  %v2924_v32 = vunpack.c.l.b16 %v2724_v34  ;;  %v11278_v47 = vrot.slane %v2726_v19, 9  ;;  %v2755_v49 = vrot.slane %v14371_v52, 5 }
 0x1df   : > { %v11332_v63 = vor.u32 %v12776_v61, %v11331_v53  ;;  %v2596_v2 = vsel %vm13509_vm12, %v11276_v14, %v2595_v24  ;;  %v11277_v28 = vrot.slane %v2725_v42, 9  ;;  %v2751_v23 = vrot.slane %v14368_v30, 5 }
 0x1e0   : > { %v2928_v41 = vpack.c.b16 %v2924_v32, %v2923_v17  ;;  %v2592_v13 = vsel %vm13509_vm12, %v11275_v56, %v2591_v40  ;;  %v2756_v6 = vsel %vm13509_vm12, %v11278_v47, %v2755_v49  ;;  %v2884_v36 = vunpack.c.l.b16 %v2596_v2  ;;  %v2731_v17 = vld [vmem:[#allocation2 + $0x40] sm:$0xe] }
 0x1e1   : > { %3721 = vmatmul.bf16.gmra.mxu3 %v11328_v33  ;;  %v2752_v52 = vsel %vm13509_vm12, %v11277_v28, %v2751_v23  ;;  %v2883_v25 = vunpack.c.l.b16 %v2592_v13  ;;  %v2934_v60 = vunpack.c.l.b16 %v2756_v6  ;;  %v2763_v31 = vrot.slane %v14401_v62, 5 }
 0x1e2   : > { %v2933_v39 = vunpack.c.l.b16 %v2752_v52  ;;  %v11279_v16 = vrot.slane %v2727_v50, 9  ;;  %v2759_v44 = vrot.slane %v14407_v8, 5  ;;  %v2730_v8 = vld [vmem:[#allocation2 + $0x38] sm:$0xe]  ;;  %v2771_v27 = vrot.slane %v14433_v18, 5 }
 0x1e3   : > { %3750 = vmatmul.bf16.gmra.mxu0 %v2927_v37  ;;  %v2888_v33 = vpack.c.b16 %v2884_v36, %v2883_v25  ;;  %v11280_v37 = vrot.slane %v2728_v35, 9  ;;  %v2767_v1 = vrot.slane %v14439_v3, 5  ;;  %v2732_v3 = vld [vmem:[#allocation2 + $0x48] sm:$0xe]  ;;  %v11283_v40 = vrot.slane %v2731_v17, 9 }
 0x1e4   : > { %v2941_v30 = vpack.c.b16 %v2934_v60, %v2933_v39  ;;  %v2760_v0 = vsel %vm13509_vm12, %v11279_v16, %v2759_v44  ;;  %v2775_v47 = vrot.slane %v14464_v59, 5  ;;  %v11284_v49 = vrot.slane %v2732_v3, 9  ;;  %v12870_v17 = vld [vmem:[%s17143_s5 + $0x68] sm:$0xff]  ;;  %v12879_v3 = vld [vmem:[%s17143_s5 + $0xb0] sm:$0xff] }
 0x1e5   : > { %v2764_v12 = vsel %vm13509_vm12, %v11280_v37, %v2763_v31  ;;  %v2935_v22 = vunpack.c.l.b16 %v2760_v0 }
 0x1e6   : > { %v2936_v15 = vunpack.c.l.b16 %v2764_v12  ;;  %v2776_v28 = vsel %vm13509_vm12, %v11283_v40, %v2775_v47  ;;  %v12887_v47 = vld [vmem:[%s17143_s5 + $0xf0] sm:$0xff] }
 0x1e7   : > { %v2939_v6 = vunpack.c.l.b16 %v2776_v28  ;;  %v14619_v28 = vld [vmem:[%s17142_s4] ss:$0 sm:$0xff] }
 0x1e8   : > { %v2942_v51 = vpack.c.b16 %v2936_v15, %v2935_v22  ;;  %v12864_v15 = vld [vmem:[%s17143_s5 + $0x38] sm:$0xff] }
 0x1e9   : > { %3692 = vmatmul.bf16.gmra.mxu2 %v2887_v26  ;;  %v11282_v26 = vrot.slane %v2730_v8, 9  ;;  %v12872_v22 = vld [vmem:[%s17143_s5 + $0x78] sm:$0xff] }
 0x1ea   : > { %4623 = vmatpush.bf16.msra.mxu2 %v12864_v15  ;;  %4652 = vmatpush.bf16.msrb.mxu3 %v12872_v22 }
 0x1eb   : > { %3668 = vmatmul.bf16.gmra.mxu1 %v2872_v54  ;;  %v11281_v54 = vrot.slane %v2729_v57, 9  ;;  %v2772_v9 = vsel %vm13509_vm12, %v11282_v26, %v2771_v27  ;;  %v12863_v26 = vld [vmem:[%s17143_s5 + $0x30] sm:$0xff] }
 0x1ec   : > { %v2938_v61 = vunpack.c.l.b16 %v2772_v9  ;;  %v12871_v27 = vld [vmem:[%s17143_s5 + $0x70] sm:$0xff] }
 0x1ed   : > { %v2768_v53 = vsel %vm13509_vm12, %v11281_v54, %v2767_v1  ;;  %v12880_v54 = vld [vmem:[%s17143_s5 + $0xb8] sm:$0xff] }
 0x1ee   : > { %v2937_v14 = vunpack.c.l.b16 %v2768_v53  ;;  %v12888_v53 = vld [vmem:[%s17143_s5 + $0xf8] sm:$0xff]  ;;  %4624 = vmatpush.bf16.msra.mxu2 %v12863_v26  ;;  %4653 = vmatpush.bf16.msrb.mxu3 %v12871_v27 }
 0x1ef   : > { %4681 = vmatpush.bf16.msra.mxu0 %v12880_v54  ;;  %4710 = vmatpush.bf16.msra.mxu1 %v12888_v53  ;;  %v12886_v53 = vld [vmem:[%s17143_s5 + $0xe8] sm:$0xff] }
 0x1f0   : > { %v2943_v24 = vpack.c.b16 %v2938_v61, %v2937_v14 }
 0x1f1   : > { %3726 = vmatmul.bf16.gmra.mxu3 %v11332_v63  ;;  %v2779_v63 = vrot.slane %v14466_v48, 5 }
 0x1f2   : > { %4654 = vmatpush.bf16.msrb.mxu3 %v12870_v17  ;;  %v12885_v17 = vld [vmem:[%s17143_s5 + $0xe0] sm:$0xff] }
 0x1f3   : > { %3755 = vmatmul.bf16.gmra.mxu0 %v2928_v41  ;;  %v2780_v23 = vsel %vm13509_vm12, %v11284_v49, %v2779_v63  ;;  %4711 = vmatpush.bf16.msra.mxu1 %v12887_v47 }
 0x1f4   : > { %v2940_v36 = vunpack.c.l.b16 %v2780_v23  ;;  %4682 = vmatpush.bf16.msra.mxu0 %v12879_v3 }
 0x1f6   : > { %v2944_v25 = vpack.c.b16 %v2940_v36, %v2939_v6 }
 0x1f7   : > { %v14490_v58 = vpop.f32.mrf.mxu1  ;;  %4712 = vmatpush.bf16.msra.mxu1 %v12886_v53 }
 0x1f8   : > { %v3539_v36 = vadd.f32 %v14619_v28, %v14490_v58  ;;  %v12861_v58 = vld [vmem:[%s17143_s5 + $0x20] sm:$0xff] }
 0x1f9   : > { %3697 = vmatmul.bf16.gmra.mxu2 %v2888_v33 }
 0x1fb   : > { %3769 = vmatmul.bf16.vlgmr.msrb.gmra.mxu1 %v2941_v30 }
 0x1fc   : > { %4713 = vmatpush.bf16.msra.mxu1 %v12885_v17 }
 0x1ff   : > { %v14493_v38 = vpop.f32.mrf.mxu1 }
 0x200   : > { %v14504_v55 = vpop.f32.mrf.mxu0 }
 0x203   : > { %v14498_v43 = vpop.f32.mrf.mxu3 }
 0x208   : > { %v14502_v46 = vpop.f32.mrf.mxu1  ;;  %v14518_v4 = vpop.f32.mrf.mxu0 }
 0x20b   : > { %v14506_v62 = vpop.f32.mrf.mxu2  ;;  %v14508_v21 = vpop.f32.mrf.mxu3  ;;  %3774 = vmatmul.bf16.gmra.mxu1 %v2942_v51 }
 0x210   : > { %v14511_v45 = vpop.f32.mrf.mxu1  ;;  %v14530_v56 = vpop.f32.mrf.mxu0 }
 0x213   : > { %v14516_v34 = vpop.f32.mrf.mxu2 }
 0x214   : > { %v14520_v19 = vpop.f32.mrf.mxu3 }
 0x218   : > { %v14524_v18 = vpop.f32.mrf.mxu1  ;;  %v14544_v52 = vpop.f32.mrf.mxu0 }
 0x21b   : > { %3779 = vmatmul.bf16.gmra.mxu1 %v2943_v24  ;;  %v12862_v24 = vld [vmem:[%s17143_s5 + $0x28] sm:$0xff] }
 0x21c   : > { %v14526_v32 = vpop.f32.mrf.mxu2  ;;  %v14528_v42 = vpop.f32.mrf.mxu3  ;;  %4625 = vmatpush.bf16.msra.mxu2 %v12862_v24  ;;  %v3541_v24 = vadd.f32 %v14619_v28, %v14493_v38 }
 0x21e   : > { %v3570_v3 = vadd.f32 %v14516_v34, %v3541_v24  ;;  %v12860_v34 = vld [vmem:[%s17143_s5 + $0x18] sm:$0xff] }
 0x220   : > { %v14534_v2 = vpop.f32.mrf.mxu1  ;;  %v14554_v39 = vpop.f32.mrf.mxu0  ;;  %4626 = vmatpush.bf16.msra.mxu2 %v12861_v58  ;;  %v3599_v11 = vadd.f32 %v14508_v21, %v3570_v3  ;;  %v3544_v58 = vadd.f32 %v14619_v28, %v14502_v46  ;;  %v12877_v46 = vld [vmem:[%s17143_s5 + $0xa0] sm:$0xff]  ;;  %v3546_v3 = vadd.f32 %v14619_v28, %v14511_v45  ;;  %v12859_v45 = vld [vmem:[%s17143_s5 + $0x10] sm:$0xff] }
 0x222   : > { %v3573_v21 = vadd.f32 %v14526_v32, %v3544_v58  ;;  %v3549_v32 = vadd.f32 %v14619_v28, %v14524_v18 }
 0x224   : > { %v14540_v41 = vpop.f32.mrf.mxu2  ;;  %v14542_v13 = vpop.f32.mrf.mxu3  ;;  %4627 = vmatpush.bf16.msra.mxu2 %v12860_v34 }
 0x228   : > { %v14546_v59 = vpop.f32.mrf.mxu1  ;;  %v14560_v37 = vpop.f32.mrf.mxu0  ;;  %4628 = vmatpush.bf16.msra.mxu2 %v12859_v45 }
 0x22b   : > { %3784 = vmatmul.bf16.gmra.mxu1 %v2944_v25  ;;  %v3568_v25 = vadd.f32 %v14506_v62, %v3539_v36  ;;  %v12869_v62 = vld [vmem:[%s17143_s5 + $0x60] sm:$0xff] }
 0x22c   : > { %v14548_v48 = vpop.f32.mrf.mxu2  ;;  %v14550_v60 = vpop.f32.mrf.mxu3  ;;  %4655 = vmatpush.bf16.msrb.mxu3 %v12869_v62  ;;  %v3628_v62 = vadd.f32 %v14518_v4, %v3599_v11  ;;  %v3575_v11 = vadd.f32 %v14540_v41, %v3546_v3  ;;  %v12876_v41 = vld [vmem:[%s17143_s5 + $0x98] sm:$0xff] }
 0x22d   : > { %v3597_v26 = vadd.f32 %v14498_v43, %v3568_v25  ;;  %v12878_v43 = vld [vmem:[%s17143_s5 + $0xa8] sm:$0xff]  ;;  %v3578_v4 = vadd.f32 %v14548_v48, %v3549_v32  ;;  %v3551_v48 = vadd.f32 %v14619_v28, %v14534_v2 }
 0x22e   : > { %4683 = vmatpush.bf16.msra.mxu0 %v12878_v43  ;;  %v3604_v2 = vadd.f32 %v14528_v42, %v3575_v11 }
 0x22f   : > { %v3626_v47 = vadd.f32 %v14504_v55, %v3597_v26  ;;  %v12884_v55 = vld [vmem:[%s17143_s5 + $0xd8] sm:$0xff] }
 0x230   : > { %v14552_v33 = vpop.f32.mrf.mxu1  ;;  %v14570_v0 = vpop.f32.mrf.mxu0  ;;  %4714 = vmatpush.bf16.msra.mxu1 %v12884_v55  ;;  %v3554_v55 = vadd.f32 %v14619_v28, %v14546_v59 }
 0x232   : > { %4684 = vmatpush.bf16.msra.mxu0 %v12877_v46 }
 0x234   : > { %v14556_v30 = vpop.f32.mrf.mxu2  ;;  %v14558_v35 = vpop.f32.mrf.mxu3 }
 0x236   : > { %4685 = vmatpush.bf16.msra.mxu0 %v12876_v41 }
 0x238   : > { %v3654_v50 = vpop.f32.mrf.mxu1  ;;  %v14591_v1 = vpop.f32.mrf.mxu0 }
 0x239   : > { %v3655_v25 = vadd.f32 %v3654_v50, %v3626_v47  ;;  %v12868_v50 = vld [vmem:[%s17143_s5 + $0x58] sm:$0xff]  ;;  %v3602_v47 = vadd.f32 %v14520_v19, %v3573_v21  ;;  %v12867_v19 = vld [vmem:[%s17143_s5 + $0x50] sm:$0xff]  ;;  %v3556_v21 = vadd.f32 %v14619_v28, %v14552_v33 }
 0x23a   : > { %4656 = vmatpush.bf16.msrb.mxu3 %v12868_v50 }
 0x23c   : > { %v14562_v31 = vpop.f32.mrf.mxu2  ;;  %v14564_v16 = vpop.f32.mrf.mxu3 }
 0x23e   : > { %4657 = vmatpush.bf16.msrb.mxu3 %v12867_v19 }
 0x240   : > { %v14566_v44 = vpop.f32.mrf.mxu1  ;;  %v3741_v49 = vpop.f32.mrf.mxu0 }
 0x241   : > { %v3657_v17 = vadd.f32 %v14566_v44, %v3628_v62  ;;  %v12882_v44 = vld [vmem:[%s17143_s5 + $0xc8] sm:$0xff]  ;;  %v3583_v62 = vadd.f32 %v14562_v31, %v3554_v55  ;;  %v12875_v31 = vld [vmem:[%s17143_s5 + $0x90] sm:$0xff] }
 0x242   : > { %4686 = vmatpush.bf16.msra.mxu0 %v12875_v31  ;;  %v13138_v55 = vld [vmem:[#allocation2 + $0x8] sm:$0xf] }
 0x244   : > { %v14568_v12 = vpop.f32.mrf.mxu2  ;;  %v14580_v8 = vpop.f32.mrf.mxu3 }
 0x245   : > { %v3585_v3 = vadd.f32 %v14568_v12, %v3556_v21 }
 0x248   : > { %v14578_v51 = vpop.f32.mrf.mxu1  ;;  %v14628_v15 = vpop.f32.mrf.mxu0 }
 0x24c   : > { %v3683_v57 = vpop.f32.mrf.mxu2  ;;  %v14598_v61 = vpop.f32.mrf.mxu3 }
 0x24d   : > { %v3684_v53 = vadd.f32 %v3683_v57, %v3655_v25  ;;  %v12883_v57 = vld [vmem:[%s17143_s5 + $0xd0] sm:$0xff] }
 0x24e   : > { %4715 = vmatpush.bf16.msra.mxu1 %v12883_v57  ;;  %v3580_v57 = vadd.f32 %v14556_v30, %v3551_v48 }
 0x24f   : > { %v3713_v24 = vadd.f32 %v14580_v8, %v3684_v53 }
 0x250   : > { %v14593_v9 = vpop.f32.mrf.mxu1  ;;  %v14658_v38 = vpop.f32.mrf.mxu0  ;;  %v3609_v12 = vadd.f32 %v14550_v60, %v3580_v57  ;;  %v12874_v60 = vld [vmem:[%s17143_s5 + $0x88] sm:$0xff] }
 0x251   : > { %v3742_v58 = vadd.f32 %v3741_v49, %v3713_v24  ;;  %v12881_v49 = vld [vmem:[%s17143_s5 + $0xc0] sm:$0xff]  ;;  %4687 = vmatpush.bf16.msra.mxu0 %v12874_v60 }
 0x252   : > { %4716 = vmatpush.bf16.msra.mxu1 %v12882_v44 }
 0x254   : > { %v3685_v14 = vpop.f32.mrf.mxu2  ;;  %v14621_v23 = vpop.f32.mrf.mxu3 }
 0x255   : > { %v3686_v25 = vadd.f32 %v3685_v14, %v3657_v17  ;;  %v3631_v14 = vadd.f32 %v14530_v56, %v3602_v47  ;;  %v3607_v56 = vadd.f32 %v14542_v13, %v3578_v4  ;;  %v3633_v13 = vadd.f32 %v14544_v52, %v3604_v2  ;;  %v12858_v52 = vld [vmem:[%s17143_s5 + $0x8] sm:$0xff] }
 0x256   : > { %4717 = vmatpush.bf16.msra.mxu1 %v12881_v49  ;;  %v3614_v4 = vadd.f32 %v14564_v16, %v3585_v3  ;;  %4629 = vmatpush.bf16.msra.mxu2 %v12858_v52 }
 0x257   : > { %v3715_v34 = vadd.f32 %v14598_v61, %v3686_v25  ;;  %v3660_v59 = vadd.f32 %v14578_v51, %v3631_v14  ;;  %v3636_v33 = vadd.f32 %v14554_v39, %v3607_v56  ;;  %v12866_v51 = vld [vmem:[%s17143_s5 + $0x48] sm:$0xff]  ;;  %v3662_v39 = vadd.f32 %v14593_v9, %v3633_v13 }
 0x258   : > { %v14609_v40 = vpop.f32.mrf.mxu1  ;;  %v14695_v8 = vpop.f32.mrf.mxu0  ;;  %4658 = vmatpush.bf16.msrb.mxu3 %v12866_v51  ;;  %v3904_v14 = vld [vmem:[#allocation2 + $0xc] sm:$0x1] }
 0x259   : > { %v3744_v42 = vadd.f32 %v14628_v15, %v3715_v34  ;;  %v3665_v15 = vadd.f32 %v14609_v40, %v3636_v33 }
 0x25c   : > { %v14614_v63 = vpop.f32.mrf.mxu2  ;;  %v14633_v27 = vpop.f32.mrf.mxu3 }
 0x25d   : > { %v3689_v32 = vadd.f32 %v14614_v63, %v3660_v59  ;;  %v3612_v63 = vadd.f32 %v14558_v35, %v3583_v62  ;;  %v12865_v35 = vld [vmem:[%s17143_s5 + $0x40] sm:$0xff] }
 0x25e   : > { %4659 = vmatpush.bf16.msrb.mxu3 %v12865_v35  ;;  %v12873_v62 = vld [vmem:[%s17143_s5 + $0x80] sm:$0xff] }
 0x25f   : > { %v3718_v9 = vadd.f32 %v14621_v23, %v3689_v32  ;;  %v3641_v41 = vadd.f32 %v14570_v0, %v3612_v63  ;;  %v4159_v59 = vld [vmem:[#allocation2] sm:$0xf]  ;;  %4688 = vmatpush.bf16.msra.mxu0 %v12873_v62  ;;  %v3916_v62 = vld [vmem:[#allocation2 + $0x1c] sm:$0x1] }
 0x260   : > { %v14623_v6 = vpop.f32.mrf.mxu1  ;;  %v14745_v25 = vpop.f32.mrf.mxu0  ;;  %v4176_v3 = vshrl.u32 %v4159_v59, 16  ;;  %v4179_v32 = vshll.u32 %v4159_v59, 16  ;;  %v11639_v63 = vld [vmem:[#allocation2] sm:$0xf] }
 0x261   : > { %v3747_v0 = vadd.f32 %v14658_v38, %v3718_v9 }
 0x262   : > { %v4181_v51 = vrot.slane %v4179_v32, 5 }
 0x264   : > { %v14630_v22 = vpop.f32.mrf.mxu2  ;;  %v14674_v26 = vpop.f32.mrf.mxu3 }
 0x268   : > { %v14635_v54 = vpop.f32.mrf.mxu1 }
 0x26c   : > { %v14656_v36 = vpop.f32.mrf.mxu2  ;;  %v14718_v50 = vpop.f32.mrf.mxu3 }
 0x26d   : > { %v3694_v44 = vadd.f32 %v14656_v36, %v3665_v15  ;;  %v3670_v36 = vadd.f32 %v14635_v54, %v3641_v41 }
 0x26f   : > { %v3723_v2 = vadd.f32 %v14674_v26, %v3694_v44  ;;  %v4160_v26 = vld [vmem:[#allocation2 + $0x4] sm:$0x1] }
 0x270   : > { %v14663_v5 = vpop.f32.mrf.mxu1  ;;  %v4185_v33 = vshll.u32 %v4160_v26, 16 }
 0x271   : > { %v3752_v9 = vadd.f32 %v14745_v25, %v3723_v2 }
 0x272   : > { %v4187_v41 = vrot.slane %v4185_v33, 5 }
 0x274   : > { %v14685_v43 = vpop.f32.mrf.mxu2  ;;  %v3727_v48 = vpop.f32.mrf.mxu3 }
 0x278   : > { %v3770_v53 = vpop.f32.mrf.mxu1 }
 0x279   : > { %v3771_v18 = vadd.f32 %v3770_v53, %v3742_v58  ;;  %v3691_v53 = vadd.f32 %v14630_v22, %v3662_v39 }
 0x27b   : > { %vm3790_vm13 = vcmp.ge.f32.partialorder %v3771_v18, 0.0  ;;  %v3798_v46 = vmul.f32 0.1, %v3771_v18 }
 0x27c   : > { %v3698_v17 = vpop.f32.mrf.mxu2  ;;  %v3729_v60 = vpop.f32.mrf.mxu3 }
 0x27d   : > { %v3806_v61 = vsel %vm3790_vm13, %v3771_v18, %v3798_v46  ;;  %v3638_v18 = vadd.f32 %v14560_v37, %v3609_v12  ;;  %v3643_v37 = vadd.f32 %v14591_v1, %v3614_v4  ;;  %v3720_v46 = vadd.f32 %v14633_v27, %v3691_v53 }
 0x27e   : > { %v3814_v24 = vpack.c.bf16 %v3806_v61, %v3806_v61  ;;  %v3699_v38 = vadd.f32 %v3698_v17, %v3670_v36  ;;  %v3910_v17 = vld [vmem:[#allocation2 + $0x14] sm:$0x1] }
 0x27f   : > { %v3667_v22 = vadd.f32 %v14623_v6, %v3638_v18  ;;  %v12857_v6 = vld [vmem:[%s17143_s5] sm:$0xff]  ;;  %v3672_v1 = vadd.f32 %v14663_v5, %v3643_v37  ;;  %v4178_v5 = vrot.slane %v4176_v3, 4  ;;  %v3749_v35 = vadd.f32 %v14695_v8, %v3720_v46  ;;  %v12896_v8 = vld [vmem:[%s17143_s5 + $0x138] sm:$0xff] }
 0x280   : > { %v3823_v28 = vshrl.u32 %v3814_v24, 16  ;;  %v3772_v30 = vpop.f32.mrf.mxu1  ;;  %v3826_v11 = vshll.u32 %v3814_v24, 16  ;;  %4630 = vmatpush.bf16.msra.mxu2 %v12857_v6 }
 0x281   : > { %v3773_v47 = vadd.f32 %v3772_v30, %v3744_v42  ;;  %v3696_v54 = vadd.f32 %v14685_v43, %v3667_v22  ;;  %v3907_v43 = vld [vmem:[#allocation2 + $0x10] sm:$0xf]  ;;  %v4182_v15 = vor.u32 %v4181_v51, %v4178_v5 }
 0x282   : > { %v3825_v58 = vrot.slane %v3823_v28, 7  ;;  %v3753_v28 = vpop.f32.mrf.mxu0 }
 0x283   : > { %vm3791_vm14 = vcmp.ge.f32.partialorder %v3773_v47, 0.0  ;;  %v3799_v40 = vmul.f32 0.1, %v3773_v47 }
 0x284   : > { %v3828_v45 = vor.u32 %v3826_v11, %v3825_v58  ;;  %v3829_v19 = vrot.slane %v3825_v58, 4  ;;  %v3700_v21 = vpop.f32.mrf.mxu2  ;;  %v3725_v58 = vadd.f32 %v14718_v50, %v3696_v54  ;;  %v3728_v11 = vadd.f32 %v3727_v48, %v3699_v38  ;;  %5593 = vmatpush.bf16.msrb.mxu2 %v12896_v8  ;;  %v3922_v8 = vld [vmem:[#allocation2 + $0x24] sm:$0x1] }
 0x285   : > { %v3807_v49 = vsel %vm3791_vm14, %v3773_v47, %v3799_v40  ;;  %v3701_v42 = vadd.f32 %v3700_v21, %v3672_v1 }
 0x286   : > { %v3902_v16 = vsel %vm13278_vm4, %v3828_v45, %v13138_v55  ;;  %v3905_v23 = vsel %vm13471_vm7, %v3829_v19, %v3904_v14  ;;  %v3815_v34 = vpack.c.bf16 %v3807_v49, %v3807_v49  ;;  %v4183_v49 = vrot.slane %v4182_v15, 4 }
 0x287   : > { %3906 = vst [vmem:[#allocation2 + $0xc] sm:$0x1] %v3905_v23  ;;  %v14784_v53 = vadd.f32 %v3729_v60, %v3701_v42  ;;  %v14794_v1 = vadd.f32 %v3753_v28, %v3725_v58 }
 0x288   : > { %3903 = vst [vmem:[#allocation2 + $0x8] sm:$0xf] %v3902_v16  ;;  %v3831_v56 = vshrl.u32 %v3815_v34, 16  ;;  %v3775_v57 = vpop.f32.mrf.mxu1  ;;  %v3834_v24 = vshll.u32 %v3815_v34, 16 }
 0x289   : > { %v3776_v27 = vadd.f32 %v3775_v57, %v3747_v0  ;;  %v12904_v0 = vld [vmem:[%s17143_s5 + $0x178] sm:$0xff] }
 0x28a   : > { %v3833_v61 = vrot.slane %v3831_v56, 7  ;;  %v4188_v56 = vsel %vm13564_vm15, %v4183_v49, %v4187_v41  ;;  %v3913_v57 = vld [vmem:[#allocation2 + $0x18] sm:$0xf]  ;;  %5622 = vmatpush.bf16.msra.mxu3 %v12904_v0 }
 0x28b   : > { %vm3792_vm0 = vcmp.ge.f32.partialorder %v3776_v27, 0.0  ;;  %v3800_v13 = vmul.f32 0.1, %v3776_v27  ;;  %v4327_v28 = vunpack.c.l.b16 %v4188_v56 }
 0x28c   : > { %v3836_v30 = vor.u32 %v3834_v24, %v3833_v61  ;;  %v3837_v31 = vrot.slane %v3833_v61, 4 }
 0x28d   : > { %v3808_v12 = vsel %vm3792_vm0, %v3776_v27, %v3800_v13  ;;  %v3756_v27 = vpop.f32.mrf.mxu0 }
 0x28e   : > { %v3908_v47 = vsel %vm13278_vm4, %v3836_v30, %v3907_v43  ;;  %v3911_v52 = vsel %vm13471_vm7, %v3837_v31, %v3910_v17  ;;  %v3816_v39 = vpack.c.bf16 %v3808_v12, %v3808_v12  ;;  %v4162_v40 = vld [vmem:[#allocation2 + $0xc] sm:$0x1]  ;;  %v14800_v31 = vadd.f32 %v3756_v27, %v3728_v11  ;;  %v12903_v11 = vld [vmem:[%s17143_s5 + $0x170] sm:$0xff] }
 0x28f   : > { %3912 = vst [vmem:[#allocation2 + $0x14] sm:$0x1] %v3911_v52  ;;  %v12853_v4 = vld [vmem:[#allocation2 + $0x4] sm:$0xf0]  ;;  %v4199_v37 = vshll.u32 %v4162_v40, 16  ;;  %5623 = vmatpush.bf16.msra.mxu3 %v12903_v11 }
 0x290   : > { %3909 = vst [vmem:[#allocation2 + $0x10] sm:$0xf] %v3908_v47  ;;  %v3839_v44 = vshrl.u32 %v3816_v39, 16  ;;  %v3777_v45 = vpop.f32.mrf.mxu1  ;;  %v11640_v19 = vor.u32 %v12853_v4, %v11639_v63  ;;  %v4161_v18 = vld [vmem:[#allocation2 + $0x8] sm:$0xf]  ;;  %v3842_v25 = vshll.u32 %v3816_v39, 16 }
 0x291   : > { %v3778_v14 = vadd.f32 %v3777_v45, %v3749_v35  ;;  %v4190_v50 = vshrl.u32 %v4161_v18, 16  ;;  %v4193_v48 = vshll.u32 %v4161_v18, 16  ;;  %v4031_v55 = vld [vmem:[#allocation2 + $0x8] sm:$0xf]  ;;  %v4032_v32 = vld [vmem:[#allocation2 + $0xc] sm:$0x1] }
 0x292   : > { %v3841_v16 = vrot.slane %v3839_v44, 7  ;;  %4718 = vmatmul.bf16.vlgmr.msra.gmra.mxu1 %v11640_v19  ;;  %v4048_v23 = vshrl.u32 %v4031_v55, 16  ;;  %v4051_v34 = vshll.u32 %v4031_v55, 16  ;;  %v11623_v24 = vld [vmem:[#allocation2 + $0x8] sm:$0xf]  ;;  %v4201_v33 = vrot.slane %v4199_v37, 5 }
 0x293   : > { %vm3793_vm1 = vcmp.ge.f32.partialorder %v3778_v14, 0.0  ;;  %v3801_v22 = vmul.f32 0.1, %v3778_v14  ;;  %v4192_v36 = vrot.slane %v4190_v50, 4  ;;  %v4195_v21 = vrot.slane %v4193_v48, 5  ;;  %v12895_v63 = vld [vmem:[%s17143_s5 + $0x130] sm:$0xff] }
 0x294   : > { %v3844_v46 = vor.u32 %v3842_v25, %v3841_v16  ;;  %v3845_v2 = vrot.slane %v3841_v16, 4  ;;  %v4050_v54 = vrot.slane %v4048_v23, 4  ;;  %v4053_v38 = vrot.slane %v4051_v34, 5  ;;  %5594 = vmatpush.bf16.msrb.mxu2 %v12895_v63  ;;  %v3919_v44 = vld [vmem:[#allocation2 + $0x20] sm:$0xf]  ;;  %v12920_v55 = vld [vmem:[%s17143_s5 + $0x1f8] sm:$0xff] }
 0x295   : > { %v3809_v6 = vsel %vm3793_vm1, %v3778_v14, %v3801_v22  ;;  %v4196_v3 = vor.u32 %v4195_v21, %v4192_v36  ;;  %v4057_v15 = vshll.u32 %v4032_v32, 16  ;;  %5680 = vmatpush.bf16.msrb.mxu1 %v12920_v55 }
 0x296   : > { %v3914_v59 = vsel %vm13278_vm4, %v3844_v46, %v3913_v57  ;;  %v3917_v26 = vsel %vm13471_vm7, %v3845_v2, %v3916_v62  ;;  %v3817_v61 = vpack.c.bf16 %v3809_v6, %v3809_v6  ;;  %v4034_v42 = vld [vmem:[#allocation2 + $0x14] sm:$0x1]  ;;  %v4054_v30 = vor.u32 %v4053_v38, %v4050_v54 }
 0x297   : > { %3915 = vst [vmem:[#allocation2 + $0x18] sm:$0xf] %v3914_v59  ;;  %v12849_v13 = vld [vmem:[#allocation2 + $0xc] sm:$0xf0]  ;;  %v4197_v12 = vrot.slane %v4196_v3, 4  ;;  %v4071_v58 = vshll.u32 %v4034_v42, 16 }
 0x298   : > { %3918 = vst [vmem:[#allocation2 + $0x1c] sm:$0x1] %v3917_v26  ;;  %v3847_v5 = vshrl.u32 %v3817_v61, 16  ;;  %v3850_v51 = vshll.u32 %v3817_v61, 16  ;;  %v3780_v43 = vpop.f32.mrf.mxu1  ;;  %v11624_v17 = vor.u32 %v12849_v13, %v11623_v24  ;;  %v4033_v52 = vld [vmem:[#allocation2 + $0x10] sm:$0xf] }
 0x299   : > { %v3781_v47 = vadd.f32 %v3780_v43, %v3752_v9  ;;  %v4055_v39 = vrot.slane %v4054_v30, 4  ;;  %v4202_v35 = vsel %vm13564_vm15, %v4197_v12, %v4201_v33  ;;  %v4062_v4 = vshrl.u32 %v4033_v52, 16  ;;  %v12912_v9 = vld [vmem:[%s17143_s5 + $0x1b8] sm:$0xff]  ;;  %v4163_v48 = vld [vmem:[#allocation2 + $0x10] sm:$0xf]  ;;  %v12894_v13 = vld [vmem:[%s17143_s5 + $0x128] sm:$0xff] }
 0x29a   : > { %v3849_v60 = vrot.slane %v3847_v5, 7  ;;  %4660 = vmatmul.bf16.vlgmr.msrb.gmra.mxu3 %v11624_v17  ;;  %v4065_v40 = vshll.u32 %v4033_v52, 16  ;;  %v4328_v19 = vunpack.c.l.b16 %v4202_v35  ;;  %v4059_v18 = vrot.slane %v4057_v15, 5  ;;  %5651 = vmatpush.bf16.msrb.mxu0 %v12912_v9  ;;  %v4164_v22 = vld [vmem:[#allocation2 + $0x14] sm:$0x1]  ;;  %v12902_v43 = vld [vmem:[%s17143_s5 + $0x168] sm:$0xff] }
 0x29b   : > { %vm3794_vm3 = vcmp.ge.f32.partialorder %v3781_v47, 0.0  ;;  %v3802_v45 = vmul.f32 0.1, %v3781_v47  ;;  %v4064_v49 = vrot.slane %v4062_v4, 4  ;;  %v4073_v34 = vrot.slane %v4071_v58, 5  ;;  %5595 = vmatpush.bf16.msrb.mxu2 %v12894_v13  ;;  %v12911_v52 = vld [vmem:[%s17143_s5 + $0x1b0] sm:$0xff]  ;;  %5624 = vmatpush.bf16.msra.mxu3 %v12902_v43 }
 0x29c   : > { %v3852_v41 = vor.u32 %v3850_v51, %v3849_v60  ;;  %v3853_v14 = vrot.slane %v3849_v60, 4  ;;  %v4067_v50 = vrot.slane %v4065_v40, 5  ;;  %v4335_v25 = vpack.c.b16 %v4328_v19, %v4327_v28  ;;  %v11643_v46 = vld [vmem:[#allocation2 + $0x10] sm:$0xf]  ;;  %v3928_v17 = vld [vmem:[#allocation2 + $0x2c] sm:$0x1] }
 0x29d   : > { %v3810_v16 = vsel %vm3794_vm3, %v3781_v47, %v3802_v45  ;;  %v4060_v23 = vsel %vm13564_vm15, %v4055_v39, %v4059_v18  ;;  %v4204_v6 = vshrl.u32 %v4163_v48, 16  ;;  %v4207_v54 = vshll.u32 %v4163_v48, 16  ;;  %v12919_v39 = vld [vmem:[%s17143_s5 + $0x1f0] sm:$0xff]  ;;  %v12893_v35 = vld [vmem:[%s17143_s5 + $0x120] sm:$0xff]  ;;  %v12918_v18 = vld [vmem:[%s17143_s5 + $0x1e8] sm:$0xff] }
 0x29e   : > { %v3920_v36 = vsel %vm13278_vm4, %v3852_v41, %v3919_v44  ;;  %v3923_v37 = vsel %vm13471_vm7, %v3853_v14, %v3922_v8  ;;  %v3818_v0 = vpack.c.bf16 %v3810_v16, %v3810_v16  ;;  %v12854_v2 = vld [vmem:[#allocation2 + $0x14] sm:$0xf0]  ;;  %v4068_v56 = vor.u32 %v4067_v50, %v4064_v49  ;;  %4689 = vmatmul.bf16.vlgmr.msra.gmra.mxu0 %v4335_v25  ;;  %v12901_v4 = vld [vmem:[%s17143_s5 + $0x160] sm:$0xff]  ;;  %v12910_v41 = vld [vmem:[%s17143_s5 + $0x1a8] sm:$0xff]  ;;  %v3758_v14 = vpop.f32.mrf.mxu0 }
 0x29f   : > { %v4165_v21 = vld [vmem:[#allocation2 + $0x18] sm:$0xf]  ;;  %3921 = vst [vmem:[#allocation2 + $0x20] sm:$0xf] %v3920_v36  ;;  %v11644_v57 = vor.u32 %v12854_v2, %v11643_v46  ;;  %v4287_v62 = vunpack.c.l.b16 %v4060_v23  ;;  %v4213_v61 = vshll.u32 %v4164_v22, 16  ;;  %v4206_v3 = vrot.slane %v4204_v6, 4  ;;  %5652 = vmatpush.bf16.msrb.mxu0 %v12911_v52  ;;  %5681 = vmatpush.bf16.msrb.mxu1 %v12919_v39 }
 0x2a0   : > { %3924 = vst [vmem:[#allocation2 + $0x24] sm:$0x1] %v3923_v37  ;;  %v3855_v38 = vshrl.u32 %v3818_v0, 16  ;;  %v3858_v27 = vshll.u32 %v3818_v0, 16  ;;  %v3782_v59 = vpop.f32.mrf.mxu1  ;;  %v4069_v26 = vrot.slane %v4068_v56, 4  ;;  %v4209_v32 = vrot.slane %v4207_v54, 5  ;;  %5596 = vmatpush.bf16.msrb.mxu2 %v12893_v35  ;;  %5625 = vmatpush.bf16.msra.mxu3 %v12901_v4 }
 0x2a1   : > { %v3783_v24 = vadd.f32 %v3782_v59, %v14794_v1  ;;  %v4218_v42 = vshrl.u32 %v4165_v21, 16  ;;  %v4166_v30 = vld [vmem:[#allocation2 + $0x1c] sm:$0x1]  ;;  %v4215_v5 = vrot.slane %v4213_v61, 5  ;;  %v4221_v51 = vshll.u32 %v4165_v21, 16 }
 0x2a2   : > { %v3857_v33 = vrot.slane %v3855_v38, 7  ;;  %4723 = vmatmul.bf16.gmra.mxu1 %v11644_v57  ;;  %v4074_v28 = vsel %vm13564_vm15, %v4069_v26, %v4073_v34  ;;  %v3925_v1 = vld [vmem:[#allocation2 + $0x28] sm:$0xf]  ;;  %v4210_v47 = vor.u32 %v4209_v32, %v4206_v3  ;;  %v11627_v44 = vld [vmem:[#allocation2 + $0x18] sm:$0xf]  ;;  %v4227_v19 = vshll.u32 %v4166_v30, 16 }
 0x2a3   : > { %vm3795_vm5 = vcmp.ge.f32.partialorder %v3783_v24, 0.0  ;;  %v3803_v12 = vmul.f32 0.1, %v3783_v24  ;;  %v4288_v63 = vunpack.c.l.b16 %v4074_v28  ;;  %v4220_v11 = vrot.slane %v4218_v42, 4  ;;  %v4035_v16 = vld [vmem:[#allocation2 + $0x18] sm:$0xf]  ;;  %5682 = vmatpush.bf16.msrb.mxu1 %v12918_v18  ;;  %5653 = vmatpush.bf16.msrb.mxu0 %v12910_v41 }
 0x2a4   : > { %v3860_v15 = vor.u32 %v3858_v27, %v3857_v33  ;;  %v3861_v58 = vrot.slane %v3857_v33, 4  ;;  %v4223_v60 = vrot.slane %v4221_v51, 5  ;;  %v4211_v45 = vrot.slane %v4210_v47, 4  ;;  %v4036_v25 = vld [vmem:[#allocation2 + $0x1c] sm:$0x1]  ;;  %v12909_v33 = vld [vmem:[%s17143_s5 + $0x1a0] sm:$0xff] }
 0x2a5   : > { %v3811_v40 = vsel %vm3795_vm5, %v3783_v24, %v3803_v12  ;;  %v4295_v9 = vpack.c.b16 %v4288_v63, %v4287_v62  ;;  %v4229_v22 = vrot.slane %v4227_v19, 5  ;;  %v14856_v36 = vadd.f32 %v3758_v14, %v14784_v53  ;;  %v12917_v53 = vld [vmem:[%s17143_s5 + $0x1e0] sm:$0xff]  ;;  %v12892_v38 = vld [vmem:[%s17143_s5 + $0x118] sm:$0xff]  ;;  %v3931_v3 = vld [vmem:[#allocation2 + $0x30] sm:$0xf] }
 0x2a6   : > { %v3926_v49 = vsel %vm13278_vm4, %v3860_v15, %v3925_v1  ;;  %v3929_v50 = vsel %vm13471_vm7, %v3861_v58, %v3928_v17  ;;  %v3819_v48 = vpack.c.bf16 %v3811_v40, %v3811_v40  ;;  %v12850_v55 = vld [vmem:[#allocation2 + $0x1c] sm:$0xf0]  ;;  %v4224_v8 = vor.u32 %v4223_v60, %v4220_v11  ;;  %v12900_v24 = vld [vmem:[%s17143_s5 + $0x158] sm:$0xff]  ;;  %5597 = vmatpush.bf16.msrb.mxu2 %v12892_v38  ;;  %v3934_v1 = vld [vmem:[#allocation2 + $0x34] sm:$0x1] }
 0x2a7   : > { %3927 = vst [vmem:[#allocation2 + $0x28] sm:$0xf] %v3926_v49  ;;  %4631 = vmatmul.bf16.vlgmr.msra.gmra.mxu2 %v4295_v9  ;;  %v11628_v23 = vor.u32 %v12850_v55, %v11627_v44  ;;  %v4216_v34 = vsel %vm13564_vm15, %v4211_v45, %v4215_v5  ;;  %v4037_v37 = vld [vmem:[#allocation2 + $0x20] sm:$0xf]  ;;  %v4076_v62 = vshrl.u32 %v4035_v16, 16  ;;  %v4079_v6 = vshll.u32 %v4035_v16, 16  ;;  %5626 = vmatpush.bf16.msra.mxu3 %v12900_v24 }
 0x2a8   : > { %3930 = vst [vmem:[#allocation2 + $0x2c] sm:$0x1] %v3929_v50  ;;  %v3863_v0 = vshrl.u32 %v3819_v48, 16  ;;  %v3866_v46 = vshll.u32 %v3819_v48, 16  ;;  %v3785_v2 = vpop.f32.mrf.mxu1  ;;  %v4225_v56 = vrot.slane %v4224_v8, 4  ;;  %v4329_v21 = vunpack.c.l.b16 %v4216_v34  ;;  %5683 = vmatpush.bf16.msrb.mxu1 %v12917_v53  ;;  %v12916_v52 = vld [vmem:[%s17143_s5 + $0x1d8] sm:$0xff]  ;;  %5654 = vmatpush.bf16.msrb.mxu0 %v12909_v33 }
 0x2a9   : > { %v3786_v57 = vadd.f32 %v3785_v2, %v14800_v31  ;;  %v4085_v54 = vshll.u32 %v4036_v25, 16  ;;  %v4038_v26 = vld [vmem:[#allocation2 + $0x24] sm:$0x1]  ;;  %v4090_v31 = vshrl.u32 %v4037_v37, 16  ;;  %v4093_v61 = vshll.u32 %v4037_v37, 16  ;;  %v12915_v16 = vld [vmem:[%s17143_s5 + $0x1d0] sm:$0xff] }
 0x2aa   : > { %v3865_v27 = vrot.slane %v3863_v0, 7  ;;  %4665 = vmatmul.bf16.gmra.mxu3 %v11628_v23  ;;  %v4230_v59 = vsel %vm13564_vm15, %v4225_v56, %v4229_v22  ;;  %v4078_v13 = vrot.slane %v4076_v62, 4  ;;  %v4081_v5 = vrot.slane %v4079_v6, 5  ;;  %v4167_v43 = vld [vmem:[#allocation2 + $0x20] sm:$0xf]  ;;  %v12908_v62 = vld [vmem:[%s17143_s5 + $0x198] sm:$0xff] }
 0x2ab   : > { %vm3796_vm6 = vcmp.ge.f32.partialorder %v3786_v57, 0.0  ;;  %v3804_v32 = vmul.f32 0.1, %v3786_v57  ;;  %v4330_v42 = vunpack.c.l.b16 %v4230_v59  ;;  %v4087_v51 = vrot.slane %v4085_v54, 5  ;;  %v11647_v11 = vld [vmem:[#allocation2 + $0x20] sm:$0xf] }
 0x2ac   : > { %v3868_v28 = vor.u32 %v3866_v46, %v3865_v27  ;;  %v3869_v30 = vrot.slane %v3865_v27, 4  ;;  %v4092_v63 = vrot.slane %v4090_v31, 4  ;;  %v4095_v47 = vrot.slane %v4093_v61, 5  ;;  %v4168_v44 = vld [vmem:[#allocation2 + $0x24] sm:$0x1]  ;;  %5684 = vmatpush.bf16.msrb.mxu1 %v12916_v52  ;;  %v12914_v31 = vld [vmem:[%s17143_s5 + $0x1c8] sm:$0xff]  ;;  %5655 = vmatpush.bf16.msrb.mxu0 %v12908_v62 }
 0x2ad   : > { %v3812_v17 = vsel %vm3796_vm6, %v3786_v57, %v3804_v32  ;;  %v4336_v12 = vpack.c.b16 %v4330_v42, %v4329_v21  ;;  %v4082_v35 = vor.u32 %v4081_v5, %v4078_v13  ;;  %v4099_v9 = vshll.u32 %v4038_v26, 16  ;;  %v3937_v0 = vld [vmem:[#allocation2 + $0x38] sm:$0xf]  ;;  %v3940_v46 = vld [vmem:[#allocation2 + $0x3c] sm:$0x1]  ;;  %v12899_v57 = vld [vmem:[%s17143_s5 + $0x150] sm:$0xff] }
 0x2ae   : > { %v3932_v39 = vsel %vm13278_vm4, %v3868_v28, %v3931_v3  ;;  %v3935_v15 = vsel %vm13471_vm7, %v3869_v30, %v3934_v1  ;;  %v3820_v58 = vpack.c.bf16 %v3812_v17, %v3812_v17  ;;  %v12855_v60 = vld [vmem:[#allocation2 + $0x24] sm:$0xf0]  ;;  %v4096_v40 = vor.u32 %v4095_v47, %v4092_v63  ;;  %5627 = vmatpush.bf16.msra.mxu3 %v12899_v57  ;;  %v12907_v1 = vld [vmem:[%s17143_s5 + $0x190] sm:$0xff] }
 0x2af   : > { %3933 = vst [vmem:[#allocation2 + $0x30] sm:$0xf] %v3932_v39  ;;  %4694 = vmatmul.bf16.gmra.mxu0 %v4336_v12  ;;  %v11648_v4 = vor.u32 %v12855_v60, %v11647_v11  ;;  %v4232_v45 = vshrl.u32 %v4167_v43, 16  ;;  %v4083_v14 = vrot.slane %v4082_v35, 4  ;;  %v4235_v49 = vshll.u32 %v4167_v43, 16  ;;  %v12898_v13 = vld [vmem:[%s17143_s5 + $0x148] sm:$0xff] }
 0x2b0   : > { %3936 = vst [vmem:[#allocation2 + $0x34] sm:$0x1] %v3935_v15  ;;  %v3871_v19 = vshrl.u32 %v3820_v58, 16  ;;  %v3874_v18 = vshll.u32 %v3820_v58, 16  ;;  %v3787_v41 = vpop.f32.mrf.mxu1  ;;  %v4097_v48 = vrot.slane %v4096_v40, 4  ;;  %v4101_v55 = vrot.slane %v4099_v9, 5  ;;  %5685 = vmatpush.bf16.msrb.mxu1 %v12915_v16  ;;  %5656 = vmatpush.bf16.msrb.mxu0 %v12907_v1 }
 0x2b1   : > { %v3788_v50 = vadd.f32 %v3787_v41, %v14856_v36  ;;  %v4234_v8 = vrot.slane %v4232_v45, 4  ;;  %v4088_v23 = vsel %vm13564_vm15, %v4083_v14, %v4087_v51  ;;  %v4169_v34 = vld [vmem:[#allocation2 + $0x28] sm:$0xf]  ;;  %v4237_v22 = vrot.slane %v4235_v49, 5  ;;  %v12891_v36 = vld [vmem:[%s17143_s5 + $0x110] sm:$0xff]  ;;  %v12913_v9 = vld [vmem:[%s17143_s5 + $0x1c0] sm:$0xff] }
 0x2b2   : > { %v3873_v25 = vrot.slane %v3871_v19, 7  ;;  %4728 = vmatmul.bf16.gmra.mxu1 %v11648_v4  ;;  %v4241_v37 = vshll.u32 %v4168_v44, 16  ;;  %v4102_v56 = vsel %vm13564_vm15, %v4097_v48, %v4101_v55  ;;  %v4289_v21 = vunpack.c.l.b16 %v4088_v23  ;;  %v11631_v38 = vld [vmem:[#allocation2 + $0x28] sm:$0xf]  ;;  %v4170_v27 = vld [vmem:[#allocation2 + $0x2c] sm:$0x1]  ;;  %5598 = vmatpush.bf16.msrb.mxu2 %v12891_v36 }
 0x2b3   : > { %vm3797_vm8 = vcmp.ge.f32.partialorder %v3788_v50, 0.0  ;;  %v3805_v2 = vmul.f32 0.1, %v3788_v50  ;;  %v4290_v53 = vunpack.c.l.b16 %v4102_v56  ;;  %v4238_v59 = vor.u32 %v4237_v22, %v4234_v8  ;;  %v4039_v26 = vld [vmem:[#allocation2 + $0x28] sm:$0xf]  ;;  %5628 = vmatpush.bf16.msra.mxu3 %v12898_v13 }
 0x2b4   : > { %v3876_v6 = vor.u32 %v3874_v18, %v3873_v25  ;;  %v3877_v54 = vrot.slane %v3873_v25, 4  ;;  %v4243_v24 = vrot.slane %v4241_v37, 5  ;;  %v4246_v3 = vshrl.u32 %v4169_v34, 16  ;;  %v4040_v42 = vld [vmem:[#allocation2 + $0x2c] sm:$0x1]  ;;  %5686 = vmatpush.bf16.msrb.mxu1 %v12914_v31  ;;  %v12897_v37 = vld [vmem:[%s17143_s5 + $0x140] sm:$0xff] }
 0x2b5   : > { %v3813_v61 = vsel %vm3797_vm8, %v3788_v50, %v3805_v2  ;;  %v4249_v32 = vshll.u32 %v4169_v34, 16  ;;  %v4296_v5 = vpack.c.b16 %v4290_v53, %v4289_v21  ;;  %v4239_v12 = vrot.slane %v4238_v59, 4  ;;  %v12890_v14 = vld [vmem:[%s17143_s5 + $0x108] sm:$0xff]  ;;  %v3943_v49 = vld [vmem:[#allocation2 + $0x40] sm:$0xf] }
 0x2b6   : > { %v3938_v33 = vsel %vm13278_vm4, %v3876_v6, %v3937_v0  ;;  %v3941_v28 = vsel %vm13471_vm7, %v3877_v54, %v3940_v46  ;;  %v3821_v30 = vpack.c.bf16 %v3813_v61, %v3813_v61  ;;  %v12851_v51 = vld [vmem:[#allocation2 + $0x2c] sm:$0xf0]  ;;  %v4248_v63 = vrot.slane %v4246_v3, 4  ;;  %5599 = vmatpush.bf16.msrb.mxu2 %v12890_v14  ;;  %v12906_v22 = vld [vmem:[%s17143_s5 + $0x188] sm:$0xff]  ;;  %v3946_v36 = vld [vmem:[#allocation2 + $0x44] sm:$0x1] }
 0x2b7   : > { %v4041_v43 = vld [vmem:[#allocation2 + $0x30] sm:$0xf]  ;;  %3939 = vst [vmem:[#allocation2 + $0x38] sm:$0xf] %v3938_v33  ;;  %v11632_v17 = vor.u32 %v12851_v51, %v11631_v38  ;;  %v4251_v47 = vrot.slane %v4249_v32, 5  ;;  %4636 = vmatmul.bf16.gmra.mxu2 %v4296_v5  ;;  %v4255_v15 = vshll.u32 %v4170_v27, 16  ;;  %v4244_v11 = vsel %vm13564_vm15, %v4239_v12, %v4243_v24  ;;  %5657 = vmatpush.bf16.msrb.mxu0 %v12906_v22 }
 0x2b8   : > { %3942 = vst [vmem:[#allocation2 + $0x3c] sm:$0x1] %v3941_v28  ;;  %v3879_v52 = vshrl.u32 %v3821_v30, 16  ;;  %v3882_v39 = vshll.u32 %v3821_v30, 16  ;;  %v4104_v58 = vshrl.u32 %v4039_v26, 16  ;;  %v4107_v4 = vshll.u32 %v4039_v26, 16  ;;  %5687 = vmatpush.bf16.msrb.mxu1 %v12913_v9  ;;  %5629 = vmatpush.bf16.msra.mxu3 %v12897_v37 }
 0x2b9   : > { %v4252_v60 = vor.u32 %v4251_v47, %v4248_v63  ;;  %v4042_v35 = vld [vmem:[#allocation2 + $0x34] sm:$0x1]  ;;  %v4113_v40 = vshll.u32 %v4040_v42, 16  ;;  %v4257_v45 = vrot.slane %v4255_v15, 5  ;;  %v4331_v19 = vunpack.c.l.b16 %v4244_v11  ;;  %v4171_v41 = vld [vmem:[#allocation2 + $0x30] sm:$0xf] }
 0x2ba   : > { %v3881_v44 = vrot.slane %v3879_v52, 7  ;;  %4670 = vmatmul.bf16.gmra.mxu3 %v11632_v17  ;;  %v4106_v18 = vrot.slane %v4104_v58, 4  ;;  %v4109_v48 = vrot.slane %v4107_v4, 5  ;;  %v4118_v8 = vshrl.u32 %v4041_v43, 16  ;;  %v11651_v46 = vld [vmem:[#allocation2 + $0x30] sm:$0xf] }
 0x2bb   : > { %v4253_v50 = vrot.slane %v4252_v60, 4  ;;  %v4115_v55 = vrot.slane %v4113_v40, 5  ;;  %v4121_v23 = vshll.u32 %v4041_v43, 16  ;;  %v4127_v34 = vshll.u32 %v4042_v35, 16  ;;  %v4172_v38 = vld [vmem:[#allocation2 + $0x34] sm:$0x1] }
 0x2bc   : > { %v3884_v16 = vor.u32 %v3882_v39, %v3881_v44  ;;  %v3885_v25 = vrot.slane %v3881_v44, 4  ;;  %v4110_v2 = vor.u32 %v4109_v48, %v4106_v18  ;;  %v4120_v56 = vrot.slane %v4118_v8, 4  ;;  %v5152_v27 = vld [vmem:[#allocation2] sm:$0xf]  ;;  %v5153_v52 = vld [vmem:[#allocation2 + $0x8] sm:$0xf] }
 0x2bd   : > { %v4258_v0 = vsel %vm13564_vm15, %v4253_v50, %v4257_v45  ;;  %v4260_v21 = vshrl.u32 %v4171_v41, 16  ;;  %v4123_v53 = vrot.slane %v4121_v23, 5  ;;  %v4129_v31 = vrot.slane %v4127_v34, 5  ;;  %v12905_v30 = vld [vmem:[%s17143_s5 + $0x180] sm:$0xff]  ;;  %v14942_v35 = vld [vmem:[#allocation2 + $0xc] sm:$0x1] }
 0x2be   : > { %v3944_v57 = vsel %vm13278_vm4, %v3884_v16, %v3943_v49  ;;  %v3947_v62 = vsel %vm13471_vm7, %v3885_v25, %v3946_v36  ;;  %v4332_v6 = vunpack.c.l.b16 %v4258_v0  ;;  %v12856_v54 = vld [vmem:[#allocation2 + $0x34] sm:$0xf0]  ;;  %v4111_v26 = vrot.slane %v4110_v2, 4  ;;  %v12889_v17 = vld [vmem:[%s17143_s5 + $0x100] sm:$0xff]  ;;  %5658 = vmatpush.bf16.msrb.mxu0 %v12905_v30 }
 0x2bf   : > { %3948 = vst [vmem:[#allocation2 + $0x44] sm:$0x1] %v3947_v62  ;;  %v11652_v59 = vor.u32 %v12856_v54, %v11651_v46  ;;  %v4173_v61 = vld [vmem:[#allocation2 + $0x38] sm:$0xf]  ;;  %v4124_v3 = vor.u32 %v4123_v53, %v4120_v56  ;;  %v4174_v20 = vld [vmem:[#allocation2 + $0x3c] sm:$0x1]  ;;  %5600 = vmatpush.bf16.msrb.mxu2 %v12889_v17 }
 0x2c0   : > { %3945 = vst [vmem:[#allocation2 + $0x40] sm:$0xf] %v3944_v57  ;;  %v4337_v24 = vpack.c.b16 %v4332_v6, %v4331_v19  ;;  %v4262_v32 = vrot.slane %v4260_v21, 4  ;;  %v4263_v42 = vshll.u32 %v4171_v41, 16  ;;  %v4116_v7 = vsel %vm13564_vm15, %v4111_v26, %v4115_v55  ;;  %v14940_v60 = vld [vmem:[#allocation2 + $0x4] sm:$0x1] }
 0x2c1   : > { %v4269_v13 = vshll.u32 %v4172_v38, 16  ;;  %v4274_v33 = vshrl.u32 %v4173_v61, 16  ;;  %v4277_v28 = vshll.u32 %v4173_v61, 16  ;;  %v4125_v5 = vrot.slane %v4124_v3, 4  ;;  %v11635_v9 = vld [vmem:[#allocation2 + $0x38] sm:$0xf] }
 0x2c2   : > { %4699 = vmatmul.bf16.gmra.mxu0 %v4337_v24  ;;  %4733 = vmatmul.bf16.gmra.mxu1 %v11652_v59  ;;  %v4291_v51 = vunpack.c.l.b16 %v4116_v7  ;;  %v4265_v43 = vrot.slane %v4263_v42, 5  ;;  %v4283_v1 = vshll.u32 %v4174_v20, 16  ;;  %v5161_v39 = vshrl.u32 %v5152_v27, 16  ;;  %v4043_v50 = vld [vmem:[#allocation2 + $0x38] sm:$0xf] }
 0x2c3   : > { %v4271_v12 = vrot.slane %v4269_v13, 5  ;;  %v4276_v63 = vrot.slane %v4274_v33, 4  ;;  %v4279_v47 = vrot.slane %v4277_v28, 5  ;;  %v4130_v15 = vsel %vm13564_vm15, %v4125_v5, %v4129_v31  ;;  %v4044_v56 = vld [vmem:[#allocation2 + $0x3c] sm:$0x1] }
 0x2c4   : > { %v4266_v58 = vor.u32 %v4265_v43, %v4262_v32  ;;  %v4285_v11 = vrot.slane %v4283_v1, 5  ;;  %v5164_v4 = vshll.u32 %v5152_v27, 16  ;;  %v4292_v40 = vunpack.c.l.b16 %v4130_v15  ;;  %v14950_v54 = vld [vmem:[#allocation2 + $0xc] sm:$0x1]  ;;  %v4968_v53 = vld [vmem:[#allocation2 + $0x8] sm:$0xf] }
 0x2c5   : > { %v4280_v44 = vor.u32 %v4279_v47, %v4276_v63  ;;  %v5163_v45 = vrot.slane %v5161_v39, 4  ;;  %v5170_v19 = vshll.u32 %v14940_v60, 16  ;;  %v5175_v14 = vshrl.u32 %v5153_v52, 16  ;;  %v12936_v38 = vld [vmem:[%s17143_s5 + $0x238] sm:$0xff]  ;;  %v4969_v7 = vld [vmem:[#allocation2 + $0x10] sm:$0xf] }
 0x2c6   : > { %v4267_v18 = vrot.slane %v4266_v58, 4  ;;  %v5166_v41 = vrot.slane %v5164_v4, 5  ;;  %v5178_v49 = vshll.u32 %v5153_v52, 16  ;;  %v4297_v48 = vpack.c.b16 %v4292_v40, %v4291_v51  ;;  %v4046_v26 = vld [vmem:[#allocation2 + $0x44] sm:$0x1]  ;;  %v12944_v24 = vld [vmem:[%s17143_s5 + $0x278] sm:$0xff]  ;;  %6463 = vmatpush.bf16.msra.mxu2 %v12936_v38 }
 0x2c7   : > { %v12852_v55 = vld [vmem:[#allocation2 + $0x3c] sm:$0xf0]  ;;  %v4281_v8 = vrot.slane %v4280_v44, 4  ;;  %v5172_v16 = vrot.slane %v5170_v19, 5  ;;  %v5184_v25 = vshll.u32 %v14942_v35, 16  ;;  %v5177_v37 = vrot.slane %v5175_v14, 4  ;;  %6492 = vmatpush.bf16.msrb.mxu3 %v12944_v24 }
 0x2c8   : > { %v11636_v23 = vor.u32 %v12852_v55, %v11635_v9  ;;  %v4272_v34 = vsel %vm13564_vm15, %v4267_v18, %v4271_v12  ;;  %v5167_v22 = vor.u32 %v5166_v41, %v5163_v45  ;;  %v4045_v36 = vld [vmem:[#allocation2 + $0x40] sm:$0xf]  ;;  %4641 = vmatmul.bf16.gmra.mxu2 %v4297_v48  ;;  %v5180_v2 = vrot.slane %v5178_v49, 5  ;;  %v5090_v19 = vld [vmem:[#allocation2 + $0x8] sm:$0xe]  ;;  %v12943_v48 = vld [vmem:[%s17143_s5 + $0x270] sm:$0xff] }
 0x2c9   : > { %v4286_v0 = vsel %vm13564_vm15, %v4281_v8, %v4285_v11  ;;  %v4333_v46 = vunpack.c.l.b16 %v4272_v34  ;;  %v4132_v62 = vshrl.u32 %v4043_v50, 16  ;;  %v4135_v6 = vshll.u32 %v4043_v50, 16  ;;  %v14963_v11 = vld [vmem:[#allocation2 + $0x14] sm:$0x1]  ;;  %v5088_v4 = vld [vmem:[#allocation2] sm:$0xe] }
 0x2ca   : > { %4675 = vmatmul.bf16.gmra.mxu3 %v11636_v23  ;;  %v4334_v21 = vunpack.c.l.b16 %v4286_v0  ;;  %v5168_v57 = vrot.slane %v5167_v22, 4  ;;  %v5181_v27 = vor.u32 %v5180_v2, %v5177_v37  ;;  %v5186_v59 = vrot.slane %v5184_v25, 5  ;;  %v12935_v50 = vld [vmem:[%s17143_s5 + $0x230] sm:$0xff]  ;;  %v12952_v55 = vld [vmem:[%s17143_s5 + $0x2b8] sm:$0xff] }
 0x2cb   : > { %v4146_v31 = vshrl.u32 %v4045_v36, 16  ;;  %v4149_v61 = vshll.u32 %v4045_v36, 16  ;;  %v4134_v20 = vrot.slane %v4132_v62, 4  ;;  %v4137_v32 = vrot.slane %v4135_v6, 5  ;;  %v5154_v34 = vld [vmem:[#allocation2 + $0x10] sm:$0xf]  ;;  %6464 = vmatpush.bf16.msra.mxu2 %v12935_v50  ;;  %6493 = vmatpush.bf16.msrb.mxu3 %v12943_v48 }
 0x2cc   : > { %v5173_v3 = vsel %vm13564_vm15, %v5168_v57, %v5172_v16  ;;  %v4141_v42 = vshll.u32 %v4044_v56, 16  ;;  %v4338_v13 = vpack.c.b16 %v4334_v21, %v4333_v46  ;;  %v5182_v33 = vrot.slane %v5181_v27, 4  ;;  %v12960_v22 = vld [vmem:[%s17143_s5 + $0x2f8] sm:$0xff]  ;;  %6521 = vmatpush.bf16.msra.mxu0 %v12952_v55  ;;  %v4971_v48 = vld [vmem:[#allocation2 + $0x20] sm:$0xf] }
 0x2cd   : > { %v5320_v28 = vunpack.c.l.b16 %v5173_v3  ;;  %v4148_v30 = vrot.slane %v4146_v31, 4  ;;  %v4138_v5 = vor.u32 %v4137_v32, %v4134_v20  ;;  %v4151_v51 = vrot.slane %v4149_v61, 5  ;;  %v5155_v38 = vld [vmem:[#allocation2 + $0x18] sm:$0xf]  ;;  %6550 = vmatpush.bf16.msra.mxu1 %v12960_v22  ;;  %v4904_v61 = vld [vmem:[#allocation2 + $0x8] sm:$0xe] }
 0x2ce   : > { %v4155_v43 = vshll.u32 %v4046_v26, 16  ;;  %v4977_v1 = vshrl.u32 %v4968_v53, 16  ;;  %v5187_v17 = vsel %vm13564_vm15, %v5182_v33, %v5186_v59  ;;  %v4980_v12 = vshll.u32 %v4968_v53, 16  ;;  %v14986_v53 = vld [vmem:[#allocation2 + $0x14] sm:$0x1] }
 0x2cf   : > { %v4986_v63 = vshll.u32 %v14950_v54, 16  ;;  %v4991_v47 = vshrl.u32 %v4969_v7, 16  ;;  %v5321_v52 = vunpack.c.l.b16 %v5187_v17  ;;  %v4139_v39 = vrot.slane %v4138_v5, 4  ;;  %v12942_v5 = vld [vmem:[%s17143_s5 + $0x268] sm:$0xff] }
 0x2d0   : > { %v4143_v15 = vrot.slane %v4141_v42, 5  ;;  %v4152_v58 = vor.u32 %v4151_v51, %v4148_v30  ;;  %v4157_v40 = vrot.slane %v4155_v43, 5  ;;  %v4979_v9 = vrot.slane %v4977_v1, 4  ;;  %v4906_v42 = vld [vmem:[#allocation2 + $0x10] sm:$0xe]  ;;  %v12934_v30 = vld [vmem:[%s17143_s5 + $0x228] sm:$0xff]  ;;  %6494 = vmatpush.bf16.msrb.mxu3 %v12942_v5 }
 0x2d1   : > { %v4982_v44 = vrot.slane %v4980_v12, 5  ;;  %v4993_v45 = vrot.slane %v4991_v47, 4  ;;  %v5328_v18 = vpack.c.b16 %v5321_v52, %v5320_v28  ;;  %v4994_v49 = vshll.u32 %v4969_v7, 16  ;;  %v4970_v12 = vld [vmem:[#allocation2 + $0x18] sm:$0xf]  ;;  %v12959_v47 = vld [vmem:[%s17143_s5 + $0x2f0] sm:$0xff]  ;;  %6465 = vmatpush.bf16.msra.mxu2 %v12934_v30 }
 0x2d2   : > { %4704 = vmatmul.bf16.gmra.mxu0 %v4338_v13  ;;  %v4144_v41 = vsel %vm13564_vm15, %v4139_v39, %v4143_v15  ;;  %v4153_v14 = vrot.slane %v4152_v58, 4  ;;  %v4988_v16 = vrot.slane %v4986_v63, 5  ;;  %v5000_v25 = vshll.u32 %v14963_v11, 16  ;;  %v12951_v63 = vld [vmem:[%s17143_s5 + $0x2b0] sm:$0xff]  ;;  %6551 = vmatpush.bf16.msra.mxu1 %v12959_v47  ;;  %v15051_v47 = vld [vmem:[#allocation2 + $0x2c] sm:$0x1] }
 0x2d3   : > { %v4983_v8 = vor.u32 %v4982_v44, %v4979_v9  ;;  %v11789_v23 = vrot.slane %v5088_v4, 9  ;;  %5688 = vmatmul.bf16.vlgmr.msrb.gmra.mxu1 %v5328_v18  ;;  %v4996_v36 = vrot.slane %v4994_v49, 5  ;;  %v5122_v0 = vrot.slane %v14940_v60, 5  ;;  %v15010_v4 = vld [vmem:[#allocation2 + $0x1c] sm:$0x1]  ;;  %6522 = vmatpush.bf16.msra.mxu0 %v12951_v63 }
 0x2d4   : > { %v4158_v37 = vsel %vm13564_vm15, %v4153_v14, %v4157_v40  ;;  %v11790_v46 = vrot.slane %v5090_v19, 9  ;;  %v4293_v2 = vunpack.c.l.b16 %v4144_v41  ;;  %v5126_v57 = vrot.slane %v14942_v35, 5  ;;  %v14992_v35 = vld [vmem:[#allocation2 + $0x1c] sm:$0x1] }
 0x2d5   : > { %v4294_v56 = vunpack.c.l.b16 %v4158_v37  ;;  %v4984_v21 = vrot.slane %v4983_v8, 4  ;;  %v4997_v62 = vor.u32 %v4996_v36, %v4993_v45  ;;  %v5123_v6 = vsel %vm13509_vm12, %v11789_v23, %v5122_v0  ;;  %v15024_v0 = vld [vmem:[#allocation2 + $0x24] sm:$0x1] }
 0x2d6   : > { %v5189_v27 = vshrl.u32 %v5154_v34, 16  ;;  %v5192_v59 = vshll.u32 %v5154_v34, 16  ;;  %v5127_v31 = vsel %vm13509_vm12, %v11790_v46, %v5126_v57  ;;  %v5002_v3 = vrot.slane %v5000_v25, 5  ;;  %v5092_v34 = vld [vmem:[#allocation2 + $0x10] sm:$0xe] }
 0x2d7   : > { %v4298_v60 = vpack.c.b16 %v4294_v56, %v4293_v2  ;;  %v4989_v26 = vsel %vm13564_vm15, %v4984_v21, %v4988_v16  ;;  %v4998_v24 = vrot.slane %v4997_v62, 4  ;;  %v5304_v20 = vunpack.c.l.b16 %v5123_v6  ;;  %v5094_v62 = vld [vmem:[#allocation2 + $0x18] sm:$0xe]  ;;  %v5156_v6 = vld [vmem:[#allocation2 + $0x20] sm:$0xf] }
 0x2d8   : > { %v5191_v32 = vrot.slane %v5189_v27, 4  ;;  %v5194_v7 = vrot.slane %v5192_v59, 5  ;;  %v5198_v13 = vshll.u32 %v14986_v53, 16  ;;  %v5203_v33 = vshrl.u32 %v5155_v38, 16 }
 0x2d9   : > { %4646 = vmatmul.bf16.gmra.mxu2 %v4298_v60  ;;  %v5206_v28 = vshll.u32 %v5155_v38, 16  ;;  %v5003_v51 = vsel %vm13564_vm15, %v4998_v24, %v5002_v3  ;;  %v5288_v43 = vunpack.c.l.b16 %v4989_v26  ;;  %v5305_v1 = vunpack.c.l.b16 %v5127_v31  ;;  %v12933_v26 = vld [vmem:[%s17143_s5 + $0x220] sm:$0xff] }
 0x2da   : > { %v11781_v17 = vrot.slane %v4904_v61, 9  ;;  %v5289_v52 = vunpack.c.l.b16 %v5003_v51  ;;  %v5195_v39 = vor.u32 %v5194_v7, %v5191_v32  ;;  %v5205_v15 = vrot.slane %v5203_v33, 4  ;;  %v12941_v31 = vld [vmem:[%s17143_s5 + $0x260] sm:$0xff]  ;;  %v12950_v61 = vld [vmem:[%s17143_s5 + $0x2a8] sm:$0xff]  ;;  %6466 = vmatpush.bf16.msra.mxu2 %v12933_v26 }
 0x2db   : > { %v5212_v58 = vshll.u32 %v14992_v35, 16  ;;  %v5200_v40 = vrot.slane %v5198_v13, 5  ;;  %v5208_v9 = vrot.slane %v5206_v28, 5  ;;  %v4938_v44 = vrot.slane %v14950_v54, 5  ;;  %v12957_v7 = vld [vmem:[%s17143_s5 + $0x2e0] sm:$0xff]  ;;  %6495 = vmatpush.bf16.msrb.mxu3 %v12941_v31  ;;  %6523 = vmatpush.bf16.msra.mxu0 %v12950_v61 }
 0x2dc   : > { %v11782_v45 = vrot.slane %v4906_v42, 9  ;;  %v5296_v19 = vpack.c.b16 %v5289_v52, %v5288_v43  ;;  %v5196_v18 = vrot.slane %v5195_v39, 4  ;;  %v4942_v41 = vrot.slane %v14963_v11, 5  ;;  %v12958_v11 = vld [vmem:[%s17143_s5 + $0x2e8] sm:$0xff]  ;;  %v15038_v42 = vld [vmem:[#allocation2 + $0x24] sm:$0x1] }
 0x2dd   : > { %v5005_v14 = vshrl.u32 %v4970_v12, 16  ;;  %v5209_v49 = vor.u32 %v5208_v9, %v5205_v15  ;;  %v4939_v50 = vsel %vm13509_vm12, %v11781_v17, %v4938_v44  ;;  %v5008_v55 = vshll.u32 %v4970_v12, 16  ;;  %6552 = vmatpush.bf16.msra.mxu1 %v12958_v11  ;;  %v5157_v43 = vld [vmem:[#allocation2 + $0x28] sm:$0xf]  ;;  %v4908_v52 = vld [vmem:[#allocation2 + $0x18] sm:$0xe] }
 0x2de   : > { %v5014_v8 = vshll.u32 %v15010_v4, 16  ;;  %5630 = vmatmul.bf16.vlgmr.msra.gmra.mxu3 %v5296_v19  ;;  %v5312_v16 = vpack.c.b16 %v5305_v1, %v5304_v20  ;;  %v5201_v54 = vsel %vm13564_vm15, %v5196_v18, %v5200_v40  ;;  %v4943_v25 = vsel %vm13509_vm12, %v11782_v45, %v4942_v41  ;;  %v4910_v9 = vld [vmem:[#allocation2 + $0x20] sm:$0xe]  ;;  %v12956_v44 = vld [vmem:[%s17143_s5 + $0x2d8] sm:$0xff] }
 0x2df   : > { %v5007_v23 = vrot.slane %v5005_v14, 4  ;;  %v5210_v22 = vrot.slane %v5209_v49, 4  ;;  %v5214_v37 = vrot.slane %v5212_v58, 5  ;;  %v5272_v36 = vunpack.c.l.b16 %v4939_v50  ;;  %v4972_v14 = vld [vmem:[#allocation2 + $0x28] sm:$0xf] }
 0x2e0   : > { %v5010_v46 = vrot.slane %v5008_v55, 5  ;;  %v5322_v2 = vunpack.c.l.b16 %v5201_v54  ;;  %v5273_v56 = vunpack.c.l.b16 %v4943_v25  ;;  %v5019_v21 = vshrl.u32 %v4971_v48, 16  ;;  %v12949_v54 = vld [vmem:[%s17143_s5 + $0x2a0] sm:$0xff] }
 0x2e1   : > { %v5022_v57 = vshll.u32 %v4971_v48, 16  ;;  %v5215_v38 = vsel %vm13564_vm15, %v5210_v22, %v5214_v37  ;;  %v5016_v59 = vrot.slane %v5014_v8, 5  ;;  %v11791_v60 = vrot.slane %v5092_v34, 9  ;;  %6553 = vmatpush.bf16.msra.mxu1 %v12957_v7  ;;  %v12932_v8 = vld [vmem:[%s17143_s5 + $0x218] sm:$0xff]  ;;  %v15068_v22 = vld [vmem:[#allocation2 + $0x2c] sm:$0x1]  ;;  %6524 = vmatpush.bf16.msra.mxu0 %v12949_v54 }
 0x2e2   : > { %5659 = vmatmul.bf16.vlgmr.msrb.gmra.mxu0 %v5312_v16  ;;  %v5011_v27 = vor.u32 %v5010_v46, %v5007_v23  ;;  %v5323_v24 = vunpack.c.l.b16 %v5215_v38  ;;  %v5021_v3 = vrot.slane %v5019_v21, 4  ;;  %v5028_v32 = vshll.u32 %v15024_v0, 16  ;;  %v12940_v16 = vld [vmem:[%s17143_s5 + $0x258] sm:$0xff]  ;;  %v12955_v37 = vld [vmem:[%s17143_s5 + $0x2d0] sm:$0xff]  ;;  %6467 = vmatpush.bf16.msra.mxu2 %v12932_v8 }
 0x2e3   : > { %v5024_v20 = vrot.slane %v5022_v57, 5  ;;  %v5130_v33 = vrot.slane %v14986_v53, 5  ;;  %v11792_v28 = vrot.slane %v5094_v62, 9  ;;  %v5134_v30 = vrot.slane %v14992_v35, 5  ;;  %6496 = vmatpush.bf16.msrb.mxu3 %v12940_v16  ;;  %v15083_v7 = vld [vmem:[#allocation2 + $0x34] sm:$0x1] }
 0x2e4   : > { %v5012_v13 = vrot.slane %v5011_v27, 4  ;;  %v5329_v5 = vpack.c.b16 %v5323_v24, %v5322_v2  ;;  %v5217_v1 = vshrl.u32 %v5156_v6, 16  ;;  %v5220_v17 = vshll.u32 %v5156_v6, 16  ;;  %v15113_v54 = vld [vmem:[#allocation2 + $0x3c] sm:$0x1] }
 0x2e5   : > { %v5025_v51 = vor.u32 %v5024_v20, %v5021_v3  ;;  %v5131_v63 = vsel %vm13509_vm12, %v11791_v60, %v5130_v33  ;;  %v5135_v53 = vsel %vm13509_vm12, %v11792_v28, %v5134_v30  ;;  %v5226_v35 = vshll.u32 %v15038_v42, 16  ;;  %6554 = vmatpush.bf16.msra.mxu1 %v12956_v44  ;;  %v12954_v33 = vld [vmem:[%s17143_s5 + $0x2c8] sm:$0xff]  ;;  %v12948_v44 = vld [vmem:[%s17143_s5 + $0x298] sm:$0xff] }
 0x2e6   : > { %v5017_v12 = vsel %vm13564_vm15, %v5012_v13, %v5016_v59  ;;  %5693 = vmatmul.bf16.gmra.mxu1 %v5329_v5  ;;  %v5280_v39 = vpack.c.b16 %v5273_v56, %v5272_v36  ;;  %v5030_v58 = vrot.slane %v5028_v32, 5  ;;  %v5306_v45 = vunpack.c.l.b16 %v5131_v63  ;;  %v4973_v59 = vld [vmem:[#allocation2 + $0x30] sm:$0xf]  ;;  %6525 = vmatpush.bf16.msra.mxu0 %v12948_v44  ;;  %v4919_v44 = vld [vmem:[#allocation2 + $0x44] sm:$0x1] }
 0x2e7   : > { %v5026_v15 = vrot.slane %v5025_v51, 4  ;;  %v5290_v40 = vunpack.c.l.b16 %v5017_v12  ;;  %v5219_v19 = vrot.slane %v5217_v1, 4  ;;  %v5222_v18 = vrot.slane %v5220_v17, 5 }
 0x2e8   : > { %v5231_v41 = vshrl.u32 %v5157_v43, 16  ;;  %v5307_v50 = vunpack.c.l.b16 %v5135_v53  ;;  %v5228_v48 = vrot.slane %v5226_v35, 5  ;;  %v5234_v55 = vshll.u32 %v5157_v43, 16  ;;  %v5098_v43 = vld [vmem:[#allocation2 + $0x28] sm:$0xe] }
 0x2e9   : > { %5601 = vmatmul.bf16.vlgmr.msrb.gmra.mxu2 %v5280_v39  ;;  %v5031_v49 = vsel %vm13564_vm15, %v5026_v15, %v5030_v58  ;;  %v5223_v23 = vor.u32 %v5222_v18, %v5219_v19  ;;  %v11783_v11 = vrot.slane %v4908_v52, 9  ;;  %v5240_v46 = vshll.u32 %v15051_v47, 16  ;;  %6555 = vmatpush.bf16.msra.mxu1 %v12955_v37  ;;  %v15090_v53 = vld [vmem:[#allocation2 + $0x34] sm:$0x1]  ;;  %v5158_v35 = vld [vmem:[#allocation2 + $0x30] sm:$0xf] }
 0x2ea   : > { %v5291_v25 = vunpack.c.l.b16 %v5031_v49  ;;  %v5233_v34 = vrot.slane %v5231_v41, 4  ;;  %v5236_v36 = vrot.slane %v5234_v55, 5  ;;  %v4946_v2 = vrot.slane %v15010_v4, 5 }
 0x2eb   : > { %v11784_v56 = vrot.slane %v4910_v9, 9  ;;  %v5224_v57 = vrot.slane %v5223_v23, 4  ;;  %v4950_v62 = vrot.slane %v15024_v0, 5  ;;  %v5033_v6 = vshrl.u32 %v4972_v14, 16  ;;  %v5096_v0 = vld [vmem:[#allocation2 + $0x20] sm:$0xe] }
 0x2ec   : > { %v5297_v21 = vpack.c.b16 %v5291_v25, %v5290_v40  ;;  %v5237_v38 = vor.u32 %v5236_v36, %v5233_v34  ;;  %v4947_v27 = vsel %vm13509_vm12, %v11783_v11, %v4946_v2  ;;  %v5036_v60 = vshll.u32 %v4972_v14, 16  ;;  %v12931_v40 = vld [vmem:[%s17143_s5 + $0x210] sm:$0xff]  ;;  %v12953_v14 = vld [vmem:[%s17143_s5 + $0x2c0] sm:$0xff]  ;;  %v4912_v36 = vld [vmem:[#allocation2 + $0x28] sm:$0xe] }
 0x2ed   : > { %v5042_v26 = vshll.u32 %v15068_v22, 16  ;;  %v5313_v31 = vpack.c.b16 %v5307_v50, %v5306_v45  ;;  %v5229_v4 = vsel %vm13564_vm15, %v5224_v57, %v5228_v48  ;;  %v4951_v61 = vsel %vm13509_vm12, %v11784_v56, %v4950_v62  ;;  %6556 = vmatpush.bf16.msra.mxu1 %v12954_v33  ;;  %v12939_v9 = vld [vmem:[%s17143_s5 + $0x250] sm:$0xff]  ;;  %v5159_v48 = vld [vmem:[#allocation2 + $0x38] sm:$0xf]  ;;  %6468 = vmatpush.bf16.msra.mxu2 %v12931_v40  ;;  %v12938_v62 = vld [vmem:[%s17143_s5 + $0x248] sm:$0xff] }
 0x2ee   : > { %v5035_v24 = vrot.slane %v5033_v6, 4  ;;  %5635 = vmatmul.bf16.gmra.mxu3 %v5297_v21  ;;  %v5238_v3 = vrot.slane %v5237_v38, 4  ;;  %v5242_v20 = vrot.slane %v5240_v46, 5  ;;  %v5274_v32 = vunpack.c.l.b16 %v4947_v27  ;;  %v12947_v25 = vld [vmem:[%s17143_s5 + $0x290] sm:$0xff] }
 0x2ef   : > { %v5038_v13 = vrot.slane %v5036_v60, 5  ;;  %v5324_v28 = vunpack.c.l.b16 %v5229_v4  ;;  %v5275_v30 = vunpack.c.l.b16 %v4951_v61  ;;  %v5047_v5 = vshrl.u32 %v4973_v59, 16  ;;  %6497 = vmatpush.bf16.msrb.mxu3 %v12939_v9  ;;  %v4914_v57 = vld [vmem:[#allocation2 + $0x30] sm:$0xe]  ;;  %v4974_v60 = vld [vmem:[#allocation2 + $0x38] sm:$0xf]  ;;  %6526 = vmatpush.bf16.msra.mxu0 %v12947_v25 }
 0x2f0   : > { %v5050_v51 = vshll.u32 %v4973_v59, 16  ;;  %v5243_v1 = vsel %vm13564_vm15, %v5238_v3, %v5242_v20  ;;  %v5044_v12 = vrot.slane %v5042_v26, 5  ;;  %v11793_v63 = vrot.slane %v5096_v0, 9  ;;  %v12930_v0 = vld [vmem:[%s17143_s5 + $0x208] sm:$0xff] }
 0x2f1   : > { %v5039_v17 = vor.u32 %v5038_v13, %v5035_v24  ;;  %v5325_v52 = vunpack.c.l.b16 %v5243_v1  ;;  %v5049_v39 = vrot.slane %v5047_v5, 4  ;;  %v5056_v58 = vshll.u32 %v15083_v7, 16  ;;  %6557 = vmatpush.bf16.msra.mxu1 %v12953_v14  ;;  %v15124_v24 = vld [vmem:[#allocation2 + $0x3c] sm:$0x1]  ;;  %v12946_v3 = vld [vmem:[%s17143_s5 + $0x288] sm:$0xff]  ;;  %6469 = vmatpush.bf16.msra.mxu2 %v12930_v0 }
 0x2f2   : > { %5664 = vmatmul.bf16.gmra.mxu0 %v5313_v31  ;;  %v5052_v15 = vrot.slane %v5050_v51, 5  ;;  %v5138_v19 = vrot.slane %v15038_v42, 5  ;;  %v11794_v18 = vrot.slane %v5098_v43, 9  ;;  %v5142_v41 = vrot.slane %v15051_v47, 5 }
 0x2f3   : > { %v5040_v45 = vrot.slane %v5039_v17, 4  ;;  %v5330_v49 = vpack.c.b16 %v5325_v52, %v5324_v28  ;;  %v5245_v55 = vshrl.u32 %v5158_v35, 16  ;;  %v5248_v8 = vshll.u32 %v5158_v35, 16  ;;  %6498 = vmatpush.bf16.msrb.mxu3 %v12938_v62  ;;  %v12937_v28 = vld [vmem:[%s17143_s5 + $0x240] sm:$0xff]  ;;  %6527 = vmatpush.bf16.msra.mxu0 %v12946_v3  ;;  %v5999_v3 = vld [vmem:[#allocation2 + $0xc] sm:$0x1] }
 0x2f4   : > { %v5053_v50 = vor.u32 %v5052_v15, %v5049_v39  ;;  %v5139_v42 = vsel %vm13509_vm12, %v11793_v63, %v5138_v19  ;;  %v5143_v47 = vsel %vm13509_vm12, %v11794_v18, %v5142_v41  ;;  %v5281_v23 = vpack.c.b16 %v5275_v30, %v5274_v32 }
 0x2f5   : > { %v5045_v16 = vsel %vm13564_vm15, %v5040_v45, %v5044_v12  ;;  %v5058_v11 = vrot.slane %v5056_v58, 5  ;;  %v5254_v37 = vshll.u32 %v15090_v53, 16  ;;  %v5247_v2 = vrot.slane %v5245_v55, 4  ;;  %v4975_v12 = vld [vmem:[#allocation2 + $0x40] sm:$0xf] }
 0x2f6   : > { %v5054_v34 = vrot.slane %v5053_v50, 4  ;;  %5698 = vmatmul.bf16.gmra.mxu1 %v5330_v49  ;;  %v5292_v46 = vunpack.c.l.b16 %v5045_v16  ;;  %v5250_v56 = vrot.slane %v5248_v8, 5  ;;  %v5259_v21 = vshrl.u32 %v5159_v48, 16  ;;  %v5100_v58 = vld [vmem:[#allocation2 + $0x30] sm:$0xe]  ;;  %v12945_v50 = vld [vmem:[%s17143_s5 + $0x280] sm:$0xff] }
 0x2f7   : > { %v5308_v38 = vunpack.c.l.b16 %v5139_v42  ;;  %v5309_v27 = vunpack.c.l.b16 %v5143_v47  ;;  %v5262_v59 = vshll.u32 %v5159_v48, 16  ;;  %v11785_v61 = vrot.slane %v4912_v36, 9  ;;  %6499 = vmatpush.bf16.msrb.mxu3 %v12937_v28  ;;  %v5102_v49 = vld [vmem:[#allocation2 + $0x38] sm:$0xe]  ;;  %v12929_v48 = vld [vmem:[%s17143_s5 + $0x200] sm:$0xff]  ;;  %6528 = vmatpush.bf16.msra.mxu0 %v12945_v50 }
 0x2f8   : > { %v5059_v6 = vsel %vm13564_vm15, %v5054_v34, %v5058_v11  ;;  %v5251_v31 = vor.u32 %v5250_v56, %v5247_v2  ;;  %v5261_v4 = vrot.slane %v5259_v21, 4  ;;  %v5268_v32 = vshll.u32 %v15113_v54, 16  ;;  %v4916_v47 = vld [vmem:[#allocation2 + $0x38] sm:$0xe]  ;;  %6470 = vmatpush.bf16.msra.mxu2 %v12929_v48  ;;  %v15155_v56 = vld [vmem:[#allocation2 + $0xc] sm:$0xf0] }
 0x2f9   : > { %5606 = vmatmul.bf16.gmra.mxu2 %v5281_v23  ;;  %v5293_v26 = vunpack.c.l.b16 %v5059_v6  ;;  %v5264_v20 = vrot.slane %v5262_v59, 5  ;;  %v4954_v13 = vrot.slane %v15068_v22, 5  ;;  %v11786_v33 = vrot.slane %v4914_v57, 9  ;;  %v4918_v6 = vld [vmem:[#allocation2 + $0x40] sm:$0xe] }
 0x2fa   : > { %v5252_v30 = vrot.slane %v5251_v31, 4  ;;  %v5256_v5 = vrot.slane %v5254_v37, 5  ;;  %v4958_v51 = vrot.slane %v15083_v7, 5  ;;  %v5061_v43 = vshrl.u32 %v4974_v60, 16  ;;  %v15168_v28 = vld [vmem:[#allocation2 + $0x14] sm:$0xf0] }
 0x2fb   : > { %v5265_v1 = vor.u32 %v5264_v20, %v5261_v4  ;;  %v4955_v17 = vsel %vm13509_vm12, %v11785_v61, %v4954_v13  ;;  %v5064_v63 = vshll.u32 %v4974_v60, 16  ;;  %v5070_v22 = vshll.u32 %v15124_v24, 16 }
 0x2fc   : > { %v5298_v35 = vpack.c.b16 %v5293_v26, %v5292_v46  ;;  %v5314_v52 = vpack.c.b16 %v5309_v27, %v5308_v38  ;;  %v4959_v39 = vsel %vm13509_vm12, %v11786_v33, %v4958_v51  ;;  %v5063_v15 = vrot.slane %v5061_v43, 4  ;;  %v5998_v26 = vld [vmem:[#allocation2 + $0x8] sm:$0xf]  ;;  %v15174_v43 = vld [vmem:[#allocation2 + $0x10] sm:$0xf] }
 0x2fd   : > { %v5257_v7 = vsel %vm13564_vm15, %v5252_v30, %v5256_v5  ;;  %v5266_v40 = vrot.slane %v5265_v1, 4  ;;  %v5270_v9 = vrot.slane %v5268_v32, 5  ;;  %v5066_v45 = vrot.slane %v5064_v63, 5  ;;  %v6000_v30 = vld [vmem:[#allocation2 + $0x10] sm:$0xf] }
 0x2fe   : > { %5640 = vmatmul.bf16.gmra.mxu3 %v5298_v35  ;;  %v5276_v19 = vunpack.c.l.b16 %v4955_v17  ;;  %v5277_v18 = vunpack.c.l.b16 %v4959_v39  ;;  %v5075_v41 = vshrl.u32 %v4975_v12, 16  ;;  %v5078_v14 = vshll.u32 %v4975_v12, 16  ;;  %v6001_v63 = vld [vmem:[#allocation2 + $0x14] sm:$0x1] }
 0x2ff   : > { %v5271_v55 = vsel %vm13564_vm15, %v5266_v40, %v5270_v9  ;;  %v5067_v8 = vor.u32 %v5066_v45, %v5063_v15  ;;  %v5072_v16 = vrot.slane %v5070_v22, 5  ;;  %v11795_v42 = vrot.slane %v5100_v58, 9  ;;  %v12968_v40 = vld [vmem:[%s17143_s5 + $0x338] sm:$0xff] }
 0x300   : > { %v5327_v25 = vunpack.c.l.b16 %v5271_v55  ;;  %v5077_v23 = vrot.slane %v5075_v41, 4  ;;  %v5080_v34 = vrot.slane %v5078_v14, 5  ;;  %v5084_v11 = vshll.u32 %v4919_v44, 16  ;;  %v12976_v9 = vld [vmem:[%s17143_s5 + $0x378] sm:$0xff]  ;;  %v5871_v41 = vld [vmem:[#allocation2 + $0x14] sm:$0x1]  ;;  %7429 = vmatpush.bf16.msrb.mxu2 %v12968_v40 }
 0x301   : > { %v5068_v37 = vrot.slane %v5067_v8, 4  ;;  %v5146_v36 = vrot.slane %v15090_v53, 5  ;;  %v11796_v46 = vrot.slane %v5102_v49, 9  ;;  %v5150_v2 = vrot.slane %v15113_v54, 5  ;;  %v15163_v53 = vld [vmem:[#allocation2 + $0x8] sm:$0xf]  ;;  %7458 = vmatpush.bf16.msra.mxu3 %v12976_v9 }
 0x302   : > { %5669 = vmatmul.bf16.gmra.mxu0 %v5314_v52  ;;  %v5326_v21 = vunpack.c.l.b16 %v5257_v7  ;;  %v5282_v57 = vpack.c.b16 %v5277_v18, %v5276_v19  ;;  %v5081_v62 = vor.u32 %v5080_v34, %v5077_v23  ;;  %v11787_v38 = vrot.slane %v4916_v47, 9  ;;  %v5870_v52 = vld [vmem:[#allocation2 + $0x10] sm:$0xf]  ;;  %v5872_v14 = vld [vmem:[#allocation2 + $0x18] sm:$0xf] }
 0x303   : > { %v5073_v27 = vsel %vm13564_vm15, %v5068_v37, %v5072_v16  ;;  %v5147_v59 = vsel %vm13509_vm12, %v11795_v42, %v5146_v36  ;;  %v5151_v60 = vsel %vm13509_vm12, %v11796_v46, %v5150_v2  ;;  %v4962_v54 = vrot.slane %v15124_v24, 5  ;;  %v5873_v8 = vld [vmem:[#allocation2 + $0x1c] sm:$0x1] }
 0x304   : > { %v5331_v31 = vpack.c.b16 %v5327_v25, %v5326_v21  ;;  %v5082_v4 = vrot.slane %v5081_v62, 4  ;;  %v5086_v61 = vrot.slane %v5084_v11, 5  ;;  %v12008_v0 = vor.u32 %v15155_v56, %v15163_v53 }
 0x305   : > { %v5294_v20 = vunpack.c.l.b16 %v5073_v27  ;;  %v5311_v32 = vunpack.c.l.b16 %v5151_v60  ;;  %v11788_v13 = vrot.slane %v4918_v6, 9  ;;  %v4966_v33 = vrot.slane %v4919_v44, 5  ;;  %v6003_v60 = vld [vmem:[#allocation2 + $0x1c] sm:$0x1] }
 0x306   : > { %5703 = vmatmul.bf16.gmra.mxu1 %v5331_v31  ;;  %v5087_v5 = vsel %vm13564_vm15, %v5082_v4, %v5086_v61  ;;  %v5310_v24 = vunpack.c.l.b16 %v5147_v59  ;;  %v4963_v51 = vsel %vm13509_vm12, %v11787_v38, %v4962_v54  ;;  %v6015_v1 = vshrl.u32 %v5998_v26, 16  ;;  %v6004_v61 = vld [vmem:[#allocation2 + $0x20] sm:$0xf] }
 0x307   : > { %v5295_v17 = vunpack.c.l.b16 %v5087_v5  ;;  %v4967_v12 = vsel %vm13509_vm12, %v11788_v13, %v4966_v33  ;;  %v6018_v22 = vshll.u32 %v5998_v26, 16  ;;  %v6024_v35 = vshll.u32 %v5999_v3, 16 }
 0x308   : > { %v11992_v39 = vor.u32 %v15168_v28, %v15174_v43  ;;  %v6017_v15 = vrot.slane %v6015_v1, 4  ;;  %v6029_v58 = vshrl.u32 %v6000_v30, 16  ;;  %v6032_v7 = vshll.u32 %v6000_v30, 16  ;;  %v15196_v30 = vld [vmem:[#allocation2 + $0x24] sm:$0xf0] }
 0x309   : > { %5611 = vmatmul.bf16.gmra.mxu2 %v5282_v57  ;;  %v5315_v44 = vpack.c.b16 %v5311_v32, %v5310_v24  ;;  %v5278_v45 = vunpack.c.l.b16 %v4963_v51  ;;  %v5279_v19 = vunpack.c.l.b16 %v4967_v12  ;;  %v6020_v18 = vrot.slane %v6018_v22, 5  ;;  %v6002_v57 = vld [vmem:[#allocation2 + $0x18] sm:$0xf]  ;;  %v15194_v32 = vld [vmem:[#allocation2 + $0x1c] sm:$0xf0] }
 0x30a   : > { %v5299_v49 = vpack.c.b16 %v5295_v17, %v5294_v20  ;;  %v6031_v50 = vrot.slane %v6029_v58, 4  ;;  %v6034_v48 = vrot.slane %v6032_v7, 5  ;;  %v6038_v55 = vshll.u32 %v6001_v63, 16  ;;  %v15192_v20 = vld [vmem:[#allocation2 + $0x18] sm:$0xf] }
 0x30b   : > { %v6021_v16 = vor.u32 %v6020_v18, %v6017_v15  ;;  %v6026_v42 = vrot.slane %v6024_v35, 5  ;;  %v5887_v47 = vshrl.u32 %v5870_v52, 16  ;;  %v5890_v25 = vshll.u32 %v5870_v52, 16  ;;  %v15200_v1 = vld [vmem:[#allocation2 + $0x20] sm:$0xf] }
 0x30c   : > { %v6035_v23 = vor.u32 %v6034_v48, %v6031_v50  ;;  %v5896_v34 = vshll.u32 %v5871_v41, 16  ;;  %v5901_v11 = vshrl.u32 %v5872_v14, 16  ;;  %v5904_v37 = vshll.u32 %v5872_v14, 16  ;;  %v6005_v22 = vld [vmem:[#allocation2 + $0x24] sm:$0x1] }
 0x30d   : > { %v6022_v36 = vrot.slane %v6021_v16, 4  ;;  %v5889_v46 = vrot.slane %v5887_v47, 4  ;;  %v5892_v2 = vrot.slane %v5890_v25, 5  ;;  %v5910_v21 = vshll.u32 %v5873_v8, 16  ;;  %v5875_v14 = vld [vmem:[#allocation2 + $0x24] sm:$0x1] }
 0x30e   : > { %5645 = vmatmul.bf16.gmra.mxu3 %v5299_v49  ;;  %v6036_v6 = vrot.slane %v6035_v23, 4  ;;  %v6040_v38 = vrot.slane %v6038_v55, 5  ;;  %v5903_v27 = vrot.slane %v5901_v11, 4  ;;  %v5906_v59 = vrot.slane %v5904_v37, 5  ;;  %v5876_v49 = vld [vmem:[#allocation2 + $0x28] sm:$0xf] }
 0x30f   : > { %v15186_v62 = vpop.f32.mrf.mxu1  ;;  %v5283_v54 = vpack.c.b16 %v5279_v19, %v5278_v45  ;;  %v6027_v26 = vsel %vm13564_vm15, %v6022_v36, %v6026_v42  ;;  %v5893_v31 = vor.u32 %v5892_v2, %v5889_v46  ;;  %v5898_v4 = vrot.slane %v5896_v34, 5  ;;  %v15221_v25 = vld [vmem:[#allocation2 + $0x28] sm:$0xf]  ;;  %v15223_v23 = vld [vmem:[#allocation2 + $0x2c] sm:$0xf0] }
 0x310   : > { %v6041_v3 = vsel %vm13564_vm15, %v6036_v6, %v6040_v38  ;;  %v5907_v13 = vor.u32 %v5906_v59, %v5903_v27  ;;  %v5912_v33 = vrot.slane %v5910_v21, 5  ;;  %v6043_v5 = vshrl.u32 %v6002_v57, 16  ;;  %v5877_v46 = vld [vmem:[#allocation2 + $0x2c] sm:$0x1]  ;;  %v6006_v6 = vld [vmem:[#allocation2 + $0x28] sm:$0xf] }
 0x311   : > { %v15198_v24 = vunpack.c.l.b16 %v6041_v3  ;;  %v5894_v51 = vrot.slane %v5893_v31, 4  ;;  %v6046_v17 = vshll.u32 %v6002_v57, 16  ;;  %v6052_v12 = vshll.u32 %v6003_v60, 16  ;;  %v6007_v3 = vld [vmem:[#allocation2 + $0x2c] sm:$0x1] }
 0x312   : > { %5674 = vmatmul.bf16.gmra.mxu0 %v5315_v44  ;;  %v5908_v63 = vrot.slane %v5907_v13, 4  ;;  %v6045_v35 = vrot.slane %v6043_v5, 4  ;;  %v6057_v52 = vshrl.u32 %v6004_v61, 16  ;;  %v6060_v15 = vshll.u32 %v6004_v61, 16  ;;  %v5874_v44 = vld [vmem:[#allocation2 + $0x20] sm:$0xf] }
 0x313   : > { %v15202_v58 = vunpack.c.l.b16 %v6027_v26  ;;  %v12012_v7 = vor.u32 %v15194_v32, %v15192_v20  ;;  %v11996_v40 = vor.u32 %v15196_v30, %v15200_v1  ;;  %v6048_v9 = vrot.slane %v6046_v17, 5  ;;  %v6008_v26 = vld [vmem:[#allocation2 + $0x30] sm:$0xf]  ;;  %v6009_v13 = vld [vmem:[#allocation2 + $0x34] sm:$0x1]  ;;  %v12982_v30 = vld [vmem:[%s17143_s5 + $0x3a8] sm:$0xff] }
 0x314   : > { %v5899_v45 = vsel %vm13564_vm15, %v5894_v51, %v5898_v4  ;;  %v5913_v19 = vsel %vm13564_vm15, %v5908_v63, %v5912_v33  ;;  %v6059_v18 = vrot.slane %v6057_v52, 4  ;;  %v6062_v41 = vrot.slane %v6060_v15, 5  ;;  %v15241_v63 = vld [vmem:[#allocation2 + $0x34] sm:$0xf0] }
 0x315   : > { %v6174_v50 = vpack.c.b16 %v15198_v24, %v15202_v58  ;;  %v6049_v48 = vor.u32 %v6048_v9, %v6045_v35  ;;  %v6054_v55 = vrot.slane %v6052_v12, 5  ;;  %v6066_v8 = vshll.u32 %v6005_v22, 16  ;;  %v15239_v12 = vld [vmem:[#allocation2 + $0x30] sm:$0xf] }
 0x316   : > { %6558 = vmatmul.bf16.vlgmr.msra.gmra.mxu1 %v12008_v0  ;;  %v15219_v42 = vunpack.c.l.b16 %v5913_v19  ;;  %v6063_v47 = vor.u32 %v6062_v41, %v6059_v18  ;;  %v5915_v34 = vshrl.u32 %v5874_v44, 16  ;;  %v5918_v11 = vshll.u32 %v5874_v44, 16  ;;  %v12967_v19 = vld [vmem:[%s17143_s5 + $0x330] sm:$0xff]  ;;  %v12984_v41 = vld [vmem:[%s17143_s5 + $0x3b8] sm:$0xff] }
 0x317   : > { %v15217_v16 = vpop.f32.mrf.mxu1  ;;  %v15225_v37 = vunpack.c.l.b16 %v5899_v45  ;;  %v6050_v36 = vrot.slane %v6049_v48, 4  ;;  %v5924_v2 = vshll.u32 %v5875_v14, 16  ;;  %v5929_v21 = vshrl.u32 %v5876_v49, 16  ;;  %v5878_v45 = vld [vmem:[#allocation2 + $0x30] sm:$0xf]  ;;  %7430 = vmatpush.bf16.msrb.mxu2 %v12967_v19  ;;  %7487 = vmatpush.bf16.msrb.mxu0 %v12984_v41 }
 0x318   : > { %v6064_v56 = vrot.slane %v6063_v47, 4  ;;  %v6068_v53 = vrot.slane %v6066_v8, 5  ;;  %v5917_v0 = vrot.slane %v5915_v34, 4  ;;  %v5920_v57 = vrot.slane %v5918_v11, 5  ;;  %v12975_v18 = vld [vmem:[%s17143_s5 + $0x370] sm:$0xff]  ;;  %v12992_v47 = vld [vmem:[%s17143_s5 + $0x3f8] sm:$0xff] }
 0x319   : > { %5616 = vmatmul.bf16.gmra.mxu2 %v5283_v54  ;;  %v6055_v38 = vsel %vm13564_vm15, %v6050_v36, %v6054_v55  ;;  %v12016_v27 = vor.u32 %v15223_v23, %v15221_v25  ;;  %v5931_v59 = vrot.slane %v5929_v21, 4  ;;  %v5932_v60 = vshll.u32 %v5876_v49, 16  ;;  %7459 = vmatpush.bf16.msra.mxu3 %v12975_v18  ;;  %v4854_v23 = vld [vmem:[#allocation3 + $0x8] sm:$0xf] }
 0x31a   : > { %v6134_v31 = vpack.c.b16 %v15219_v42, %v15225_v37  ;;  %v6069_v54 = vsel %vm13564_vm15, %v6064_v56, %v6068_v53  ;;  %v5921_v4 = vor.u32 %v5920_v57, %v5917_v0  ;;  %v5938_v61 = vshll.u32 %v5877_v46, 16  ;;  %7516 = vmatpush.bf16.msrb.mxu1 %v12992_v47  ;;  %v5880_v0 = vld [vmem:[#allocation2 + $0x38] sm:$0xf]  ;;  %v12974_v47 = vld [vmem:[%s17143_s5 + $0x368] sm:$0xff] }
 0x31b   : > { %v15235_v33 = vpop.f32.mrf.mxu0  ;;  %v15237_v5 = vunpack.c.l.b16 %v6069_v54  ;;  %v5926_v51 = vrot.slane %v5924_v2, 5  ;;  %v5934_v17 = vrot.slane %v5932_v60, 5  ;;  %v6071_v22 = vshrl.u32 %v6006_v6, 16  ;;  %v5879_v2 = vld [vmem:[#allocation2 + $0x34] sm:$0x1] }
 0x31c   : > { %v15245_v52 = vunpack.c.l.b16 %v6055_v38  ;;  %v5922_v15 = vrot.slane %v5921_v4, 4  ;;  %v6074_v9 = vshll.u32 %v6006_v6, 16  ;;  %v6085_v44 = vshrl.u32 %v6008_v26, 16 }
 0x31d   : > { %v15243_v35 = vpop.f32.mrf.mxu3  ;;  %v5935_v14 = vor.u32 %v5934_v17, %v5931_v59  ;;  %v6073_v49 = vrot.slane %v6071_v22, 4  ;;  %v6080_v48 = vshll.u32 %v6007_v3, 16  ;;  %v6088_v55 = vshll.u32 %v6008_v26, 16  ;;  %v5881_v26 = vld [vmem:[#allocation2 + $0x3c] sm:$0x1]  ;;  %7460 = vmatpush.bf16.msra.mxu3 %v12974_v47 }
 0x31e   : > { %6500 = vmatmul.bf16.vlgmr.msrb.gmra.mxu3 %v11992_v39  ;;  %v5940_v34 = vrot.slane %v5938_v61, 5  ;;  %v12000_v11 = vor.u32 %v15241_v63, %v15239_v12  ;;  %v6076_v36 = vrot.slane %v6074_v9, 5  ;;  %v6087_v46 = vrot.slane %v6085_v44, 4  ;;  %v15277_v3 = vld [vmem:[#allocation2 + $0x38] sm:$0xf]  ;;  %v12963_v12 = vld [vmem:[%s17143_s5 + $0x310] sm:$0xff] }
 0x31f   : > { %v15259_v8 = vpop.f32.mrf.mxu1  ;;  %v6175_v21 = vpack.c.b16 %v15237_v5, %v15245_v52  ;;  %v5936_v28 = vrot.slane %v5935_v14, 4  ;;  %v6090_v43 = vrot.slane %v6088_v55, 5  ;;  %v6094_v39 = vshll.u32 %v6009_v13, 16  ;;  %v15279_v13 = vld [vmem:[#allocation2 + $0x3c] sm:$0xf0]  ;;  %v12966_v55 = vld [vmem:[%s17143_s5 + $0x328] sm:$0xff] }
 0x320   : > { %v5927_v56 = vsel %vm13564_vm15, %v5922_v15, %v5926_v51  ;;  %v6077_v53 = vor.u32 %v6076_v36, %v6073_v49  ;;  %v5943_v57 = vshrl.u32 %v5878_v45, 16  ;;  %v5946_v6 = vshll.u32 %v5878_v45, 16  ;;  %v6010_v22 = vld [vmem:[#allocation2 + $0x38] sm:$0xf]  ;;  %v15283_v44 = vld [vmem:[#allocation2 + $0x40] sm:$0xf]  ;;  %7431 = vmatpush.bf16.msrb.mxu2 %v12966_v55 }
 0x321   : > { %v5941_v38 = vsel %vm13564_vm15, %v5936_v28, %v5940_v34  ;;  %v6082_v59 = vrot.slane %v6080_v48, 5  ;;  %v6091_v60 = vor.u32 %v6090_v43, %v6087_v46  ;;  %v5952_v54 = vshll.u32 %v5879_v2, 16  ;;  %v15291_v49 = vld [vmem:[#allocation2 + $0x44] sm:$0xf0]  ;;  %v6012_v48 = vld [vmem:[#allocation2 + $0x40] sm:$0xf] }
 0x322   : > { %6529 = vmatmul.bf16.vlgmr.msra.gmra.mxu0 %v6174_v50  ;;  %v15275_v4 = vunpack.c.l.b16 %v5941_v38  ;;  %v6078_v61 = vrot.slane %v6077_v53, 4  ;;  %v5945_v51 = vrot.slane %v5943_v57, 4  ;;  %v5948_v17 = vrot.slane %v5946_v6, 5  ;;  %v12983_v34 = vld [vmem:[%s17143_s5 + $0x3b0] sm:$0xff]  ;;  %v6011_v6 = vld [vmem:[#allocation2 + $0x3c] sm:$0x1] }
 0x323   : > { %v15281_v15 = vpop.f32.mrf.mxu0  ;;  %v6092_v24 = vrot.slane %v6091_v60, 4  ;;  %v6096_v58 = vrot.slane %v6094_v39, 5  ;;  %v5957_v50 = vshrl.u32 %v5880_v0, 16  ;;  %v5960_v9 = vshll.u32 %v5880_v0, 16  ;;  %7488 = vmatpush.bf16.msrb.mxu0 %v12983_v34  ;;  %v12971_v63 = vld [vmem:[%s17143_s5 + $0x350] sm:$0xff] }
 0x324   : > { %v15287_v19 = vunpack.c.l.b16 %v5927_v56  ;;  %v6083_v18 = vsel %vm13564_vm15, %v6078_v61, %v6082_v59  ;;  %v5949_v41 = vor.u32 %v5948_v17, %v5945_v51  ;;  %v5966_v14 = vshll.u32 %v5881_v26, 16  ;;  %v12991_v56 = vld [vmem:[%s17143_s5 + $0x3f0] sm:$0xff]  ;;  %v6988_v59 = vld [vmem:[#allocation2 + $0x8] sm:$0xf]  ;;  %v6013_v61 = vld [vmem:[#allocation2 + $0x44] sm:$0x1] }
 0x325   : > { %v15285_v45 = vpop.f32.mrf.mxu3  ;;  %v6097_v36 = vsel %vm13564_vm15, %v6092_v24, %v6096_v58  ;;  %v12020_v46 = vor.u32 %v15279_v13, %v15277_v3  ;;  %v5959_v2 = vrot.slane %v5957_v50, 4  ;;  %v5962_v28 = vrot.slane %v5960_v9, 5  ;;  %7517 = vmatpush.bf16.msrb.mxu1 %v12991_v56 }
 0x326   : > { %6563 = vmatmul.bf16.gmra.mxu1 %v12012_v7  ;;  %v6135_v39 = vpack.c.b16 %v15275_v4, %v15287_v19  ;;  %v15316_v53 = vunpack.c.l.b16 %v6083_v18  ;;  %v5950_v0 = vrot.slane %v5949_v41, 4  ;;  %v5954_v57 = vrot.slane %v5952_v54, 5 }
 0x327   : > { %v15309_v43 = vpop.f32.mrf.mxu1  ;;  %v15318_v38 = vunpack.c.l.b16 %v6097_v36  ;;  %v5963_v20 = vor.u32 %v5962_v28, %v5959_v2  ;;  %v6099_v32 = vshrl.u32 %v6010_v22, 16  ;;  %v6102_v7 = vshll.u32 %v6010_v22, 16  ;;  %v15337_v2 = vld [vmem:[#allocation2 + $0xc] sm:$0x1]  ;;  %v6989_v28 = vld [vmem:[#allocation2 + $0x10] sm:$0xf]  ;;  %7489 = vmatpush.bf16.msrb.mxu0 %v12982_v30 }
 0x328   : > { %v5968_v60 = vrot.slane %v5966_v14, 5  ;;  %v12004_v26 = vor.u32 %v15291_v49, %v15283_v44  ;;  %v6113_v54 = vshrl.u32 %v6012_v48, 16  ;;  %v6116_v51 = vshll.u32 %v6012_v48, 16 }
 0x329   : > { %6471 = vmatmul.bf16.vlgmr.msra.gmra.mxu2 %v6134_v31  ;;  %v5964_v24 = vrot.slane %v5963_v20, 4  ;;  %v6101_v58 = vrot.slane %v6099_v32, 4  ;;  %v6104_v50 = vrot.slane %v6102_v7, 5  ;;  %v6108_v9 = vshll.u32 %v6011_v6, 16  ;;  %v15343_v20 = vld [vmem:[#allocation2 + $0x14] sm:$0x1] }
 0x32a   : > { %v4632_v17 = vpop.f32.mrf.mxu2  ;;  %v5955_v42 = vsel %vm13564_vm15, %v5950_v0, %v5954_v57  ;;  %v6115_v37 = vrot.slane %v6113_v54, 4  ;;  %v6118_v31 = vrot.slane %v6116_v51, 5  ;;  %v6122_v48 = vshll.u32 %v6013_v61, 16  ;;  %v6804_v7 = vld [vmem:[#allocation2 + $0x10] sm:$0xf]  ;;  %v12965_v61 = vld [vmem:[%s17143_s5 + $0x320] sm:$0xff] }
 0x32b   : > { %v4662_v22 = vadd.f32 %v15243_v35, %v4632_v17  ;;  %v5969_v41 = vsel %vm13564_vm15, %v5964_v24, %v5968_v60  ;;  %v6105_v14 = vor.u32 %v6104_v50, %v6101_v58  ;;  %v6997_v55 = vshrl.u32 %v6988_v59, 16  ;;  %v12973_v54 = vld [vmem:[%s17143_s5 + $0x360] sm:$0xff]  ;;  %7432 = vmatpush.bf16.msrb.mxu2 %v12965_v61 }
 0x32c   : > { %v15328_v18 = vpop.f32.mrf.mxu0  ;;  %v15335_v36 = vunpack.c.l.b16 %v5969_v41  ;;  %v6119_v35 = vor.u32 %v6118_v31, %v6115_v37  ;;  %v7000_v56 = vshll.u32 %v6988_v59, 16  ;;  %v6176_v0 = vpack.c.b16 %v15318_v38, %v15316_v53  ;;  %v12990_v59 = vld [vmem:[%s17143_s5 + $0x3e8] sm:$0xff]  ;;  %7461 = vmatpush.bf16.msra.mxu3 %v12973_v54 }
 0x32d   : > { %v4691_v47 = vadd.f32 %v15235_v33, %v4662_v22  ;;  %v15333_v34 = vpop.f32.mrf.mxu3  ;;  %v15341_v57 = vunpack.c.l.b16 %v5955_v42  ;;  %v6106_v6 = vrot.slane %v6105_v14, 4  ;;  %v6999_v32 = vrot.slane %v6997_v55, 4  ;;  %7518 = vmatpush.bf16.msrb.mxu1 %v12990_v59  ;;  %v12989_v22 = vld [vmem:[%s17143_s5 + $0x3e0] sm:$0xff] }
 0x32e   : > { %6505 = vmatmul.bf16.gmra.mxu3 %v11996_v40  ;;  %v6110_v51 = vrot.slane %v6108_v9, 5  ;;  %v7002_v17 = vrot.slane %v7000_v56, 5  ;;  %v6124_v1 = vrot.slane %v6122_v48, 5  ;;  %v7006_v40 = vshll.u32 %v15337_v2, 16 }
 0x32f   : > { %v4720_v33 = vadd.f32 %v15186_v62, %v4691_v47  ;;  %v15349_v60 = vpop.f32.mrf.mxu1  ;;  %v6120_v62 = vrot.slane %v6119_v35, 4  ;;  %v7011_v24 = vshrl.u32 %v6989_v28, 16  ;;  %v7014_v58 = vshll.u32 %v6989_v28, 16 }
 0x330   : > { %v6136_v9 = vpack.c.b16 %v15335_v36, %v15341_v57  ;;  %v6111_v42 = vsel %vm13564_vm15, %v6106_v6, %v6110_v51  ;;  %v7003_v41 = vor.u32 %v7002_v17, %v6999_v32  ;;  %v7020_v35 = vshll.u32 %v15343_v20, 16  ;;  %v12969_v36 = vld [vmem:[%s17143_s5 + $0x340] sm:$0xff] }
 0x331   : > { %vm4739_vm4 = vcmp.ge.f32.partialorder %v4720_v33, 0.0  ;;  %v4747_v50 = vmul.f32 0.1, %v4720_v33  ;;  %v6125_v31 = vsel %vm13564_vm15, %v6120_v62, %v6124_v1  ;;  %v7013_v14 = vrot.slane %v7011_v24, 4  ;;  %7519 = vmatpush.bf16.msrb.mxu1 %v12989_v22  ;;  %v15387_v1 = vld [vmem:[#allocation2 + $0x14] sm:$0x1] }
 0x332   : > { %6534 = vmatmul.bf16.gmra.mxu0 %v6175_v21  ;;  %v4634_v37 = vpop.f32.mrf.mxu2  ;;  %v7016_v48 = vrot.slane %v7014_v58, 5  ;;  %v6813_v28 = vshrl.u32 %v6804_v7, 16  ;;  %v7004_v6 = vrot.slane %v7003_v41, 4  ;;  %v7008_v59 = vrot.slane %v7006_v40, 5  ;;  %v12964_v58 = vld [vmem:[%s17143_s5 + $0x318] sm:$0xff] }
 0x333   : > { %v4755_v55 = vsel %vm4739_vm4, %v4720_v33, %v4747_v50  ;;  %v4664_v47 = vadd.f32 %v15285_v45, %v4634_v37  ;;  %v15383_v32 = vunpack.c.l.b16 %v6125_v31  ;;  %v6805_v33 = vld [vmem:[#allocation2 + $0x18] sm:$0xf]  ;;  %v6816_v45 = vshll.u32 %v6804_v7, 16  ;;  %v6924_v41 = vld [vmem:[#allocation2 + $0x8] sm:$0xe]  ;;  %7433 = vmatpush.bf16.msrb.mxu2 %v12964_v58 }
 0x334   : > { %v4763_v56 = vpack.c.bf16 %v4755_v55, %v4755_v55  ;;  %v7017_v5 = vor.u32 %v7016_v48, %v7013_v14  ;;  %v15379_v21 = vpop.f32.mrf.mxu0  ;;  %v6815_v54 = vrot.slane %v6813_v28, 4  ;;  %v15385_v62 = vunpack.c.l.b16 %v6111_v42  ;;  %v12988_v7 = vld [vmem:[%s17143_s5 + $0x3d8] sm:$0xff]  ;;  %v12987_v55 = vld [vmem:[%s17143_s5 + $0x3d0] sm:$0xff] }
 0x335   : > { %v4693_v52 = vadd.f32 %v15281_v15, %v4664_v47  ;;  %v15381_v61 = vpop.f32.mrf.mxu3  ;;  %v7022_v30 = vrot.slane %v7020_v35, 5  ;;  %v12972_v50 = vld [vmem:[%s17143_s5 + $0x358] sm:$0xff]  ;;  %v6818_v22 = vrot.slane %v6816_v45, 5  ;;  %v6827_v37 = vshrl.u32 %v6805_v33, 16  ;;  %7520 = vmatpush.bf16.msrb.mxu1 %v12988_v7  ;;  %v6926_v7 = vld [vmem:[#allocation2 + $0x10] sm:$0xe] }
 0x336   : > { %v4772_v51 = vshrl.u32 %v4763_v56, 16  ;;  %v7018_v17 = vrot.slane %v7017_v5, 4  ;;  %v4775_v40 = vshll.u32 %v4763_v56, 16  ;;  %6568 = vmatmul.bf16.gmra.mxu1 %v12016_v27  ;;  %v12981_v27 = vld [vmem:[%s17143_s5 + $0x3a0] sm:$0xff]  ;;  %v6830_v31 = vshll.u32 %v6805_v33, 16  ;;  %7462 = vmatpush.bf16.msra.mxu3 %v12972_v50 }
 0x337   : > { %v4722_v15 = vadd.f32 %v15217_v16, %v4693_v52  ;;  %v15393_v24 = vpop.f32.mrf.mxu1  ;;  %v7009_v16 = vsel %vm13564_vm15, %v7004_v6, %v7008_v59  ;;  %v4859_v14 = vld [vmem:[#allocation3 + $0xc] sm:$0x1]  ;;  %v6177_v47 = vpack.c.b16 %v15383_v32, %v15385_v62  ;;  %v6819_v35 = vor.u32 %v6818_v22, %v6815_v54  ;;  %7490 = vmatpush.bf16.msrb.mxu0 %v12981_v27  ;;  %v15431_v58 = vld [vmem:[#allocation2 + $0x18] sm:$0xf] }
 0x338   : > { %v4774_v25 = vrot.slane %v4772_v51, 7  ;;  %v7023_v42 = vsel %vm13564_vm15, %v7018_v17, %v7022_v30  ;;  %v15419_v6 = vld [vmem:[#allocation2 + $0x1c] sm:$0x1]  ;;  %v6822_v59 = vshll.u32 %v15387_v1, 16  ;;  %v6829_v5 = vrot.slane %v6827_v37, 4  ;;  %7434 = vmatpush.bf16.msrb.mxu2 %v12963_v12 }
 0x339   : > { %vm4740_vm7 = vcmp.ge.f32.partialorder %v4722_v15, 0.0  ;;  %v4748_v48 = vmul.f32 0.1, %v4722_v15  ;;  %6476 = vmatmul.bf16.gmra.mxu2 %v6135_v39  ;;  %v15422_v39 = vunpack.c.l.b16 %v7009_v16  ;;  %v15424_v52 = vunpack.c.l.b16 %v7023_v42  ;;  %7521 = vmatpush.bf16.msrb.mxu1 %v12987_v55 }
 0x33a   : > { %v4777_v28 = vor.u32 %v4775_v40, %v4774_v25  ;;  %v4778_v56 = vrot.slane %v4774_v25, 4  ;;  %v4637_v19 = vpop.f32.mrf.mxu2  ;;  %v6832_v33 = vrot.slane %v6830_v31, 5  ;;  %v6820_v50 = vrot.slane %v6819_v35, 4  ;;  %7463 = vmatpush.bf16.msra.mxu3 %v12971_v63 }
 0x33b   : > { %v4756_v4 = vsel %vm4740_vm7, %v4722_v15, %v4748_v48  ;;  %v4667_v40 = vadd.f32 %v15333_v34, %v4637_v19  ;;  %v6836_v22 = vshll.u32 %v15419_v6, 16  ;;  %v12221_v25 = vrot.slane %v6924_v41, 9  ;;  %v15445_v41 = vld [vmem:[#allocation2 + $0x1c] sm:$0x1] }
 0x33c   : > { %v4855_v54 = vsel %vm13245_vm2, %v4777_v28, %v4854_v23  ;;  %v4860_v17 = vsel %vm13485_vm9, %v4778_v56, %v4859_v14  ;;  %v4764_v30 = vpack.c.bf16 %v4756_v4, %v4756_v4  ;;  %v6833_v16 = vor.u32 %v6832_v33, %v6829_v5  ;;  %v4865_v5 = vld [vmem:[#allocation3 + $0x14] sm:$0x1] }
 0x33d   : > { %4856 = vst [vmem:[#allocation3 + $0x8] sm:$0xf] %v4855_v54  ;;  %v15433_v15 = vpop.f32.mrf.mxu3  ;;  %v4696_v42 = vadd.f32 %v15328_v18, %v4667_v40  ;;  %v6824_v37 = vrot.slane %v6822_v59, 5  ;;  %v6838_v48 = vrot.slane %v6836_v22, 5  ;;  %v6958_v55 = vrot.slane %v15337_v2, 5  ;;  %v12986_v18 = vld [vmem:[%s17143_s5 + $0x3c8] sm:$0xff] }
 0x33e   : > { %4861 = vst [vmem:[#allocation3 + $0xc] sm:$0x1] %v4860_v17  ;;  %v4780_v23 = vshrl.u32 %v4764_v30, 16  ;;  %v4783_v27 = vshll.u32 %v4764_v30, 16  ;;  %6510 = vmatmul.bf16.gmra.mxu3 %v12000_v11  ;;  %v6834_v14 = vrot.slane %v6833_v16, 4  ;;  %v12222_v35 = vrot.slane %v6926_v7, 9  ;;  %7522 = vmatpush.bf16.msrb.mxu1 %v12986_v18 }
 0x33f   : > { %v15437_v31 = vpop.f32.mrf.mxu0  ;;  %v15442_v34 = vpop.f32.mrf.mxu1  ;;  %v4725_v56 = vadd.f32 %v15259_v8, %v4696_v42  ;;  %v6962_v11 = vrot.slane %v15343_v20, 5  ;;  %v7025_v2 = vshrl.u32 %v15431_v58, 16  ;;  %v4862_v59 = vld [vmem:[#allocation3 + $0x10] sm:$0xf]  ;;  %v12980_v8 = vld [vmem:[%s17143_s5 + $0x398] sm:$0xff]  ;;  %v6825_v4 = vsel %vm13564_vm15, %v6820_v50, %v6824_v37 }
 0x340   : > { %v4782_v28 = vrot.slane %v4780_v23, 7  ;;  %v6839_v19 = vsel %vm13564_vm15, %v6834_v14, %v6838_v48  ;;  %v6959_v33 = vsel %vm13509_vm12, %v12221_v25, %v6958_v55  ;;  %v7028_v54 = vshll.u32 %v15431_v58, 16  ;;  %v12985_v40 = vld [vmem:[%s17143_s5 + $0x3c0] sm:$0xff]  ;;  %7491 = vmatpush.bf16.msrb.mxu0 %v12980_v8 }
 0x341   : > { %vm4741_vm10 = vcmp.ge.f32.partialorder %v4725_v56, 0.0  ;;  %v4749_v30 = vmul.f32 0.1, %v4725_v56  ;;  %v15475_v50 = vunpack.c.l.b16 %v6839_v19  ;;  %v6963_v16 = vsel %vm13509_vm12, %v12222_v35, %v6962_v11  ;;  %v5882_v14 = vld [vmem:[#allocation2 + $0x40] sm:$0xf]  ;;  %v12979_v19 = vld [vmem:[%s17143_s5 + $0x390] sm:$0xff] }
 0x342   : > { %v4785_v20 = vor.u32 %v4783_v27, %v4782_v28  ;;  %v4786_v17 = vrot.slane %v4782_v28, 4  ;;  %6539 = vmatmul.bf16.gmra.mxu0 %v6176_v0  ;;  %v4639_v7 = vpop.f32.mrf.mxu2  ;;  %v15479_v22 = vrot.slane %v7025_v2, 4  ;;  %v7034_v25 = vshll.u32 %v15445_v41, 16  ;;  %v5883_v48 = vld [vmem:[#allocation2 + $0x44] sm:$0x1]  ;;  %7523 = vmatpush.bf16.msrb.mxu1 %v12985_v40 }
 0x343   : > { %v4757_v0 = vsel %vm4741_vm10, %v4725_v56, %v4749_v30  ;;  %v4669_v23 = vadd.f32 %v15381_v61, %v4639_v7  ;;  %v7164_v37 = vpack.c.b16 %v15424_v52, %v15422_v39  ;;  %v15491_v55 = vunpack.c.l.b16 %v6825_v4  ;;  %v5884_v56 = vld [vmem:[#allocation2 + $0x48] sm:$0xf] }
 0x344   : > { %v4863_v53 = vsel %vm13245_vm2, %v4785_v20, %v4862_v59  ;;  %v4866_v38 = vsel %vm13485_vm9, %v4786_v17, %v4865_v5  ;;  %v4765_v27 = vpack.c.bf16 %v4757_v0, %v4757_v0  ;;  %v7141_v35 = vunpack.c.l.b16 %v6963_v16  ;;  %v4868_v4 = vld [vmem:[#allocation3 + $0x18] sm:$0xf]  ;;  %v5885_v20 = vld [vmem:[#allocation2 + $0x4c] sm:$0x1]  ;;  %7492 = vmatpush.bf16.msrb.mxu0 %v12979_v19 }
 0x345   : > { %4864 = vst [vmem:[#allocation3 + $0x10] sm:$0xf] %v4863_v53  ;;  %v15487_v42 = vpop.f32.mrf.mxu3  ;;  %v4698_v28 = vadd.f32 %v15379_v21, %v4669_v23  ;;  %v5971_v18 = vshrl.u32 %v5882_v14, 16  ;;  %v5974_v61 = vshll.u32 %v5882_v14, 16  ;;  %v7140_v12 = vunpack.c.l.b16 %v6959_v33  ;;  %v12970_v33 = vld [vmem:[%s17143_s5 + $0x348] sm:$0xff] }
 0x346   : > { %4867 = vst [vmem:[#allocation3 + $0x14] sm:$0x1] %v4866_v38  ;;  %v4788_v63 = vshrl.u32 %v4765_v27, 16  ;;  %v4791_v11 = vshll.u32 %v4765_v27, 16  ;;  %6573 = vmatmul.bf16.gmra.mxu1 %v12020_v46  ;;  %v5980_v5 = vshll.u32 %v5883_v48, 16  ;;  %v5985_v8 = vshrl.u32 %v5884_v56, 16  ;;  %7464 = vmatpush.bf16.msra.mxu3 %v12970_v33 }
 0x347   : > { %v15494_v2 = vpop.f32.mrf.mxu0  ;;  %v15499_v59 = vpop.f32.mrf.mxu1  ;;  %v4727_v21 = vadd.f32 %v15309_v43, %v4698_v28  ;;  %v5973_v17 = vrot.slane %v5971_v18, 4  ;;  %v5976_v30 = vrot.slane %v5974_v61, 5  ;;  %v7132_v3 = vpack.c.b16 %v15475_v50, %v15491_v55  ;;  %v4871_v46 = vld [vmem:[#allocation3 + $0x1c] sm:$0x1]  ;;  %v7972_v48 = vld [vmem:[#allocation3 + $0x8] sm:$0xf] }
 0x348   : > { %v4790_v13 = vrot.slane %v4788_v63, 7  ;;  %v5987_v43 = vrot.slane %v5985_v8, 4  ;;  %v5988_v40 = vshll.u32 %v5884_v56, 16  ;;  %v12962_v7 = vld [vmem:[%s17143_s5 + $0x308] sm:$0xff]  ;;  %v15516_v16 = vpack.c.b16 %v7141_v35, %v7140_v12  ;;  %v4886_v50 = vld [vmem:[#allocation3 + $0x30] sm:$0xf] }
 0x349   : > { %6481 = vmatmul.bf16.gmra.mxu2 %v6136_v9  ;;  %vm4742_vm11 = vcmp.ge.f32.partialorder %v4727_v21, 0.0  ;;  %v4750_v53 = vmul.f32 0.1, %v4727_v21  ;;  %v5977_v38 = vor.u32 %v5976_v30, %v5973_v17  ;;  %v5994_v0 = vshll.u32 %v5885_v20, 16  ;;  %v12978_v23 = vld [vmem:[%s17143_s5 + $0x388] sm:$0xff] }
 0x34a   : > { %v4793_v57 = vor.u32 %v4791_v11, %v4790_v13  ;;  %v4794_v9 = vrot.slane %v4790_v13, 4  ;;  %v5982_v27 = vrot.slane %v5980_v5, 5  ;;  %v5990_v14 = vrot.slane %v5988_v40, 5  ;;  %7435 = vmatpush.bf16.msrb.mxu2 %v12962_v7  ;;  %v7973_v11 = vld [vmem:[#allocation3 + $0xc] sm:$0x1]  ;;  %7493 = vmatpush.bf16.msrb.mxu0 %v12978_v23  ;;  %v12977_v23 = vld [vmem:[%s17143_s5 + $0x380] sm:$0xff] }
 0x34b   : > { %v4758_v35 = vsel %vm4742_vm11, %v4727_v21, %v4750_v53  ;;  %v4642_v28 = vpop.f32.mrf.mxu2  ;;  %v5978_v56 = vrot.slane %v5977_v38, 4  ;;  %v5996_v18 = vrot.slane %v5994_v0, 5  ;;  %v7989_v61 = vshrl.u32 %v7972_v48, 16  ;;  %7465 = vmatpush.bf16.msra.mxu3 %v12969_v36  ;;  %v12961_v36 = vld [vmem:[%s17143_s5 + $0x300] sm:$0xff] }
 0x34c   : > { %v4869_v12 = vsel %vm13245_vm2, %v4793_v57, %v4868_v4  ;;  %v4872_v63 = vsel %vm13485_vm9, %v4794_v9, %v4871_v46  ;;  %v4766_v8 = vpack.c.bf16 %v4758_v35, %v4758_v35  ;;  %v4672_v19 = vadd.f32 %v15433_v15, %v4642_v28  ;;  %v7974_v33 = vld [vmem:[#allocation3 + $0x10] sm:$0xf]  ;;  %v4889_v55 = vld [vmem:[#allocation3 + $0x34] sm:$0x1] }
 0x34d   : > { %4870 = vst [vmem:[#allocation3 + $0x18] sm:$0xf] %v4869_v12  ;;  %v15529_v5 = vpop.f32.mrf.mxu3  ;;  %v5983_v21 = vsel %vm13564_vm15, %v5978_v56, %v5982_v27  ;;  %v5991_v20 = vor.u32 %v5990_v14, %v5987_v43  ;;  %v7975_v17 = vld [vmem:[#allocation3 + $0x14] sm:$0x1]  ;;  %v7991_v30 = vrot.slane %v7989_v61, 4  ;;  %v7992_v4 = vshll.u32 %v7972_v48, 16 }
 0x34e   : > { %4873 = vst [vmem:[#allocation3 + $0x1c] sm:$0x1] %v4872_v63  ;;  %v4796_v13 = vshrl.u32 %v4766_v8, 16  ;;  %v4799_v46 = vshll.u32 %v4766_v8, 16  ;;  %v4701_v40 = vadd.f32 %v15437_v31, %v4672_v19  ;;  %6515 = vmatmul.bf16.gmra.mxu3 %v12004_v26  ;;  %v6132_v7 = vunpack.c.l.b16 %v5983_v21  ;;  %v4874_v26 = vld [vmem:[#allocation3 + $0x20] sm:$0xf]  ;;  %7436 = vmatpush.bf16.msrb.mxu2 %v12961_v36 }
 0x34f   : > { %v15534_v15 = vpop.f32.mrf.mxu0  ;;  %v5992_v53 = vrot.slane %v5991_v20, 4  ;;  %v7994_v38 = vrot.slane %v7992_v4, 5  ;;  %v7998_v43 = vshll.u32 %v7973_v11, 16  ;;  %v8003_v0 = vshrl.u32 %v7974_v33, 16  ;;  %v4877_v27 = vld [vmem:[#allocation3 + $0x24] sm:$0x1]  ;;  %7494 = vmatpush.bf16.msrb.mxu0 %v12977_v23 }
 0x350   : > { %v4798_v31 = vrot.slane %v4796_v13, 7  ;;  %v4730_v57 = vadd.f32 %v15349_v60, %v4701_v40  ;;  %v15546_v9 = vpop.f32.mrf.mxu1  ;;  %v8006_v44 = vshll.u32 %v7974_v33, 16  ;;  %v8012_v49 = vshll.u32 %v7975_v17, 16  ;;  %v6991_v33 = vld [vmem:[#allocation2 + $0x20] sm:$0xf] }
 0x351   : > { %v5997_v14 = vsel %vm13564_vm15, %v5992_v53, %v5996_v18  ;;  %v7995_v48 = vor.u32 %v7994_v38, %v7991_v30  ;;  %v8000_v35 = vrot.slane %v7998_v43, 5  ;;  %v8005_v28 = vrot.slane %v8003_v0, 4  ;;  %v15560_v4 = vld [vmem:[#allocation2 + $0x24] sm:$0x1]  ;;  %v6740_v53 = vld [vmem:[#allocation2 + $0x10] sm:$0xe] }
 0x352   : > { %6544 = vmatmul.bf16.gmra.mxu0 %v6177_v47  ;;  %v4801_v56 = vor.u32 %v4799_v46, %v4798_v31  ;;  %v4802_v61 = vrot.slane %v4798_v31, 4  ;;  %vm4743_vm13 = vcmp.ge.f32.partialorder %v4730_v57, 0.0  ;;  %v4751_v60 = vmul.f32 0.1, %v4730_v57 }
 0x353   : > { %v4644_v12 = vpop.f32.mrf.mxu2  ;;  %v6133_v63 = vunpack.c.l.b16 %v5997_v14  ;;  %v7996_v8 = vrot.slane %v7995_v48, 4  ;;  %v8008_v19 = vrot.slane %v8006_v44, 5  ;;  %v8014_v11 = vrot.slane %v8012_v49, 5  ;;  %v4883_v49 = vld [vmem:[#allocation3 + $0x2c] sm:$0x1] }
 0x354   : > { %v4875_v32 = vsel %vm13245_vm2, %v4801_v56, %v4874_v26  ;;  %v4878_v62 = vsel %vm13485_vm9, %v4802_v61, %v4877_v27  ;;  %v4759_v47 = vsel %vm4743_vm13, %v4730_v57, %v4751_v60  ;;  %v4674_v18 = vadd.f32 %v15487_v42, %v4644_v12  ;;  %v6742_v56 = vld [vmem:[#allocation2 + $0x18] sm:$0xe] }
 0x355   : > { %4876 = vst [vmem:[#allocation3 + $0x20] sm:$0xf] %v4875_v32  ;;  %v4767_v21 = vpack.c.bf16 %v4759_v47, %v4759_v47  ;;  %v6137_v20 = vpack.c.b16 %v6133_v63, %v6132_v7  ;;  %v8001_v17 = vsel %vm13564_vm15, %v7996_v8, %v8000_v35  ;;  %v8009_v30 = vor.u32 %v8008_v19, %v8005_v28  ;;  %v15572_v0 = vpop.f32.mrf.mxu3 }
 0x356   : > { %4879 = vst [vmem:[#allocation3 + $0x24] sm:$0x1] %v4878_v62  ;;  %v4703_v13 = vadd.f32 %v15494_v2, %v4674_v18  ;;  %7524 = vmatmul.bf16.vlgmr.msrb.gmra.mxu1 %v7164_v37  ;;  %v8556_v42 = vunpack.c.l.b16 %v8001_v17  ;;  %v7030_v40 = vrot.slane %v7028_v54, 5  ;;  %v7036_v7 = vrot.slane %v7034_v25, 5  ;;  %v4880_v54 = vld [vmem:[#allocation3 + $0x28] sm:$0xf] }
 0x357   : > { %v15563_v46 = vpop.f32.mrf.mxu0  ;;  %v4804_v38 = vshrl.u32 %v4767_v21, 16  ;;  %v4807_v43 = vshll.u32 %v4767_v21, 16  ;;  %v8010_v23 = vrot.slane %v8009_v30, 4  ;;  %v7039_v2 = vshrl.u32 %v6991_v33, 16  ;;  %v7976_v62 = vld [vmem:[#allocation3 + $0x18] sm:$0xf] }
 0x358   : > { %v4732_v36 = vadd.f32 %v15393_v24, %v4703_v13  ;;  %v7031_v39 = vor.u32 %v7030_v40, %v15479_v22  ;;  %v7042_v52 = vshll.u32 %v6991_v33, 16  ;;  %v7048_v37 = vshll.u32 %v15560_v4, 16  ;;  %v15577_v31 = vpop.f32.mrf.mxu1 }
 0x359   : > { %6486 = vmatmul.bf16.gmra.mxu2 %v6137_v20  ;;  %v4806_v58 = vrot.slane %v4804_v38, 7  ;;  %v8015_v25 = vsel %vm13564_vm15, %v8010_v23, %v8014_v11  ;;  %v7041_v57 = vrot.slane %v7039_v2, 4  ;;  %v12213_v44 = vrot.slane %v6740_v53, 9  ;;  %v7977_v2 = vld [vmem:[#allocation3 + $0x1c] sm:$0x1] }
 0x35a   : > { %vm4744_vm14 = vcmp.ge.f32.partialorder %v4732_v36, 0.0  ;;  %v4752_v26 = vmul.f32 0.1, %v4732_v36  ;;  %v8557_v27 = vunpack.c.l.b16 %v8015_v25  ;;  %v7032_v24 = vrot.slane %v7031_v39, 4 }
 0x35b   : > { %v4809_v14 = vor.u32 %v4807_v43, %v4806_v58  ;;  %v4810_v48 = vrot.slane %v4806_v58, 4  ;;  %v7044_v35 = vrot.slane %v7042_v52, 5  ;;  %v7050_v28 = vrot.slane %v7048_v37, 5 }
 0x35c   : > { %v4647_v22 = vpop.f32.mrf.mxu2  ;;  %v4760_v61 = vsel %vm4744_vm14, %v4732_v36, %v4752_v26  ;;  %v15581_v60 = vpack.c.b16 %v8557_v27, %v8556_v42  ;;  %v7037_v63 = vsel %vm13564_vm15, %v7032_v24, %v7036_v7  ;;  %v6774_v33 = vrot.slane %v15387_v1, 5  ;;  %v7978_v58 = vld [vmem:[#allocation3 + $0x20] sm:$0xf] }
 0x35d   : > { %v4677_v12 = vadd.f32 %v15529_v5, %v4647_v22  ;;  %v4881_v8 = vsel %vm13245_vm2, %v4809_v14, %v4880_v54  ;;  %v4884_v19 = vsel %vm13485_vm9, %v4810_v48, %v4883_v49  ;;  %v4768_v11 = vpack.c.bf16 %v4760_v61, %v4760_v61  ;;  %v7979_v26 = vld [vmem:[#allocation3 + $0x24] sm:$0x1]  ;;  %v6806_v22 = vld [vmem:[#allocation2 + $0x20] sm:$0xf] }
 0x35e   : > { %v7045_v32 = vor.u32 %v7044_v35, %v7041_v57  ;;  %4882 = vst [vmem:[#allocation3 + $0x28] sm:$0xf] %v4881_v8  ;;  %8893 = vrot.lane.b32.xlu1 %v15581_v60, %s13168_s18  ;;  %7466 = vmatmul.bf16.vlgmr.msra.gmra.mxu3 %v7132_v3  ;;  %v7158_v18 = vunpack.c.l.b16 %v7037_v63  ;;  %v12214_v21 = vrot.slane %v6742_v56, 9  ;;  %v6778_v13 = vrot.slane %v15419_v6, 5 }
 0x35f   : > { %v4706_v47 = vadd.f32 %v15534_v15, %v4677_v12  ;;  %v15593_v5 = vpop.f32.mrf.mxu0  ;;  %4885 = vst [vmem:[#allocation3 + $0x2c] sm:$0x1] %v4884_v19  ;;  %v4812_v20 = vshrl.u32 %v4768_v11, 16  ;;  %v4815_v17 = vshll.u32 %v4768_v11, 16  ;;  %v6775_v15 = vsel %vm13509_vm12, %v12213_v44, %v6774_v33  ;;  %v4892_v11 = vld [vmem:[#allocation3 + $0x38] sm:$0xf] }
 0x360   : > { %v7046_v30 = vrot.slane %v7045_v32, 4  ;;  %v8017_v40 = vshrl.u32 %v7976_v62, 16  ;;  %v8020_v7 = vshll.u32 %v7976_v62, 16  ;;  %v6779_v6 = vsel %vm13509_vm12, %v12214_v21, %v6778_v13  ;;  %v4895_v13 = vld [vmem:[#allocation3 + $0x3c] sm:$0x1] }
 0x361   : > { %v4735_v42 = vadd.f32 %v15442_v34, %v4706_v47  ;;  %v4814_v53 = vrot.slane %v4812_v20, 7  ;;  %v15603_v3 = vpop.f32.mrf.mxu3  ;;  %v7108_v38 = vunpack.c.l.b16 %v6775_v15  ;;  %v7109_v23 = vunpack.c.l.b16 %v6779_v6  ;;  %v15623_v20 = vld [vmem:[#allocation2 + $0x24] sm:$0x1] }
 0x362   : > { %7495 = vmatmul.bf16.vlgmr.msrb.gmra.mxu0 %v15516_v16  ;;  %v7051_v1 = vsel %vm13564_vm15, %v7046_v30, %v7050_v28  ;;  %v8019_v54 = vrot.slane %v8017_v40, 4  ;;  %v8022_v16 = vrot.slane %v8020_v7, 5  ;;  %v8026_v56 = vshll.u32 %v7977_v2, 16 }
 0x363   : > { %vm4745_vm0 = vcmp.ge.f32.partialorder %v4735_v42, 0.0  ;;  %v4753_v34 = vmul.f32 0.1, %v4735_v42  ;;  %v7159_v43 = vunpack.c.l.b16 %v7051_v1  ;;  %v4817_v36 = vor.u32 %v4815_v17, %v4814_v53  ;;  %v15610_v52 = vpop.f32.mrf.mxu1 }
 0x364   : > { %v4818_v39 = vrot.slane %v4814_v53, 4  ;;  %v4649_v37 = vpop.f32.mrf.mxu2  ;;  %v7116_v49 = vpack.c.b16 %v7109_v23, %v7108_v38  ;;  %v8023_v48 = vor.u32 %v8022_v16, %v8019_v54  ;;  %v8034_v61 = vshll.u32 %v7978_v58, 16 }
 0x365   : > { %v4761_v25 = vsel %vm4745_vm0, %v4735_v42, %v4753_v34  ;;  %v4679_v57 = vadd.f32 %v15572_v0, %v4649_v37  ;;  %v7165_v44 = vpack.c.b16 %v7159_v43, %v7158_v18  ;;  %v4887_v27 = vsel %vm13245_vm2, %v4817_v36, %v4886_v50 }
 0x366   : > { %v4890_v24 = vsel %vm13485_vm9, %v4818_v39, %v4889_v55  ;;  %v4769_v14 = vpack.c.bf16 %v4761_v25, %v4761_v25  ;;  %4888 = vst [vmem:[#allocation3 + $0x30] sm:$0xf] %v4887_v27  ;;  %v8031_v0 = vshrl.u32 %v7978_v58, 16  ;;  %v8024_v8 = vrot.slane %v8023_v48, 4  ;;  %v6807_v55 = vld [vmem:[#allocation2 + $0x28] sm:$0xf] }
 0x367   : > { %v4708_v35 = vadd.f32 %v15563_v46, %v4679_v57  ;;  %v15618_v28 = vpop.f32.mrf.mxu0  ;;  %7529 = vmatmul.bf16.gmra.mxu1 %v7165_v44  ;;  %4891 = vst [vmem:[#allocation3 + $0x34] sm:$0x1] %v4890_v24  ;;  %v8040_v19 = vshll.u32 %v7979_v26, 16  ;;  %v8028_v62 = vrot.slane %v8026_v56, 5  ;;  %v8036_v18 = vrot.slane %v8034_v61, 5 }
 0x368   : > { %v4820_v12 = vshrl.u32 %v4769_v14, 16  ;;  %v4823_v63 = vshll.u32 %v4769_v14, 16  ;;  %v8033_v47 = vrot.slane %v8031_v0, 4  ;;  %v6841_v17 = vshrl.u32 %v6806_v22, 16  ;;  %v6928_v58 = vld [vmem:[#allocation2 + $0x18] sm:$0xe] }
 0x369   : > { %v4737_v32 = vadd.f32 %v15499_v59, %v4708_v35  ;;  %7437 = vmatmul.bf16.vlgmr.msrb.gmra.mxu2 %v7116_v49  ;;  %v15621_v46 = vpop.f32.mrf.mxu3  ;;  %v8042_v21 = vrot.slane %v8040_v19, 5  ;;  %v6844_v30 = vshll.u32 %v6806_v22, 16  ;;  %v8029_v15 = vsel %vm13564_vm15, %v8024_v8, %v8028_v62  ;;  %v6930_v56 = vld [vmem:[#allocation2 + $0x20] sm:$0xe]  ;;  %v4898_v61 = vld [vmem:[#allocation3 + $0x40] sm:$0xf] }
 0x36a   : > { %v4822_v33 = vrot.slane %v4820_v12, 7  ;;  %v8037_v40 = vor.u32 %v8036_v18, %v8033_v47  ;;  %v8558_v53 = vunpack.c.l.b16 %v8029_v15  ;;  %v6843_v1 = vrot.slane %v6841_v17, 4  ;;  %v4901_v19 = vld [vmem:[#allocation3 + $0x44] sm:$0x1]  ;;  %v6992_v17 = vld [vmem:[#allocation2 + $0x28] sm:$0xf] }
 0x36b   : > { %vm4746_vm1 = vcmp.ge.f32.partialorder %v4737_v32, 0.0  ;;  %v4754_v42 = vmul.f32 0.1, %v4737_v32  ;;  %v15627_v38 = vpop.f32.mrf.mxu1  ;;  %v6846_v23 = vrot.slane %v6844_v30, 5  ;;  %v6850_v37 = vshll.u32 %v15623_v20, 16 }
 0x36c   : > { %v4825_v59 = vor.u32 %v4823_v63, %v4822_v33  ;;  %v4826_v7 = vrot.slane %v4822_v33, 4  ;;  %v5602_v50 = vpop.f32.mrf.mxu2  ;;  %v8038_v34 = vrot.slane %v8037_v40, 4  ;;  %v6855_v44 = vshrl.u32 %v6807_v55, 16 }
 0x36d   : > { %v4762_v6 = vsel %vm4746_vm1, %v4737_v32, %v4754_v42  ;;  %v5632_v43 = vadd.f32 %v15603_v3, %v5602_v50  ;;  %v15640_v3 = vld [vmem:[#allocation2 + $0x2c] sm:$0x1]  ;;  %v6847_v57 = vor.u32 %v6846_v23, %v6843_v1  ;;  %v6852_v24 = vrot.slane %v6850_v37, 5 }
 0x36e   : > { %v4893_v2 = vsel %vm13245_vm2, %v4825_v59, %v4892_v11  ;;  %v4896_v36 = vsel %vm13485_vm9, %v4826_v7, %v4895_v13  ;;  %v4770_v39 = vpack.c.bf16 %v4762_v6, %v4762_v6  ;;  %v8043_v54 = vsel %vm13564_vm15, %v8038_v34, %v8042_v21  ;;  %v15665_v34 = vld [vmem:[#allocation2 + $0x2c] sm:$0x1] }
 0x36f   : > { %4894 = vst [vmem:[#allocation3 + $0x38] sm:$0xf] %v4893_v2  ;;  %v5661_v16 = vadd.f32 %v15593_v5, %v5632_v43  ;;  %v15638_v25 = vpop.f32.mrf.mxu0  ;;  %v8559_v27 = vunpack.c.l.b16 %v8043_v54  ;;  %v6848_v48 = vrot.slane %v6847_v57, 4  ;;  %v6857_v22 = vrot.slane %v6855_v44, 4  ;;  %v5822_v57 = vld [vmem:[#allocation3 + $0x58] sm:$0xf] }
 0x370   : > { %4897 = vst [vmem:[#allocation3 + $0x3c] sm:$0x1] %v4896_v36  ;;  %v4828_v49 = vshrl.u32 %v4770_v39, 16  ;;  %v4831_v26 = vshll.u32 %v4770_v39, 16  ;;  %v6858_v35 = vshll.u32 %v6807_v55, 16  ;;  %v6864_v12 = vshll.u32 %v15640_v3, 16 }
 0x371   : > { %v5690_v14 = vadd.f32 %v15546_v9, %v5661_v16  ;;  %v15643_v5 = vpack.c.b16 %v8559_v27, %v8558_v53  ;;  %v15646_v63 = vpop.f32.mrf.mxu3  ;;  %v12223_v8 = vrot.slane %v6928_v58, 9  ;;  %v6853_v32 = vsel %vm13564_vm15, %v6848_v48, %v6852_v24  ;;  %v6993_v39 = vld [vmem:[#allocation2 + $0x30] sm:$0xf]  ;;  %v5825_v24 = vld [vmem:[#allocation3 + $0x5c] sm:$0x1] }
 0x372   : > { %v4830_v0 = vrot.slane %v4828_v49, 7  ;;  %v6860_v9 = vrot.slane %v6858_v35, 5  ;;  %v6866_v18 = vrot.slane %v6864_v12, 5  ;;  %v7126_v33 = vunpack.c.l.b16 %v6853_v32 }
 0x373   : > { %vm5709_vm3 = vcmp.ge.f32.partialorder %v5690_v14, 0.0  ;;  %v5717_v11 = vmul.f32 0.1, %v5690_v14  ;;  %8895 = vrot.lane.b32.xlu1 %v15643_v5, %s13168_s18  ;;  %v6966_v42 = vrot.slane %v15445_v41, 5  ;;  %v12224_v15 = vrot.slane %v6930_v56, 9  ;;  %v15660_v1 = vpop.f32.mrf.mxu1 }
 0x374   : > { %v4833_v62 = vor.u32 %v4831_v26, %v4830_v0  ;;  %v4834_v47 = vrot.slane %v4830_v0, 4  ;;  %v5604_v21 = vpop.f32.mrf.mxu2  ;;  %v6861_v13 = vor.u32 %v6860_v9, %v6857_v22  ;;  %v6970_v53 = vrot.slane %v15560_v4, 5  ;;  %v6744_v56 = vld [vmem:[#allocation2 + $0x20] sm:$0xe] }
 0x375   : > { %v5725_v30 = vsel %vm5709_vm3, %v5690_v14, %v5717_v11  ;;  %v6967_v55 = vsel %vm13509_vm12, %v12223_v8, %v6966_v42  ;;  %v5634_v6 = vadd.f32 %v15621_v46, %v5604_v21  ;;  %v7053_v43 = vshrl.u32 %v6992_v17, 16  ;;  %v7980_v21 = vld [vmem:[#allocation3 + $0x28] sm:$0xf] }
 0x376   : > { %v4899_v40 = vsel %vm13245_vm2, %v4833_v62, %v4898_v61  ;;  %v4902_v59 = vsel %vm13485_vm9, %v4834_v47, %v4901_v19  ;;  %v5733_v7 = vpack.c.bf16 %v5725_v30, %v5725_v30  ;;  %v6862_v50 = vrot.slane %v6861_v13, 4  ;;  %v6746_v19 = vld [vmem:[#allocation2 + $0x28] sm:$0xe] }
 0x377   : > { %4900 = vst [vmem:[#allocation3 + $0x40] sm:$0xf] %v4899_v40  ;;  %v15663_v41 = vpop.f32.mrf.mxu0  ;;  %v6971_v4 = vsel %vm13509_vm12, %v12224_v15, %v6970_v53  ;;  %v7142_v36 = vunpack.c.l.b16 %v6967_v55  ;;  %v5663_v54 = vadd.f32 %v15618_v28, %v5634_v6  ;;  %v7055_v46 = vrot.slane %v7053_v43, 4  ;;  %v15676_v28 = vld [vmem:[#allocation2 + $0x34] sm:$0x1] }
 0x378   : > { %4903 = vst [vmem:[#allocation3 + $0x44] sm:$0x1] %v4902_v59  ;;  %v5742_v23 = vshrl.u32 %v5733_v7, 16  ;;  %v5745_v2 = vshll.u32 %v5733_v7, 16  ;;  %v6867_v37 = vsel %vm13564_vm15, %v6862_v50, %v6866_v18  ;;  %v7143_v58 = vunpack.c.l.b16 %v6971_v4 }
 0x379   : > { %v7127_v44 = vunpack.c.l.b16 %v6867_v37  ;;  %v7056_v49 = vshll.u32 %v6992_v17, 16  ;;  %v7062_v26 = vshll.u32 %v15665_v34, 16  ;;  %v15673_v27 = vpop.f32.mrf.mxu3  ;;  %v5692_v48 = vadd.f32 %v15577_v31, %v5663_v54  ;;  %v7982_v37 = vld [vmem:[#allocation3 + $0x30] sm:$0xf] }
 0x37a   : > { %v5744_v16 = vrot.slane %v5742_v23, 7  ;;  %v7149_v14 = vpack.c.b16 %v7143_v58, %v7142_v36  ;;  %v7067_v22 = vshrl.u32 %v6993_v39, 16  ;;  %v7070_v35 = vshll.u32 %v6993_v39, 16  ;;  %v7981_v23 = vld [vmem:[#allocation3 + $0x2c] sm:$0x1] }
 0x37b   : > { %v7133_v12 = vpack.c.b16 %v7127_v44, %v7126_v33  ;;  %v7058_v8 = vrot.slane %v7056_v49, 5  ;;  %vm5710_vm5 = vcmp.ge.f32.partialorder %v5692_v48, 0.0  ;;  %v5718_v32 = vmul.f32 0.1, %v5692_v48  ;;  %v15691_v43 = vpop.f32.mrf.mxu1  ;;  %v5828_v44 = vld [vmem:[#allocation3 + $0x60] sm:$0xf] }
 0x37c   : > { %v5747_v0 = vor.u32 %v5745_v2, %v5744_v16  ;;  %v5748_v61 = vrot.slane %v5744_v16, 4  ;;  %v15678_v11 = vpop.f32.mrf.mxu2  ;;  %7500 = vmatmul.bf16.gmra.mxu0 %v7149_v14  ;;  %v7064_v9 = vrot.slane %v7062_v26, 5  ;;  %v7069_v62 = vrot.slane %v7067_v22, 4  ;;  %v5831_v49 = vld [vmem:[#allocation3 + $0x64] sm:$0x1] }
 0x37d   : > { %7471 = vmatmul.bf16.gmra.mxu3 %v7133_v12  ;;  %v7059_v18 = vor.u32 %v7058_v8, %v7055_v46  ;;  %v7072_v33 = vrot.slane %v7070_v35, 5  ;;  %v5726_v17 = vsel %vm5710_vm5, %v5692_v48, %v5718_v32  ;;  %v7076_v30 = vshll.u32 %v15676_v28, 16  ;;  %v7983_v35 = vld [vmem:[#allocation3 + $0x34] sm:$0x1] }
 0x37e   : > { %v5823_v31 = vsel %vm13245_vm2, %v5747_v0, %v5822_v57  ;;  %v5826_v47 = vsel %vm13485_vm9, %v5748_v61, %v5825_v24  ;;  %v12215_v13 = vrot.slane %v6744_v56, 9  ;;  %v6782_v42 = vrot.slane %v15623_v20, 5 }
 0x37f   : > { %5824 = vst [vmem:[#allocation3 + $0x58] sm:$0xf] %v5823_v31  ;;  %v15686_v15 = vpop.f32.mrf.mxu0  ;;  %v5734_v40 = vpack.c.bf16 %v5726_v17, %v5726_v17  ;;  %v7060_v59 = vrot.slane %v7059_v18, 4  ;;  %v7073_v7 = vor.u32 %v7072_v33, %v7069_v62  ;;  %v12216_v53 = vrot.slane %v6746_v19, 9  ;;  %v6808_v62 = vld [vmem:[#allocation2 + $0x30] sm:$0xf] }
 0x380   : > { %5827 = vst [vmem:[#allocation3 + $0x5c] sm:$0x1] %v5826_v47  ;;  %v7078_v50 = vrot.slane %v7076_v30, 5  ;;  %v6783_v55 = vsel %vm13509_vm12, %v12215_v13, %v6782_v42  ;;  %v6786_v6 = vrot.slane %v15640_v3, 5  ;;  %v8045_v2 = vshrl.u32 %v7980_v21, 16 }
 0x381   : > { %v5750_v4 = vshrl.u32 %v5734_v40, 16  ;;  %v5753_v36 = vshll.u32 %v5734_v40, 16  ;;  %v7065_v20 = vsel %vm13564_vm15, %v7060_v59, %v7064_v9  ;;  %v7074_v39 = vrot.slane %v7073_v7, 4  ;;  %v15695_v58 = vpop.f32.mrf.mxu3  ;;  %v15703_v9 = vld [vmem:[#allocation2 + $0x34] sm:$0x1] }
 0x382   : > { %v7160_v54 = vunpack.c.l.b16 %v7065_v20  ;;  %v6787_v46 = vsel %vm13509_vm12, %v12216_v53, %v6786_v6  ;;  %v7110_v16 = vunpack.c.l.b16 %v6783_v55  ;;  %v8047_v57 = vrot.slane %v8045_v2, 4  ;;  %v6809_v17 = vld [vmem:[#allocation2 + $0x38] sm:$0xf]  ;;  %v6932_v55 = vld [vmem:[#allocation2 + $0x28] sm:$0xe] }
 0x383   : > { %v5752_v3 = vrot.slane %v5750_v4, 7  ;;  %v7079_v26 = vsel %vm13564_vm15, %v7074_v39, %v7078_v50  ;;  %v7111_v24 = vunpack.c.l.b16 %v6787_v46  ;;  %v8048_v14 = vshll.u32 %v7980_v21, 16 }
 0x384   : > { %v15701_v48 = vpop.f32.mrf.mxu2  ;;  %v7161_v22 = vunpack.c.l.b16 %v7079_v26  ;;  %v8054_v56 = vshll.u32 %v7981_v23, 16  ;;  %v8059_v0 = vshrl.u32 %v7982_v37, 16  ;;  %v8062_v61 = vshll.u32 %v7982_v37, 16  ;;  %v15717_v37 = vld [vmem:[#allocation2 + $0x3c] sm:$0x1] }
 0x385   : > { %v5755_v12 = vor.u32 %v5753_v36, %v5752_v3  ;;  %v5756_v8 = vrot.slane %v5752_v3, 4  ;;  %v7117_v19 = vpack.c.b16 %v7111_v24, %v7110_v16  ;;  %v8050_v32 = vrot.slane %v8048_v14, 5  ;;  %v15719_v16 = vpop.f32.mrf.mxu1  ;;  %v6934_v14 = vld [vmem:[#allocation2 + $0x30] sm:$0xe] }
 0x386   : > { %v7166_v31 = vpack.c.b16 %v7161_v22, %v7160_v54  ;;  %v8056_v47 = vrot.slane %v8054_v56, 5  ;;  %v8061_v18 = vrot.slane %v8059_v0, 4  ;;  %v8064_v33 = vrot.slane %v8062_v61, 5 }
 0x387   : > { %v15705_v21 = vpop.f32.mrf.mxu0  ;;  %v5829_v30 = vsel %vm13245_vm2, %v5755_v12, %v5828_v44  ;;  %v5832_v13 = vsel %vm13485_vm9, %v5756_v8, %v5831_v49  ;;  %7442 = vmatmul.bf16.gmra.mxu2 %v7117_v19  ;;  %v8051_v42 = vor.u32 %v8050_v32, %v8047_v57  ;;  %v8068_v40 = vshll.u32 %v7983_v35, 16 }
 0x388   : > { %5830 = vst [vmem:[#allocation3 + $0x60] sm:$0xf] %v5829_v30  ;;  %7534 = vmatmul.bf16.gmra.mxu1 %v7166_v31  ;;  %v8065_v59 = vor.u32 %v8064_v33, %v8061_v18  ;;  %v5637_v7 = vadd.f32 %v15646_v63, %v15678_v11  ;;  %v6869_v53 = vshrl.u32 %v6808_v62, 16  ;;  %v6872_v50 = vshll.u32 %v6808_v62, 16 }
 0x389   : > { %5833 = vst [vmem:[#allocation3 + $0x64] sm:$0x1] %v5832_v13  ;;  %v8052_v6 = vrot.slane %v8051_v42, 4  ;;  %v8070_v23 = vrot.slane %v8068_v40, 5  ;;  %v6878_v2 = vshll.u32 %v15703_v9, 16  ;;  %v6883_v4 = vshrl.u32 %v6809_v17, 16  ;;  %v15714_v36 = vpop.f32.mrf.mxu3 }
 0x38a   : > { %v8066_v20 = vrot.slane %v8065_v59, 4  ;;  %v5666_v39 = vadd.f32 %v15638_v25, %v5637_v7  ;;  %v6871_v54 = vrot.slane %v6869_v53, 4  ;;  %v6874_v46 = vrot.slane %v6872_v50, 5  ;;  %v15747_v50 = vld [vmem:[#allocation2 + $0x3c] sm:$0x1] }
 0x38b   : > { %v8057_v63 = vsel %vm13564_vm15, %v8052_v6, %v8056_v47  ;;  %v6880_v11 = vrot.slane %v6878_v2, 5  ;;  %v6885_v57 = vrot.slane %v6883_v4, 4  ;;  %v6886_v3 = vshll.u32 %v6809_v17, 16  ;;  %v6994_v47 = vld [vmem:[#allocation2 + $0x38] sm:$0xf] }
 0x38c   : > { %v15723_v44 = vpop.f32.mrf.mxu2  ;;  %v8071_v49 = vsel %vm13564_vm15, %v8066_v20, %v8070_v23  ;;  %v8560_v26 = vunpack.c.l.b16 %v8057_v63  ;;  %v5695_v25 = vadd.f32 %v15610_v52, %v5666_v39  ;;  %v6875_v24 = vor.u32 %v6874_v46, %v6871_v54 }
 0x38d   : > { %v8561_v22 = vunpack.c.l.b16 %v8071_v49  ;;  %v6888_v35 = vrot.slane %v6886_v3, 5  ;;  %v6892_v56 = vshll.u32 %v15717_v37, 16  ;;  %v12225_v0 = vrot.slane %v6932_v55, 9  ;;  %v6995_v55 = vld [vmem:[#allocation2 + $0x40] sm:$0xf] }
 0x38e   : > { %vm5711_vm6 = vcmp.ge.f32.partialorder %v5695_v25, 0.0  ;;  %v5719_v61 = vmul.f32 0.1, %v5695_v25  ;;  %v6876_v12 = vrot.slane %v6875_v24, 4  ;;  %v6974_v8 = vrot.slane %v15665_v34, 5 }
 0x38f   : > { %v15730_v19 = vpack.c.b16 %v8561_v22, %v8560_v26  ;;  %v6889_v32 = vor.u32 %v6888_v35, %v6885_v57  ;;  %v6894_v62 = vrot.slane %v6892_v56, 5  ;;  %v12226_v31 = vrot.slane %v6934_v14, 9  ;;  %v15732_v18 = vpop.f32.mrf.mxu0  ;;  %v6748_v57 = vld [vmem:[#allocation2 + $0x30] sm:$0xe]  ;;  %v5834_v3 = vld [vmem:[#allocation3 + $0x68] sm:$0xf] }
 0x390   : > { %v5727_v52 = vsel %vm5711_vm6, %v5695_v25, %v5719_v61  ;;  %v6881_v33 = vsel %vm13564_vm15, %v6876_v12, %v6880_v11  ;;  %v6975_v17 = vsel %vm13509_vm12, %v12225_v0, %v6974_v8  ;;  %v6978_v30 = vrot.slane %v15676_v28, 5  ;;  %v5837_v24 = vld [vmem:[#allocation3 + $0x6c] sm:$0x1]  ;;  %v15758_v35 = vld [vmem:[#allocation2 + $0x44] sm:$0x1] }
 0x391   : > { %8897 = vrot.lane.b32.xlu2 %v15730_v19, %s13168_s18  ;;  %v5735_v34 = vpack.c.bf16 %v5727_v52, %v5727_v52  ;;  %v6890_v13 = vrot.slane %v6889_v32, 4  ;;  %v7128_v42 = vunpack.c.l.b16 %v6881_v33  ;;  %v7144_v40 = vunpack.c.l.b16 %v6975_v17  ;;  %v15741_v59 = vpop.f32.mrf.mxu3  ;;  %v6750_v32 = vld [vmem:[#allocation2 + $0x38] sm:$0xe] }
 0x392   : > { %v6979_v7 = vsel %vm13509_vm12, %v12226_v31, %v6978_v30  ;;  %v5639_v53 = vadd.f32 %v15673_v27, %v15701_v48  ;;  %v7081_v6 = vshrl.u32 %v6994_v47, 16  ;;  %v7084_v28 = vshll.u32 %v6994_v47, 16  ;;  %v15754_v27 = vpop.f32.mrf.mxu1 }
 0x393   : > { %v5758_v23 = vshrl.u32 %v5735_v34, 16  ;;  %v5761_v2 = vshll.u32 %v5735_v34, 16  ;;  %v6895_v4 = vsel %vm13564_vm15, %v6890_v13, %v6894_v62  ;;  %v7145_v20 = vunpack.c.l.b16 %v6979_v7 }
 0x394   : > { %v15751_v39 = vpop.f32.mrf.mxu2  ;;  %v7129_v54 = vunpack.c.l.b16 %v6895_v4  ;;  %v5668_v46 = vadd.f32 %v15663_v41, %v5639_v53  ;;  %v7083_v63 = vrot.slane %v7081_v6, 4  ;;  %v7086_v11 = vrot.slane %v7084_v28, 5  ;;  %v6810_v53 = vld [vmem:[#allocation2 + $0x40] sm:$0xf] }
 0x395   : > { %v5760_v48 = vrot.slane %v5758_v23, 7  ;;  %v7150_v49 = vpack.c.b16 %v7145_v20, %v7144_v40  ;;  %v7090_v26 = vshll.u32 %v15747_v50, 16  ;;  %v7095_v25 = vshrl.u32 %v6995_v55, 16 }
 0x396   : > { %v7134_v14 = vpack.c.b16 %v7129_v54, %v7128_v42  ;;  %v5697_v22 = vadd.f32 %v15627_v38, %v5668_v46  ;;  %v7087_v56 = vor.u32 %v7086_v11, %v7083_v63  ;;  %v7098_v0 = vshll.u32 %v6995_v55, 16  ;;  %v15779_v63 = vld [vmem:[#allocation2 + $0x44] sm:$0x1] }
 0x397   : > { %v5763_v41 = vor.u32 %v5761_v2, %v5760_v48  ;;  %v5764_v61 = vrot.slane %v5760_v48, 4  ;;  %7505 = vmatmul.bf16.gmra.mxu0 %v7150_v49  ;;  %v7092_v12 = vrot.slane %v7090_v26, 5  ;;  %v7097_v8 = vrot.slane %v7095_v25, 4  ;;  %v15765_v30 = vpop.f32.mrf.mxu0  ;;  %v6811_v48 = vld [vmem:[#allocation2 + $0x48] sm:$0xf] }
 0x398   : > { %7476 = vmatmul.bf16.gmra.mxu3 %v7134_v14  ;;  %vm5712_vm8 = vcmp.ge.f32.partialorder %v5697_v22, 0.0  ;;  %v5720_v62 = vmul.f32 0.1, %v5697_v22  ;;  %v7088_v31 = vrot.slane %v7087_v56, 4  ;;  %v7100_v47 = vrot.slane %v7098_v0, 5 }
 0x399   : > { %v5835_v52 = vsel %vm13245_vm2, %v5763_v41, %v5834_v3  ;;  %v5838_v38 = vsel %vm13485_vm9, %v5764_v61, %v5837_v24  ;;  %v7104_v33 = vshll.u32 %v15758_v35, 16  ;;  %v12217_v17 = vrot.slane %v6748_v57, 9  ;;  %v15767_v34 = vpop.f32.mrf.mxu3  ;;  %v5843_v0 = vld [vmem:[#allocation3 + $0x74] sm:$0x1] }
 0x39a   : > { %5836 = vst [vmem:[#allocation3 + $0x68] sm:$0xf] %v5835_v52  ;;  %v5728_v13 = vsel %vm5712_vm8, %v5697_v22, %v5720_v62  ;;  %v7093_v42 = vsel %vm13564_vm15, %v7088_v31, %v7092_v12  ;;  %v7101_v40 = vor.u32 %v7100_v47, %v7097_v8  ;;  %v6790_v7 = vrot.slane %v15703_v9, 5 }
 0x39b   : > { %5839 = vst [vmem:[#allocation3 + $0x6c] sm:$0x1] %v5838_v38  ;;  %v5736_v55 = vpack.c.bf16 %v5728_v13, %v5728_v13  ;;  %v7106_v6 = vrot.slane %v7104_v33, 5  ;;  %v7162_v28 = vunpack.c.l.b16 %v7093_v42  ;;  %v12218_v23 = vrot.slane %v6750_v32, 9  ;;  %v6938_v42 = vld [vmem:[#allocation2 + $0x40] sm:$0xe] }
 0x39c   : > { %v15772_v2 = vpop.f32.mrf.mxu2  ;;  %v7102_v4 = vrot.slane %v7101_v40, 4  ;;  %v6791_v20 = vsel %vm13509_vm12, %v12217_v17, %v6790_v7  ;;  %v6794_v54 = vrot.slane %v15717_v37, 5  ;;  %v5642_v46 = vadd.f32 %v15695_v58, %v15723_v44  ;;  %v15786_v37 = vpop.f32.mrf.mxu1  ;;  %v5840_v58 = vld [vmem:[#allocation3 + $0x70] sm:$0xf]  ;;  %v6755_v7 = vld [vmem:[#allocation2 + $0x4c] sm:$0x1] }
 0x39d   : > { %v5766_v9 = vshrl.u32 %v5736_v55, 16  ;;  %v5769_v11 = vshll.u32 %v5736_v55, 16  ;;  %v7112_v57 = vunpack.c.l.b16 %v6791_v20  ;;  %v6897_v3 = vshrl.u32 %v6810_v53, 16 }
 0x39e   : > { %v7107_v49 = vsel %vm13564_vm15, %v7102_v4, %v7106_v6  ;;  %v6795_v26 = vsel %vm13509_vm12, %v12218_v23, %v6794_v54  ;;  %v5671_v25 = vadd.f32 %v15686_v15, %v5642_v46  ;;  %v6900_v24 = vshll.u32 %v6810_v53, 16  ;;  %v6936_v15 = vld [vmem:[#allocation2 + $0x38] sm:$0xe]  ;;  %v6752_v6 = vld [vmem:[#allocation2 + $0x40] sm:$0xe] }
 0x39f   : > { %v5768_v14 = vrot.slane %v5766_v9, 7  ;;  %v7163_v44 = vunpack.c.l.b16 %v7107_v49  ;;  %v7113_v22 = vunpack.c.l.b16 %v6795_v26  ;;  %v6899_v56 = vrot.slane %v6897_v3, 4  ;;  %v15790_v52 = vpop.f32.mrf.mxu0 }
 0x3a0   : > { %v5700_v41 = vadd.f32 %v15660_v1, %v5671_v25  ;;  %v6902_v61 = vrot.slane %v6900_v24, 5  ;;  %v6906_v12 = vshll.u32 %v15779_v63, 16  ;;  %v6911_v8 = vshrl.u32 %v6811_v48, 16 }
 0x3a1   : > { %v5771_v32 = vor.u32 %v5769_v11, %v5768_v14  ;;  %v5772_v62 = vrot.slane %v5768_v14, 4  ;;  %v7167_v31 = vpack.c.b16 %v7163_v44, %v7162_v28  ;;  %v7118_v47 = vpack.c.b16 %v7113_v22, %v7112_v57  ;;  %v15792_v38 = vpop.f32.mrf.mxu3  ;;  %v6754_v44 = vld [vmem:[#allocation2 + $0x48] sm:$0xe] }
 0x3a2   : > { %vm5713_vm4 = vcmp.ge.f32.partialorder %v5700_v41, 0.0  ;;  %v5721_v33 = vmul.f32 0.1, %v5700_v41  ;;  %v6903_v17 = vor.u32 %v6902_v61, %v6899_v56  ;;  %v6908_v13 = vrot.slane %v6906_v12, 5  ;;  %v5846_v61 = vld [vmem:[#allocation3 + $0x78] sm:$0xf] }
 0x3a3   : > { %v5841_v1 = vsel %vm13245_vm2, %v5771_v32, %v5840_v58  ;;  %v5844_v40 = vsel %vm13485_vm9, %v5772_v62, %v5843_v0  ;;  %7539 = vmatmul.bf16.gmra.mxu1 %v7167_v31  ;;  %7447 = vmatmul.bf16.gmra.mxu2 %v7118_v47  ;;  %v6913_v53 = vrot.slane %v6911_v8, 4  ;;  %v6914_v55 = vshll.u32 %v6811_v48, 16  ;;  %v5849_v62 = vld [vmem:[#allocation3 + $0x7c] sm:$0x1] }
 0x3a4   : > { %v5619_v28 = vpop.f32.mrf.mxu2  ;;  %5842 = vst [vmem:[#allocation3 + $0x70] sm:$0xf] %v5841_v1  ;;  %v5729_v23 = vsel %vm5713_vm4, %v5700_v41, %v5721_v33  ;;  %v6904_v4 = vrot.slane %v6903_v17, 4  ;;  %v6920_v20 = vshll.u32 %v6755_v7, 16  ;;  %v12227_v54 = vrot.slane %v6936_v15, 9  ;;  %v15809_v41 = vpop.f32.mrf.mxu1 }
 0x3a5   : > { %5845 = vst [vmem:[#allocation3 + $0x74] sm:$0x1] %v5844_v40  ;;  %v5737_v46 = vpack.c.bf16 %v5729_v23, %v5729_v23  ;;  %v6916_v9 = vrot.slane %v6914_v55, 5  ;;  %v6982_v11 = vrot.slane %v15747_v50, 5  ;;  %v12228_v57 = vrot.slane %v6938_v42, 9 }
 0x3a6   : > { %v6909_v3 = vsel %vm13564_vm15, %v6904_v4, %v6908_v13  ;;  %v6922_v49 = vrot.slane %v6920_v20, 5  ;;  %v6986_v26 = vrot.slane %v15758_v35, 5  ;;  %v5644_v48 = vadd.f32 %v15714_v36, %v15751_v39 }
 0x3a7   : > { %v5774_v25 = vshrl.u32 %v5737_v46, 16  ;;  %v5777_v24 = vshll.u32 %v5737_v46, 16  ;;  %v6917_v14 = vor.u32 %v6916_v9, %v6913_v53  ;;  %v7130_v58 = vunpack.c.l.b16 %v6909_v3  ;;  %v6532_v8 = vpop.f32.mrf.mxu0 }
 0x3a8   : > { %v6983_v22 = vsel %vm13509_vm12, %v12227_v54, %v6982_v11  ;;  %v6987_v50 = vsel %vm13509_vm12, %v12228_v57, %v6986_v26  ;;  %v5673_v56 = vadd.f32 %v15705_v21, %v5644_v48  ;;  %v12219_v0 = vrot.slane %v6752_v6, 9 }
 0x3a9   : > { %v5776_v35 = vrot.slane %v5774_v25, 7  ;;  %v6918_v12 = vrot.slane %v6917_v14, 4  ;;  %v7146_v36 = vunpack.c.l.b16 %v6983_v22  ;;  %v7147_v39 = vunpack.c.l.b16 %v6987_v50  ;;  %v6503_v32 = vpop.f32.mrf.mxu3 }
 0x3aa   : > { %v5702_v31 = vadd.f32 %v15691_v43, %v5673_v56  ;;  %v6798_v47 = vrot.slane %v15779_v63, 5  ;;  %v12220_v15 = vrot.slane %v6754_v44, 9  ;;  %v6802_v33 = vrot.slane %v6755_v7, 5  ;;  %v5855_v44 = vld [vmem:[#allocation3 + $0x84] sm:$0x1] }
 0x3ab   : > { %v5779_v17 = vor.u32 %v5777_v24, %v5776_v35  ;;  %v5780_v13 = vrot.slane %v5776_v35, 4  ;;  %v6923_v21 = vsel %vm13564_vm15, %v6918_v12, %v6922_v49  ;;  %v7151_v42 = vpack.c.b16 %v7147_v39, %v7146_v36 }
 0x3ac   : > { %v6472_v1 = vpop.f32.mrf.mxu2  ;;  %v7131_v40 = vunpack.c.l.b16 %v6923_v21  ;;  %vm5714_vm7 = vcmp.ge.f32.partialorder %v5702_v31, 0.0  ;;  %v5722_v53 = vmul.f32 0.1, %v5702_v31  ;;  %v6799_v55 = vsel %vm13509_vm12, %v12219_v0, %v6798_v47 }
 0x3ad   : > { %v5847_v43 = vsel %vm13245_vm2, %v5779_v17, %v5846_v61  ;;  %v5850_v63 = vsel %vm13485_vm9, %v5780_v13, %v5849_v62  ;;  %7510 = vmatmul.bf16.gmra.mxu0 %v7151_v42  ;;  %v6803_v7 = vsel %vm13509_vm12, %v12220_v15, %v6802_v33  ;;  %v7114_v6 = vunpack.c.l.b16 %v6799_v55 }
 0x3ae   : > { %5848 = vst [vmem:[#allocation3 + $0x78] sm:$0xf] %v5847_v43  ;;  %v7135_v23 = vpack.c.b16 %v7131_v40, %v7130_v58  ;;  %v5730_v4 = vsel %vm5714_vm7, %v5702_v31, %v5722_v53  ;;  %v7115_v20 = vunpack.c.l.b16 %v6803_v7  ;;  %v5647_v54 = vadd.f32 %v15741_v59, %v15772_v2  ;;  %v15831_v59 = vpop.f32.mrf.mxu1  ;;  %v5858_v40 = vld [vmem:[#allocation3 + $0x88] sm:$0xf]  ;;  %v5861_v53 = vld [vmem:[#allocation3 + $0x8c] sm:$0x1] }
 0x3af   : > { %5851 = vst [vmem:[#allocation3 + $0x7c] sm:$0x1] %v5850_v63  ;;  %v5738_v46 = vpack.c.bf16 %v5730_v4, %v5730_v4  ;;  %v5649_v9 = vadd.f32 %v15767_v34, %v5619_v28  ;;  %v6502_v11 = vadd.f32 %v15792_v38, %v6472_v1  ;;  %v6535_v25 = vpop.f32.mrf.mxu0  ;;  %v5852_v34 = vld [vmem:[#allocation3 + $0x80] sm:$0xf]  ;;  %v5864_v4 = vld [vmem:[#allocation3 + $0x90] sm:$0xf] }
 0x3b0   : > { %7481 = vmatmul.bf16.gmra.mxu3 %v7135_v23  ;;  %v5676_v57 = vadd.f32 %v15732_v18, %v5647_v54  ;;  %v7119_v49 = vpack.c.b16 %v7115_v20, %v7114_v6  ;;  %v5867_v20 = vld [vmem:[#allocation3 + $0x94] sm:$0x1] }
 0x3b1   : > { %v5782_v3 = vshrl.u32 %v5738_v46, 16  ;;  %v5678_v26 = vadd.f32 %v15765_v30, %v5649_v9  ;;  %v6531_v48 = vadd.f32 %v15790_v52, %v6502_v11  ;;  %v6506_v24 = vpop.f32.mrf.mxu3  ;;  %v5785_v58 = vshll.u32 %v5738_v46, 16 }
 0x3b2   : > { %v5705_v14 = vadd.f32 %v15719_v16, %v5676_v57  ;;  %v6692_v57 = vld [vmem:[#allocation3 + $0xa8] sm:$0xf] }
 0x3b3   : > { %v5784_v2 = vrot.slane %v5782_v3, 7  ;;  %7452 = vmatmul.bf16.gmra.mxu2 %v7119_v49  ;;  %v5707_v38 = vadd.f32 %v15754_v27, %v5678_v26  ;;  %v6560_v18 = vadd.f32 %v15786_v37, %v6531_v48 }
 0x3b4   : > { %v6474_v28 = vpop.f32.mrf.mxu2  ;;  %vm5715_vm10 = vcmp.ge.f32.partialorder %v5705_v14, 0.0  ;;  %v5723_v30 = vmul.f32 0.1, %v5705_v14 }
 0x3b5   : > { %v6504_v22 = vadd.f32 %v6503_v32, %v6474_v28  ;;  %v5787_v52 = vor.u32 %v5785_v58, %v5784_v2  ;;  %v5788_v50 = vrot.slane %v5784_v2, 4  ;;  %vm5716_vm11 = vcmp.ge.f32.partialorder %v5707_v38, 0.0  ;;  %v6695_v2 = vld [vmem:[#allocation3 + $0xac] sm:$0x1]  ;;  %v6698_v28 = vld [vmem:[#allocation3 + $0xb0] sm:$0xf] }
 0x3b6   : > { %v5724_v56 = vmul.f32 0.1, %v5707_v38  ;;  %v5731_v16 = vsel %vm5715_vm10, %v5705_v14, %v5723_v30  ;;  %vm6579_vm13 = vcmp.ge.f32.partialorder %v6560_v18, 0.0  ;;  %v6587_v0 = vmul.f32 0.1, %v6560_v18  ;;  %v6566_v43 = vpop.f32.mrf.mxu1 }
 0x3b7   : > { %v6533_v35 = vadd.f32 %v6532_v8, %v6504_v22  ;;  %v5853_v61 = vsel %vm13245_vm2, %v5787_v52, %v5852_v34  ;;  %v5856_v27 = vsel %vm13485_vm9, %v5788_v50, %v5855_v44  ;;  %v5739_v37 = vpack.c.bf16 %v5731_v16, %v5731_v16  ;;  %v15840_v33 = vpop.f32.mrf.mxu0  ;;  %v6701_v44 = vld [vmem:[#allocation3 + $0xb4] sm:$0x1]  ;;  %v7717_v22 = vld [vmem:[#allocation3 + $0xa4] sm:$0x1] }
 0x3b8   : > { %v5732_v12 = vsel %vm5716_vm11, %v5707_v38, %v5724_v56  ;;  %5854 = vst [vmem:[#allocation3 + $0x80] sm:$0xf] %v5853_v61  ;;  %v6595_v39 = vsel %vm6579_vm13, %v6560_v18, %v6587_v0 }
 0x3b9   : > { %v5740_v36 = vpack.c.bf16 %v5732_v12, %v5732_v12  ;;  %v6562_v32 = vadd.f32 %v15809_v41, %v6533_v35  ;;  %5857 = vst [vmem:[#allocation3 + $0x84] sm:$0x1] %v5856_v27  ;;  %v5790_v62 = vshrl.u32 %v5739_v37, 16  ;;  %v6603_v31 = vpack.c.bf16 %v6595_v39, %v6595_v39  ;;  %v6508_v47 = vpop.f32.mrf.mxu3 }
 0x3ba   : > { %v5793_v13 = vshll.u32 %v5739_v37, 16  ;;  %v7742_v35 = vshll.u32 %v7717_v22, 16  ;;  %v6710_v22 = vld [vmem:[#allocation3 + $0xc0] sm:$0xf] }
 0x3bb   : > { %v5798_v15 = vshrl.u32 %v5740_v36, 16  ;;  %vm6580_vm14 = vcmp.ge.f32.partialorder %v6562_v32, 0.0  ;;  %v6588_v8 = vmul.f32 0.1, %v6562_v32  ;;  %v5792_v17 = vrot.slane %v5790_v62, 7 }
 0x3bc   : > { %v5801_v21 = vshll.u32 %v5740_v36, 16  ;;  %v6612_v42 = vshrl.u32 %v6603_v31, 16  ;;  %v6477_v1 = vpop.f32.mrf.mxu2  ;;  %v6615_v63 = vshll.u32 %v6603_v31, 16 }
 0x3bd   : > { %v5800_v55 = vrot.slane %v5798_v15, 7  ;;  %v6596_v41 = vsel %vm6580_vm14, %v6562_v32, %v6588_v8  ;;  %v6507_v7 = vadd.f32 %v6506_v24, %v6477_v1  ;;  %v5795_v6 = vor.u32 %v5793_v13, %v5792_v17  ;;  %v7716_v24 = vld [vmem:[#allocation3 + $0xa0] sm:$0xf] }
 0x3be   : > { %v5796_v23 = vrot.slane %v5792_v17, 4  ;;  %v6614_v54 = vrot.slane %v6612_v42, 7  ;;  %v6604_v46 = vpack.c.bf16 %v6596_v41, %v6596_v41  ;;  %v7733_v52 = vshrl.u32 %v7716_v24, 16  ;;  %v6569_v31 = vpop.f32.mrf.mxu1  ;;  %v6704_v41 = vld [vmem:[#allocation3 + $0xb8] sm:$0xf] }
 0x3bf   : > { %v5803_v9 = vor.u32 %v5801_v21, %v5800_v55  ;;  %v5804_v11 = vrot.slane %v5800_v55, 4  ;;  %v6536_v3 = vadd.f32 %v6535_v25, %v6507_v7  ;;  %v5859_v49 = vsel %vm13245_vm2, %v5795_v6, %v5858_v40  ;;  %v6540_v39 = vpop.f32.mrf.mxu0  ;;  %v6707_v7 = vld [vmem:[#allocation3 + $0xbc] sm:$0x1] }
 0x3c0   : > { %v5862_v26 = vsel %vm13485_vm9, %v5796_v23, %v5861_v53  ;;  %v6617_v48 = vor.u32 %v6615_v63, %v6614_v54  ;;  %v6618_v14 = vrot.slane %v6614_v54, 4  ;;  %5860 = vst [vmem:[#allocation3 + $0x88] sm:$0xf] %v5859_v49  ;;  %v6620_v38 = vshrl.u32 %v6604_v46, 16 }
 0x3c1   : > { %v5865_v58 = vsel %vm13245_vm2, %v5803_v9, %v5864_v4  ;;  %v5868_v34 = vsel %vm13485_vm9, %v5804_v11, %v5867_v20  ;;  %5863 = vst [vmem:[#allocation3 + $0x8c] sm:$0x1] %v5862_v26  ;;  %v6623_v18 = vshll.u32 %v6604_v46, 16  ;;  %v6565_v30 = vadd.f32 %v15831_v59, %v6536_v3  ;;  %v6511_v16 = vpop.f32.mrf.mxu3  ;;  %v7964_v26 = vld [vmem:[#allocation3 + $0x58] sm:$0xf] }
 0x3c2   : > { %v6693_v25 = vsel %vm13245_vm2, %v6617_v48, %v6692_v57  ;;  %5866 = vst [vmem:[#allocation3 + $0x90] sm:$0xf] %v5865_v58  ;;  %v6696_v50 = vsel %vm13485_vm9, %v6618_v14, %v6695_v2  ;;  %v6622_v56 = vrot.slane %v6620_v38, 7  ;;  %v7736_v0 = vshll.u32 %v7716_v24, 16  ;;  %v8100_v38 = vld [vmem:[#allocation3 + $0x5c] sm:$0x1] }
 0x3c3   : > { %5869 = vst [vmem:[#allocation3 + $0x94] sm:$0x1] %v5868_v34  ;;  %vm6581_vm0 = vcmp.ge.f32.partialorder %v6565_v30, 0.0  ;;  %v6589_v61 = vmul.f32 0.1, %v6565_v30  ;;  %v7735_v37 = vrot.slane %v7733_v52, 4 }
 0x3c4   : > { %v6479_v27 = vpop.f32.mrf.mxu2  ;;  %6694 = vst [vmem:[#allocation3 + $0xa8] sm:$0xf] %v6693_v25  ;;  %v6625_v12 = vor.u32 %v6623_v18, %v6622_v56  ;;  %v6626_v36 = vrot.slane %v6622_v56, 4  ;;  %v7738_v32 = vrot.slane %v7736_v0, 5  ;;  %v7744_v42 = vrot.slane %v7742_v35, 5 }
 0x3c5   : > { %v6509_v59 = vadd.f32 %v6508_v47, %v6479_v27  ;;  %6697 = vst [vmem:[#allocation3 + $0xac] sm:$0x1] %v6696_v50  ;;  %v6597_v62 = vsel %vm6581_vm0, %v6565_v30, %v6589_v61  ;;  %v7965_v34 = vld [vmem:[#allocation3 + $0x60] sm:$0xf]  ;;  %v8109_v56 = vshrl.u32 %v7964_v26, 16  ;;  %v8118_v27 = vshll.u32 %v8100_v38, 16 }
 0x3c6   : > { %v6699_v15 = vsel %vm13245_vm2, %v6625_v12, %v6698_v28  ;;  %v6702_v8 = vsel %vm13485_vm9, %v6626_v36, %v6701_v44  ;;  %v6605_v17 = vpack.c.bf16 %v6597_v62, %v6597_v62  ;;  %v7739_v21 = vor.u32 %v7738_v32, %v7735_v37  ;;  %v6571_v30 = vpop.f32.mrf.mxu1  ;;  %v6713_v35 = vld [vmem:[#allocation3 + $0xc4] sm:$0x1]  ;;  %v6719_v38 = vld [vmem:[#allocation3 + $0xcc] sm:$0x1] }
 0x3c7   : > { %v6538_v13 = vadd.f32 %v15840_v33, %v6509_v59  ;;  %6700 = vst [vmem:[#allocation3 + $0xb0] sm:$0xf] %v6699_v15  ;;  %v6542_v2 = vpop.f32.mrf.mxu0  ;;  %v8123_v37 = vshrl.u32 %v7965_v34, 16  ;;  %v8111_v36 = vrot.slane %v8109_v56, 4 }
 0x3c8   : > { %6703 = vst [vmem:[#allocation3 + $0xb4] sm:$0x1] %v6702_v8  ;;  %v6628_v1 = vshrl.u32 %v6605_v17, 16  ;;  %v7740_v47 = vrot.slane %v7739_v21, 4  ;;  %v6631_v55 = vshll.u32 %v6605_v17, 16  ;;  %v8120_v8 = vrot.slane %v8118_v27, 5 }
 0x3c9   : > { %v6567_v40 = vadd.f32 %v6566_v43, %v6538_v13  ;;  %v6513_v46 = vpop.f32.mrf.mxu3 }
 0x3ca   : > { %v6630_v53 = vrot.slane %v6628_v1, 7  ;;  %v7745_v4 = vsel %vm13564_vm15, %v7740_v47, %v7744_v42  ;;  %v8125_v42 = vrot.slane %v8123_v37, 4 }
 0x3cb   : > { %vm6582_vm1 = vcmp.ge.f32.partialorder %v6567_v40, 0.0  ;;  %v6590_v63 = vmul.f32 0.1, %v6567_v40  ;;  %v7718_v23 = vld [vmem:[#allocation3 + $0xa8] sm:$0xf]  ;;  %v8496_v58 = vunpack.c.l.b16 %v7745_v4 }
 0x3cc   : > { %v6482_v6 = vpop.f32.mrf.mxu2  ;;  %v6633_v20 = vor.u32 %v6631_v55, %v6630_v53  ;;  %v6634_v33 = vrot.slane %v6630_v53, 4  ;;  %v7719_v11 = vld [vmem:[#allocation3 + $0xac] sm:$0x1]  ;;  %v7747_v43 = vshrl.u32 %v7718_v23, 16  ;;  %v7750_v3 = vshll.u32 %v7718_v23, 16 }
 0x3cd   : > { %v6598_v54 = vsel %vm6582_vm1, %v6567_v40, %v6590_v63  ;;  %v6512_v9 = vadd.f32 %v6511_v16, %v6482_v6  ;;  %v7756_v49 = vshll.u32 %v7719_v11, 16  ;;  %v8112_v16 = vshll.u32 %v7964_v26, 16 }
 0x3ce   : > { %v6606_v57 = vpack.c.bf16 %v6598_v54, %v6598_v54  ;;  %v6705_v48 = vsel %vm13245_vm2, %v6633_v20, %v6704_v41  ;;  %v6708_v14 = vsel %vm13485_vm9, %v6634_v33, %v6707_v7  ;;  %v7749_v28 = vrot.slane %v7747_v43, 4  ;;  %v7720_v1 = vld [vmem:[#allocation3 + $0xb0] sm:$0xf] }
 0x3cf   : > { %v6541_v24 = vadd.f32 %v6540_v39, %v6512_v9  ;;  %6706 = vst [vmem:[#allocation3 + $0xb8] sm:$0xf] %v6705_v48  ;;  %v7752_v44 = vrot.slane %v7750_v3, 5  ;;  %v7758_v50 = vrot.slane %v7756_v49, 5  ;;  %v8114_v39 = vrot.slane %v8112_v16, 5 }
 0x3d0   : > { %v6636_v25 = vshrl.u32 %v6606_v57, 16  ;;  %v6639_v18 = vshll.u32 %v6606_v57, 16  ;;  %6709 = vst [vmem:[#allocation3 + $0xbc] sm:$0x1] %v6708_v14  ;;  %v8126_v23 = vshll.u32 %v7965_v34, 16  ;;  %v7761_v54 = vshrl.u32 %v7720_v1, 16  ;;  %v6574_v34 = vpop.f32.mrf.mxu1 }
 0x3d1   : > { %v6570_v52 = vadd.f32 %v6569_v31, %v6541_v24  ;;  %v7753_v61 = vor.u32 %v7752_v44, %v7749_v28  ;;  %v8101_v31 = vld [vmem:[#allocation3 + $0x64] sm:$0x1]  ;;  %v8115_v21 = vor.u32 %v8114_v39, %v8111_v36  ;;  %v6516_v63 = vpop.f32.mrf.mxu3  ;;  %v7721_v3 = vld [vmem:[#allocation3 + $0xb4] sm:$0x1]  ;;  %v6716_v48 = vld [vmem:[#allocation3 + $0xc8] sm:$0xf] }
 0x3d2   : > { %v6638_v0 = vrot.slane %v6636_v25, 7  ;;  %v8132_v33 = vshll.u32 %v8101_v31, 16  ;;  %v8128_v43 = vrot.slane %v8126_v23, 5  ;;  %v7763_v24 = vrot.slane %v7761_v54, 4  ;;  %v7966_v36 = vld [vmem:[#allocation3 + $0x68] sm:$0xf] }
 0x3d3   : > { %vm6583_vm3 = vcmp.ge.f32.partialorder %v6570_v52, 0.0  ;;  %v6591_v12 = vmul.f32 0.1, %v6570_v52  ;;  %v7754_v62 = vrot.slane %v7753_v61, 4  ;;  %v8116_v6 = vrot.slane %v8115_v21, 4 }
 0x3d4   : > { %v6641_v59 = vor.u32 %v6639_v18, %v6638_v0  ;;  %v6642_v32 = vrot.slane %v6638_v0, 4  ;;  %v6484_v15 = vpop.f32.mrf.mxu2  ;;  %v8134_v14 = vrot.slane %v8132_v33, 5  ;;  %v8129_v25 = vor.u32 %v8128_v43, %v8125_v42  ;;  %v8102_v43 = vld [vmem:[#allocation3 + $0x6c] sm:$0x1] }
 0x3d5   : > { %v6599_v17 = vsel %vm6583_vm3, %v6570_v52, %v6591_v12  ;;  %v6514_v13 = vadd.f32 %v6513_v46, %v6484_v15  ;;  %v7759_v55 = vsel %vm13564_vm15, %v7754_v62, %v7758_v50  ;;  %v6545_v46 = vpop.f32.mrf.mxu0  ;;  %v8121_v57 = vsel %vm13564_vm15, %v8116_v6, %v8120_v8 }
 0x3d6   : > { %v6711_v40 = vsel %vm13245_vm2, %v6641_v59, %v6710_v22  ;;  %v6714_v47 = vsel %vm13485_vm9, %v6642_v32, %v6713_v35  ;;  %v6607_v53 = vpack.c.bf16 %v6599_v17, %v6599_v17  ;;  %v8497_v41 = vunpack.c.l.b16 %v7759_v55  ;;  %v7722_v49 = vld [vmem:[#allocation3 + $0xb8] sm:$0xf] }
 0x3d7   : > { %6712 = vst [vmem:[#allocation3 + $0xc0] sm:$0xf] %v6711_v40  ;;  %v6543_v7 = vadd.f32 %v6542_v2, %v6514_v13  ;;  %v8568_v2 = vunpack.c.l.b16 %v8121_v57  ;;  %v7764_v18 = vshll.u32 %v7720_v1, 16  ;;  %v7770_v22 = vshll.u32 %v7721_v3, 16  ;;  %v7723_v37 = vld [vmem:[#allocation3 + $0xbc] sm:$0x1] }
 0x3d8   : > { %6715 = vst [vmem:[#allocation3 + $0xc4] sm:$0x1] %v6714_v47  ;;  %v6644_v4 = vshrl.u32 %v6607_v53, 16  ;;  %v6647_v20 = vshll.u32 %v6607_v53, 16  ;;  %v15872_v9 = vpack.c.b16 %v8497_v41, %v8496_v58  ;;  %v7775_v52 = vshrl.u32 %v7722_v49, 16  ;;  %v6576_v3 = vpop.f32.mrf.mxu1 }
 0x3d9   : > { %v6572_v11 = vadd.f32 %v6571_v30, %v6543_v7  ;;  %v8130_v56 = vrot.slane %v8129_v25, 4  ;;  %v7766_v0 = vrot.slane %v7764_v18, 5  ;;  %v7772_v12 = vrot.slane %v7770_v22, 5  ;;  %v6518_v31 = vpop.f32.mrf.mxu3  ;;  %v6722_v53 = vld [vmem:[#allocation3 + $0xd0] sm:$0xf] }
 0x3da   : > { %v6646_v26 = vrot.slane %v6644_v4, 7  ;;  %8508 = vrot.lane.b32.xlu2 %v15872_v9, %s13168_s18  ;;  %v7777_v62 = vrot.slane %v7775_v52, 4  ;;  %v7778_v13 = vshll.u32 %v7722_v49, 16  ;;  %v7784_v1 = vshll.u32 %v7723_v37, 16  ;;  %v6725_v7 = vld [vmem:[#allocation3 + $0xd4] sm:$0x1] }
 0x3db   : > { %vm6584_vm5 = vcmp.ge.f32.partialorder %v6572_v11, 0.0  ;;  %v6592_v58 = vmul.f32 0.1, %v6572_v11  ;;  %v8135_v39 = vsel %vm13564_vm15, %v8130_v56, %v8134_v14  ;;  %v7767_v32 = vor.u32 %v7766_v0, %v7763_v24  ;;  %v7967_v57 = vld [vmem:[#allocation3 + $0x70] sm:$0xf] }
 0x3dc   : > { %v6649_v28 = vor.u32 %v6647_v20, %v6646_v26  ;;  %v6650_v44 = vrot.slane %v6646_v26, 4  ;;  %v6487_v30 = vpop.f32.mrf.mxu2  ;;  %v8569_v17 = vunpack.c.l.b16 %v8135_v39  ;;  %v8137_v40 = vshrl.u32 %v7966_v36, 16  ;;  %v8103_v25 = vld [vmem:[#allocation3 + $0x74] sm:$0x1]  ;;  %v6731_v39 = vld [vmem:[#allocation3 + $0xdc] sm:$0x1] }
 0x3dd   : > { %v6600_v50 = vsel %vm6584_vm5, %v6572_v11, %v6592_v58  ;;  %v6517_v16 = vadd.f32 %v6516_v63, %v6487_v30  ;;  %v7768_v42 = vrot.slane %v7767_v32, 4  ;;  %v7780_v63 = vrot.slane %v7778_v13, 5  ;;  %v6547_v6 = vpop.f32.mrf.mxu0 }
 0x3de   : > { %v6717_v35 = vsel %vm13245_vm2, %v6649_v28, %v6716_v48  ;;  %v6720_v61 = vsel %vm13485_vm9, %v6650_v44, %v6719_v38  ;;  %v6608_v27 = vpack.c.bf16 %v6600_v50, %v6600_v50  ;;  %v15884_v55 = vpack.c.b16 %v8569_v17, %v8568_v2 }
 0x3df   : > { %6718 = vst [vmem:[#allocation3 + $0xc8] sm:$0xf] %v6717_v35  ;;  %v6546_v59 = vadd.f32 %v6545_v46, %v6517_v16  ;;  %v8140_v41 = vshll.u32 %v7966_v36, 16  ;;  %v7773_v4 = vsel %vm13564_vm15, %v7768_v42, %v7772_v12  ;;  %v7781_v54 = vor.u32 %v7780_v63, %v7777_v62 }
 0x3e0   : > { %6721 = vst [vmem:[#allocation3 + $0xcc] sm:$0x1] %v6720_v61  ;;  %v6652_v15 = vshrl.u32 %v6608_v27, 16  ;;  %v6655_v8 = vshll.u32 %v6608_v27, 16  ;;  %v7786_v46 = vrot.slane %v7784_v1, 5  ;;  %v8139_v48 = vrot.slane %v8137_v40, 4 }
 0x3e1   : > { %v6575_v21 = vadd.f32 %v6574_v34, %v6546_v59  ;;  %v8142_v14 = vrot.slane %v8140_v41, 5  ;;  %v7782_v38 = vrot.slane %v7781_v54, 4  ;;  %v8146_v28 = vshll.u32 %v8102_v43, 16  ;;  %v6728_v27 = vld [vmem:[#allocation3 + $0xd8] sm:$0xf]  ;;  %v7467_v59 = vpop.f32.mrf.mxu3 }
 0x3e2   : > { %v6654_v47 = vrot.slane %v6652_v15, 7  ;;  %8580 = vrot.lane.b32.xlu2 %v15884_v55, %s13168_s18  ;;  %v8151_v44 = vshrl.u32 %v7967_v57, 16  ;;  %v8498_v52 = vunpack.c.l.b16 %v7773_v4  ;;  %v8154_v50 = vshll.u32 %v7967_v57, 16  ;;  %v6734_v57 = vld [vmem:[#allocation3 + $0xe0] sm:$0xf] }
 0x3e3   : > { %vm6585_vm6 = vcmp.ge.f32.partialorder %v6575_v21, 0.0  ;;  %v6593_v23 = vmul.f32 0.1, %v6575_v21  ;;  %v8143_v18 = vor.u32 %v8142_v14, %v8139_v48  ;;  %v7787_v22 = vsel %vm13564_vm15, %v7782_v38, %v7786_v46  ;;  %v6737_v43 = vld [vmem:[#allocation3 + $0xe4] sm:$0x1] }
 0x3e4   : > { %v6657_v20 = vor.u32 %v6655_v8, %v6654_v47  ;;  %v6658_v33 = vrot.slane %v6654_v47, 4  ;;  %v6489_v11 = vpop.f32.mrf.mxu2  ;;  %v8499_v16 = vunpack.c.l.b16 %v7787_v22  ;;  %v8153_v37 = vrot.slane %v8151_v44, 4 }
 0x3e5   : > { %v6601_v49 = vsel %vm6585_vm6, %v6575_v21, %v6593_v23  ;;  %v6519_v26 = vadd.f32 %v6518_v31, %v6489_v11  ;;  %v8144_v35 = vrot.slane %v8143_v18, 4  ;;  %v8156_v12 = vrot.slane %v8154_v50, 5  ;;  %v7496_v31 = vpop.f32.mrf.mxu0 }
 0x3e6   : > { %v6723_v2 = vsel %vm13245_vm2, %v6657_v20, %v6722_v53  ;;  %v6726_v24 = vsel %vm13485_vm9, %v6658_v33, %v6725_v7  ;;  %v6609_v34 = vpack.c.bf16 %v6601_v49, %v6601_v49  ;;  %v8160_v36 = vshll.u32 %v8103_v25, 16  ;;  %v7525_v7 = vpop.f32.mrf.mxu1 }
 0x3e7   : > { %6724 = vst [vmem:[#allocation3 + $0xd0] sm:$0xf] %v6723_v2  ;;  %v6548_v58 = vadd.f32 %v6547_v6, %v6519_v26  ;;  %v15896_v32 = vpack.c.b16 %v8499_v16, %v8498_v52  ;;  %v8148_v15 = vrot.slane %v8146_v28, 5  ;;  %v8157_v13 = vor.u32 %v8156_v12, %v8153_v37 }
 0x3e8   : > { %6727 = vst [vmem:[#allocation3 + $0xd4] sm:$0x1] %v6726_v24  ;;  %v6660_v30 = vshrl.u32 %v6609_v34, 16  ;;  %v6663_v56 = vshll.u32 %v6609_v34, 16  ;;  %v8162_v1 = vrot.slane %v8160_v36, 5  ;;  %vm8640_vm1 = vcmask 523264  }
 0x3e9   : > { %v6577_v0 = vadd.f32 %v6576_v3, %v6548_v58  ;;  %8510 = vrot.lane.b32.xlu1 %v15896_v32, %s13168_s18  ;;  %v8149_v42 = vsel %vm13564_vm15, %v8144_v35, %v8148_v15  ;;  %v8158_v41 = vrot.slane %v8157_v13, 4  ;;  %v7469_v14 = vpop.f32.mrf.mxu3  ;;  %v7661_v35 = vld [vmem:[#allocation3 + $0xfc] sm:$0x1]  ;;  %v7664_v15 = vld [vmem:[#allocation3 + $0x100] sm:$0xf] }
 0x3ea   : > { %v6662_v61 = vrot.slane %v6660_v30, 7  ;;  %v8570_v20 = vunpack.c.l.b16 %v8149_v42 }
 0x3eb   : > { %vm6586_vm8 = vcmp.ge.f32.partialorder %v6577_v0, 0.0  ;;  %v6594_v62 = vmul.f32 0.1, %v6577_v0  ;;  %v8163_v4 = vsel %vm13564_vm15, %v8158_v41, %v8162_v1 }
 0x3ec   : > { %v6665_v8 = vor.u32 %v6663_v56, %v6662_v61  ;;  %v6666_v17 = vrot.slane %v6662_v61, 4  ;;  %v7438_v40 = vpop.f32.mrf.mxu2  ;;  %v8571_v33 = vunpack.c.l.b16 %v8163_v4 }
 0x3ed   : > { %v6602_v21 = vsel %vm6586_vm8, %v6577_v0, %v6594_v62  ;;  %v7468_v6 = vadd.f32 %v7467_v59, %v7438_v40  ;;  %v7498_v25 = vpop.f32.mrf.mxu0  ;;  %v7658_v0 = vld [vmem:[#allocation3 + $0xf8] sm:$0xf]  ;;  %v7667_v40 = vld [vmem:[#allocation3 + $0x104] sm:$0x1] }
 0x3ee   : > { %v6729_v47 = vsel %vm13245_vm2, %v6665_v8, %v6728_v27  ;;  %v6732_v53 = vsel %vm13485_vm9, %v6666_v17, %v6731_v39  ;;  %v6610_v63 = vpack.c.bf16 %v6602_v21, %v6602_v21  ;;  %v15908_v3 = vpack.c.b16 %v8571_v33, %v8570_v20  ;;  %v7527_v30 = vpop.f32.mrf.mxu1  ;;  %v7728_v62 = vld [vmem:[#allocation3 + $0xd0] sm:$0xf] }
 0x3ef   : > { %6730 = vst [vmem:[#allocation3 + $0xd8] sm:$0xf] %v6729_v47  ;;  %v7497_v54 = vadd.f32 %v7496_v31, %v7468_v6  ;;  %v7729_v8 = vld [vmem:[#allocation3 + $0xd4] sm:$0x1]  ;;  %v7817_v42 = vshrl.u32 %v7728_v62, 16  ;;  %v7820_v1 = vshll.u32 %v7728_v62, 16 }
 0x3f0   : > { %6733 = vst [vmem:[#allocation3 + $0xdc] sm:$0x1] %v6732_v53  ;;  %v6668_v23 = vshrl.u32 %v6610_v63, 16  ;;  %v6671_v11 = vshll.u32 %v6610_v63, 16  ;;  %v7826_v47 = vshll.u32 %v7729_v8, 16 }
 0x3f1   : > { %v7526_v49 = vadd.f32 %v7525_v7, %v7497_v54  ;;  %8582 = vrot.lane.b32.xlu1 %v15908_v3, %s13168_s18  ;;  %v7819_v6 = vrot.slane %v7817_v42, 4  ;;  %v7670_v62 = vld [vmem:[#allocation3 + $0x108] sm:$0xf] }
 0x3f2   : > { %v6670_v46 = vrot.slane %v6668_v23, 7  ;;  %v7822_v23 = vrot.slane %v7820_v1, 5  ;;  %v13016_v42 = vld [vmem:[%s17144_s6 + $0x38] sm:$0xff] }
 0x3f3   : > { %vm7545_vm4 = vcmp.ge.f32.partialorder %v7526_v49, 0.0  ;;  %v7553_v2 = vmul.f32 0.1, %v7526_v49  ;;  %9823 = vmatpush.bf16.msra.mxu2 %v13016_v42  ;;  %13053 = vmatpush.bf16.msrb.mxu3 %v13016_v42 }
 0x3f4   : > { %v6673_v26 = vor.u32 %v6671_v11, %v6670_v46  ;;  %v6674_v48 = vrot.slane %v6670_v46, 4  ;;  %v7440_v24 = vpop.f32.mrf.mxu2  ;;  %v7823_v11 = vor.u32 %v7822_v23, %v7819_v6 }
 0x3f5   : > { %v7470_v58 = vadd.f32 %v7469_v14, %v7440_v24  ;;  %v7561_v18 = vsel %vm7545_vm4, %v7526_v49, %v7553_v2 }
 0x3f6   : > { %v6735_v34 = vsel %vm13245_vm2, %v6673_v26, %v6734_v57  ;;  %v6738_v38 = vsel %vm13485_vm9, %v6674_v48, %v6737_v43  ;;  %v7569_v28 = vpack.c.bf16 %v7561_v18, %v7561_v18  ;;  %v7730_v17 = vld [vmem:[#allocation3 + $0xd8] sm:$0xf]  ;;  %v7824_v49 = vrot.slane %v7823_v11, 4 }
 0x3f7   : > { %6736 = vst [vmem:[#allocation3 + $0xe0] sm:$0xf] %v6735_v34  ;;  %v7499_v44 = vadd.f32 %v7498_v25, %v7470_v58  ;;  %v7731_v21 = vld [vmem:[#allocation3 + $0xdc] sm:$0x1]  ;;  %v7831_v53 = vshrl.u32 %v7730_v17, 16  ;;  %v7834_v63 = vshll.u32 %v7730_v17, 16  ;;  %v7530_v25 = vpop.f32.mrf.mxu1 }
 0x3f8   : > { %6739 = vst [vmem:[#allocation3 + $0xe4] sm:$0x1] %v6738_v38  ;;  %v7578_v22 = vshrl.u32 %v7569_v28, 16  ;;  %v7581_v56 = vshll.u32 %v7569_v28, 16  ;;  %v7840_v33 = vshll.u32 %v7731_v21, 16  ;;  %v7828_v26 = vrot.slane %v7826_v47, 5 }
 0x3f9   : > { %v7528_v52 = vadd.f32 %v7527_v30, %v7499_v44  ;;  %v7833_v4 = vrot.slane %v7831_v53, 4  ;;  %v7836_v20 = vrot.slane %v7834_v63, 5  ;;  %v7501_v2 = vpop.f32.mrf.mxu0  ;;  %v7971_v21 = vld [vmem:[#allocation3 + $0x90] sm:$0xf]  ;;  %v8107_v47 = vld [vmem:[#allocation3 + $0x94] sm:$0x1] }
 0x3fa   : > { %v7580_v50 = vrot.slane %v7578_v22, 7  ;;  %v7842_v14 = vrot.slane %v7840_v33, 5  ;;  %v7829_v34 = vsel %vm13564_vm15, %v7824_v49, %v7828_v26  ;;  %v8210_v11 = vshll.u32 %v7971_v21, 16  ;;  %v7676_v26 = vld [vmem:[#allocation3 + $0x110] sm:$0xf] }
 0x3fb   : > { %vm7546_vm7 = vcmp.ge.f32.partialorder %v7528_v52, 0.0  ;;  %v7554_v16 = vmul.f32 0.1, %v7528_v52  ;;  %v7837_v57 = vor.u32 %v7836_v20, %v7833_v4  ;;  %v8502_v18 = vunpack.c.l.b16 %v7829_v34  ;;  %v7707_v4 = vld [vmem:[#allocation3 + $0xf0] sm:$0xf] }
 0x3fc   : > { %v7583_v61 = vor.u32 %v7581_v56, %v7580_v50  ;;  %v7584_v27 = vrot.slane %v7580_v50, 4  ;;  %v8216_v49 = vshll.u32 %v8107_v47, 16  ;;  %v7844_v34 = vld [vmem:[#allocation3 + $0xf4] sm:$0x1]  ;;  %v13014_v47 = vld [vmem:[%s17144_s6 + $0x28] sm:$0xff] }
 0x3fd   : > { %v7562_v37 = vsel %vm7546_vm7, %v7528_v52, %v7554_v16  ;;  %v7838_v48 = vrot.slane %v7837_v57, 4 }
 0x3fe   : > { %v7570_v12 = vpack.c.bf16 %v7562_v37, %v7562_v37  ;;  %v7659_v36 = vsel %vm13245_vm2, %v7583_v61, %v7658_v0  ;;  %v7662_v39 = vsel %vm13485_vm9, %v7584_v27, %v7661_v35 }
 0x3ff   : > { %7660 = vst [vmem:[#allocation3 + $0xf8] sm:$0xf] %v7659_v36  ;;  %v7843_v58 = vsel %vm13564_vm15, %v7838_v48, %v7842_v14  ;;  %v7532_v37 = vpop.f32.mrf.mxu1 }
 0x400   : > { %v7586_v59 = vshrl.u32 %v7570_v12, 16  ;;  %7663 = vst [vmem:[#allocation3 + $0xfc] sm:$0x1] %v7662_v39  ;;  %v7589_v31 = vshll.u32 %v7570_v12, 16  ;;  %v7472_v43 = vpop.f32.mrf.mxu3  ;;  %v8503_v28 = vunpack.c.l.b16 %v7843_v58 }
 0x401   : > { %v7503_v35 = vpop.f32.mrf.mxu0 }
 0x402   : > { %v7588_v13 = vrot.slane %v7586_v59, 7  ;;  %v15928_v30 = vpack.c.b16 %v8503_v28, %v8502_v18  ;;  %v8218_v18 = vrot.slane %v8216_v49, 5  ;;  %v7853_v28 = vshrl.u32 %v7707_v4, 16 }
 0x404   : > { %v7591_v41 = vor.u32 %v7589_v31, %v7588_v13  ;;  %v7592_v7 = vrot.slane %v7588_v13, 4  ;;  %8514 = vrot.lane.b32.xlu2 %v15928_v30, %s13168_s18  ;;  %v7970_v31 = vld [vmem:[#allocation3 + $0x88] sm:$0xf] }
 0x405   : > { %v8193_v53 = vshrl.u32 %v7970_v31, 16  ;;  %v8196_v63 = vshll.u32 %v7970_v31, 16 }
 0x406   : > { %v7665_v54 = vsel %vm13245_vm2, %v7591_v41, %v7664_v15  ;;  %v7668_v46 = vsel %vm13485_vm9, %v7592_v7, %v7667_v40  ;;  %v7673_v15 = vld [vmem:[#allocation3 + $0x10c] sm:$0x1]  ;;  %v15939_v20 = vld [vmem:[#allocation3 + $0xf8] sm:$0xf] }
 0x407   : > { %7666 = vst [vmem:[#allocation3 + $0x100] sm:$0xf] %v7665_v54  ;;  %v8106_v40 = vld [vmem:[#allocation3 + $0x8c] sm:$0x1]  ;;  %v8195_v33 = vrot.slane %v8193_v53, 4  ;;  %v8198_v54 = vrot.slane %v8196_v63, 5 }
 0x408   : > { %7669 = vst [vmem:[#allocation3 + $0x104] sm:$0x1] %v7668_v46  ;;  %v7474_v50 = vpop.f32.mrf.mxu3  ;;  %v8202_v23 = vshll.u32 %v8106_v40, 16  ;;  %v8207_v46 = vshrl.u32 %v7971_v21, 16  ;;  %v8230_v40 = vld [vmem:[#allocation3 + $0xb0] sm:$0xf] }
 0x409   : > { %v8199_v48 = vor.u32 %v8198_v54, %v8195_v33  ;;  %v13032_v53 = vld [vmem:[%s17144_s6 + $0xb8] sm:$0xff] }
 0x40a   : > { %v7443_v24 = vpop.f32.mrf.mxu2  ;;  %v8204_v14 = vrot.slane %v8202_v23, 5  ;;  %10001 = vmatpush.bf16.msra.mxu0 %v13032_v53  ;;  %v8233_v53 = vld [vmem:[#allocation3 + $0xbc] sm:$0x1] }
 0x40b   : > { %v7473_v38 = vadd.f32 %v7472_v43, %v7443_v24  ;;  %v8212_v24 = vrot.slane %v8210_v11, 5 }
 0x40d   : > { %v7502_v44 = vadd.f32 %v7501_v2, %v7473_v38  ;;  %v8209_v2 = vrot.slane %v8207_v46, 4 }
 0x40f   : > { %v7531_v22 = vadd.f32 %v7530_v25, %v7502_v44  ;;  %v7679_v25 = vld [vmem:[#allocation3 + $0x114] sm:$0x1]  ;;  %v7856_v44 = vshll.u32 %v7707_v4, 16 }
 0x411   : > { %vm7547_vm10 = vcmp.ge.f32.partialorder %v7531_v22, 0.0  ;;  %v7555_v52 = vmul.f32 0.1, %v7531_v22 }
 0x412   : > { %v7445_v56 = vpop.f32.mrf.mxu2 }
 0x413   : > { %v7563_v16 = vsel %vm7547_vm10, %v7531_v22, %v7555_v52  ;;  %v7475_v0 = vadd.f32 %v7474_v50, %v7445_v56  ;;  %v8200_v22 = vrot.slane %v8199_v48, 4  ;;  %v8213_v52 = vor.u32 %v8212_v24, %v8209_v2  ;;  %v7845_v50 = vld [vmem:[#allocation3 + $0xfc] sm:$0x1] }
 0x414   : > { %v7571_v61 = vpack.c.bf16 %v7563_v16, %v7563_v16  ;;  %v7862_v56 = vshll.u32 %v7844_v34, 16  ;;  %v7867_v16 = vshrl.u32 %v15939_v20, 16 }
 0x415   : > { %v7504_v27 = vadd.f32 %v7503_v35, %v7475_v0  ;;  %v7506_v0 = vpop.f32.mrf.mxu0 }
 0x416   : > { %v7594_v12 = vshrl.u32 %v7571_v61, 16  ;;  %v7597_v59 = vshll.u32 %v7571_v61, 16 }
 0x417   : > { %v7533_v36 = vadd.f32 %v7532_v37, %v7504_v27  ;;  %v7855_v27 = vrot.slane %v7853_v28, 4  ;;  %v7858_v37 = vrot.slane %v7856_v44, 5  ;;  %v8262_v44 = vshll.u32 %v8230_v40, 16 }
 0x418   : > { %v7596_v39 = vrot.slane %v7594_v12, 7  ;;  %v8228_v12 = vld [vmem:[#allocation3 + $0xa8] sm:$0xf] }
 0x419   : > { %vm7548_vm11 = vcmp.ge.f32.partialorder %v7533_v36, 0.0  ;;  %v7556_v8 = vmul.f32 0.1, %v7533_v36  ;;  %v8248_v54 = vshll.u32 %v8228_v12, 16 }
 0x41a   : > { %v7599_v17 = vor.u32 %v7597_v59, %v7596_v39  ;;  %v7600_v13 = vrot.slane %v7596_v39, 4  ;;  %v8205_v39 = vsel %vm13564_vm15, %v8200_v22, %v8204_v14  ;;  %v8214_v59 = vrot.slane %v8213_v52, 4 }
 0x41b   : > { %v7564_v1 = vsel %vm7548_vm11, %v7533_v36, %v7556_v8  ;;  %v7477_v38 = vpop.f32.mrf.mxu3  ;;  %v13015_v36 = vld [vmem:[%s17144_s6 + $0x30] sm:$0xff]  ;;  %v8229_v8 = vld [vmem:[#allocation3 + $0xac] sm:$0x1]  ;;  %v8574_v42 = vunpack.c.l.b16 %v8205_v39  ;;  %v8250_v14 = vrot.slane %v8248_v54, 5 }
 0x41c   : > { %v7671_v41 = vsel %vm13245_vm2, %v7599_v17, %v7670_v62  ;;  %v7674_v7 = vsel %vm13485_vm9, %v7600_v13, %v7673_v15  ;;  %v7572_v6 = vpack.c.bf16 %v7564_v1, %v7564_v1  ;;  %v7864_v62 = vrot.slane %v7862_v56, 5  ;;  %v15947_v17 = vld [vmem:[#allocation3 + $0x18] sm:$0xe]  ;;  %v7535_v13 = vpop.f32.mrf.mxu1  ;;  %9824 = vmatpush.bf16.msra.mxu2 %v13015_v36  ;;  %13054 = vmatpush.bf16.msrb.mxu3 %v13015_v36 }
 0x41d   : > { %7672 = vst [vmem:[#allocation3 + $0x108] sm:$0xf] %v7671_v41  ;;  %v7869_v15 = vrot.slane %v7867_v16, 4  ;;  %v7859_v1 = vor.u32 %v7858_v37, %v7855_v27  ;;  %v8219_v63 = vsel %vm13564_vm15, %v8214_v59, %v8218_v18  ;;  %v7870_v41 = vshll.u32 %v15939_v20, 16  ;;  %v7508_v27 = vpop.f32.mrf.mxu0  ;;  %v8232_v59 = vld [vmem:[#allocation3 + $0xb8] sm:$0xf] }
 0x41e   : > { %7675 = vst [vmem:[#allocation3 + $0x10c] sm:$0x1] %v7674_v7  ;;  %v7602_v57 = vshrl.u32 %v7572_v6, 16  ;;  %v7605_v43 = vshll.u32 %v7572_v6, 16  ;;  %v7876_v7 = vshll.u32 %v7845_v50, 16  ;;  %v8245_v6 = vshrl.u32 %v8228_v12, 16 }
 0x41f   : > { %v8575_v4 = vunpack.c.l.b16 %v8219_v63  ;;  %v7860_v33 = vrot.slane %v7859_v1, 4  ;;  %v8254_v46 = vshll.u32 %v8229_v8, 16  ;;  %v12479_v20 = vrot.slane %v15947_v17, 9  ;;  %v13012_v8 = vld [vmem:[%s17144_s6 + $0x18] sm:$0xff]  ;;  %v8234_v63 = vld [vmem:[#allocation3 + $0xc0] sm:$0xf] }
 0x420   : > { %v7604_v58 = vrot.slane %v7602_v57, 7  ;;  %v7872_v57 = vrot.slane %v7870_v41, 5  ;;  %v8247_v49 = vrot.slane %v8245_v6, 4  ;;  %9825 = vmatpush.bf16.msra.mxu2 %v13014_v47  ;;  %13055 = vmatpush.bf16.msrb.mxu3 %v13014_v47  ;;  %v7878_v34 = vrot.slane %v7876_v7, 5  ;;  %v7697_v17 = vld [vmem:[#allocation3 + $0x12c] sm:$0x1] }
 0x421   : > { %v7865_v48 = vsel %vm13564_vm15, %v7860_v33, %v7864_v62  ;;  %v8256_v28 = vrot.slane %v8254_v46, 5  ;;  %v8264_v12 = vrot.slane %v8262_v44, 5  ;;  %v8276_v41 = vshll.u32 %v8232_v59, 16 }
 0x422   : > { %v7607_v35 = vor.u32 %v7605_v43, %v7604_v58  ;;  %v7608_v61 = vrot.slane %v7604_v58, 4  ;;  %v8231_v43 = vld [vmem:[#allocation3 + $0xb4] sm:$0x1]  ;;  %v7873_v24 = vor.u32 %v7872_v57, %v7869_v15  ;;  %v8259_v58 = vshrl.u32 %v8230_v40, 16 }
 0x423   : > { %v7479_v18 = vpop.f32.mrf.mxu3  ;;  %v8268_v22 = vshll.u32 %v8231_v43, 16  ;;  %v8516_v56 = vunpack.c.l.b16 %v7865_v48  ;;  %v8235_v43 = vld [vmem:[#allocation3 + $0xc4] sm:$0x1]  ;;  %v8287_v48 = vshrl.u32 %v8234_v63, 16 }
 0x424   : > { %v7677_v31 = vsel %vm13245_vm2, %v7607_v35, %v7676_v26  ;;  %v7680_v21 = vsel %vm13485_vm9, %v7608_v61, %v7679_v25  ;;  %v15962_v26 = vpack.c.b16 %v8575_v4, %v8574_v42  ;;  %v12997_v25 = vld [vmem:[#allocation3 + $0x5c] sm:$0xf0]  ;;  %v7874_v50 = vrot.slane %v7873_v24, 4  ;;  %v12439_v35 = vld [vmem:[#allocation3 + $0x58] sm:$0xf] }
 0x425   : > { %7678 = vst [vmem:[#allocation3 + $0x110] sm:$0xf] %v7677_v31  ;;  %v8261_v16 = vrot.slane %v8259_v58, 4  ;;  %v13031_v61 = vld [vmem:[%s17144_s6 + $0xb0] sm:$0xff]  ;;  %v8270_v36 = vrot.slane %v8268_v22, 5  ;;  %v15975_v39 = vor.u32 %v12997_v25, %v12439_v35  ;;  %v8273_v31 = vshrl.u32 %v8232_v59, 16 }
 0x426   : > { %7681 = vst [vmem:[#allocation3 + $0x114] sm:$0x1] %v7680_v21  ;;  %v7448_v23 = vpop.f32.mrf.mxu2  ;;  %8586 = vrot.lane.b32.xlu2 %v15962_v26, %s13168_s18  ;;  %v7879_v15 = vsel %vm13564_vm15, %v7874_v50, %v7878_v34  ;;  %10002 = vmatpush.bf16.msra.mxu0 %v13031_v61  ;;  %v7537_v21 = vpop.f32.mrf.mxu1  ;;  %v8240_v25 = vld [vmem:[#allocation3 + $0xd8] sm:$0xf]  ;;  %v12999_v22 = vld [vmem:[#allocation3 + $0x7c] sm:$0xf0] }
 0x427   : > { %v7478_v11 = vadd.f32 %v7477_v38, %v7448_v23  ;;  %17189 = vst [vmem:[#allocation4_spill] sm:$0xff] %v15962_v26  ;;  %v8251_v38 = vor.u32 %v8250_v14, %v8247_v49  ;;  %v8517_v42 = vunpack.c.l.b16 %v7879_v15  ;;  %v8265_v47 = vor.u32 %v8264_v12, %v8261_v16  ;;  %v12447_v59 = vld [vmem:[#allocation3 + $0x78] sm:$0xf] }
 0x428   : > { %v8275_v4 = vrot.slane %v8273_v31, 4  ;;  %v8282_v49 = vshll.u32 %v8233_v53, 16  ;;  %v8290_v14 = vshll.u32 %v8234_v63, 16  ;;  %v8289_v50 = vrot.slane %v8287_v48, 4 }
 0x429   : > { %v7507_v2 = vadd.f32 %v7506_v0, %v7478_v11  ;;  %v13013_v0 = vld [vmem:[%s17144_s6 + $0x20] sm:$0xff]  ;;  %v8252_v37 = vrot.slane %v8251_v38, 4  ;;  %v15988_v54 = vpack.c.b16 %v8517_v42, %v8516_v56  ;;  %v8266_v46 = vrot.slane %v8265_v47, 4  ;;  %v7685_v38 = vld [vmem:[#allocation3 + $0x11c] sm:$0x1] }
 0x42a   : > { %9826 = vmatpush.bf16.msra.mxu2 %v13013_v0  ;;  %13056 = vmatpush.bf16.msrb.mxu3 %v13013_v0  ;;  %v8278_v11 = vrot.slane %v8276_v41, 5  ;;  %v8292_v0 = vrot.slane %v8290_v14, 5  ;;  %v8296_v61 = vshll.u32 %v8235_v43, 16  ;;  %v8332_v48 = vshll.u32 %v8240_v25, 16 }
 0x42b   : > { %v7536_v52 = vadd.f32 %v7535_v13, %v7507_v2  ;;  %v13030_v13 = vld [vmem:[%s17144_s6 + $0xa8] sm:$0xff]  ;;  %v8257_v40 = vsel %vm13564_vm15, %v8252_v37, %v8256_v28  ;;  %17190 = vst [vmem:[#allocation5_spill] sm:$0xff] %v15988_v54  ;;  %8873 = vrot.lane.b32.xlu1 %v15988_v54, %s13168_s18  ;;  %v8271_v34 = vsel %vm13564_vm15, %v8266_v46, %v8270_v36  ;;  %v13029_v37 = vld [vmem:[%s17144_s6 + $0xa0] sm:$0xff] }
 0x42c   : > { %v8608_v23 = vunpack.c.l.b16 %v8257_v40  ;;  %10003 = vmatpush.bf16.msra.mxu0 %v13030_v13  ;;  %v8279_v58 = vor.u32 %v8278_v11, %v8275_v4  ;;  %v8609_v44 = vunpack.c.l.b16 %v8271_v34  ;;  %v7511_v13 = vpop.f32.mrf.mxu0  ;;  %v8293_v42 = vor.u32 %v8292_v0, %v8289_v50  ;;  %v13010_v40 = vld [vmem:[%s17144_s6 + $0x8] sm:$0xff] }
 0x42d   : > { %vm7549_vm13 = vcmp.ge.f32.partialorder %v7536_v52, 0.0  ;;  %v7557_v62 = vmul.f32 0.1, %v7536_v52  ;;  %v8298_v41 = vrot.slane %v8296_v61, 5  ;;  %v7691_v61 = vld [vmem:[#allocation3 + $0x124] sm:$0x1] }
 0x42e   : > { %v7450_v1 = vpop.f32.mrf.mxu2  ;;  %9827 = vmatpush.bf16.msra.mxu2 %v13012_v8  ;;  %13057 = vmatpush.bf16.msrb.mxu3 %v13012_v8  ;;  %v8280_v35 = vrot.slane %v8279_v58, 4  ;;  %v16000_v36 = vpack.c.b16 %v8609_v44, %v8608_v23  ;;  %v7540_v23 = vpop.f32.mrf.mxu1  ;;  %v8294_v11 = vrot.slane %v8293_v42, 4  ;;  %v8764_v42 = vld [vmem:[#allocation3 + $0x20] sm:$0xe] }
 0x42f   : > { %v7565_v7 = vsel %vm7549_vm13, %v7536_v52, %v7557_v62  ;;  %v7480_v6 = vadd.f32 %v7479_v18, %v7450_v1  ;;  %v7682_v18 = vld [vmem:[#allocation3 + $0x118] sm:$0xf]  ;;  %v8284_v52 = vrot.slane %v8282_v49, 5  ;;  %v8329_v62 = vshrl.u32 %v8240_v25, 16  ;;  %v8241_v1 = vld [vmem:[#allocation3 + $0xdc] sm:$0x1] }
 0x430   : > { %v7573_v33 = vpack.c.bf16 %v7565_v7, %v7565_v7  ;;  %10004 = vmatpush.bf16.msra.mxu0 %v13029_v37  ;;  %8620 = vrot.lane.b32.xlu2 %v16000_v36, %s13168_s18  ;;  %v8242_v7 = vld [vmem:[#allocation3 + $0xe0] sm:$0xf]  ;;  %v8338_v14 = vshll.u32 %v8241_v1, 16 }
 0x431   : > { %v7509_v57 = vadd.f32 %v7508_v27, %v7480_v6  ;;  %v13011_v27 = vld [vmem:[%s17144_s6 + $0x10] sm:$0xff]  ;;  %v8285_v63 = vsel %vm13564_vm15, %v8280_v35, %v8284_v52  ;;  %v13028_v6 = vld [vmem:[%s17144_s6 + $0x98] sm:$0xff]  ;;  %v8331_v49 = vrot.slane %v8329_v62, 4  ;;  %v8343_v58 = vshrl.u32 %v8242_v7, 16 }
 0x432   : > { %v7610_v2 = vshrl.u32 %v7573_v33, 16  ;;  %v7613_v24 = vshll.u32 %v7573_v33, 16  ;;  %9828 = vmatpush.bf16.msra.mxu2 %v13011_v27  ;;  %13058 = vmatpush.bf16.msrb.mxu3 %v13011_v27  ;;  %v8610_v34 = vunpack.c.l.b16 %v8285_v63  ;;  %v13027_v52 = vld [vmem:[%s17144_s6 + $0x90] sm:$0xff]  ;;  %v8346_v35 = vshll.u32 %v8242_v7, 16  ;;  %v13000_v63 = vld [vmem:[#allocation3 + $0x8c] sm:$0xf0] }
 0x433   : > { %v7538_v28 = vadd.f32 %v7537_v21, %v7509_v57  ;;  %v7482_v16 = vpop.f32.mrf.mxu3  ;;  %v16002_v21 = vor.u32 %v12999_v22, %v12447_v59  ;;  %v8243_v57 = vld [vmem:[#allocation3 + $0xe4] sm:$0x1]  ;;  %8548 = vrot.lane.b32.xlu1 %v15975_v39, %s13168_s18  ;;  %v8334_v22 = vrot.slane %v8332_v48, 5 }
 0x434   : > { %v7612_v56 = vrot.slane %v7610_v2, 7  ;;  %10005 = vmatpush.bf16.msra.mxu0 %v13028_v6  ;;  %v8352_v0 = vshll.u32 %v8243_v57, 16 }
 0x435   : > { %vm7550_vm14 = vcmp.ge.f32.partialorder %v7538_v28, 0.0  ;;  %v7558_v12 = vmul.f32 0.1, %v7538_v28  ;;  %v8335_v37 = vor.u32 %v8334_v22, %v8331_v49  ;;  %v13139_v49 = vld [vmem:[#allocation3 + $0x1c] sm:$0x1] }
 0x436   : > { %v7615_v15 = vor.u32 %v7613_v24, %v7612_v56  ;;  %v7616_v8 = vrot.slane %v7612_v56, 4  ;;  %v7453_v31 = vpop.f32.mrf.mxu2  ;;  %v8299_v24 = vsel %vm13564_vm15, %v8294_v11, %v8298_v41  ;;  %9829 = vmatpush.bf16.msra.mxu2 %v13010_v40  ;;  %13059 = vmatpush.bf16.msrb.mxu3 %v13010_v40  ;;  %v7688_v56 = vld [vmem:[#allocation3 + $0x120] sm:$0xf]  ;;  %v13026_v41 = vld [vmem:[%s17144_s6 + $0x88] sm:$0xff]  ;;  %v12423_v11 = vld [vmem:[#allocation3 + $0xf0] sm:$0xf] }
 0x437   : > { %v7566_v47 = vsel %vm7550_vm14, %v7538_v28, %v7558_v12  ;;  %v7483_v53 = vadd.f32 %v7482_v16, %v7453_v31  ;;  %v8611_v44 = vunpack.c.l.b16 %v8299_v24  ;;  %v8345_v16 = vrot.slane %v8343_v58, 4  ;;  %v7542_v24 = vpop.f32.mrf.mxu1 }
 0x438   : > { %v7683_v4 = vsel %vm13245_vm2, %v7615_v15, %v7682_v18  ;;  %v7686_v33 = vsel %vm13485_vm9, %v7616_v8, %v7685_v38  ;;  %v7574_v46 = vpack.c.bf16 %v7566_v47, %v7566_v47  ;;  %v13009_v18 = vld [vmem:[%s17144_s6] sm:$0xff]  ;;  %v16025_v38 = vpop.permute.xlu2 %8897  ;;  %v8340_v12 = vrot.slane %v8338_v14, 5  ;;  %8552 = vrot.lane.b32.xlu2 %v16002_v21, %s13168_s18  ;;  %10006 = vmatpush.bf16.msra.mxu0 %v13027_v52  ;;  %v13140_v52 = vld [vmem:[#allocation3 + $0x24] sm:$0x1] }
 0x439   : > { %7684 = vst [vmem:[#allocation3 + $0x118] sm:$0xf] %v7683_v4  ;;  %v7512_v43 = vadd.f32 %v7511_v13, %v7483_v53  ;;  %v16030_v8 = vpack.c.b16 %v8611_v44, %v8610_v34  ;;  %v8348_v31 = vrot.slane %v8346_v35, 5  ;;  %v8336_v47 = vrot.slane %v8335_v37, 4  ;;  %v7711_v37 = vld [vmem:[#allocation3 + $0x110] sm:$0xf] }
 0x43a   : > { %7687 = vst [vmem:[#allocation3 + $0x11c] sm:$0x1] %v7686_v33  ;;  %v7618_v2 = vshrl.u32 %v7574_v46, 16  ;;  %v7621_v28 = vshll.u32 %v7574_v46, 16  ;;  %9830 = vmatpush.bf16.msra.mxu2 %v13009_v18  ;;  %v8354_v53 = vrot.slane %v8352_v0, 5  ;;  %13060 = vmatpush.bf16.msrb.mxu3 %v13009_v18  ;;  %v8795_v48 = vrot.slane %v13139_v49, 5 }
 0x43b   : > { %v7541_v25 = vadd.f32 %v7540_v23, %v7512_v43  ;;  %v7484_v15 = vpop.f32.mrf.mxu3  ;;  %17191 = vst [vmem:[#allocation6_spill] sm:$0xff] %v16030_v8  ;;  %v7513_v23 = vpop.f32.mrf.mxu0  ;;  %v8349_v33 = vor.u32 %v8348_v31, %v8345_v16  ;;  %v12451_v46 = vld [vmem:[#allocation3 + $0x88] sm:$0xf]  ;;  %v8341_v43 = vsel %vm13564_vm15, %v8336_v47, %v8340_v12  ;;  %v12480_v14 = vrot.slane %v8764_v42, 9  ;;  %8622 = vrot.lane.b32.xlu1 %v16030_v8, %s13168_s18  ;;  %v13025_v16 = vld [vmem:[%s17144_s6 + $0x80] sm:$0xff] }
 0x43c   : > { %v7620_v50 = vrot.slane %v7618_v2, 7  ;;  %v12993_v2 = vld [vmem:[#allocation3 + $0xf4] sm:$0xf0]  ;;  %v8614_v44 = vunpack.c.l.b16 %v8341_v43  ;;  %v8796_v22 = vsel %vm13509_vm12, %v12479_v20, %v8795_v48  ;;  %10007 = vmatpush.bf16.msra.mxu0 %v13026_v41  ;;  %v7694_v0 = vld [vmem:[#allocation3 + $0x128] sm:$0xf] }
 0x43d   : > { %vm7551_vm0 = vcmp.ge.f32.partialorder %v7541_v25, 0.0  ;;  %v7559_v27 = vmul.f32 0.1, %v7541_v25  ;;  %v8220_v41 = vld [vmem:[#allocation3 + $0xf8] sm:$0xf] }
 0x43e   : > { %v7623_v59 = vor.u32 %v7621_v28, %v7620_v50  ;;  %v7624_v62 = vrot.slane %v7620_v50, 4  ;;  %v7455_v13 = vpop.f32.mrf.mxu2  ;;  %v8350_v28 = vrot.slane %v8349_v33, 4  ;;  %v8799_v50 = vrot.slane %v13140_v52, 5  ;;  %v7700_v52 = vld [vmem:[#allocation3 + $0x130] sm:$0xf] }
 0x43f   : > { %v7567_v1 = vsel %vm7551_vm0, %v7541_v25, %v7559_v27  ;;  %v7485_v40 = vadd.f32 %v7484_v15, %v7455_v13  ;;  %v16045_v25 = vor.u32 %v13000_v63, %v12451_v46  ;;  %v12424_v27 = vor.u32 %v12993_v2, %v12423_v11  ;;  %v8221_v46 = vld [vmem:[#allocation3 + $0x100] sm:$0xf]  ;;  %v8356_v11 = vld [vmem:[#allocation3 + $0xfc] sm:$0x1] }
 0x440   : > { %v7689_v7 = vsel %vm13245_vm2, %v7623_v59, %v7688_v56  ;;  %v7692_v6 = vsel %vm13485_vm9, %v7624_v62, %v7691_v61  ;;  %v7575_v4 = vpack.c.bf16 %v7567_v1, %v7567_v1  ;;  %v8509_v56 = vpop.permute.xlu2 %8508  ;;  %v8355_v61 = vsel %vm13564_vm15, %v8350_v28, %v8354_v53  ;;  %v7712_v42 = vld [vmem:[#allocation3 + $0x118] sm:$0xf]  ;;  %v7848_v1 = vld [vmem:[#allocation3 + $0x114] sm:$0x1]  ;;  %10008 = vmatpush.bf16.msra.mxu0 %v13025_v16 }
 0x441   : > { %7690 = vst [vmem:[#allocation3 + $0x120] sm:$0xf] %v7689_v7  ;;  %v7514_v57 = vadd.f32 %v7513_v23, %v7485_v40  ;;  %v8615_v20 = vunpack.c.l.b16 %v8355_v61  ;;  %v8800_v59 = vsel %vm13509_vm12, %v12480_v14, %v8799_v50  ;;  %v8643_v31 = vsel %vm8640_vm1, %v12424_v27, %v8509_v56  ;;  %v7849_v33 = vld [vmem:[#allocation3 + $0x11c] sm:$0x1] }
 0x442   : > { %7693 = vst [vmem:[#allocation3 + $0x124] sm:$0x1] %v7692_v6  ;;  %v7626_v34 = vshrl.u32 %v7575_v4, 16  ;;  %v7629_v58 = vshll.u32 %v7575_v4, 16  ;;  %v8904_v13 = vunpack.c.l.b16 %v8800_v59  ;;  %9831 = vmatmul.bf16.vlgmr.msra.gmra.mxu2 %v8643_v31  ;;  %v7909_v53 = vshrl.u32 %v7711_v37, 16 }
 0x443   : > { %v7543_v18 = vadd.f32 %v7542_v24, %v7514_v57  ;;  %v16059_v47 = vpack.c.b16 %v8615_v20, %v8614_v44  ;;  %v7912_v63 = vshll.u32 %v7711_v37, 16  ;;  %v8903_v4 = vunpack.c.l.b16 %v8796_v22  ;;  %8554 = vrot.lane.b32.xlu1 %v16045_v25, %s13168_s18  ;;  %v8357_v59 = vld [vmem:[#allocation3 + $0x104] sm:$0x1] }
 0x444   : > { %v7628_v35 = vrot.slane %v7626_v34, 7  ;;  %v7911_v57 = vrot.slane %v7909_v53, 4  ;;  %v7918_v49 = vshll.u32 %v7848_v1, 16  ;;  %v7923_v48 = vshrl.u32 %v7712_v42, 16  ;;  %v8766_v53 = vld [vmem:[#allocation3 + $0x30] sm:$0xe] }
 0x445   : > { %vm7552_vm3 = vcmp.ge.f32.partialorder %v7543_v18, 0.0  ;;  %v7560_v12 = vmul.f32 0.1, %v7543_v18  ;;  %17192 = vst [vmem:[#allocation7_spill] sm:$0xff] %v16059_v47  ;;  %8626 = vrot.lane.b32.xlu2 %v16059_v47, %s13168_s18  ;;  %v7914_v43 = vrot.slane %v7912_v63, 5  ;;  %v16069_v24 = vpack.c.b16 %v8904_v13, %v8903_v4 }
 0x446   : > { %v7631_v62 = vor.u32 %v7629_v58, %v7628_v35  ;;  %v7632_v15 = vrot.slane %v7628_v35, 4  ;;  %v7926_v34 = vshll.u32 %v7712_v42, 16  ;;  %v7925_v28 = vrot.slane %v7923_v48, 4  ;;  %v7703_v35 = vld [vmem:[#allocation3 + $0x134] sm:$0x1] }
 0x447   : > { %v7568_v40 = vsel %vm7552_vm3, %v7543_v18, %v7560_v12  ;;  %17193 = vst [vmem:[#allocation8_spill] sm:$0xff] %v16069_v24  ;;  %v7915_v58 = vor.u32 %v7914_v43, %v7911_v57  ;;  %v7932_v18 = vshll.u32 %v7849_v33, 16  ;;  %v8365_v44 = vshrl.u32 %v8220_v41, 16  ;;  %v8765_v13 = vld [vmem:[#allocation3 + $0x28] sm:$0xe] }
 0x448   : > { %v7695_v7 = vsel %vm13245_vm2, %v7631_v62, %v7694_v0  ;;  %v7698_v6 = vsel %vm13485_vm9, %v7632_v15, %v7697_v17  ;;  %v7576_v23 = vpack.c.bf16 %v7568_v40, %v7568_v40  ;;  %v7920_v50 = vrot.slane %v7918_v49, 5  ;;  %v8581_v15 = vpop.permute.xlu2 %8580  ;;  %v13141_v57 = vld [vmem:[#allocation3 + $0x2c] sm:$0x1] }
 0x449   : > { %7696 = vst [vmem:[#allocation3 + $0x128] sm:$0xf] %v7695_v7  ;;  %v7928_v56 = vrot.slane %v7926_v34, 5  ;;  %v8368_v16 = vshll.u32 %v8220_v41, 16  ;;  %v7916_v0 = vrot.slane %v7915_v58, 4  ;;  %v8367_v61 = vrot.slane %v8365_v44, 4 }
 0x44a   : > { %7699 = vst [vmem:[#allocation3 + $0x12c] sm:$0x1] %v7698_v6  ;;  %v7634_v14 = vshrl.u32 %v7576_v23, 16  ;;  %v7637_v2 = vshll.u32 %v7576_v23, 16  ;;  %v8374_v27 = vshll.u32 %v8356_v11, 16  ;;  %v8379_v37 = vshrl.u32 %v8221_v46, 16 }
 0x44b   : > { %v7929_v20 = vor.u32 %v7928_v56, %v7925_v28  ;;  %v8370_v62 = vrot.slane %v8368_v16, 5  ;;  %v7921_v31 = vsel %vm13564_vm15, %v7916_v0, %v7920_v50  ;;  %v7934_v42 = vrot.slane %v7932_v18, 5  ;;  %v8360_v58 = vld [vmem:[#allocation3 + $0x11c] sm:$0x1]  ;;  %v13142_v28 = vld [vmem:[#allocation3 + $0x34] sm:$0x1] }
 0x44c   : > { %v7636_v22 = vrot.slane %v7634_v14, 7  ;;  %v8381_v1 = vrot.slane %v8379_v37, 4  ;;  %v8382_v40 = vshll.u32 %v8221_v46, 16  ;;  %v8376_v6 = vrot.slane %v8374_v27, 5  ;;  %v8224_v46 = vld [vmem:[#allocation3 + $0x118] sm:$0xf] }
 0x44d   : > { %v7930_v7 = vrot.slane %v7929_v20, 4  ;;  %8915 = vrot.lane.b32.xlu2 %v16069_v24, %s13168_s18  ;;  %v8371_v23 = vor.u32 %v8370_v62, %v8367_v61  ;;  %v8388_v33 = vshll.u32 %v8357_v59, 16  ;;  %v16081_v11 = vsel %vm8640_vm1, %v15581_v60, %v8581_v15  ;;  %v8225_v44 = vld [vmem:[#allocation3 + $0x120] sm:$0xf]  ;;  %v8361_v27 = vld [vmem:[#allocation3 + $0x124] sm:$0x1] }
 0x44e   : > { %v7639_v17 = vor.u32 %v7637_v2, %v7636_v22  ;;  %v7640_v12 = vrot.slane %v7636_v22, 4  ;;  %v8384_v4 = vrot.slane %v8382_v40, 5  ;;  %10009 = vmatmul.bf16.vlgmr.msra.gmra.mxu0 %v16081_v11  ;;  %v12481_v51 = vrot.slane %v8765_v13, 9  ;;  %v8105_v24 = vld [vmem:[#allocation3 + $0x84] sm:$0x1] }
 0x44f   : > { %v7935_v45 = vsel %vm13564_vm15, %v7930_v7, %v7934_v42  ;;  %v8803_v43 = vrot.slane %v13141_v57, 5  ;;  %v12482_v49 = vrot.slane %v8766_v53, 9  ;;  %v8520_v48 = vunpack.c.l.b16 %v7921_v31  ;;  %v7850_v53 = vld [vmem:[#allocation3 + $0x124] sm:$0x1] }
 0x450   : > { %v7701_v63 = vsel %vm13245_vm2, %v7639_v17, %v7700_v52  ;;  %v7704_v41 = vsel %vm13485_vm9, %v7640_v12, %v7703_v35  ;;  %v8521_v14 = vunpack.c.l.b16 %v7935_v45  ;;  %v8372_v2 = vrot.slane %v8371_v23, 4  ;;  %v7713_v12 = vld [vmem:[#allocation3 + $0x120] sm:$0xf]  ;;  %v7714_v40 = vld [vmem:[#allocation3 + $0x128] sm:$0xf] }
 0x451   : > { %7702 = vst [vmem:[#allocation3 + $0x130] sm:$0xf] %v7701_v63  ;;  %v8385_v34 = vor.u32 %v8384_v4, %v8381_v1  ;;  %v8804_v60 = vsel %vm13509_vm12, %v12481_v51, %v8803_v43  ;;  %v8807_v18 = vrot.slane %v13142_v28, 5  ;;  %v8421_v22 = vshrl.u32 %v8224_v46, 16  ;;  %v13040_v51 = vld [vmem:[%s17144_s6 + $0xf8] sm:$0xff] }
 0x452   : > { %7705 = vst [vmem:[#allocation3 + $0x134] sm:$0x1] %v7704_v41  ;;  %v8424_v52 = vshll.u32 %v8224_v46, 16  ;;  %v16088_v50 = vpack.c.b16 %v8521_v14, %v8520_v48  ;;  %v8377_v56 = vsel %vm13564_vm15, %v8372_v2, %v8376_v6  ;;  %v8390_v35 = vrot.slane %v8388_v33, 5  ;;  %v7851_v6 = vld [vmem:[#allocation3 + $0x12c] sm:$0x1]  ;;  %10090 = vmatpush.bf16.msra.mxu1 %v13040_v51 }
 0x453   : > { %v8386_v16 = vrot.slane %v8385_v34, 4  ;;  %v8808_v0 = vsel %vm13509_vm12, %v12482_v49, %v8807_v18  ;;  %v8905_v61 = vunpack.c.l.b16 %v8804_v60  ;;  %v8423_v37 = vrot.slane %v8421_v22, 4  ;;  %v8226_v60 = vld [vmem:[#allocation3 + $0x128] sm:$0xf]  ;;  %v8362_v28 = vld [vmem:[#allocation3 + $0x12c] sm:$0x1] }
 0x454   : > { %17194 = vst [vmem:[#allocation9_spill] sm:$0xff] %v16088_v50  ;;  %v8426_v17 = vrot.slane %v8424_v52, 5  ;;  %8877 = vrot.lane.b32.xlu0 %v16088_v50, %s13168_s18  ;;  %v8906_v59 = vunpack.c.l.b16 %v8808_v0  ;;  %v8430_v62 = vshll.u32 %v8360_v58, 16  ;;  %v8435_v15 = vshrl.u32 %v8225_v44, 16 }
 0x455   : > { %v8391_v20 = vsel %vm13564_vm15, %v8386_v16, %v8390_v35  ;;  %v8628_v13 = vunpack.c.l.b16 %v8377_v56  ;;  %v8438_v1 = vshll.u32 %v8225_v44, 16  ;;  %v8444_v7 = vshll.u32 %v8361_v27, 16 }
 0x456   : > { %v8629_v31 = vunpack.c.l.b16 %v8391_v20  ;;  %v8427_v42 = vor.u32 %v8426_v17, %v8423_v37  ;;  %v16098_v63 = vpack.c.b16 %v8906_v59, %v8905_v61  ;;  %v8437_v41 = vrot.slane %v8435_v15, 4 }
 0x457   : > { %v7937_v23 = vshrl.u32 %v7713_v12, 16  ;;  %v8432_v46 = vrot.slane %v8430_v62, 5  ;;  %v8440_v45 = vrot.slane %v8438_v1, 5  ;;  %v7940_v43 = vshll.u32 %v7713_v12, 16 }
 0x458   : > { %17195 = vst [vmem:[#allocation10_spill] sm:$0xff] %v16098_v63  ;;  %v16100_v4 = vpack.c.b16 %v8629_v31, %v8628_v13  ;;  %v8428_v33 = vrot.slane %v8427_v42, 4  ;;  %v7946_v49 = vshll.u32 %v7850_v53, 16  ;;  %v7951_v48 = vshrl.u32 %v7714_v40, 16  ;;  %v8227_v56 = vld [vmem:[#allocation3 + $0x130] sm:$0xf] }
 0x459   : > { %v7939_v57 = vrot.slane %v7937_v23, 4  ;;  %v8441_v2 = vor.u32 %v8440_v45, %v8437_v41  ;;  %v7954_v34 = vshll.u32 %v7714_v40, 16  ;;  %v7960_v58 = vshll.u32 %v7851_v6, 16  ;;  %v8363_v62 = vld [vmem:[#allocation3 + $0x134] sm:$0x1] }
 0x45a   : > { %8921 = vrot.lane.b32.xlu1 %v16100_v4, %s13168_s18  ;;  %v8433_v14 = vsel %vm13564_vm15, %v8428_v33, %v8432_v46  ;;  %v8446_v18 = vrot.slane %v8444_v7, 5  ;;  %v7942_v22 = vrot.slane %v7940_v43, 5  ;;  %v7953_v52 = vrot.slane %v7951_v48, 4  ;;  %v9019_v53 = vld [vmem:[#allocation3 + $0x20] sm:$0xf]  ;;  %v16114_v46 = vpop.permute.xlu1 %8893 }
 0x45b   : > { %v8632_v44 = vunpack.c.l.b16 %v8433_v14  ;;  %v8442_v16 = vrot.slane %v8441_v2, 4  ;;  %v7948_v35 = vrot.slane %v7946_v49, 5  ;;  %v7956_v0 = vrot.slane %v7954_v34, 5  ;;  %v13039_v33 = vld [vmem:[%s17144_s6 + $0xf0] sm:$0xff]  ;;  %v9021_v48 = vld [vmem:[#allocation3 + $0x28] sm:$0xf] }
 0x45c   : > { %v7962_v61 = vrot.slane %v7960_v58, 5  ;;  %v7943_v27 = vor.u32 %v7942_v22, %v7939_v57  ;;  %v8449_v37 = vshrl.u32 %v8226_v60, 16  ;;  %v8452_v17 = vshll.u32 %v8226_v60, 16  ;;  %v16120_v49 = vld [vmem:[#allocation3 + $0x24] sm:$0x1]  ;;  %10091 = vmatpush.bf16.msra.mxu1 %v13039_v33  ;;  %v13038_v60 = vld [vmem:[%s17144_s6 + $0xe8] sm:$0xff] }
 0x45d   : > { %v8458_v12 = vshll.u32 %v8362_v28, 16  ;;  %v8447_v20 = vsel %vm13564_vm15, %v8442_v16, %v8446_v18  ;;  %v7957_v59 = vor.u32 %v7956_v0, %v7953_v52  ;;  %v8463_v15 = vshrl.u32 %v8227_v56, 16 }
 0x45e   : > { %v8466_v13 = vshll.u32 %v8227_v56, 16  ;;  %v8633_v31 = vunpack.c.l.b16 %v8447_v20  ;;  %v7944_v42 = vrot.slane %v7943_v27, 4  ;;  %v8451_v1 = vrot.slane %v8449_v37, 4  ;;  %v16131_v56 = vld [vmem:[#allocation3 + $0x2c] sm:$0x1] }
 0x45f   : > { %v8454_v40 = vrot.slane %v8452_v17, 5  ;;  %v7958_v41 = vrot.slane %v7957_v59, 4  ;;  %v8460_v7 = vrot.slane %v8458_v12, 5  ;;  %v8465_v6 = vrot.slane %v8463_v15, 4  ;;  %v13001_v27 = vld [vmem:[#allocation3 + $0xfc] sm:$0xf0] }
 0x460   : > { %v8468_v23 = vrot.slane %v8466_v13, 5  ;;  %v16116_v45 = vpack.c.b16 %v8633_v31, %v8632_v44  ;;  %v7949_v51 = vsel %vm13564_vm15, %v7944_v42, %v7948_v35  ;;  %v8472_v43 = vshll.u32 %v8363_v62, 16  ;;  %v7984_v20 = vld [vmem:[#allocation3 + $0x38] sm:$0xf]  ;;  %10092 = vmatpush.bf16.msra.mxu1 %v13038_v60 }
 0x461   : > { %v8455_v57 = vor.u32 %v8454_v40, %v8451_v1  ;;  %v7963_v14 = vsel %vm13564_vm15, %v7958_v41, %v7962_v61  ;;  %v8522_v2 = vunpack.c.l.b16 %v7949_v51  ;;  %v9060_v58 = vshrl.u32 %v9019_v53, 16  ;;  %v12455_v59 = vld [vmem:[#allocation3 + $0xf8] sm:$0xf]  ;;  %v7986_v41 = vld [vmem:[#allocation3 + $0x40] sm:$0xf] }
 0x462   : > { %17196 = vst [vmem:[#allocation11_spill] sm:$0xff] %v16116_v45  ;;  %8917 = vrot.lane.b32.xlu1 %v16098_v63, %s13168_s18  ;;  %v8469_v34 = vor.u32 %v8468_v23, %v8465_v6  ;;  %8925 = vrot.lane.b32.xlu2 %v16116_v45, %s13168_s18  ;;  %v8523_v28 = vunpack.c.l.b16 %v7963_v14  ;;  %v8474_v44 = vrot.slane %v8472_v43, 5  ;;  %v9063_v22 = vshll.u32 %v9019_v53, 16  ;;  %v16143_v53 = vld [vmem:[#allocation3 + $0x3c] sm:$0x1] }
 0x463   : > { %v8456_v18 = vrot.slane %v8455_v57, 4  ;;  %v9062_v16 = vrot.slane %v9060_v58, 4  ;;  %v9069_v35 = vshll.u32 %v16120_v49, 16  ;;  %v9074_v0 = vshrl.u32 %v9021_v48, 16  ;;  %v16147_v23 = vld [vmem:[#allocation3 + $0x44] sm:$0x1]  ;;  %v16149_v57 = vpop.permute.xlu1 %8895 }
 0x464   : > { %v8470_v52 = vrot.slane %v8469_v34, 4  ;;  %v16134_v61 = vpack.c.b16 %v8523_v28, %v8522_v2  ;;  %v9065_v17 = vrot.slane %v9063_v22, 5  ;;  %v9077_v12 = vshll.u32 %v9021_v48, 16  ;;  %v7969_v63 = vld [vmem:[#allocation3 + $0x80] sm:$0xf] }
 0x465   : > { %v8461_v37 = vsel %vm13564_vm15, %v8456_v18, %v8460_v7  ;;  %v9076_v13 = vrot.slane %v9074_v0, 4  ;;  %v9083_v40 = vshll.u32 %v16131_v56, 16  ;;  %v16145_v7 = vor.u32 %v13001_v27, %v12455_v59  ;;  %v13002_v18 = vld [vmem:[#allocation3 + $0x10c] sm:$0xf0] }
 0x466   : > { %17197 = vst [vmem:[#allocation12_spill] sm:$0xff] %v16134_v61  ;;  %v8475_v62 = vsel %vm13564_vm15, %v8470_v52, %v8474_v44  ;;  %v8634_v15 = vunpack.c.l.b16 %v8461_v37  ;;  %8879 = vrot.lane.b32.xlu0 %v16134_v61, %s13168_s18  ;;  %v9066_v42 = vor.u32 %v9065_v17, %v9062_v16  ;;  %v9079_v1 = vrot.slane %v9077_v12, 5  ;;  %v7725_v17 = vld [vmem:[#allocation3 + $0xc4] sm:$0x1]  ;;  %v7726_v12 = vld [vmem:[#allocation3 + $0xc8] sm:$0xf] }
 0x467   : > { %v8635_v31 = vunpack.c.l.b16 %v8475_v62  ;;  %v9071_v6 = vrot.slane %v9069_v35, 5  ;;  %v8073_v33 = vshrl.u32 %v7984_v20, 16  ;;  %v8076_v51 = vshll.u32 %v7984_v20, 16  ;;  %v7724_v35 = vld [vmem:[#allocation3 + $0xc0] sm:$0xf] }
 0x468   : > { %v9067_v48 = vrot.slane %v9066_v42, 4  ;;  %v9080_v14 = vor.u32 %v9079_v1, %v9076_v13  ;;  %v9085_v2 = vrot.slane %v9083_v40, 5  ;;  %v8082_v60 = vshll.u32 %v16143_v53, 16  ;;  %v12459_v13 = vld [vmem:[#allocation3 + $0x108] sm:$0xf] }
 0x469   : > { %v16151_v43 = vpack.c.b16 %v8635_v31, %v8634_v15  ;;  %v8075_v34 = vrot.slane %v8073_v33, 4  ;;  %v8078_v58 = vrot.slane %v8076_v51, 5  ;;  %v8087_v28 = vshrl.u32 %v7986_v41, 16  ;;  %v7727_v40 = vld [vmem:[#allocation3 + $0xcc] sm:$0x1] }
 0x46a   : > { %9263 = vrot.lane.b32.xlu2 %v16145_v7, %s13168_s18  ;;  %v9072_v44 = vsel %vm13564_vm15, %v9067_v48, %v9071_v6  ;;  %v9081_v22 = vrot.slane %v9080_v14, 4  ;;  %v8090_v52 = vshll.u32 %v7986_v41, 16  ;;  %v8096_v16 = vshll.u32 %v16147_v23, 16  ;;  %v13037_v6 = vld [vmem:[%s17144_s6 + $0xe0] sm:$0xff] }
 0x46b   : > { %17198 = vst [vmem:[#allocation13_spill] sm:$0xff] %v16151_v43  ;;  %8927 = vrot.lane.b32.xlu1 %v16151_v43, %s13168_s18  ;;  %v9293_v0 = vunpack.c.l.b16 %v9072_v44  ;;  %v8079_v27 = vor.u32 %v8078_v58, %v8075_v34  ;;  %v8089_v37 = vrot.slane %v8087_v28, 4  ;;  %v8084_v59 = vrot.slane %v8082_v60, 5  ;;  %v12994_v34 = vld [vmem:[#allocation3 + $0x104] sm:$0xf0]  ;;  %10093 = vmatpush.bf16.msra.mxu1 %v13037_v6 }
 0x46c   : > { %v9086_v20 = vsel %vm13564_vm15, %v9081_v22, %v9085_v2  ;;  %v8092_v62 = vrot.slane %v8090_v52, 5  ;;  %v8098_v15 = vrot.slane %v8096_v16, 5  ;;  %v16163_v1 = vor.u32 %v13002_v18, %v12459_v13  ;;  %v9023_v18 = vld [vmem:[#allocation3 + $0x30] sm:$0xf]  ;;  %v13036_v44 = vld [vmem:[%s17144_s6 + $0xd8] sm:$0xff] }
 0x46d   : > { %v9294_v31 = vunpack.c.l.b16 %v9086_v20  ;;  %v8080_v42 = vrot.slane %v8079_v27, 4  ;;  %v7789_v41 = vshrl.u32 %v7724_v35, 16  ;;  %v7792_v51 = vshll.u32 %v7724_v35, 16  ;;  %v8511_v27 = vpop.permute.xlu1 %8510  ;;  %v16175_v13 = vld [vmem:[#allocation3 + $0x34] sm:$0x1] }
 0x46e   : > { %v8093_v33 = vor.u32 %v8092_v62, %v8089_v37  ;;  %v7798_v48 = vshll.u32 %v7725_v17, 16  ;;  %v7803_v14 = vshrl.u32 %v7726_v12, 16  ;;  %v7806_v28 = vshll.u32 %v7726_v12, 16  ;;  %v12427_v37 = vld [vmem:[#allocation3 + $0x100] sm:$0xf] }
 0x46f   : > { %v16168_v2 = vpack.c.b16 %v9294_v31, %v9293_v0  ;;  %v8085_v58 = vsel %vm13564_vm15, %v8080_v42, %v8084_v59  ;;  %v7791_v60 = vrot.slane %v7789_v41, 4  ;;  %v7794_v16 = vrot.slane %v7792_v51, 5  ;;  %v9025_v31 = vld [vmem:[#allocation3 + $0x38] sm:$0xf]  ;;  %10094 = vmatpush.bf16.msra.mxu1 %v13036_v44  ;;  %v9006_v44 = vld [vmem:[#allocation3 + $0x60] sm:$0xf] }
 0x470   : > { %v8094_v22 = vrot.slane %v8093_v33, 4  ;;  %v8562_v52 = vunpack.c.l.b16 %v8085_v58  ;;  %v7800_v35 = vrot.slane %v7798_v48, 5  ;;  %v7805_v17 = vrot.slane %v7803_v14, 4  ;;  %v16184_v48 = vld [vmem:[#allocation3 + $0x3c] sm:$0x1] }
 0x471   : > { %17199 = vst [vmem:[#allocation14_spill] sm:$0xff] %v16168_v2  ;;  %v7808_v0 = vrot.slane %v7806_v28, 5  ;;  %v7812_v20 = vshll.u32 %v7727_v40, 16  ;;  %v12428_v62 = vor.u32 %v12994_v34, %v12427_v37  ;;  %v7795_v59 = vor.u32 %v7794_v16, %v7791_v60  ;;  %v13004_v14 = vld [vmem:[#allocation3 + $0x12c] sm:$0xf0] }
 0x472   : > { %9305 = vrot.lane.b32.xlu2 %v16168_v2, %s13168_s18  ;;  %v8099_v12 = vsel %vm13564_vm15, %v8094_v22, %v8098_v15  ;;  %v9088_v42 = vshrl.u32 %v9023_v18, 16  ;;  %v9091_v41 = vshll.u32 %v9023_v18, 16  ;;  %v9097_v28 = vshll.u32 %v16175_v13, 16  ;;  %v12467_v37 = vld [vmem:[#allocation3 + $0x128] sm:$0xf] }
 0x473   : > { %9265 = vrot.lane.b32.xlu1 %v16163_v1, %s13168_s18  ;;  %v8563_v6 = vunpack.c.l.b16 %v8099_v12  ;;  %v7809_v33 = vor.u32 %v7808_v0, %v7805_v17  ;;  %v7814_v51 = vrot.slane %v7812_v20, 5  ;;  %v8647_v40 = vsel %vm8640_vm1, %v12428_v62, %v8511_v27 }
 0x474   : > { %v7796_v34 = vrot.slane %v7795_v59, 4  ;;  %9836 = vmatmul.bf16.gmra.mxu2 %v8647_v40  ;;  %v9090_v58 = vrot.slane %v9088_v42, 4  ;;  %v9093_v15 = vrot.slane %v9091_v41, 5  ;;  %v9102_v16 = vshrl.u32 %v9025_v31, 16  ;;  %v9007_v59 = vld [vmem:[#allocation3 + $0x68] sm:$0xf] }
 0x475   : > { %v16187_v22 = vpack.c.b16 %v8563_v6, %v8562_v52  ;;  %v7810_v60 = vrot.slane %v7809_v33, 4  ;;  %v9105_v18 = vshll.u32 %v9025_v31, 16  ;;  %v9111_v0 = vshll.u32 %v16184_v48, 16  ;;  %v9143_v31 = vld [vmem:[#allocation3 + $0x64] sm:$0x1] }
 0x476   : > { %v7801_v17 = vsel %vm13564_vm15, %v7796_v34, %v7800_v35  ;;  %v9094_v27 = vor.u32 %v9093_v15, %v9090_v58  ;;  %v16194_v20 = vor.u32 %v13004_v14, %v12467_v37  ;;  %v9104_v62 = vrot.slane %v9102_v16, 4  ;;  %v9144_v34 = vld [vmem:[#allocation3 + $0x6c] sm:$0x1]  ;;  %v13035_v14 = vld [vmem:[%s17144_s6 + $0xd0] sm:$0xff] }
 0x477   : > { %8899 = vrot.lane.b32.xlu0 %v16187_v22, %s13168_s18  ;;  %v7815_v52 = vsel %vm13564_vm15, %v7810_v60, %v7814_v51  ;;  %v9107_v12 = vrot.slane %v9105_v18, 5  ;;  %v8500_v42 = vunpack.c.l.b16 %v7801_v17  ;;  %v9099_v35 = vrot.slane %v9097_v28, 5  ;;  %v7968_v28 = vld [vmem:[#allocation3 + $0x78] sm:$0xf]  ;;  %10095 = vmatpush.bf16.msra.mxu1 %v13035_v14 }
 0x478   : > { %v8501_v41 = vunpack.c.l.b16 %v7815_v52  ;;  %v9095_v6 = vrot.slane %v9094_v27, 4  ;;  %v9113_v40 = vrot.slane %v9111_v0, 5  ;;  %v9152_v58 = vshrl.u32 %v9006_v44, 16  ;;  %v13034_v52 = vld [vmem:[%s17144_s6 + $0xc8] sm:$0xff] }
 0x479   : > { %v9108_v33 = vor.u32 %v9107_v12, %v9104_v62  ;;  %v9155_v15 = vshll.u32 %v9006_v44, 16  ;;  %v9161_v16 = vshll.u32 %v9143_v31, 16  ;;  %v9166_v18 = vshrl.u32 %v9007_v59, 16  ;;  %v8104_v44 = vld [vmem:[#allocation3 + $0x7c] sm:$0x1] }
 0x47a   : > { %9269 = vrot.lane.b32.xlu2 %v16194_v20, %s13168_s18  ;;  %v16203_v51 = vpack.c.b16 %v8501_v41, %v8500_v42  ;;  %v9100_v60 = vsel %vm13564_vm15, %v9095_v6, %v9099_v35  ;;  %v9154_v27 = vrot.slane %v9152_v58, 4  ;;  %v9169_v42 = vshll.u32 %v9007_v59, 16 }
 0x47b   : > { %v9109_v37 = vrot.slane %v9108_v33, 4  ;;  %v9295_v17 = vunpack.c.l.b16 %v9100_v60  ;;  %v9157_v0 = vrot.slane %v9155_v15, 5  ;;  %v9163_v62 = vrot.slane %v9161_v16, 5  ;;  %10096 = vmatpush.bf16.msra.mxu1 %v13034_v52 }
 0x47c   : > { %v9168_v12 = vrot.slane %v9166_v18, 4  ;;  %v9175_v41 = vshll.u32 %v9144_v34, 16  ;;  %v8165_v35 = vshrl.u32 %v7968_v28, 16  ;;  %v8168_v33 = vshll.u32 %v7968_v28, 16  ;;  %v8583_v34 = vpop.permute.xlu1 %8582  ;;  %v8817_v28 = vld [vmem:[#allocation3 + $0xa8] sm:$0xe] }
 0x47d   : > { %v9114_v31 = vsel %vm13564_vm15, %v9109_v37, %v9113_v40  ;;  %v9158_v6 = vor.u32 %v9157_v0, %v9154_v27  ;;  %v9171_v58 = vrot.slane %v9169_v42, 5  ;;  %v8174_v14 = vshll.u32 %v8104_v44, 16 }
 0x47e   : > { %v9296_v60 = vunpack.c.l.b16 %v9114_v31  ;;  %v9177_v15 = vrot.slane %v9175_v41, 5  ;;  %v8167_v16 = vrot.slane %v8165_v35, 4  ;;  %v8170_v18 = vrot.slane %v8168_v33, 5  ;;  %v16218_v31 = vpop.permute.xlu2 %8514  ;;  %v13033_v35 = vld [vmem:[%s17144_s6 + $0xc0] sm:$0xff] }
 0x47f   : > { %8512 = vrot.lane.b32.xlu0 %v16203_v51, %s13168_s18  ;;  %v9159_v2 = vrot.slane %v9158_v6, 4  ;;  %v8179_v59 = vshrl.u32 %v7969_v63, 16  ;;  %v9172_v40 = vor.u32 %v9171_v58, %v9168_v12  ;;  %v8176_v37 = vrot.slane %v8174_v14, 5  ;;  %v8818_v6 = vld [vmem:[#allocation3 + $0xb0] sm:$0xe]  ;;  %10097 = vmatpush.bf16.msra.mxu1 %v13033_v35 }
 0x480   : > { %v16214_v61 = vpack.c.b16 %v9296_v60, %v9295_v17  ;;  %v8182_v27 = vshll.u32 %v7969_v63, 16  ;;  %v8171_v42 = vor.u32 %v8170_v18, %v8167_v16  ;;  %v8188_v41 = vshll.u32 %v8105_v24, 16  ;;  %v13143_v60 = vld [vmem:[#allocation3 + $0xac] sm:$0x1]  ;;  %v7709_v35 = vld [vmem:[#allocation3 + $0x100] sm:$0xf] }
 0x481   : > { %v9164_v0 = vsel %vm13564_vm15, %v9159_v2, %v9163_v62  ;;  %v8181_v44 = vrot.slane %v8179_v59, 4  ;;  %v9173_v17 = vrot.slane %v9172_v40, 4  ;;  %v16227_v12 = vsel %vm8640_vm1, %v15643_v5, %v8583_v34  ;;  %v8821_v2 = vld [vmem:[#allocation3 + $0xc8] sm:$0xe]  ;;  %v13144_v59 = vld [vmem:[#allocation3 + $0xb4] sm:$0x1] }
 0x482   : > { %17200 = vst [vmem:[#allocation15_spill] sm:$0xff] %v16214_v61  ;;  %9307 = vrot.lane.b32.xlu1 %v16214_v61, %s13168_s18  ;;  %v9311_v52 = vunpack.c.l.b16 %v9164_v0  ;;  %v8184_v63 = vrot.slane %v8182_v27, 5  ;;  %v8172_v62 = vrot.slane %v8171_v42, 4  ;;  %v8190_v24 = vrot.slane %v8188_v41, 5  ;;  %10014 = vmatmul.bf16.gmra.mxu0 %v16227_v12  ;;  %v16232_v27 = vld [vmem:[#allocation3 + $0xcc] sm:$0x1] }
 0x483   : > { %v12485_v33 = vrot.slane %v8817_v28, 9  ;;  %v8843_v58 = vrot.slane %v13143_v60, 5  ;;  %v9178_v14 = vsel %vm13564_vm15, %v9173_v17, %v9177_v15  ;;  %v12486_v18 = vrot.slane %v8818_v6, 9  ;;  %v8822_v5 = vld [vmem:[#allocation3 + $0xd0] sm:$0xe] }
 0x484   : > { %v8185_v16 = vor.u32 %v8184_v63, %v8181_v44  ;;  %v8847_v40 = vrot.slane %v13144_v59, 5  ;;  %v9312_v34 = vunpack.c.l.b16 %v9178_v14  ;;  %v8177_v0 = vsel %vm13564_vm15, %v8172_v62, %v8176_v37  ;;  %v16238_v42 = vld [vmem:[#allocation3 + $0xd4] sm:$0x1]  ;;  %v7846_v17 = vld [vmem:[#allocation3 + $0x104] sm:$0x1] }
 0x485   : > { %v8844_v28 = vsel %vm13509_vm12, %v12485_v33, %v8843_v58  ;;  %v12489_v41 = vrot.slane %v8821_v2, 9  ;;  %v8572_v15 = vunpack.c.l.b16 %v8177_v0  ;;  %v8859_v59 = vrot.slane %v16232_v27, 5  ;;  %v7710_v2 = vld [vmem:[#allocation3 + $0x108] sm:$0xf] }
 0x486   : > { %v8186_v60 = vrot.slane %v8185_v16, 4  ;;  %v8848_v44 = vsel %vm13509_vm12, %v12486_v18, %v8847_v40  ;;  %v8929_v6 = vunpack.c.l.b16 %v8844_v28  ;;  %v16242_v63 = vpack.c.b16 %v9312_v34, %v9311_v52  ;;  %v7847_v34 = vld [vmem:[#allocation3 + $0x10c] sm:$0x1] }
 0x487   : > { %v8930_v14 = vunpack.c.l.b16 %v8848_v44  ;;  %v12490_v37 = vrot.slane %v8822_v5, 9  ;;  %v8863_v33 = vrot.slane %v16238_v42, 5  ;;  %v7881_v58 = vshrl.u32 %v7709_v35, 16  ;;  %v9008_v5 = vld [vmem:[#allocation3 + $0x70] sm:$0xf] }
 0x488   : > { %17201 = vst [vmem:[#allocation16_spill] sm:$0xff] %v16242_v63  ;;  %v8191_v62 = vsel %vm13564_vm15, %v8186_v60, %v8190_v24  ;;  %v7884_v16 = vshll.u32 %v7709_v35, 16  ;;  %9427 = vrot.lane.b32.xlu2 %v16242_v63, %s13168_s18  ;;  %v8860_v52 = vsel %vm13509_vm12, %v12489_v41, %v8859_v59  ;;  %v7890_v0 = vshll.u32 %v7846_v17, 16  ;;  %v9145_v44 = vld [vmem:[#allocation3 + $0x74] sm:$0x1] }
 0x489   : > { %v8573_v18 = vunpack.c.l.b16 %v8191_v62  ;;  %v16250_v40 = vpack.c.b16 %v8930_v14, %v8929_v6  ;;  %v8864_v24 = vsel %vm13509_vm12, %v12490_v37, %v8863_v33  ;;  %v7883_v28 = vrot.slane %v7881_v58, 4  ;;  %v16260_v62 = vpop.permute.xlu2 %8586  ;;  %v9009_v63 = vld [vmem:[#allocation3 + $0x78] sm:$0xf] }
 0x48a   : > { %v7886_v60 = vrot.slane %v7884_v16, 5  ;;  %v8933_v35 = vunpack.c.l.b16 %v8860_v52  ;;  %v8934_v6 = vunpack.c.l.b16 %v8864_v24  ;;  %v7895_v14 = vshrl.u32 %v7710_v2, 16  ;;  %v9012_v16 = vld [vmem:[#allocation3 + $0x90] sm:$0xf] }
 0x48b   : > { %17202 = vst [vmem:[#allocation17_spill] sm:$0xff] %v16250_v40  ;;  %v16256_v61 = vpack.c.b16 %v8573_v18, %v8572_v15  ;;  %9419 = vrot.lane.b32.xlu1 %v16250_v40, %s13168_s18  ;;  %v7898_v59 = vshll.u32 %v7710_v2, 16  ;;  %v7904_v17 = vshll.u32 %v7847_v34, 16  ;;  %v9180_v50 = vshrl.u32 %v9008_v5, 16  ;;  %v9146_v40 = vld [vmem:[#allocation3 + $0x7c] sm:$0x1] }
 0x48c   : > { %v7887_v41 = vor.u32 %v7886_v60, %v7883_v28  ;;  %v7892_v37 = vrot.slane %v7890_v0, 5  ;;  %v7897_v33 = vrot.slane %v7895_v14, 4  ;;  %v9183_v15 = vshll.u32 %v9008_v5, 16  ;;  %v9013_v0 = vld [vmem:[#allocation3 + $0x98] sm:$0xf] }
 0x48d   : > { %17203 = vst [vmem:[#allocation18_spill] sm:$0xff] %v16256_v61  ;;  %8584 = vrot.lane.b32.xlu0 %v16256_v61, %s13168_s18  ;;  %v9189_v58 = vshll.u32 %v9145_v44, 16  ;;  %v16264_v18 = vpack.c.b16 %v8934_v6, %v8933_v35  ;;  %v7900_v24 = vrot.slane %v7898_v59, 5  ;;  %v9182_v47 = vrot.slane %v9180_v50, 4  ;;  %v9149_v14 = vld [vmem:[#allocation3 + $0x94] sm:$0x1] }
 0x48e   : > { %v7888_v52 = vrot.slane %v7887_v41, 4  ;;  %v7906_v54 = vrot.slane %v7904_v17, 5  ;;  %v9185_v28 = vrot.slane %v9183_v15, 5  ;;  %v9194_v2 = vshrl.u32 %v9009_v63, 16  ;;  %v9150_v50 = vld [vmem:[#allocation3 + $0x9c] sm:$0x1] }
 0x48f   : > { %17204 = vst [vmem:[#allocation19_spill] sm:$0xff] %v16264_v18  ;;  %v9197_v34 = vshll.u32 %v9009_v63, 16  ;;  %v7901_v43 = vor.u32 %v7900_v24, %v7897_v33  ;;  %v9191_v26 = vrot.slane %v9189_v58, 5  ;;  %v9236_v5 = vshrl.u32 %v9012_v16, 16 }
 0x490   : > { %v7893_v60 = vsel %vm13564_vm15, %v7888_v52, %v7892_v37  ;;  %9423 = vrot.lane.b32.xlu2 %v16264_v18, %s13168_s18  ;;  %v9186_v44 = vor.u32 %v9185_v28, %v9182_v47  ;;  %v9196_v35 = vrot.slane %v9194_v2, 4  ;;  %v9203_v41 = vshll.u32 %v9146_v40, 16  ;;  %v8823_v2 = vld [vmem:[#allocation3 + $0xd8] sm:$0xe] }
 0x491   : > { %v9199_v6 = vrot.slane %v9197_v34, 5  ;;  %v7902_v59 = vrot.slane %v7901_v43, 4  ;;  %v8518_v17 = vunpack.c.l.b16 %v7893_v60  ;;  %v9238_v15 = vrot.slane %v9236_v5, 4  ;;  %v16274_v43 = vpop.permute.xlu2 %8620  ;;  %v8824_v5 = vld [vmem:[#allocation3 + $0xe0] sm:$0xe] }
 0x492   : > { %v9239_v63 = vshll.u32 %v9012_v16, 16  ;;  %v9187_v45 = vrot.slane %v9186_v44, 4  ;;  %v9245_v37 = vshll.u32 %v9149_v14, 16  ;;  %v9250_v33 = vshrl.u32 %v9013_v0, 16  ;;  %17205 = vst [vmem:[#allocation20_spill] sm:$0xff] %v16274_v43 }
 0x493   : > { %v9200_v8 = vor.u32 %v9199_v6, %v9196_v35  ;;  %v7907_v58 = vsel %vm13564_vm15, %v7902_v59, %v7906_v54  ;;  %v9253_v24 = vshll.u32 %v9013_v0, 16  ;;  %v9259_v61 = vshll.u32 %v9150_v50, 16  ;;  %v8236_v6 = vld [vmem:[#allocation3 + $0xc8] sm:$0xf] }
 0x494   : > { %v9241_v52 = vrot.slane %v9239_v63, 5  ;;  %v8519_v18 = vunpack.c.l.b16 %v7907_v58  ;;  %v9192_v47 = vsel %vm13564_vm15, %v9187_v45, %v9191_v26  ;;  %v9205_v28 = vrot.slane %v9203_v41, 5  ;;  %v8238_v58 = vld [vmem:[#allocation3 + $0xd0] sm:$0xf] }
 0x495   : > { %v9201_v40 = vrot.slane %v9200_v8, 4  ;;  %v9247_v34 = vrot.slane %v9245_v37, 5  ;;  %v9252_v60 = vrot.slane %v9250_v33, 4  ;;  %v9255_v14 = vrot.slane %v9253_v24, 5 }
 0x496   : > { %v9242_v16 = vor.u32 %v9241_v52, %v9238_v15  ;;  %v16276_v44 = vpack.c.b16 %v8519_v18, %v8518_v17  ;;  %v9313_v0 = vunpack.c.l.b16 %v9192_v47  ;;  %v9261_v35 = vrot.slane %v9259_v61, 5  ;;  %v13145_v18 = vld [vmem:[#allocation3 + $0xdc] sm:$0x1]  ;;  %v13146_v15 = vld [vmem:[#allocation3 + $0xe4] sm:$0x1] }
 0x497   : > { %v9206_v54 = vsel %vm13564_vm15, %v9201_v40, %v9205_v28  ;;  %v9256_v8 = vor.u32 %v9255_v14, %v9252_v60  ;;  %v8691_v45 = vsel %vm8640_vm1, %v16145_v7, %v16274_v43  ;;  %v12491_v41 = vrot.slane %v8823_v2, 9  ;;  %v12998_v7 = vld [vmem:[#allocation3 + $0x6c] sm:$0xf0]  ;;  %v12443_v60 = vld [vmem:[#allocation3 + $0x68] sm:$0xf] }
 0x498   : > { %v9314_v50 = vunpack.c.l.b16 %v9206_v54  ;;  %v9243_v26 = vrot.slane %v9242_v16, 4  ;;  %8875 = vrot.lane.b32.xlu0 %v16276_v44, %s13168_s18  ;;  %10098 = vmatmul.bf16.vlgmr.msra.gmra.mxu1 %v8691_v45  ;;  %v8867_v59 = vrot.slane %v13145_v18, 5  ;;  %v12492_v17 = vrot.slane %v8824_v5, 9  ;;  %v8223_v18 = vld [vmem:[#allocation3 + $0x110] sm:$0xf] }
 0x499   : > { %v8871_v63 = vrot.slane %v13146_v15, 5  ;;  %v9257_v33 = vrot.slane %v9256_v8, 4  ;;  %v8301_v52 = vshrl.u32 %v8236_v6, 16  ;;  %v8304_v40 = vshll.u32 %v8236_v6, 16  ;;  %v8358_v43 = vld [vmem:[#allocation3 + $0x10c] sm:$0x1] }
 0x49a   : > { %v16285_v37 = vpack.c.b16 %v9314_v50, %v9313_v0  ;;  %v9248_v61 = vsel %vm13564_vm15, %v9243_v26, %v9247_v34  ;;  %v8868_v34 = vsel %vm13509_vm12, %v12491_v41, %v8867_v59  ;;  %v8315_v5 = vshrl.u32 %v8238_v58, 16  ;;  %v8222_v59 = vld [vmem:[#allocation3 + $0x108] sm:$0xf] }
 0x49b   : > { %v9317_v24 = vunpack.c.l.b16 %v9248_v61  ;;  %v8872_v47 = vsel %vm13509_vm12, %v12492_v17, %v8871_v63  ;;  %v9262_v28 = vsel %vm13564_vm15, %v9257_v33, %v9261_v35  ;;  %v8303_v2 = vrot.slane %v8301_v52, 4 }
 0x49c   : > { %9429 = vrot.lane.b32.xlu1 %v16285_v37, %s13168_s18  ;;  %v9318_v16 = vunpack.c.l.b16 %v9262_v28  ;;  %v8306_v14 = vrot.slane %v8304_v40, 5  ;;  %v16297_v54 = vor.u32 %v12998_v7, %v12443_v60  ;;  %v8936_v0 = vunpack.c.l.b16 %v8872_v47  ;;  %v8767_v7 = vld [vmem:[#allocation3 + $0x38] sm:$0xe]  ;;  %v13147_v60 = vld [vmem:[#allocation3 + $0xc] sm:$0x1] }
 0x49d   : > { %v8310_v50 = vshll.u32 %v16232_v27, 16  ;;  %v8318_v6 = vshll.u32 %v8238_v58, 16  ;;  %v8317_v45 = vrot.slane %v8315_v5, 4  ;;  %v8324_v35 = vshll.u32 %v16238_v42, 16  ;;  %v16307_v63 = vpop.permute.xlu1 %8873  ;;  %v8761_v58 = vld [vmem:[#allocation3 + $0x8] sm:$0xe] }
 0x49e   : > { %v16300_v26 = vpack.c.b16 %v9318_v16, %v9317_v24  ;;  %v8307_v8 = vor.u32 %v8306_v14, %v8303_v2  ;;  %v8935_v17 = vunpack.c.l.b16 %v8868_v34  ;;  %v8407_v52 = vshrl.u32 %v8223_v18, 16  ;;  %v8762_v24 = vld [vmem:[#allocation3 + $0x10] sm:$0xe] }
 0x49f   : > { %v8320_v15 = vrot.slane %v8318_v6, 5  ;;  %v8312_v61 = vrot.slane %v8310_v50, 5  ;;  %v8326_v42 = vrot.slane %v8324_v35, 5  ;;  %v8393_v28 = vshrl.u32 %v8222_v59, 16 }
 0x4a0   : > { %17206 = vst [vmem:[#allocation21_spill] sm:$0xff] %v16300_v26  ;;  %9433 = vrot.lane.b32.xlu2 %v16300_v26, %s13168_s18  ;;  %8550 = vrot.lane.b32.xlu0 %v16297_v54, %s13168_s18  ;;  %v8308_v41 = vrot.slane %v8307_v8, 4  ;;  %v16309_v27 = vpack.c.b16 %v8936_v0, %v8935_v17  ;;  %v8396_v2 = vshll.u32 %v8222_v59, 16  ;;  %v12477_v16 = vrot.slane %v8761_v58, 9  ;;  %v8768_v0 = vld [vmem:[#allocation3 + $0x40] sm:$0xe] }
 0x4a1   : > { %v8321_v33 = vor.u32 %v8320_v15, %v8317_v45  ;;  %v8787_v34 = vrot.slane %v13147_v60, 5  ;;  %v8409_v14 = vrot.slane %v8407_v52, 4  ;;  %v8410_v5 = vshll.u32 %v8223_v18, 16  ;;  %v13148_v8 = vld [vmem:[#allocation3 + $0x14] sm:$0x1] }
 0x4a2   : > { %v8313_v47 = vsel %vm13564_vm15, %v8308_v41, %v8312_v61  ;;  %v12478_v6 = vrot.slane %v8762_v24, 9  ;;  %v8791_v45 = vrot.slane %v13148_v8, 5  ;;  %v12483_v35 = vrot.slane %v8767_v7, 9  ;;  %v8359_v59 = vld [vmem:[#allocation3 + $0x114] sm:$0x1] }
 0x4a3   : > { %v8322_v40 = vrot.slane %v8321_v33, 4  ;;  %v8612_v17 = vunpack.c.l.b16 %v8313_v47  ;;  %v8412_v41 = vrot.slane %v8410_v5, 5  ;;  %v8811_v61 = vrot.slane %v16143_v53, 5  ;;  %v16333_v5 = vld [vmem:[#allocation3 + $0x14] sm:$0x1] }
 0x4a4   : > { %9425 = vrot.lane.b32.xlu1 %v16309_v27, %s13168_s18  ;;  %v8395_v33 = vrot.slane %v8393_v28, 4  ;;  %v8398_v58 = vrot.slane %v8396_v2, 5  ;;  %v12484_v60 = vrot.slane %v8768_v0, 9  ;;  %v8815_v18 = vrot.slane %v16147_v23, 5  ;;  %v16335_v0 = vld [vmem:[#allocation3 + $0x1c] sm:$0x1] }
 0x4a5   : > { %v8327_v50 = vsel %vm13564_vm15, %v8322_v40, %v8326_v42  ;;  %v8413_v26 = vor.u32 %v8412_v41, %v8409_v14  ;;  %v8812_v42 = vsel %vm13509_vm12, %v12483_v35, %v8811_v61  ;;  %v16323_v24 = vpop.permute.xlu1 %8548  ;;  %v8792_v7 = vsel %vm13509_vm12, %v12478_v6, %v8791_v45  ;;  %v9363_v45 = vld [vmem:[#allocation3 + $0x10] sm:$0xe]  ;;  %v9364_v35 = vld [vmem:[#allocation3 + $0x18] sm:$0xe]  ;;  %v9365_v41 = vld [vmem:[#allocation3 + $0x20] sm:$0xe] }
 0x4a6   : > { %v8613_v15 = vunpack.c.l.b16 %v8327_v50  ;;  %v8816_v53 = vsel %vm13509_vm12, %v12484_v60, %v8815_v18  ;;  %v8402_v47 = vshll.u32 %v8358_v43, 16  ;;  %v8416_v40 = vshll.u32 %v8359_v59, 16 }
 0x4a7   : > { %v8907_v23 = vunpack.c.l.b16 %v8812_v42  ;;  %v8908_v28 = vunpack.c.l.b16 %v8816_v53  ;;  %v8788_v2 = vsel %vm13509_vm12, %v12477_v16, %v8787_v34  ;;  %v8399_v14 = vor.u32 %v8398_v58, %v8395_v33  ;;  %v9366_v33 = vld [vmem:[#allocation3 + $0x28] sm:$0xe] }
 0x4a8   : > { %v16319_v52 = vpack.c.b16 %v8613_v15, %v8612_v17  ;;  %v8902_v50 = vunpack.c.l.b16 %v8792_v7  ;;  %v8414_v6 = vrot.slane %v8413_v26, 4  ;;  %v9397_v17 = vrot.slane %v16120_v49, 5  ;;  %v9017_v15 = vld [vmem:[#allocation3 + $0x18] sm:$0xf]  ;;  %v9015_v7 = vld [vmem:[#allocation3 + $0x10] sm:$0xf] }
 0x4a9   : > { %v16337_v8 = vpack.c.b16 %v8908_v28, %v8907_v23  ;;  %v9401_v43 = vrot.slane %v16131_v56, 5  ;;  %v8901_v61 = vunpack.c.l.b16 %v8788_v2  ;;  %v8404_v59 = vrot.slane %v8402_v47, 5 }
 0x4aa   : > { %8624 = vrot.lane.b32.xlu0 %v16319_v52, %s13168_s18  ;;  %v8418_v16 = vrot.slane %v8416_v40, 5  ;;  %v9393_v34 = vrot.slane %v16335_v0, 5  ;;  %v8400_v58 = vrot.slane %v8399_v14, 4  ;;  %v9389_v60 = vrot.slane %v16333_v5, 5 }
 0x4ab   : > { %17207 = vst [vmem:[#allocation22_spill] sm:$0xff] %v16337_v8  ;;  %v12509_v26 = vrot.slane %v9363_v45, 9  ;;  %v12510_v18 = vrot.slane %v9364_v35, 9  ;;  %v16343_v42 = vpack.c.b16 %v8902_v50, %v8901_v61  ;;  %v9046_v56 = vshrl.u32 %v9017_v15, 16  ;;  %v9367_v35 = vld [vmem:[#allocation3 + $0x30] sm:$0xe] }
 0x4ac   : > { %v8419_v49 = vsel %vm13564_vm15, %v8414_v6, %v8418_v16  ;;  %v9049_v53 = vshll.u32 %v9017_v15, 16  ;;  %v12511_v28 = vrot.slane %v9365_v41, 9  ;;  %v12512_v2 = vrot.slane %v9366_v33, 9 }
 0x4ad   : > { %v16347_v23 = vpop.permute.xlu1 %8622  ;;  %v9394_v40 = vsel %vm13509_vm12, %v12510_v18, %v9393_v34  ;;  %v8405_v14 = vsel %vm13564_vm15, %v8400_v58, %v8404_v59  ;;  %v9032_v50 = vshrl.u32 %v9015_v7, 16  ;;  %v9035_v6 = vshll.u32 %v9015_v7, 16  ;;  %v9368_v58 = vld [vmem:[#allocation3 + $0x38] sm:$0xe] }
 0x4ae   : > { %v8695_v47 = vsel %vm8640_vm1, %v16163_v1, %v16347_v23  ;;  %v9390_v45 = vsel %vm13509_vm12, %v12509_v26, %v9389_v60  ;;  %v8631_v15 = vunpack.c.l.b16 %v8419_v49  ;;  %v9436_v1 = vunpack.c.l.b16 %v9394_v40 }
 0x4af   : > { %10103 = vmatmul.bf16.gmra.mxu1 %v8695_v47  ;;  %v9048_v61 = vrot.slane %v9046_v56, 4  ;;  %v9051_v16 = vrot.slane %v9049_v53, 5  ;;  %v9398_v41 = vsel %vm13509_vm12, %v12511_v28, %v9397_v17  ;;  %v9402_v34 = vsel %vm13509_vm12, %v12512_v2, %v9401_v43  ;;  %v13024_v43 = vld [vmem:[%s17144_s6 + $0x78] sm:$0xff] }
 0x4b0   : > { %v9405_v33 = vrot.slane %v16175_v13, 5  ;;  %v8630_v18 = vunpack.c.l.b16 %v8405_v14  ;;  %v9435_v59 = vunpack.c.l.b16 %v9390_v45  ;;  %v12513_v7 = vrot.slane %v9367_v35, 9  ;;  %v9028_v13 = vld [vmem:[#allocation3 + $0x44] sm:$0x1]  ;;  %9912 = vmatpush.bf16.msra.mxu3 %v13024_v43 }
 0x4b1   : > { %v9409_v47 = vrot.slane %v16184_v48, 5  ;;  %v9034_v60 = vrot.slane %v9032_v50, 4  ;;  %v9037_v26 = vrot.slane %v9035_v6, 5  ;;  %v9437_v53 = vunpack.c.l.b16 %v9398_v41  ;;  %v9030_v6 = vld [vmem:[#allocation3 + $0x4c] sm:$0x1] }
 0x4b2   : > { %8913 = vrot.lane.b32.xlu0 %v16343_v42, %s13168_s18  ;;  %v16366_v49 = vpack.c.b16 %v8631_v15, %v8630_v18  ;;  %v16368_v56 = vpack.c.b16 %v9436_v1, %v9435_v59  ;;  %v9438_v40 = vunpack.c.l.b16 %v9402_v34  ;;  %v9052_v17 = vor.u32 %v9051_v16, %v9048_v61  ;;  %v9027_v1 = vld [vmem:[#allocation3 + $0x40] sm:$0xf]  ;;  %v9029_v61 = vld [vmem:[#allocation3 + $0x48] sm:$0xf] }
 0x4b3   : > { %v12514_v28 = vrot.slane %v9368_v58, 9  ;;  %v9406_v48 = vsel %vm13509_vm12, %v12513_v7, %v9405_v33  ;;  %v9038_v14 = vor.u32 %v9037_v26, %v9034_v60  ;;  %v9055_v50 = vshll.u32 %v16335_v0, 16  ;;  %v9369_v59 = vld [vmem:[#allocation3 + $0x40] sm:$0xe]  ;;  %v9370_v58 = vld [vmem:[#allocation3 + $0x48] sm:$0xe] }
 0x4b4   : > { %v16375_v2 = vpack.c.b16 %v9438_v40, %v9437_v53  ;;  %v9041_v45 = vshll.u32 %v16333_v5, 16  ;;  %v9053_v15 = vrot.slane %v9052_v17, 4  ;;  %v9413_v16 = vrot.slane %v9028_v13, 5 }
 0x4b5   : > { %v9410_v35 = vsel %vm13509_vm12, %v12514_v28, %v9409_v47  ;;  %v9439_v41 = vunpack.c.l.b16 %v9406_v48  ;;  %v9417_v18 = vrot.slane %v9030_v6, 5  ;;  %v9039_v33 = vrot.slane %v9038_v14, 4 }
 0x4b6   : > { %v9440_v34 = vunpack.c.l.b16 %v9410_v35  ;;  %v9057_v7 = vrot.slane %v9055_v50, 5  ;;  %v12515_v0 = vrot.slane %v9369_v59, 9  ;;  %v9043_v26 = vrot.slane %v9041_v45, 5 }
 0x4b7   : > { %v9116_v5 = vshrl.u32 %v9027_v1, 16  ;;  %v9119_v53 = vshll.u32 %v9027_v1, 16  ;;  %v12516_v40 = vrot.slane %v9370_v58, 9  ;;  %v9130_v17 = vshrl.u32 %v9029_v61, 16 }
 0x4b8   : > { %v16383_v60 = vpack.c.b16 %v9440_v34, %v9439_v41  ;;  %v9058_v47 = vsel %vm13564_vm15, %v9053_v15, %v9057_v7  ;;  %v9133_v28 = vshll.u32 %v9029_v61, 16  ;;  %v9414_v43 = vsel %vm13509_vm12, %v12515_v0, %v9413_v16 }
 0x4b9   : > { %v9418_v48 = vsel %vm13509_vm12, %v12516_v40, %v9417_v18  ;;  %v9441_v14 = vunpack.c.l.b16 %v9414_v43  ;;  %v9044_v50 = vsel %vm13564_vm15, %v9039_v33, %v9043_v26  ;;  %v9292_v45 = vunpack.c.l.b16 %v9058_v47  ;;  %v13023_v33 = vld [vmem:[%s17144_s6 + $0x70] sm:$0xff] }
 0x4ba   : > { %8923 = vrot.lane.b32.xlu0 %v16366_v49, %s13168_s18  ;;  %v9442_v35 = vunpack.c.l.b16 %v9418_v48  ;;  %v9118_v1 = vrot.slane %v9116_v5, 4  ;;  %v9121_v41 = vrot.slane %v9119_v53, 5  ;;  %v9132_v15 = vrot.slane %v9130_v17, 4  ;;  %9913 = vmatpush.bf16.msra.mxu3 %v13023_v33  ;;  %v13003_v5 = vld [vmem:[#allocation3 + $0x11c] sm:$0xf0] }
 0x4bb   : > { %v9135_v34 = vrot.slane %v9133_v28, 5  ;;  %v9291_v59 = vunpack.c.l.b16 %v9044_v50  ;;  %v9139_v40 = vshll.u32 %v9030_v6, 16  ;;  %v9125_v26 = vshll.u32 %v9028_v13, 16  ;;  %v9011_v17 = vld [vmem:[#allocation3 + $0x88] sm:$0xf] }
 0x4bc   : > { %v16397_v58 = vpack.c.b16 %v9442_v35, %v9441_v14  ;;  %v9122_v18 = vor.u32 %v9121_v41, %v9118_v1  ;;  %v12463_v28 = vld [vmem:[#allocation3 + $0x118] sm:$0xf]  ;;  %v9010_v14 = vld [vmem:[#allocation3 + $0x80] sm:$0xf]  ;;  %v9225_v35 = vshll.u32 %v9011_v17, 16  ;;  %vm10300_vm2 = vcmask 23552  }
 0x4bd   : > { %v16399_v7 = vpack.c.b16 %v9292_v45, %v9291_v59  ;;  %v9136_v0 = vor.u32 %v9135_v34, %v9132_v15  ;;  %v9141_v47 = vrot.slane %v9139_v40, 5  ;;  %v9127_v43 = vrot.slane %v9125_v26, 5  ;;  %v8820_v13 = vld [vmem:[#allocation3 + $0xc0] sm:$0xe]  ;;  %v13150_v26 = vld [vmem:[#allocation3 + $0xbc] sm:$0x1] }
 0x4be   : > { %v9123_v53 = vrot.slane %v9122_v18, 4  ;;  %v16406_v48 = vor.u32 %v13003_v5, %v12463_v28  ;;  %v9222_v45 = vshrl.u32 %v9011_v17, 16  ;;  %v9208_v1 = vshrl.u32 %v9010_v14, 16  ;;  %v9148_v28 = vld [vmem:[#allocation3 + $0x8c] sm:$0x1] }
 0x4bf   : > { %v9211_v41 = vshll.u32 %v9010_v14, 16  ;;  %v12488_v59 = vrot.slane %v8820_v13, 9  ;;  %v9227_v40 = vrot.slane %v9225_v35, 5  ;;  %v8851_v5 = vrot.slane %v13150_v26, 5 }
 0x4c0   : > { %v9128_v6 = vsel %vm13564_vm15, %v9123_v53, %v9127_v43  ;;  %v9210_v53 = vrot.slane %v9208_v1, 4  ;;  %v9231_v13 = vshll.u32 %v9148_v28, 16  ;;  %v12431_v28 = vld [vmem:[#allocation3 + $0x110] sm:$0xf] }
 0x4c1   : > { %v9297_v15 = vunpack.c.l.b16 %v9128_v6 }
 0x4c2   : > { %8919 = vrot.lane.b32.xlu0 %v16337_v8, %s13168_s18 }
 0x4c6   : > { %v8878_v61 = vpop.permute.xlu0 %8877 }
 0x4c7   : > { %v8951_v16 = vsel %vm8640_vm1, %v16203_v51, %v8878_v61  ;;  %v9137_v51 = vrot.slane %v9136_v0, 4  ;;  %v8819_v61 = vld [vmem:[#allocation3 + $0xb8] sm:$0xe]  ;;  %v9224_v0 = vrot.slane %v9222_v45, 4 }
 0x4c8   : > { %9861 = vmatmul.bf16.vlgmr.msrb.gmra.mxu3 %v8951_v16  ;;  %v13149_v16 = vld [vmem:[#allocation3 + $0xc4] sm:$0x1]  ;;  %v12487_v33 = vrot.slane %v8819_v61, 9 }
 0x4c9   : > { %v9142_v50 = vsel %vm13564_vm15, %v9137_v51, %v9141_v47  ;;  %v8855_v18 = vrot.slane %v13149_v16, 5  ;;  %v9213_v51 = vrot.slane %v9211_v41, 5  ;;  %v9228_v6 = vor.u32 %v9227_v40, %v9224_v0 }
 0x4ca   : > { %9303 = vrot.lane.b32.xlu0 %v16399_v7, %s13168_s18  ;;  %v9298_v34 = vunpack.c.l.b16 %v9142_v50  ;;  %v9147_v50 = vld [vmem:[#allocation3 + $0x84] sm:$0x1]  ;;  %v8852_v45 = vsel %vm13509_vm12, %v12487_v33, %v8851_v5 }
 0x4cb   : > { %v8856_v14 = vsel %vm13509_vm12, %v12488_v59, %v8855_v18  ;;  %v9214_v35 = vor.u32 %v9213_v51, %v9210_v53  ;;  %v9217_v41 = vshll.u32 %v9147_v50, 16  ;;  %v9233_v59 = vrot.slane %v9231_v13, 5  ;;  %v12996_v50 = vld [vmem:[#allocation3 + $0x124] sm:$0xf0] }
 0x4cc   : > { %v16414_v17 = vpack.c.b16 %v9298_v34, %v9297_v15  ;;  %v8932_v1 = vunpack.c.l.b16 %v8856_v14  ;;  %v9229_v15 = vrot.slane %v9228_v6, 4  ;;  %v8931_v34 = vunpack.c.l.b16 %v8852_v45  ;;  %v13021_v6 = vld [vmem:[%s17144_s6 + $0x60] sm:$0xff]  ;;  %v13044_v13 = vld [vmem:[%s17144_s6 + $0x118] sm:$0xff] }
 0x4cd   : > { %v9215_v61 = vrot.slane %v9214_v35, 4  ;;  %v9219_v18 = vrot.slane %v9217_v41, 5  ;;  %v9324_v51 = vsel %vm8640_vm1, %v15975_v39, %v16114_v46  ;;  %v9327_v39 = vsel %vm8640_vm1, %v16297_v54, %v16149_v57  ;;  %v12435_v35 = vld [vmem:[#allocation3 + $0x120] sm:$0xf]  ;;  %10183 = vmatpush.bf16.msrb.mxu2 %v13044_v13  ;;  %v17210_v13 = vld [vmem:[#allocation11_spill] sm:$0xff] }
 0x4ce   : > { %v16427_v16 = vpack.c.b16 %v8932_v1, %v8931_v34  ;;  %v9234_v0 = vsel %vm13564_vm15, %v9229_v15, %v9233_v59  ;;  %v12436_v41 = vor.u32 %v12996_v50, %v12435_v35  ;;  %v9330_v54 = vsel %vm8640_vm1, %v16002_v21, %v16025_v38  ;;  %v13042_v59 = vld [vmem:[%s17144_s6 + $0x108] sm:$0xff]  ;;  %v17209_v50 = vld [vmem:[#allocation6_spill] sm:$0xff] }
 0x4cf   : > { %v9220_v40 = vsel %vm13564_vm15, %v9215_v61, %v9219_v18  ;;  %v9316_v33 = vunpack.c.l.b16 %v9234_v0  ;;  %v8943_v21 = vsel %vm8640_vm1, %v15872_v9, %v16307_v63  ;;  %v16489_v63 = vpop.permute.xlu2 %8552 }
 0x4d0   : > { %v9315_v26 = vunpack.c.l.b16 %v9220_v40  ;;  %v8655_v15 = vsel %vm8640_vm1, %v12436_v41, %v16218_v31  ;;  %v8687_v31 = vsel %vm8640_vm1, %v16187_v22, %v16260_v62  ;;  %v13041_v22 = vld [vmem:[%s17144_s6 + $0x100] sm:$0xff] }
 0x4d2   : > { %9267 = vrot.lane.b32.xlu0 %v16406_v48, %s13168_s18  ;;  %v16435_v5 = vpack.c.b16 %v9316_v33, %v9315_v26 }
 0x4d7   : > { %v16498_v26 = vpop.permute.xlu2 %8626 }
 0x4d8   : > { %v8880_v47 = vpop.permute.xlu0 %8879 }
 0x4d9   : > { %v8955_v43 = vsel %vm8640_vm1, %v15928_v30, %v8880_v47  ;;  %v13022_v30 = vld [vmem:[%s17144_s6 + $0x68] sm:$0xff] }
 0x4da   : > { %9866 = vmatmul.bf16.gmra.mxu3 %v8955_v43  ;;  %9309 = vrot.lane.b32.xlu0 %v16414_v17, %s13168_s18  ;;  %v12995_v47 = vld [vmem:[#allocation3 + $0x114] sm:$0xf0] }
 0x4db   : > { %9914 = vmatpush.bf16.msra.mxu3 %v13022_v30  ;;  %v12432_v43 = vor.u32 %v12995_v47, %v12431_v28  ;;  %v13020_v30 = vld [vmem:[%s17144_s6 + $0x58] sm:$0xff] }
 0x4df   : > { %9915 = vmatpush.bf16.msra.mxu3 %v13021_v6  ;;  %v8916_v47 = vpop.permute.xlu2 %8915  ;;  %v13017_v6 = vld [vmem:[%s17144_s6 + $0x40] sm:$0xff] }
 0x4e0   : > { %v8979_v28 = vsel %vm8640_vm1, %v15908_v3, %v8916_v47 }
 0x4e2   : > { %9421 = vrot.lane.b32.xlu0 %v16427_v16, %s13168_s18 }
 0x4e3   : > { %9916 = vmatpush.bf16.msra.mxu3 %v13020_v30 }
 0x4e9   : > { %v16437_v53 = vpop.permute.xlu0 %8899 }
 0x4ea   : > { %9871 = vmatmul.bf16.gmra.mxu3 %v9324_v51  ;;  %9431 = vrot.lane.b32.xlu0 %v16435_v5, %s13168_s18  ;;  %v9333_v18 = vsel %vm8640_vm1, %v16045_v25, %v16437_v53  ;;  %v13019_v25 = vld [vmem:[%s17144_s6 + $0x50] sm:$0xff]  ;;  %v16504_v51 = vpop.permute.xlu1 %8554 }
 0x4eb   : > { %9917 = vmatpush.bf16.msra.mxu3 %v13019_v25 }
 0x4f1   : > { %v8513_v14 = vpop.permute.xlu0 %8512 }
 0x4f2   : > { %v8651_v10 = vsel %vm8640_vm1, %v12432_v43, %v8513_v14  ;;  %v17208_v14 = vld [vmem:[#allocation18_spill] sm:$0xff] }
 0x4f3   : > { %9841 = vmatmul.bf16.gmra.mxu2 %v8651_v10 }
 0x4fa   : > { %9876 = vmatmul.bf16.gmra.mxu3 %v9327_v39 }
 0x4ff   : > { %v8585_v45 = vpop.permute.xlu0 %8584 }
 0x500   : > { %v8683_v1 = vsel %vm8640_vm1, %v15730_v19, %v8585_v45  ;;  %v13043_v19 = vld [vmem:[%s17144_s6 + $0x110] sm:$0xff]  ;;  %v16527_v45 = vpop.f32.mrf.mxu2 }
 0x501   : > { %10019 = vmatmul.bf16.gmra.mxu0 %v8683_v1  ;;  %10184 = vmatpush.bf16.msrb.mxu2 %v13043_v19 }
 0x503   : > { %9846 = vmatmul.bf16.gmra.mxu2 %v8655_v15  ;;  %v17211_v15 = vld [vmem:[#allocation4_spill] sm:$0xff] }
 0x505   : > { %10185 = vmatpush.bf16.msrb.mxu2 %v13042_v59 }
 0x509   : > { %10186 = vmatpush.bf16.msrb.mxu2 %v13041_v22  ;;  %v17215_v22 = vld [vmem:[#allocation5_spill] sm:$0xff] }
 0x50a   : > { %9881 = vmatmul.bf16.gmra.mxu3 %v9330_v54  ;;  %v8876_v34 = vpop.permute.xlu0 %8875 }
 0x50b   : > { %v8947_v0 = vsel %vm8640_vm1, %v15896_v32, %v8876_v34  ;;  %v13018_v32 = vld [vmem:[%s17144_s6 + $0x48] sm:$0xff]  ;;  %v16535_v34 = vpop.f32.mrf.mxu2 }
 0x50c   : > { %9918 = vmatpush.bf16.msra.mxu3 %v13018_v32  ;;  %v13005_v32 = vld [vmem:[#allocation3 + $0x64] sm:$0xf0] }
 0x510   : > { %9919 = vmatpush.bf16.msra.mxu3 %v13017_v6 }
 0x511   : > { %10024 = vmatmul.bf16.gmra.mxu0 %v8687_v31 }
 0x512   : > { %v16473_v61 = vpop.permute.xlu0 %8550 }
 0x513   : > { %9851 = vmatmul.bf16.gmra.mxu2 %v8943_v21  ;;  %v17213_v21 = vld [vmem:[#allocation13_spill] sm:$0xff]  ;;  %v16543_v59 = vpop.f32.mrf.mxu2 }
 0x51a   : > { %9886 = vmatmul.bf16.gmra.mxu3 %v9333_v18 }
 0x51c   : > { %v16484_v62 = vpop.permute.xlu0 %8624 }
 0x51d   : > { %v8699_v9 = vsel %vm8640_vm1, %v16406_v48, %v16484_v62  ;;  %v8703_v48 = vsel %vm8640_vm1, %v16194_v20, %v16498_v26 }
 0x51e   : > { %10108 = vmatmul.bf16.gmra.mxu1 %v8699_v9 }
 0x523   : > { %9856 = vmatmul.bf16.gmra.mxu2 %v8947_v0  ;;  %v16552_v0 = vpop.f32.mrf.mxu2 }
 0x524   : > { %v8914_v40 = vpop.permute.xlu0 %8913 }
 0x525   : > { %v8975_v33 = vsel %vm8640_vm1, %v15884_v55, %v8914_v40 }
 0x526   : > { %10029 = vmatmul.bf16.gmra.mxu0 %v8975_v33  ;;  %v17218_v33 = vld [vmem:[#allocation17_spill] sm:$0xff] }
 0x52a   : > { %9891 = vmatmul.bf16.gmra.mxu3 %v16081_v11  ;;  %v8922_v11 = vpop.permute.xlu1 %8921 }
 0x52b   : > { %v8991_v20 = vsel %vm8640_vm1, %v16000_v36, %v8922_v11  ;;  %v12495_v11 = vld [vmem:[#allocation3 + $0x60] sm:$0xf] }
 0x52c   : > { %v8924_v39 = vpop.permute.xlu0 %8923 }
 0x52d   : > { %v8995_v36 = vsel %vm8640_vm1, %v17209_v50, %v8924_v39 }
 0x52e   : > { %10113 = vmatmul.bf16.gmra.mxu1 %v8703_v48 }
 0x532   : > { %v8918_v43 = vpop.permute.xlu1 %8917 }
 0x533   : > { %12661 = vmatmul.msk.bf16.vlgmr.msrb.gmra.mxu2 %vm8640_vm1, %v16100_v4  ;;  %v8983_v10 = vsel %vm8640_vm1, %v17208_v14, %v8918_v43 }
 0x534   : > { %v8920_v35 = vpop.permute.xlu0 %8919 }
 0x535   : > { %v8987_v54 = vsel %vm8640_vm1, %v17211_v15, %v8920_v35 }
 0x536   : > { %10034 = vmatmul.bf16.gmra.mxu0 %v8979_v28 }
 0x53a   : > { %9896 = vmatmul.bf16.gmra.mxu3 %v16227_v12  ;;  %v8928_v9 = vpop.permute.xlu1 %8927 }
 0x53c   : > { %v9304_v28 = vpop.permute.xlu0 %9303 }
 0x53e   : > { %10118 = vmatmul.bf16.gmra.mxu1 %v8991_v20 }
 0x543   : > { %12662 = vmatmul.msk.bf16.gmra.mxu2 %vm8640_vm1, %v16366_v49 }
 0x546   : > { %10039 = vmatmul.bf16.gmra.mxu0 %v8983_v10 }
 0x54a   : > { %9901 = vmatmul.bf16.gmra.mxu3 %v8683_v1  ;;  %v8926_v1 = vpop.permute.xlu2 %8925 }
 0x54b   : > { %v16523_v12 = vpop.f32.mrf.mxu3  ;;  %v8999_v19 = vsel %vm8640_vm1, %v16319_v52, %v8926_v1  ;;  %v17217_v52 = vld [vmem:[#allocation7_spill] sm:$0xff]  ;;  %v12499_v1 = vld [vmem:[#allocation3 + $0x70] sm:$0xf] }
 0x54c   : > { %v9003_v40 = vsel %vm8640_vm1, %v17217_v52, %v8928_v9 }
 0x54e   : > { %10123 = vmatmul.bf16.gmra.mxu1 %v8995_v36 }
 0x552   : > { %v16570_v39 = vpop.permute.xlu2 %9263 }
 0x553   : > { %12663 = vmatmul.msk.bf16.gmra.mxu2 %vm8640_vm1, %v17210_v13  ;;  %v16531_v41 = vpop.f32.mrf.mxu3 }
 0x556   : > { %10044 = vmatmul.bf16.gmra.mxu0 %v8987_v54 }
 0x55a   : > { %9906 = vmatmul.bf16.gmra.mxu3 %v8687_v31  ;;  %v8659_v31 = vsel %vm8640_vm1, %v17215_v22, %v16323_v24  ;;  %v8663_v24 = vsel %vm8640_vm1, %v16276_v44, %v16473_v61  ;;  %v13006_v44 = vld [vmem:[#allocation3 + $0x74] sm:$0xf0]  ;;  %v17222_v61 = vld [vmem:[#allocation9_spill] sm:$0xff]  ;;  %v9306_v54 = vpop.permute.xlu2 %9305 }
 0x55b   : > { %v8667_v35 = vsel %vm8640_vm1, %v17222_v61, %v16489_v63  ;;  %v12500_v22 = vor.u32 %v13006_v44, %v12499_v1 }
 0x55d   : > { %v16537_v30 = vpop.f32.mrf.mxu3  ;;  %v9353_v9 = vsel %vm8640_vm1, %v12500_v22, %v9306_v54  ;;  %v13152_v22 = vld [vmem:[#allocation3 + $0xac] sm:$0x1] }
 0x55e   : > { %17212 = vst [vmem:[#allocation18_spill] sm:$0xff] %v16537_v30  ;;  %10128 = vmatmul.bf16.gmra.mxu1 %v8999_v19 }
 0x563   : > { %12664 = vmatmul.msk.bf16.gmra.mxu2 %vm8640_vm1, %v17213_v21 }
 0x565   : > { %v16545_v18 = vpop.f32.mrf.mxu3 }
 0x566   : > { %17214 = vst [vmem:[#allocation6_spill] sm:$0xff] %v16545_v18  ;;  %10049 = vmatmul.bf16.gmra.mxu0 %v8991_v20  ;;  %v12496_v20 = vor.u32 %v13005_v32, %v12495_v11 }
 0x568   : > { %v9349_v10 = vsel %vm8640_vm1, %v12496_v20, %v9304_v28  ;;  %v8706_v28 = vld [vmem:[#allocation3 + $0xa8] sm:$0xe] }
 0x569   : > { %v13007_v20 = vld [vmem:[#allocation3 + $0x84] sm:$0xf0]  ;;  %v12470_v1 = vrot.slane %v8706_v28, 9 }
 0x56a   : > { %9920 = vmatmul.bf16.vlgmr.msra.gmra.mxu3 %v8659_v31 }
 0x56d   : > { %v16550_v25 = vpop.f32.mrf.mxu3 }
 0x56e   : > { %17216 = vst [vmem:[#allocation11_spill] sm:$0xff] %v16550_v25  ;;  %10133 = vmatmul.bf16.gmra.mxu1 %v9003_v40 }
 0x573   : > { %12665 = vmatmul.msk.bf16.gmra.mxu2 %vm8640_vm1, %v17218_v33  ;;  %v17224_v33 = vld [vmem:[#allocation19_spill] sm:$0xff] }
 0x575   : > { %v16558_v48 = vpop.f32.mrf.mxu3 }
 0x576   : > { %17219 = vst [vmem:[#allocation4_spill] sm:$0xff] %v16558_v48  ;;  %v16560_v47 = vpop.f32.mrf.mxu2  ;;  %10054 = vmatmul.bf16.gmra.mxu0 %v8995_v36 }
 0x57a   : > { %9925 = vmatmul.bf16.gmra.mxu3 %v8663_v24  ;;  %v8705_v24 = vld [vmem:[#allocation3 + $0xa0] sm:$0xe] }
 0x57b   : > { %v12469_v61 = vrot.slane %v8705_v24, 9 }
 0x57d   : > { %v16565_v43 = vpop.f32.mrf.mxu3 }
 0x57e   : > { %17220 = vst [vmem:[#allocation13_spill] sm:$0xff] %v16565_v43  ;;  %v16568_v6 = vpop.f32.mrf.mxu2  ;;  %10138 = vmatmul.bf16.gmra.mxu1 %v9349_v10  ;;  %v17226_v10 = vld [vmem:[#allocation12_spill] sm:$0xff] }
 0x57f   : > { %v8671_v44 = vsel %vm8640_vm1, %v17226_v10, %v16504_v51  ;;  %v16610_v10 = vpop.permute.xlu0 %9267 }
 0x583   : > { %12666 = vmatmul.msk.bf16.gmra.mxu2 %vm8640_vm1, %v16427_v16  ;;  %v16586_v16 = vpop.permute.xlu1 %9265 }
 0x585   : > { %v16574_v50 = vpop.f32.mrf.mxu3 }
 0x586   : > { %17221 = vst [vmem:[#allocation5_spill] sm:$0xff] %v16574_v50  ;;  %v16576_v36 = vpop.f32.mrf.mxu2  ;;  %10059 = vmatmul.bf16.gmra.mxu0 %v8999_v19  ;;  %v16590_v19 = vpop.f32.mrf.mxu0 }
 0x58a   : > { %9930 = vmatmul.bf16.gmra.mxu3 %v8667_v35  ;;  %v13151_v35 = vld [vmem:[#allocation3 + $0xa4] sm:$0x1] }
 0x58b   : > { %v9308_v11 = vpop.permute.xlu1 %9307  ;;  %v8731_v54 = vrot.slane %v13151_v35, 5 }
 0x58d   : > { %v16581_v31 = vpop.f32.mrf.mxu3  ;;  %v8732_v43 = vsel %vm13509_vm12, %v12469_v61, %v8731_v54 }
 0x58e   : > { %17223 = vst [vmem:[#allocation7_spill] sm:$0xff] %v16581_v31  ;;  %v16584_v52 = vpop.f32.mrf.mxu2  ;;  %10143 = vmatmul.bf16.gmra.mxu1 %v9353_v9  ;;  %v8735_v9 = vrot.slane %v13152_v22, 5  ;;  %v16608_v24 = vpop.f32.mrf.mxu0  ;;  %v8881_v28 = vunpack.c.l.b16 %v8732_v43  ;;  %v13008_v43 = vld [vmem:[#allocation3 + $0x94] sm:$0xf0] }
 0x58f   : > { %v9310_v22 = vpop.permute.xlu0 %9309 }
 0x590   : > { %v8736_v51 = vsel %vm13509_vm12, %v12470_v1, %v8735_v9  ;;  %v8708_v1 = vld [vmem:[#allocation3 + $0xb8] sm:$0xe]  ;;  %v12507_v9 = vld [vmem:[#allocation3 + $0x90] sm:$0xf] }
 0x593   : > { %12667 = vmatmul.msk.bf16.gmra.mxu2 %vm8640_vm1, %v17224_v33  ;;  %v12503_v33 = vld [vmem:[#allocation3 + $0x80] sm:$0xf] }
 0x595   : > { %v16592_v32 = vpop.f32.mrf.mxu3 }
 0x596   : > { %17225 = vst [vmem:[#allocation17_spill] sm:$0xff] %v16592_v32  ;;  %v16594_v63 = vpop.f32.mrf.mxu2  ;;  %10064 = vmatmul.bf16.gmra.mxu0 %v9003_v40  ;;  %v12504_v32 = vor.u32 %v13007_v20, %v12503_v33  ;;  %v9420_v20 = vpop.permute.xlu1 %9419 }
 0x597   : > { %v9461_v61 = vsel %vm8640_vm1, %v16100_v4, %v9420_v20  ;;  %v16620_v54 = vpop.f32.mrf.mxu0  ;;  %v13154_v4 = vld [vmem:[#allocation3 + $0xb4] sm:$0x1] }
 0x598   : > { %v9357_v40 = vsel %vm8640_vm1, %v12504_v32, %v9308_v11  ;;  %v8739_v20 = vrot.slane %v13154_v4, 5 }
 0x59a   : > { %9935 = vmatmul.bf16.gmra.mxu3 %v8671_v44  ;;  %v8882_v44 = vunpack.c.l.b16 %v8736_v51  ;;  %v13153_v51 = vld [vmem:[#allocation3 + $0xbc] sm:$0x1] }
 0x59c   : > { %v8889_v11 = vpack.c.b16 %v8882_v44, %v8881_v28  ;;  %v8743_v28 = vrot.slane %v13153_v51, 5  ;;  %v12508_v44 = vor.u32 %v13008_v43, %v12507_v9 }
 0x59d   : > { %v16599_v31 = vpop.f32.mrf.mxu3 }
 0x59e   : > { %17227 = vst [vmem:[#allocation9_spill] sm:$0xff] %v16599_v31  ;;  %v16602_v50 = vpop.f32.mrf.mxu2  ;;  %10148 = vmatmul.bf16.gmra.mxu1 %v9357_v40  ;;  %v8959_v33 = vsel %vm8640_vm1, %v8889_v11, %v16114_v46  ;;  %v8707_v40 = vld [vmem:[#allocation3 + $0xb0] sm:$0xe]  ;;  %v16624_v31 = vpop.f32.mrf.mxu1 }
 0x59f   : > { %v16633_v11 = vpop.permute.xlu2 %9269  ;;  %v16637_v9 = vpop.f32.mrf.mxu0 }
 0x5a3   : > { %12668 = vmatmul.msk.bf16.gmra.mxu2 %vm8640_vm1, %v16309_v27  ;;  %v12472_v27 = vrot.slane %v8708_v1, 9 }
 0x5a5   : > { %v16614_v32 = vpop.f32.mrf.mxu3  ;;  %v8744_v46 = vsel %vm13509_vm12, %v12472_v27, %v8743_v28 }
 0x5a6   : > { %17228 = vst [vmem:[#allocation19_spill] sm:$0xff] %v16614_v32  ;;  %v16618_v35 = vpop.f32.mrf.mxu2  ;;  %10069 = vmatmul.bf16.gmra.mxu0 %v9461_v61  ;;  %v12471_v32 = vrot.slane %v8707_v40, 9  ;;  %v9361_v61 = vsel %vm8640_vm1, %v12508_v44, %v9310_v22  ;;  %v8884_v43 = vunpack.c.l.b16 %v8744_v46  ;;  %v17230_v40 = vld [vmem:[#allocation16_spill] sm:$0xff]  ;;  %v16647_v4 = vpop.f32.mrf.mxu1 }
 0x5a8   : > { %v8740_v1 = vsel %vm13509_vm12, %v12471_v32, %v8739_v20  ;;  %v8710_v32 = vld [vmem:[#allocation3 + $0xc8] sm:$0xe]  ;;  %v9428_v20 = vpop.permute.xlu2 %9427 }
 0x5a9   : > { %v8883_v51 = vunpack.c.l.b16 %v8740_v1  ;;  %v12474_v1 = vrot.slane %v8710_v32, 9 }
 0x5aa   : > { %9940 = vmatmul.bf16.gmra.mxu3 %v8959_v33  ;;  %v9422_v33 = vpop.permute.xlu0 %9421 }
 0x5ab   : > { %v8890_v44 = vpack.c.b16 %v8884_v43, %v8883_v51  ;;  %v9465_v27 = vsel %vm8640_vm1, %v16366_v49, %v9422_v33 }
 0x5ad   : > { %v16626_v48 = vpop.f32.mrf.mxu3  ;;  %v8963_v46 = vsel %vm8640_vm1, %v8890_v44, %v16149_v57 }
 0x5ae   : > { %17229 = vst [vmem:[#allocation12_spill] sm:$0xff] %v16626_v48  ;;  %v16629_v25 = vpop.f32.mrf.mxu2  ;;  %10153 = vmatmul.bf16.gmra.mxu1 %v9361_v61  ;;  %v16649_v61 = vpop.f32.mrf.mxu0  ;;  %v13156_v48 = vld [vmem:[#allocation3 + $0xc4] sm:$0x1] }
 0x5af   : > { %v8747_v49 = vrot.slane %v13156_v48, 5  ;;  %v16659_v30 = vpop.f32.mrf.mxu1 }
 0x5b0   : > { %v9424_v32 = vpop.permute.xlu2 %9423 }
 0x5b3   : > { %12669 = vmatmul.msk.bf16.gmra.mxu2 %vm8640_vm1, %v17230_v40  ;;  %v8709_v40 = vld [vmem:[#allocation3 + $0xc0] sm:$0xe] }
 0x5b4   : > { %v12473_v51 = vrot.slane %v8709_v40, 9  ;;  %v9469_v40 = vsel %vm8640_vm1, %v17210_v13, %v9424_v32  ;;  %v17235_v13 = vld [vmem:[#allocation14_spill] sm:$0xff] }
 0x5b5   : > { %v16641_v22 = vpop.f32.mrf.mxu3 }
 0x5b6   : > { %17231 = vst [vmem:[#allocation16_spill] sm:$0xff] %v16641_v22  ;;  %v16645_v28 = vpop.f32.mrf.mxu2  ;;  %10074 = vmatmul.bf16.gmra.mxu0 %v9465_v27  ;;  %v13155_v22 = vld [vmem:[#allocation3 + $0xcc] sm:$0x1]  ;;  %v9477_v27 = vsel %vm8640_vm1, %v16399_v7, %v9428_v20  ;;  %v8748_v44 = vsel %vm13509_vm12, %v12473_v51, %v8747_v49  ;;  %v8712_v51 = vld [vmem:[#allocation3 + $0xd8] sm:$0xe] }
 0x5b7   : > { %v8751_v43 = vrot.slane %v13155_v22, 5  ;;  %v8885_v48 = vunpack.c.l.b16 %v8748_v44  ;;  %v8711_v49 = vld [vmem:[#allocation3 + $0xd0] sm:$0xe]  ;;  %v13157_v44 = vld [vmem:[#allocation3 + $0xdc] sm:$0x1] }
 0x5b9   : > { %v8752_v18 = vsel %vm13509_vm12, %v12474_v1, %v8751_v43  ;;  %v9430_v1 = vpop.permute.xlu1 %9429  ;;  %v16673_v43 = vpop.f32.mrf.mxu1 }
 0x5ba   : > { %9945 = vmatmul.bf16.gmra.mxu3 %v8963_v46  ;;  %v8886_v22 = vunpack.c.l.b16 %v8752_v18  ;;  %v16665_v46 = vpop.f32.mrf.mxu0  ;;  %v9481_v32 = vsel %vm8640_vm1, %v17235_v13, %v9430_v1 }
 0x5bc   : > { %v8891_v20 = vpack.c.b16 %v8886_v22, %v8885_v48  ;;  %v12475_v48 = vrot.slane %v8711_v49, 9 }
 0x5bd   : > { %v16653_v33 = vpop.f32.mrf.mxu3 }
 0x5be   : > { %17232 = vst [vmem:[#allocation23_spill] sm:$0xff] %v16653_v33  ;;  %10158 = vmatmul.bf16.gmra.mxu1 %v9477_v27  ;;  %v16661_v57 = vpop.f32.mrf.mxu2  ;;  %v8967_v18 = vsel %vm8640_vm1, %v8891_v20, %v16025_v38  ;;  %v8759_v33 = vrot.slane %v13157_v44, 5 }
 0x5c1   : > { %v16687_v20 = vpop.f32.mrf.mxu1 }
 0x5c3   : > { %12670 = vmatmul.msk.bf16.gmra.mxu2 %vm8640_vm1, %v16285_v37  ;;  %v12476_v37 = vrot.slane %v8712_v51, 9  ;;  %v9426_v51 = vpop.permute.xlu1 %9425 }
 0x5c4   : > { %v9473_v13 = vsel %vm8640_vm1, %v17213_v21, %v9426_v51  ;;  %v17237_v21 = vld [vmem:[#allocation21_spill] sm:$0xff]  ;;  %v9336_v51 = vsel %vm8640_vm1, %v15884_v55, %v16570_v39 }
 0x5c5   : > { %v16669_v7 = vpop.f32.mrf.mxu3  ;;  %v8760_v38 = vsel %vm13509_vm12, %v12476_v37, %v8759_v33 }
 0x5c6   : > { %17233 = vst [vmem:[#allocation24_spill] sm:$0xff] %v16669_v7  ;;  %10079 = vmatmul.bf16.gmra.mxu0 %v9469_v40  ;;  %v16675_v27 = vpop.f32.mrf.mxu2  ;;  %v16679_v7 = vpop.f32.mrf.mxu0  ;;  %v13158_v40 = vld [vmem:[#allocation3 + $0xd4] sm:$0x1] }
 0x5c7   : > { %v8755_v8 = vrot.slane %v13158_v40, 5  ;;  %v17236_v40 = vld [vmem:[#allocation15_spill] sm:$0xff] }
 0x5c9   : > { %v16703_v37 = vpop.f32.mrf.mxu1 }
 0x5ca   : > { %9950 = vmatmul.bf16.gmra.mxu3 %v8967_v18  ;;  %v8756_v18 = vsel %vm13509_vm12, %v12475_v48, %v8755_v8  ;;  %v9432_v8 = vpop.permute.xlu0 %9431 }
 0x5cb   : > { %v8887_v49 = vunpack.c.l.b16 %v8756_v18 }
 0x5cd   : > { %v16681_v22 = vpop.f32.mrf.mxu3 }
 0x5ce   : > { %17234 = vst [vmem:[#allocation25_spill] sm:$0xff] %v16681_v22  ;;  %10163 = vmatmul.bf16.gmra.mxu1 %v9481_v32  ;;  %v16691_v44 = vpop.f32.mrf.mxu2  ;;  %v8888_v22 = vunpack.c.l.b16 %v8760_v38  ;;  %v16699_v32 = vpop.f32.mrf.mxu0  ;;  %v9485_v38 = vsel %vm8640_vm1, %v17236_v40, %v9432_v8 }
 0x5d0   : > { %v8892_v33 = vpack.c.b16 %v8888_v22, %v8887_v49  ;;  %v9434_v49 = vpop.permute.xlu2 %9433 }
 0x5d1   : > { %v16713_v18 = vpop.f32.mrf.mxu1 }
 0x5d2   : > { %v8971_v29 = vsel %vm8640_vm1, %v8892_v33, %v16437_v53  ;;  %v9489_v33 = vsel %vm8640_vm1, %v16414_v17, %v9434_v49 }
 0x5d3   : > { %12671 = vmatmul.msk.bf16.gmra.mxu2 %vm8640_vm1, %v16435_v5 }
 0x5d5   : > { %v16695_v1 = vpop.f32.mrf.mxu3 }
 0x5d6   : > { %10084 = vmatmul.bf16.gmra.mxu0 %v9473_v13  ;;  %v16705_v48 = vpop.f32.mrf.mxu2 }
 0x5d9   : > { %v16725_v8 = vpop.f32.mrf.mxu1 }
 0x5da   : > { %9955 = vmatmul.bf16.gmra.mxu3 %v8971_v29 }
 0x5dd   : > { %v16707_v5 = vpop.f32.mrf.mxu3 }
 0x5de   : > { %10168 = vmatmul.bf16.gmra.mxu1 %v9485_v38  ;;  %v16717_v53 = vpop.f32.mrf.mxu2 }
 0x5e3   : > { %12672 = vmatmul.msk.bf16.gmra.mxu2 %vm8640_vm1, %v17237_v21 }
 0x5e5   : > { %v16715_v22 = vpop.f32.mrf.mxu3 }
 0x5e6   : > { %v16728_v38 = vpop.f32.mrf.mxu2 }
 0x5ea   : > { %9960 = vmatmul.bf16.gmra.mxu3 %v9336_v51 }
 0x5ed   : > { %v9921_v13 = vpop.f32.mrf.mxu3 }
 0x5ee   : > { %v9922_v29 = vadd.f32 %v9921_v13, %v16527_v45  ;;  %10173 = vmatmul.bf16.gmra.mxu1 %v9489_v33 }
 0x5f0   : > { %v10011_v40 = vadd.f32 %v16590_v19, %v9922_v29 }
 0x5f2   : > { %v10100_v21 = vadd.f32 %v16624_v31, %v10011_v40  ;;  %v9339_v31 = vsel %vm8640_vm1, %v15908_v3, %v16586_v16  ;;  %v16755_v40 = vpop.f32.mrf.mxu0  ;;  %v16758_v16 = vpop.f32.mrf.mxu1 }
 0x5f3   : > { %12673 = vmatmul.msk.bf16.gmra.mxu2 %vm8640_vm1, %v16368_v56 }
 0x5f4   : > { %v16734_v55 = vadd.f32 %v16645_v28, %v10100_v21  ;;  %v16745_v28 = vpop.f32.mrf.mxu2 }
 0x5f5   : > { %v9923_v39 = vpop.f32.mrf.mxu3 }
 0x5f6   : > { %v9924_v17 = vadd.f32 %v9923_v39, %v16535_v34  ;;  %v10268_v45 = vmul.f32 %v16734_v55, %v16734_v55 }
 0x5f8   : > { %v10013_v51 = vadd.f32 %v16608_v24, %v9924_v17  ;;  %v10301_v19 = vsel %vm10300_vm2, %v10268_v45, 0.0 }
 0x5f9   : > { %10302 = vadd.xlane.f32.xlu0 %v10301_v19 }
 0x5fa   : > { %v10102_v56 = vadd.f32 %v16647_v4, %v10013_v51  ;;  %9965 = vmatmul.bf16.gmra.mxu3 %v9339_v31  ;;  %v16776_v17 = vpop.f32.mrf.mxu0 }
 0x5fc   : > { %v16748_v49 = vadd.f32 %v16661_v57, %v10102_v56 }
 0x5fd   : > { %v9926_v34 = vpop.f32.mrf.mxu3 }
 0x5fe   : > { %v9927_v13 = vadd.f32 %v9926_v34, %v16543_v59  ;;  %v10269_v24 = vmul.f32 %v16748_v49, %v16748_v49  ;;  %v16765_v59 = vpop.f32.mrf.mxu2 }
 0x600   : > { %v10016_v33 = vadd.f32 %v16620_v54, %v9927_v13  ;;  %v10304_v29 = vsel %vm10300_vm2, %v10269_v24, 0.0 }
 0x601   : > { %10305 = vadd.xlane.f32.xlu1 %v10304_v29 }
 0x602   : > { %v10105_v3 = vadd.f32 %v16659_v30, %v10016_v33  ;;  %v16796_v56 = vpop.f32.mrf.mxu0 }
 0x603   : > { %12674 = vmatmul.msk.bf16.gmra.mxu2 %vm8640_vm1, %v16375_v2  ;;  %v9342_v2 = vsel %vm8640_vm1, %v17208_v14, %v16610_v10 }
 0x604   : > { %v16763_v4 = vadd.f32 %v16675_v27, %v10105_v3 }
 0x605   : > { %v9928_v57 = vpop.f32.mrf.mxu3 }
 0x606   : > { %v9929_v54 = vadd.f32 %v9928_v57, %v16552_v0  ;;  %v10270_v21 = vmul.f32 %v16763_v4, %v16763_v4  ;;  %v16781_v0 = vpop.f32.mrf.mxu1  ;;  %v16786_v31 = vpop.f32.mrf.mxu2 }
 0x608   : > { %v10018_v39 = vadd.f32 %v16637_v9, %v9929_v54  ;;  %v10307_v30 = vsel %vm10300_vm2, %v10270_v21, 0.0 }
 0x609   : > { %10308 = vadd.xlane.f32.xlu2 %v10307_v30 }
 0x60a   : > { %v10107_v27 = vadd.f32 %v16673_v43, %v10018_v39  ;;  %9970 = vmatmul.bf16.gmra.mxu3 %v9342_v2  ;;  %v10037_v57 = vpop.f32.mrf.mxu0 }
 0x60c   : > { %v16779_v45 = vadd.f32 %v16691_v44, %v10107_v27 }
 0x60d   : > { %v9931_v51 = vpop.f32.mrf.mxu3 }
 0x60e   : > { %v9932_v9 = vadd.f32 %v9931_v51, %v16560_v47  ;;  %v10271_v19 = vmul.f32 %v16779_v45, %v16779_v45  ;;  %v10213_v33 = vpop.f32.mrf.mxu2 }
 0x610   : > { %v10021_v14 = vadd.f32 %v16649_v61, %v9932_v9  ;;  %v10310_v10 = vsel %vm10300_vm2, %v10271_v19, 0.0  ;;  %v16801_v61 = vpop.f32.mrf.mxu1 }
 0x611   : > { %10311 = vadd.xlane.f32.xlu2 %v10310_v10 }
 0x612   : > { %v10110_v43 = vadd.f32 %v16687_v20, %v10021_v14  ;;  %v10040_v27 = vpop.f32.mrf.mxu0 }
 0x613   : > { %12675 = vmatmul.msk.bf16.gmra.mxu2 %vm8640_vm1, %v16383_v60  ;;  %v9345_v60 = vsel %vm8640_vm1, %v17211_v15, %v16633_v11 }
 0x614   : > { %v16794_v44 = vadd.f32 %v16705_v48, %v10110_v43 }
 0x615   : > { %v9933_v47 = vpop.f32.mrf.mxu3 }
 0x616   : > { %v9934_v34 = vadd.f32 %v9933_v47, %v16568_v6  ;;  %v10272_v13 = vmul.f32 %v16794_v44, %v16794_v44  ;;  %v10215_v11 = vpop.f32.mrf.mxu2 }
 0x618   : > { %v10023_v24 = vadd.f32 %v16665_v46, %v9934_v34  ;;  %v10313_v20 = vsel %vm10300_vm2, %v10272_v13, 0.0  ;;  %v10126_v39 = vpop.f32.mrf.mxu1 }
 0x619   : > { %10314 = vadd.xlane.f32.xlu0 %v10313_v20 }
 0x61a   : > { %v10112_v48 = vadd.f32 %v16703_v37, %v10023_v24  ;;  %9975 = vmatmul.bf16.gmra.mxu3 %v9345_v60  ;;  %v17239_v60 = vld [vmem:[#allocation8_spill] sm:$0xff] }
 0x61c   : > { %v16810_v6 = vadd.f32 %v16717_v53, %v10112_v48 }
 0x61d   : > { %v9936_v29 = vpop.f32.mrf.mxu3 }
 0x61e   : > { %v9937_v3 = vadd.f32 %v9936_v29, %v16576_v36  ;;  %v10273_v46 = vmul.f32 %v16810_v6, %v16810_v6 }
 0x620   : > { %v10026_v54 = vadd.f32 %v16679_v7, %v9937_v3  ;;  %v10316_v21 = vsel %vm10300_vm2, %v10273_v46, 0.0 }
 0x621   : > { %10317 = vadd.xlane.f32.xlu1 %v10316_v21 }
 0x622   : > { %v10115_v15 = vadd.f32 %v16713_v18, %v10026_v54  ;;  %v17238_v18 = vld [vmem:[#allocation20_spill] sm:$0xff] }
 0x623   : > { %12676 = vmatmul.msk.bf16.gmra.mxu2 %vm8640_vm1, %v16397_v58  ;;  %v9448_v51 = vsel %vm8640_vm1, %v16343_v42, %v17238_v18 }
 0x624   : > { %v16821_v37 = vadd.f32 %v16728_v38, %v10115_v15  ;;  %v10129_v38 = vpop.f32.mrf.mxu1 }
 0x625   : > { %v9938_v36 = vpop.f32.mrf.mxu3 }
 0x626   : > { %v9939_v53 = vadd.f32 %v9938_v36, %v16584_v52  ;;  %v10274_v30 = vmul.f32 %v16821_v37, %v16821_v37  ;;  %v10218_v52 = vpop.f32.mrf.mxu2 }
 0x628   : > { %v10028_v7 = vadd.f32 %v16699_v32, %v9939_v53  ;;  %v10319_v2 = vsel %vm10300_vm2, %v10274_v30, 0.0 }
 0x629   : > { %10320 = vadd.xlane.f32.xlu2 %v10319_v2 }
 0x62a   : > { %v10117_v58 = vadd.f32 %v16725_v8, %v10028_v7  ;;  %9980 = vmatmul.bf16.gmra.mxu3 %v9448_v51  ;;  %v10042_v8 = vpop.f32.mrf.mxu0 }
 0x62c   : > { %v16833_v9 = vadd.f32 %v16745_v28, %v10117_v58  ;;  %v10131_v28 = vpop.f32.mrf.mxu1 }
 0x62d   : > { %v9941_v19 = vpop.f32.mrf.mxu3 }
 0x62e   : > { %v9942_v14 = vadd.f32 %v9941_v19, %v16594_v63  ;;  %v10275_v32 = vmul.f32 %v16833_v9, %v16833_v9  ;;  %v10220_v24 = vpop.f32.mrf.mxu2 }
 0x630   : > { %v10031_v10 = vadd.f32 %v16755_v40, %v9942_v14  ;;  %v10322_v43 = vsel %vm10300_vm2, %v10275_v32, 0.0 }
 0x631   : > { %10323 = vadd.xlane.f32.xlu0 %v10322_v43 }
 0x632   : > { %v10120_v42 = vadd.f32 %v16758_v16, %v10031_v10  ;;  %v9451_v16 = vsel %vm8640_vm1, %v17239_v60, %v16347_v23 }
 0x634   : > { %v16842_v47 = vadd.f32 %v16765_v59, %v10120_v42  ;;  %v10134_v46 = vpop.f32.mrf.mxu1 }
 0x635   : > { %v9943_v34 = vpop.f32.mrf.mxu3 }
 0x636   : > { %v9944_v13 = vadd.f32 %v9943_v34, %v16602_v50  ;;  %v10276_v63 = vmul.f32 %v16842_v47, %v16842_v47  ;;  %v10045_v50 = vpop.f32.mrf.mxu0  ;;  %v10223_v15 = vpop.f32.mrf.mxu2 }
 0x638   : > { %v10033_v20 = vadd.f32 %v16776_v17, %v9944_v13  ;;  %v10325_v40 = vsel %vm10300_vm2, %v10276_v63, 0.0 }
 0x639   : > { %10326 = vadd.xlane.f32.xlu1 %v10325_v40 }
 0x63a   : > { %v10122_v59 = vadd.f32 %v16781_v0, %v10033_v20  ;;  %9985 = vmatmul.bf16.gmra.mxu3 %v9451_v16  ;;  %v17242_v16 = vld [vmem:[#allocation18_spill] sm:$0xff] }
 0x63c   : > { %v16854_v48 = vadd.f32 %v16786_v31, %v10122_v59  ;;  %v10136_v2 = vpop.f32.mrf.mxu1 }
 0x63d   : > { %v9946_v29 = vpop.f32.mrf.mxu3 }
 0x63e   : > { %v9947_v3 = vadd.f32 %v9946_v29, %v16618_v35  ;;  %v10277_v17 = vmul.f32 %v16854_v48, %v16854_v48  ;;  %v10047_v53 = vpop.f32.mrf.mxu0 }
 0x640   : > { %v10036_v54 = vadd.f32 %v16796_v56, %v9947_v3  ;;  %v10328_v21 = vsel %vm10300_vm2, %v10277_v17, 0.0  ;;  %v17240_v56 = vld [vmem:[#allocation10_spill] sm:$0xff] }
 0x641   : > { %10329 = vadd.xlane.f32.xlu2 %v10328_v21  ;;  %v9454_v18 = vsel %vm8640_vm1, %v17240_v56, %v16484_v62  ;;  %v17243_v21 = vld [vmem:[#allocation6_spill] sm:$0xff] }
 0x642   : > { %v10125_v23 = vadd.f32 %v16801_v61, %v10036_v54  ;;  %v10225_v61 = vpop.f32.mrf.mxu2 }
 0x644   : > { %v16862_v0 = vadd.f32 %v10213_v33, %v10125_v23  ;;  %v10139_v43 = vpop.f32.mrf.mxu1 }
 0x645   : > { %v9948_v31 = vpop.f32.mrf.mxu3 }
 0x646   : > { %v9949_v36 = vadd.f32 %v9948_v31, %v16629_v25  ;;  %v10278_v35 = vmul.f32 %v16862_v0, %v16862_v0  ;;  %v10050_v32 = vpop.f32.mrf.mxu0 }
 0x648   : > { %v10038_v30 = vadd.f32 %v10037_v57, %v9949_v36  ;;  %v10331_v7 = vsel %vm10300_vm2, %v10278_v35, 0.0 }
 0x649   : > { %10332 = vadd.xlane.f32.xlu0 %v10331_v7 }
 0x64a   : > { %v10127_v51 = vadd.f32 %v10126_v39, %v10038_v30  ;;  %9990 = vmatmul.bf16.gmra.mxu3 %v9454_v18  ;;  %v10228_v62 = vpop.f32.mrf.mxu2  ;;  %v17244_v18 = vld [vmem:[#allocation11_spill] sm:$0xff] }
 0x64c   : > { %v16871_v33 = vadd.f32 %v10215_v11, %v10127_v51  ;;  %v10141_v40 = vpop.f32.mrf.mxu1 }
 0x64d   : > { %v9951_v58 = vpop.f32.mrf.mxu3 }
 0x64e   : > { %v9952_v25 = vadd.f32 %v9951_v58, %v16523_v12  ;;  %v10279_v19 = vmul.f32 %v16871_v33, %v16871_v33 }
 0x650   : > { %v10041_v57 = vadd.f32 %v10040_v27, %v9952_v25  ;;  %v10334_v14 = vsel %vm10300_vm2, %v10279_v19, 0.0  ;;  %v17241_v27 = vld [vmem:[#allocation22_spill] sm:$0xff] }
 0x651   : > { %10335 = vadd.xlane.f32.xlu1 %v10334_v14  ;;  %v9457_v63 = vsel %vm8640_vm1, %v17241_v27, %v16498_v26 }
 0x652   : > { %v10130_v10 = vadd.f32 %v10129_v38, %v10041_v57  ;;  %v10052_v38 = vpop.f32.mrf.mxu0 }
 0x654   : > { %v16877_v42 = vadd.f32 %v10218_v52, %v10130_v10  ;;  %v10144_v31 = vpop.f32.mrf.mxu1 }
 0x655   : > { %v9953_v39 = vpop.f32.mrf.mxu3 }
 0x656   : > { %v9954_v11 = vadd.f32 %v9953_v39, %v16531_v41  ;;  %v10280_v34 = vmul.f32 %v16877_v42, %v16877_v42 }
 0x658   : > { %v10043_v12 = vadd.f32 %v10042_v8, %v9954_v11  ;;  %v10337_v13 = vsel %vm10300_vm2, %v10280_v34, 0.0  ;;  %v10230_v8 = vpop.f32.mrf.mxu2 }
 0x659   : > { %10338 = vadd.xlane.f32.xlu2 %v10337_v13  ;;  %v17245_v13 = vld [vmem:[#allocation4_spill] sm:$0xff] }
 0x65a   : > { %v10132_v20 = vadd.f32 %v10131_v28, %v10043_v12  ;;  %9995 = vmatmul.bf16.gmra.mxu3 %v9457_v63  ;;  %v10055_v26 = vpop.f32.mrf.mxu0 }
 0x65c   : > { %v16886_v52 = vadd.f32 %v10220_v24, %v10132_v20  ;;  %v16908_v57 = vpop.f32.mrf.mxu1 }
 0x65d   : > { %v9956_v60 = vpop.f32.mrf.mxu3 }
 0x65e   : > { %v9957_v41 = vadd.f32 %v9956_v60, %v17242_v16  ;;  %v10281_v59 = vmul.f32 %v16886_v52, %v16886_v52 }
 0x660   : > { %v10046_v29 = vadd.f32 %v10045_v50, %v9957_v41  ;;  %v10340_v3 = vsel %vm10300_vm2, %v10281_v59, 0.0  ;;  %v16898_v30 = vpop.f32.mrf.mxu2 }
 0x661   : > { %10341 = vadd.xlane.f32.xlu0 %v10340_v3 }
 0x662   : > { %v10135_v17 = vadd.f32 %v10134_v46, %v10046_v29  ;;  %v16905_v25 = vpop.f32.mrf.mxu0 }
 0x664   : > { %v16892_v54 = vadd.f32 %v10223_v15, %v10135_v17  ;;  %v16920_v41 = vpop.f32.mrf.mxu1 }
 0x665   : > { %v9958_v28 = vpop.f32.mrf.mxu3 }
 0x666   : > { %v9959_v24 = vadd.f32 %v9958_v28, %v17243_v21  ;;  %v10282_v23 = vmul.f32 %v16892_v54, %v16892_v54 }
 0x668   : > { %v10048_v36 = vadd.f32 %v10047_v53, %v9959_v24  ;;  %v10343_v35 = vsel %vm10300_vm2, %v10282_v23, 0.0  ;;  %v16910_v14 = vpop.f32.mrf.mxu2 }
 0x669   : > { %10344 = vadd.xlane.f32.xlu1 %v10343_v35 }
 0x66a   : > { %v10137_v50 = vadd.f32 %v10136_v2, %v10048_v36  ;;  %v17246_v36 = vld [vmem:[#allocation13_spill] sm:$0xff] }
 0x66c   : > { %v10303_v7 = vpop.xlane.xlu0 %10302  ;;  %v16900_v56 = vadd.f32 %v10225_v61, %v10137_v50 }
 0x66d   : > { %v10397_v46 = vmax.f32 %v10303_v7, 1e-24  ;;  %v9961_v15 = vpop.f32.mrf.mxu3 }
 0x66e   : > { %v9962_v51 = vadd.f32 %v9961_v15, %v17244_v18  ;;  %v10283_v58 = vmul.f32 %v16900_v56, %v16900_v56 }
 0x66f   : > { %13073 = vrsqrt.f32 %v10397_v46  ;;  %vm10435_vm12 = vweird.f32 %v10397_v46 }
 0x670   : > { %v10051_v53 = vadd.f32 %v10050_v32, %v9962_v51  ;;  %v10346_v19 = vsel %vm10300_vm2, %v10283_v58, 0.0  ;;  %v16924_v28 = vpop.f32.mrf.mxu2 }
 0x671   : > { %10347 = vadd.xlane.f32.xlu2 %v10346_v19 }
 0x672   : > { %v10140_v2 = vadd.f32 %v10139_v43, %v10051_v53  ;;  %v16918_v43 = vpop.f32.mrf.mxu0 }
 0x674   : > { %v10306_v61 = vpop.xlane.xlu1 %10305  ;;  %v16912_v10 = vadd.f32 %v10228_v62, %v10140_v2 }
 0x675   : > { %v13074_v39 = vpop.eup %13073  ;;  %v10398_v11 = vmax.f32 %v10306_v61, 1e-24  ;;  %v9963_v34 = vpop.f32.mrf.mxu3 }
 0x676   : > { %v10430_v12 = vmul.f32 %v13074_v39, %v10397_v46  ;;  %v9964_v27 = vadd.f32 %v9963_v34, %v17245_v13  ;;  %v10284_v32 = vmul.f32 %v16912_v10, %v16912_v10  ;;  %vm10436_vm9 = vweird.f32 %v13074_v39 }
 0x677   : > { %13075 = vrsqrt.f32 %v10398_v11  ;;  %vm10437_vm15 = vmor %vm10435_vm12, %vm10436_vm9  ;;  %vm10445_vm6 = vweird.f32 %v10398_v11 }
 0x678   : > { %v10431_v63 = vmul.f32 %v13074_v39, %v10430_v12  ;;  %v10053_v20 = vadd.f32 %v10052_v38, %v9964_v27  ;;  %v10349_v60 = vsel %vm10300_vm2, %v10284_v32, 0.0  ;;  %v17247_v12 = vld [vmem:[#allocation5_spill] sm:$0xff]  ;;  %v16948_v27 = vpop.f32.mrf.mxu2 }
 0x679   : > { %10350 = vadd.xlane.f32.xlu0 %v10349_v60 }
 0x67a   : > { %v10432_v16 = vmul.f32 0.5, %v10431_v63  ;;  %v10142_v62 = vadd.f32 %v10141_v40, %v10053_v20  ;;  %v16938_v58 = vpop.f32.mrf.mxu0 }
 0x67c   : > { %v10433_v59 = vsub.f32 1.5, %v10432_v16  ;;  %v10309_v29 = vpop.xlane.xlu2 %10308  ;;  %v16922_v3 = vadd.f32 %v10230_v8, %v10142_v62 }
 0x67d   : > { %v13076_v17 = vpop.eup %13075  ;;  %v10399_v21 = vmax.f32 %v10309_v29, 1e-24  ;;  %v9966_v38 = vpop.f32.mrf.mxu3 }
 0x67e   : > { %v10434_v24 = vmul.f32 %v13074_v39, %v10433_v59  ;;  %v10440_v23 = vmul.f32 %v13076_v17, %v10398_v11  ;;  %v9967_v35 = vadd.f32 %v9966_v38, %v17246_v36  ;;  %v10285_v40 = vmul.f32 %v16922_v3, %v16922_v3 }
 0x67f   : > { %13077 = vrsqrt.f32 %v10399_v21  ;;  %vm10446_vm5 = vweird.f32 %v13076_v17  ;;  %vm10455_vm7 = vweird.f32 %v10399_v21 }
 0x680   : > { %v10438_v8 = vsel %vm10437_vm15, %v13074_v39, %v10434_v24  ;;  %v10441_v50 = vmul.f32 %v13076_v17, %v10440_v23  ;;  %v10056_v7 = vadd.f32 %v10055_v26, %v9967_v35  ;;  %v10352_v15 = vsel %vm10300_vm2, %v10285_v40, 0.0  ;;  %v16945_v39 = vpop.f32.mrf.mxu1  ;;  %vm10447_vm8 = vmor %vm10445_vm6, %vm10446_vm5  ;;  %v17248_v35 = vld [vmem:[#allocation7_spill] sm:$0xff] }
 0x681   : > { %v10749_v46 = vmul.f32 %v10438_v8, %v16734_v55  ;;  %10353 = vadd.xlane.f32.xlu1 %v10352_v15 }
 0x682   : > { %v10442_v18 = vmul.f32 0.5, %v10441_v50  ;;  %v10145_v51 = vadd.f32 %v10144_v31, %v10056_v7  ;;  %v16961_v24 = vpop.f32.mrf.mxu0 }
 0x683   : > { %10781 = vst.msk [vmem:[%s16934_s15] sm:$0xff] %vm10300_vm2, %v10749_v46  ;;  %v10243_v46 = vpop.f32.mrf.mxu2 }
 0x684   : > { %v10443_v53 = vsub.f32 1.5, %v10442_v18  ;;  %v10312_v19 = vpop.xlane.xlu2 %10311  ;;  %v16943_v2 = vadd.f32 %v16898_v30, %v10145_v51 }
 0x685   : > { %v13078_v61 = vpop.eup %13077  ;;  %v10400_v26 = vmax.f32 %v10312_v19, 1e-24  ;;  %v9968_v55 = vpop.f32.mrf.mxu3 }
 0x686   : > { %v10444_v34 = vmul.f32 %v13076_v17, %v10443_v53  ;;  %v10450_v31 = vmul.f32 %v13078_v61, %v10399_v21  ;;  %v9969_v13 = vadd.f32 %v9968_v55, %v17247_v12  ;;  %v10286_v32 = vmul.f32 %v16943_v2, %v16943_v2  ;;  %v17249_v12 = vld [vmem:[#allocation17_spill] sm:$0xff] }
 0x687   : > { %13079 = vrsqrt.f32 %v10400_v26  ;;  %vm10456_vm4 = vweird.f32 %v13078_v61  ;;  %vm10465_vm13 = vweird.f32 %v10400_v26 }
 0x688   : > { %v10448_v30 = vsel %vm10447_vm8, %v13076_v17, %v10444_v34  ;;  %v10451_v63 = vmul.f32 %v13078_v61, %v10450_v31  ;;  %v10058_v20 = vadd.f32 %v16905_v25, %v9969_v13  ;;  %v10355_v16 = vsel %vm10300_vm2, %v10286_v32, 0.0  ;;  %v10154_v40 = vpop.f32.mrf.mxu1  ;;  %vm10457_vm10 = vmor %vm10455_vm7, %vm10456_vm4 }
 0x689   : > { %v10750_v60 = vmul.f32 %v10448_v30, %v16748_v49  ;;  %10356 = vadd.xlane.f32.xlu2 %v10355_v16 }
 0x68a   : > { %v10452_v62 = vmul.f32 0.5, %v10451_v63  ;;  %v10147_v11 = vadd.f32 %v16908_v57, %v10058_v20  ;;  %v10067_v32 = vpop.f32.mrf.mxu0 }
 0x68b   : > { %10782 = vst.msk [vmem:[%s16934_s15 + $0x8] sm:$0xff] %vm10300_vm2, %v10750_v60 }
 0x68c   : > { %v10453_v59 = vsub.f32 1.5, %v10452_v62  ;;  %v10315_v29 = vpop.xlane.xlu0 %10314  ;;  %v16959_v38 = vadd.f32 %v16910_v14, %v10147_v11  ;;  %v10245_v11 = vpop.f32.mrf.mxu2 }
 0x68d   : > { %v13080_v17 = vpop.eup %13079  ;;  %v10401_v25 = vmax.f32 %v10315_v29, 1e-24  ;;  %v9971_v23 = vpop.f32.mrf.mxu3 }
 0x68e   : > { %v10454_v49 = vmul.f32 %v13078_v61, %v10453_v59  ;;  %v10460_v36 = vmul.f32 %v13080_v17, %v10400_v26  ;;  %v9972_v57 = vadd.f32 %v9971_v23, %v17248_v35  ;;  %v10287_v8 = vmul.f32 %v16959_v38, %v16959_v38  ;;  %v17250_v35 = vld [vmem:[#allocation9_spill] sm:$0xff] }
 0x68f   : > { %13081 = vrsqrt.f32 %v10401_v25  ;;  %vm10466_vm11 = vweird.f32 %v13080_v17  ;;  %vm10475_vm1 = vweird.f32 %v10401_v25 }
 0x690   : > { %v10458_v50 = vsel %vm10457_vm10, %v13078_v61, %v10454_v49  ;;  %v10461_v14 = vmul.f32 %v13080_v17, %v10460_v36  ;;  %v10061_v7 = vadd.f32 %v16918_v43, %v9972_v57  ;;  %v10358_v18 = vsel %vm10300_vm2, %v10287_v8, 0.0  ;;  %vm10467_vm14 = vmor %vm10465_vm13, %vm10466_vm11  ;;  %v10156_v20 = vpop.f32.mrf.mxu1 }
 0x691   : > { %v10751_v15 = vmul.f32 %v10458_v50, %v16763_v4  ;;  %10359 = vadd.xlane.f32.xlu0 %v10358_v18 }
 0x692   : > { %v10462_v21 = vmul.f32 0.5, %v10461_v14  ;;  %v10150_v51 = vadd.f32 %v16920_v41, %v10061_v7 }
 0x693   : > { %10783 = vst.msk [vmem:[%s16934_s15 + $0x10] sm:$0xff] %vm10300_vm2, %v10751_v15 }
 0x694   : > { %v10463_v53 = vsub.f32 1.5, %v10462_v21  ;;  %v10318_v19 = vpop.xlane.xlu1 %10317  ;;  %v16973_v55 = vadd.f32 %v16924_v28, %v10150_v51 }
 0x695   : > { %v13082_v61 = vpop.eup %13081  ;;  %v10402_v34 = vmax.f32 %v10318_v19, 1e-24  ;;  %v9973_v43 = vpop.f32.mrf.mxu3 }
 0x696   : > { %v10464_v31 = vmul.f32 %v13080_v17, %v10463_v53  ;;  %v10470_v4 = vmul.f32 %v13082_v61, %v10401_v25  ;;  %v9974_v13 = vadd.f32 %v9973_v43, %v17249_v12  ;;  %v10288_v41 = vmul.f32 %v16973_v55, %v16973_v55  ;;  %v10248_v43 = vpop.f32.mrf.mxu2  ;;  %v17251_v12 = vld [vmem:[#allocation19_spill] sm:$0xff] }
 0x697   : > { %13083 = vrsqrt.f32 %v10402_v34  ;;  %vm10476_vm0 = vweird.f32 %v13082_v61  ;;  %vm10485_vm12 = vweird.f32 %v10402_v34 }
 0x698   : > { %v10468_v30 = vsel %vm10467_vm14, %v13080_v17, %v10464_v31  ;;  %v10471_v63 = vmul.f32 %v13082_v61, %v10470_v4  ;;  %v10063_v28 = vadd.f32 %v16938_v58, %v9974_v13  ;;  %v10361_v16 = vsel %vm10300_vm2, %v10288_v41, 0.0  ;;  %vm10477_vm3 = vmor %vm10475_vm1, %vm10476_vm0  ;;  %v10159_v21 = vpop.f32.mrf.mxu1 }
 0x699   : > { %v10752_v60 = vmul.f32 %v10468_v30, %v16779_v45  ;;  %10362 = vadd.xlane.f32.xlu1 %v10361_v16 }
 0x69a   : > { %v10472_v26 = vmul.f32 0.5, %v10471_v63  ;;  %v10152_v62 = vadd.f32 %v16945_v39, %v10063_v28 }
 0x69b   : > { %10784 = vst.msk [vmem:[%s16934_s15 + $0x18] sm:$0xff] %vm10300_vm2, %v10752_v60 }
 0x69c   : > { %v10473_v59 = vsub.f32 1.5, %v10472_v26  ;;  %v10321_v29 = vpop.xlane.xlu2 %10320  ;;  %v16985_v17 = vadd.f32 %v16948_v27, %v10152_v62  ;;  %v10070_v27 = vpop.f32.mrf.mxu0 }
 0x69d   : > { %v13084_v23 = vpop.eup %13083  ;;  %v10403_v58 = vmax.f32 %v10321_v29, 1e-24  ;;  %v9976_v49 = vpop.f32.mrf.mxu3 }
 0x69e   : > { %v10474_v36 = vmul.f32 %v13082_v61, %v10473_v59  ;;  %v10480_v45 = vmul.f32 %v13084_v23, %v10402_v34  ;;  %v9977_v57 = vadd.f32 %v9976_v49, %v17250_v35  ;;  %v10289_v39 = vmul.f32 %v16985_v17, %v16985_v17 }
 0x69f   : > { %13085 = vrsqrt.f32 %v10403_v58  ;;  %vm10486_vm9 = vweird.f32 %v13084_v23  ;;  %vm10495_vm6 = vweird.f32 %v10403_v58 }
 0x6a0   : > { %v10478_v8 = vsel %vm10477_vm3, %v13082_v61, %v10474_v36  ;;  %v10481_v50 = vmul.f32 %v13084_v23, %v10480_v45  ;;  %v10066_v14 = vadd.f32 %v16961_v24, %v9977_v57  ;;  %v10364_v15 = vsel %vm10300_vm2, %v10289_v39, 0.0  ;;  %vm10487_vm15 = vmor %vm10485_vm12, %vm10486_vm9  ;;  %v10161_v49 = vpop.f32.mrf.mxu1  ;;  %v17252_v45 = vld [vmem:[#allocation12_spill] sm:$0xff] }
 0x6a1   : > { %v10753_v7 = vmul.f32 %v10478_v8, %v16794_v44  ;;  %10365 = vadd.xlane.f32.xlu2 %v10364_v15 }
 0x6a2   : > { %v10482_v18 = vmul.f32 0.5, %v10481_v50  ;;  %v10155_v25 = vadd.f32 %v10154_v40, %v10066_v14 }
 0x6a3   : > { %10785 = vst.msk [vmem:[%s16934_s15 + $0x20] sm:$0xff] %vm10300_vm2, %v10753_v7 }
 0x6a4   : > { %v10483_v51 = vsub.f32 1.5, %v10482_v18  ;;  %v10324_v53 = vpop.xlane.xlu0 %10323  ;;  %v16995_v19 = vadd.f32 %v10243_v46, %v10155_v25  ;;  %v10072_v26 = vpop.f32.mrf.mxu0 }
 0x6a5   : > { %v13086_v61 = vpop.eup %13085  ;;  %v10404_v31 = vmax.f32 %v10324_v53, 1e-24  ;;  %v9978_v24 = vpop.f32.mrf.mxu3 }
 0x6a6   : > { %v10484_v4 = vmul.f32 %v13084_v23, %v10483_v51  ;;  %v10490_v44 = vmul.f32 %v13086_v61, %v10403_v58  ;;  %v9979_v13 = vadd.f32 %v9978_v24, %v17251_v12  ;;  %v10290_v40 = vmul.f32 %v16995_v19, %v16995_v19 }
 0x6a7   : > { %13087 = vrsqrt.f32 %v10404_v31  ;;  %vm10496_vm5 = vweird.f32 %v13086_v61  ;;  %vm10505_vm7 = vweird.f32 %v10404_v31 }
 0x6a8   : > { %v10488_v41 = vsel %vm10487_vm15, %v13084_v23, %v10484_v4  ;;  %v10491_v30 = vmul.f32 %v13086_v61, %v10490_v44  ;;  %v10068_v63 = vadd.f32 %v10067_v32, %v9979_v13  ;;  %v10367_v28 = vsel %vm10300_vm2, %v10290_v40, 0.0  ;;  %vm10497_vm8 = vmor %vm10495_vm6, %vm10496_vm5  ;;  %v10164_v12 = vpop.f32.mrf.mxu1 }
 0x6a9   : > { %v10754_v46 = vmul.f32 %v10488_v41, %v16810_v6  ;;  %10368 = vadd.xlane.f32.xlu0 %v10367_v28 }
 0x6aa   : > { %v10492_v60 = vmul.f32 0.5, %v10491_v30  ;;  %v10157_v16 = vadd.f32 %v10156_v20, %v10068_v63  ;;  %v10250_v20 = vpop.f32.mrf.mxu2 }
 0x6ab   : > { %10786 = vst.msk [vmem:[%s16934_s15 + $0x28] sm:$0xff] %vm10300_vm2, %v10754_v46 }
 0x6ac   : > { %v10493_v34 = vsub.f32 1.5, %v10492_v60  ;;  %v10327_v62 = vpop.xlane.xlu1 %10326  ;;  %v17004_v59 = vadd.f32 %v10245_v11, %v10157_v16  ;;  %v10075_v53 = vpop.f32.mrf.mxu0 }
 0x6ad   : > { %v13088_v29 = vpop.eup %13087  ;;  %v10405_v23 = vmax.f32 %v10327_v62, 1e-24  ;;  %v9981_v36 = vpop.f32.mrf.mxu3 }
 0x6ae   : > { %v10494_v32 = vmul.f32 %v13086_v61, %v10493_v34  ;;  %v10500_v6 = vmul.f32 %v13088_v29, %v10404_v31  ;;  %v9982_v35 = vadd.f32 %v9981_v36, %v17252_v45  ;;  %v10291_v57 = vmul.f32 %v17004_v59, %v17004_v59 }
 0x6af   : > { %13089 = vrsqrt.f32 %v10405_v23  ;;  %vm10506_vm4 = vweird.f32 %v13088_v29  ;;  %vm10515_vm13 = vweird.f32 %v10405_v23 }
 0x6b0   : > { %v10498_v39 = vsel %vm10497_vm8, %v13086_v61, %v10494_v32  ;;  %v10501_v8 = vmul.f32 %v13088_v29, %v10500_v6  ;;  %v10071_v11 = vadd.f32 %v10070_v27, %v9982_v35  ;;  %v10370_v14 = vsel %vm10300_vm2, %v10291_v57, 0.0  ;;  %v17253_v27 = vld [vmem:[#allocation16_spill] sm:$0xff]  ;;  %vm10507_vm10 = vmor %vm10505_vm7, %vm10506_vm4  ;;  %v17254_v32 = vld [vmem:[#allocation23_spill] sm:$0xff] }
 0x6b1   : > { %v10755_v50 = vmul.f32 %v10498_v39, %v16821_v37  ;;  %10371 = vadd.xlane.f32.xlu1 %v10370_v14 }
 0x6b2   : > { %v10502_v7 = vmul.f32 0.5, %v10501_v8  ;;  %v10160_v15 = vadd.f32 %v10159_v21, %v10071_v11  ;;  %v10253_v41 = vpop.f32.mrf.mxu2 }
 0x6b3   : > { %10787 = vst.msk [vmem:[%s16934_s15 + $0x30] sm:$0xff] %vm10300_vm2, %v10755_v50 }
 0x6b4   : > { %v10503_v58 = vsub.f32 1.5, %v10502_v7  ;;  %v10330_v18 = vpop.xlane.xlu2 %10329  ;;  %v17013_v25 = vadd.f32 %v10248_v43, %v10160_v15  ;;  %v10077_v6 = vpop.f32.mrf.mxu0 }
 0x6b5   : > { %v13090_v51 = vpop.eup %13089  ;;  %v10406_v24 = vmax.f32 %v10330_v18, 1e-24  ;;  %v9983_v61 = vpop.f32.mrf.mxu3 }
 0x6b6   : > { %v10504_v4 = vmul.f32 %v13088_v29, %v10503_v58  ;;  %v10510_v37 = vmul.f32 %v13090_v51, %v10405_v23  ;;  %v9984_v44 = vadd.f32 %v9983_v61, %v17253_v27  ;;  %v10292_v21 = vmul.f32 %v17013_v25, %v17013_v25  ;;  %v17255_v61 = vld [vmem:[#allocation24_spill] sm:$0xff] }
 0x6b7   : > { %13091 = vrsqrt.f32 %v10406_v24  ;;  %vm10516_vm11 = vweird.f32 %v13090_v51  ;;  %vm10525_vm1 = vweird.f32 %v10406_v24 }
 0x6b8   : > { %v10508_v13 = vsel %vm10507_vm10, %v13088_v29, %v10504_v4  ;;  %v10511_v40 = vmul.f32 %v13090_v51, %v10510_v37  ;;  %v10073_v43 = vadd.f32 %v10072_v26, %v9984_v44  ;;  %v10373_v63 = vsel %vm10300_vm2, %v10292_v21, 0.0  ;;  %vm10517_vm14 = vmor %vm10515_vm13, %vm10516_vm11 }
 0x6b9   : > { %v10756_v30 = vmul.f32 %v10508_v13, %v16833_v9  ;;  %10374 = vadd.xlane.f32.xlu2 %v10373_v63 }
 0x6ba   : > { %v10512_v46 = vmul.f32 0.5, %v10511_v40  ;;  %v10162_v31 = vadd.f32 %v10161_v49, %v10073_v43  ;;  %v10255_v50 = vpop.f32.mrf.mxu2 }
 0x6bb   : > { %10788 = vst.msk [vmem:[%s16934_s15 + $0x38] sm:$0xff] %vm10300_vm2, %v10756_v30 }
 0x6bc   : > { %v10513_v28 = vsub.f32 1.5, %v10512_v46  ;;  %v10333_v60 = vpop.xlane.xlu0 %10332  ;;  %v17022_v16 = vadd.f32 %v10250_v20, %v10162_v31  ;;  %v10166_v20 = vpop.f32.mrf.mxu1 }
 0x6bd   : > { %v13092_v34 = vpop.eup %13091  ;;  %v10407_v62 = vmax.f32 %v10333_v60, 1e-24  ;;  %v9986_v29 = vpop.f32.mrf.mxu3 }
 0x6be   : > { %v10514_v36 = vmul.f32 %v13090_v51, %v10513_v28  ;;  %v10520_v26 = vmul.f32 %v13092_v34, %v10406_v24  ;;  %v9987_v9 = vadd.f32 %v9986_v29, %v17254_v32  ;;  %v10293_v49 = vmul.f32 %v17022_v16, %v17022_v16  ;;  %v10080_v21 = vpop.f32.mrf.mxu0 }
 0x6bf   : > { %13093 = vrsqrt.f32 %v10407_v62  ;;  %vm10526_vm0 = vweird.f32 %v13092_v34  ;;  %vm10535_vm12 = vweird.f32 %v10407_v62 }
 0x6c0   : > { %v10518_v45 = vsel %vm10517_vm14, %v13090_v51, %v10514_v36  ;;  %v10521_v35 = vmul.f32 %v13092_v34, %v10520_v26  ;;  %v10076_v57 = vadd.f32 %v10075_v53, %v9987_v9  ;;  %v10376_v8 = vsel %vm10300_vm2, %v10293_v49, 0.0  ;;  %vm10527_vm3 = vmor %vm10525_vm1, %vm10526_vm0  ;;  %v17256_v36 = vld [vmem:[#allocation25_spill] sm:$0xff] }
 0x6c1   : > { %v10757_v39 = vmul.f32 %v10518_v45, %v16842_v47  ;;  %10377 = vadd.xlane.f32.xlu0 %v10376_v8 }
 0x6c2   : > { %v10522_v11 = vmul.f32 0.5, %v10521_v35  ;;  %v10165_v23 = vadd.f32 %v10164_v12, %v10076_v57  ;;  %v10258_v28 = vpop.f32.mrf.mxu2 }
 0x6c3   : > { %10789 = vst.msk [vmem:[%s16934_s15 + $0x40] sm:$0xff] %vm10300_vm2, %v10757_v39 }
 0x6c4   : > { %v10523_v14 = vsub.f32 1.5, %v10522_v11  ;;  %v10336_v7 = vpop.xlane.xlu1 %10335  ;;  %v17031_v15 = vadd.f32 %v10253_v41, %v10165_v23  ;;  %v10169_v24 = vpop.f32.mrf.mxu1 }
 0x6c5   : > { %v13094_v58 = vpop.eup %13093  ;;  %v10408_v18 = vmax.f32 %v10336_v7, 1e-24  ;;  %v9988_v51 = vpop.f32.mrf.mxu3 }
 0x6c6   : > { %v10524_v53 = vmul.f32 %v13092_v34, %v10523_v14  ;;  %v10530_v47 = vmul.f32 %v13094_v58, %v10407_v62  ;;  %v9989_v4 = vadd.f32 %v9988_v51, %v17255_v61  ;;  %v10294_v37 = vmul.f32 %v17031_v15, %v17031_v15  ;;  %v10082_v39 = vpop.f32.mrf.mxu0 }
 0x6c7   : > { %13095 = vrsqrt.f32 %v10408_v18  ;;  %vm10536_vm9 = vweird.f32 %v13094_v58  ;;  %vm10545_vm6 = vweird.f32 %v10408_v18 }
 0x6c8   : > { %v10528_v27 = vsel %vm10527_vm3, %v13092_v34, %v10524_v53  ;;  %v10531_v44 = vmul.f32 %v13094_v58, %v10530_v47  ;;  %v10078_v12 = vadd.f32 %v10077_v6, %v9989_v4  ;;  %v10379_v40 = vsel %vm10300_vm2, %v10294_v37, 0.0  ;;  %vm10537_vm15 = vmor %vm10535_vm12, %vm10536_vm9 }
 0x6c9   : > { %v10758_v13 = vmul.f32 %v10528_v27, %v16854_v48  ;;  %10380 = vadd.xlane.f32.xlu1 %v10379_v40 }
 0x6ca   : > { %v10532_v43 = vmul.f32 0.5, %v10531_v44  ;;  %v10167_v41 = vadd.f32 %v10166_v20, %v10078_v12  ;;  %v10260_v53 = vpop.f32.mrf.mxu2 }
 0x6cb   : > { %10790 = vst.msk [vmem:[%s16934_s15 + $0x48] sm:$0xff] %vm10300_vm2, %v10758_v13 }
 0x6cc   : > { %v10533_v30 = vsub.f32 1.5, %v10532_v43  ;;  %v10339_v63 = vpop.xlane.xlu2 %10338  ;;  %v17040_v46 = vadd.f32 %v10255_v50, %v10167_v41  ;;  %v10171_v50 = vpop.f32.mrf.mxu1 }
 0x6cd   : > { %v13096_v31 = vpop.eup %13095  ;;  %v10409_v60 = vmax.f32 %v10339_v63, 1e-24  ;;  %v9991_v34 = vpop.f32.mrf.mxu3 }
 0x6ce   : > { %v10534_v29 = vmul.f32 %v13094_v58, %v10533_v30  ;;  %v10540_v48 = vmul.f32 %v13096_v31, %v10408_v18  ;;  %v9992_v26 = vadd.f32 %v9991_v34, %v17256_v36  ;;  %v10295_v32 = vmul.f32 %v17040_v46, %v17040_v46  ;;  %v10085_v43 = vpop.f32.mrf.mxu0 }
 0x6cf   : > { %13097 = vrsqrt.f32 %v10409_v60  ;;  %vm10546_vm5 = vweird.f32 %v13096_v31  ;;  %vm10555_vm7 = vweird.f32 %v10409_v60 }
 0x6d0   : > { %v10538_v9 = vsel %vm10537_vm15, %v13094_v58, %v10534_v29  ;;  %v10541_v6 = vmul.f32 %v13096_v31, %v10540_v48  ;;  %v10081_v49 = vadd.f32 %v10080_v21, %v9992_v26  ;;  %v10382_v35 = vsel %vm10300_vm2, %v10295_v32, 0.0  ;;  %vm10547_vm8 = vmor %vm10545_vm6, %vm10546_vm5 }
 0x6d1   : > { %v10759_v45 = vmul.f32 %v10538_v9, %v16862_v0  ;;  %10383 = vadd.xlane.f32.xlu2 %v10382_v35 }
 0x6d2   : > { %v10542_v57 = vmul.f32 0.5, %v10541_v6  ;;  %v10170_v20 = vadd.f32 %v10169_v24, %v10081_v49  ;;  %v10263_v36 = vpop.f32.mrf.mxu2 }
 0x6d3   : > { %10791 = vst.msk [vmem:[%s16934_s15 + $0x50] sm:$0xff] %vm10300_vm2, %v10759_v45 }
 0x6d4   : > { %v10543_v62 = vsub.f32 1.5, %v10542_v57  ;;  %v10342_v8 = vpop.xlane.xlu0 %10341  ;;  %v17049_v11 = vadd.f32 %v10258_v28, %v10170_v20 }
 0x6d5   : > { %v13098_v23 = vpop.eup %13097  ;;  %v10410_v14 = vmax.f32 %v10342_v8, 1e-24  ;;  %v9993_v7 = vpop.f32.mrf.mxu3 }
 0x6d6   : > { %v10544_v58 = vmul.f32 %v13096_v31, %v10543_v62  ;;  %v10550_v0 = vmul.f32 %v13098_v23, %v10409_v60  ;;  %v9994_v51 = vadd.f32 %v9993_v7, %v16695_v1  ;;  %v10296_v47 = vmul.f32 %v17049_v11, %v17049_v11  ;;  %v10087_v62 = vpop.f32.mrf.mxu0 }
 0x6d7   : > { %13099 = vrsqrt.f32 %v10410_v14  ;;  %vm10556_vm4 = vweird.f32 %v13098_v23  ;;  %vm10565_vm13 = vweird.f32 %v10410_v14 }
 0x6d8   : > { %v10548_v61 = vsel %vm10547_vm8, %v13096_v31, %v10544_v58  ;;  %v10551_v4 = vmul.f32 %v13098_v23, %v10550_v0  ;;  %v10083_v37 = vadd.f32 %v10082_v39, %v9994_v51  ;;  %v10385_v44 = vsel %vm10300_vm2, %v10296_v47, 0.0  ;;  %v10174_v31 = vpop.f32.mrf.mxu1  ;;  %vm10557_vm10 = vmor %vm10555_vm7, %vm10556_vm4 }
 0x6d9   : > { %v10760_v27 = vmul.f32 %v10548_v61, %v16871_v33  ;;  %10386 = vadd.xlane.f32.xlu0 %v10385_v44 }
 0x6da   : > { %v10552_v12 = vmul.f32 0.5, %v10551_v4  ;;  %v10172_v21 = vadd.f32 %v10171_v50, %v10083_v37  ;;  %v10265_v47 = vpop.f32.mrf.mxu2 }
 0x6db   : > { %10792 = vst.msk [vmem:[%s16934_s15 + $0x58] sm:$0xff] %vm10300_vm2, %v10760_v27 }
 0x6dc   : > { %v10553_v18 = vsub.f32 1.5, %v10552_v12  ;;  %v10345_v1 = vpop.xlane.xlu1 %10344  ;;  %v17058_v13 = vadd.f32 %v10260_v53, %v10172_v21 }
 0x6dd   : > { %v13100_v40 = vpop.eup %13099  ;;  %v10411_v41 = vmax.f32 %v10345_v1, 1e-24  ;;  %v9996_v24 = vpop.f32.mrf.mxu3 }
 0x6de   : > { %v10554_v30 = vmul.f32 %v13098_v23, %v10553_v18  ;;  %v10560_v33 = vmul.f32 %v13100_v40, %v10410_v14  ;;  %v9997_v63 = vadd.f32 %v9996_v24, %v16707_v5  ;;  %v10297_v28 = vmul.f32 %v17058_v13, %v17058_v13 }
 0x6df   : > { %13101 = vrsqrt.f32 %v10411_v41  ;;  %vm10566_vm11 = vweird.f32 %v13100_v40  ;;  %vm10575_vm1 = vweird.f32 %v10411_v41 }
 0x6e0   : > { %v10558_v34 = vsel %vm10557_vm10, %v13098_v23, %v10554_v30  ;;  %v10561_v29 = vmul.f32 %v13100_v40, %v10560_v33  ;;  %v10086_v48 = vadd.f32 %v10085_v43, %v9997_v63  ;;  %v10388_v32 = vsel %vm10300_vm2, %v10297_v28, 0.0  ;;  %vm10567_vm14 = vmor %vm10565_vm13, %vm10566_vm11  ;;  %v10176_v58 = vpop.f32.mrf.mxu1 }
 0x6e1   : > { %v10761_v26 = vmul.f32 %v10558_v34, %v16877_v42  ;;  %10389 = vadd.xlane.f32.xlu1 %v10388_v32 }
 0x6e2   : > { %v10562_v9 = vmul.f32 0.5, %v10561_v29  ;;  %v10175_v60 = vadd.f32 %v10174_v31, %v10086_v48 }
 0x6e3   : > { %10793 = vst.msk [vmem:[%s16934_s15 + $0x60] sm:$0xff] %vm10300_vm2, %v10761_v26 }
 0x6e4   : > { %v10563_v5 = vsub.f32 1.5, %v10562_v9  ;;  %v10348_v6 = vpop.xlane.xlu2 %10347  ;;  %v17067_v49 = vadd.f32 %v10263_v36, %v10175_v60 }
 0x6e5   : > { %v13102_v45 = vpop.eup %13101  ;;  %v10412_v35 = vmax.f32 %v10348_v6, 1e-24  ;;  %v9998_v57 = vpop.f32.mrf.mxu3 }
 0x6e6   : > { %v10564_v20 = vmul.f32 %v13100_v40, %v10563_v5  ;;  %v10570_v39 = vmul.f32 %v13102_v45, %v10411_v41  ;;  %v9999_v42 = vadd.f32 %v9998_v57, %v16715_v22  ;;  %v10298_v8 = vmul.f32 %v17067_v49, %v17067_v49 }
 0x6e7   : > { %13103 = vrsqrt.f32 %v10412_v35  ;;  %vm10576_vm0 = vweird.f32 %v13102_v45  ;;  %vm10585_vm12 = vweird.f32 %v10412_v35 }
 0x6e8   : > { %v10568_v23 = vsel %vm10567_vm14, %v13100_v40, %v10564_v20  ;;  %v10571_v50 = vmul.f32 %v13102_v45, %v10570_v39  ;;  %v10088_v7 = vadd.f32 %v10087_v62, %v9999_v42  ;;  %v10391_v51 = vsel %vm10300_vm2, %v10298_v8, 0.0  ;;  %vm10577_vm3 = vmor %vm10575_vm1, %vm10576_vm0 }
 0x6e9   : > { %v10762_v0 = vmul.f32 %v10568_v23, %v16886_v52  ;;  %10392 = vadd.xlane.f32.xlu2 %v10391_v51 }
 0x6ea   : > { %v10572_v53 = vmul.f32 0.5, %v10571_v50  ;;  %v10177_v14 = vadd.f32 %v10176_v58, %v10088_v7 }
 0x6eb   : > { %10794 = vst.msk [vmem:[%s16934_s15 + $0x68] sm:$0xff] %vm10300_vm2, %v10762_v0 }
 0x6ec   : > { %v10573_v22 = vsub.f32 1.5, %v10572_v53  ;;  %v10351_v61 = vpop.xlane.xlu0 %10350  ;;  %v17076_v4 = vadd.f32 %v10265_v47, %v10177_v14 }
 0x6ed   : > { %v13104_v37 = vpop.eup %13103  ;;  %v10413_v27 = vmax.f32 %v10351_v61, 1e-24 }
 0x6ee   : > { %v10574_v44 = vmul.f32 %v13102_v45, %v10573_v22  ;;  %v10580_v12 = vmul.f32 %v13104_v37, %v10412_v35  ;;  %v10299_v52 = vmul.f32 %v17076_v4, %v17076_v4  ;;  %vm10586_vm9 = vweird.f32 %v13104_v37 }
 0x6ef   : > { %13105 = vrsqrt.f32 %v10413_v27  ;;  %vm10587_vm15 = vmor %vm10585_vm12, %vm10586_vm9  ;;  %vm10595_vm6 = vweird.f32 %v10413_v27 }
 0x6f0   : > { %v10578_v21 = vsel %vm10577_vm3, %v13102_v45, %v10574_v44  ;;  %v10581_v18 = vmul.f32 %v13104_v37, %v10580_v12  ;;  %v10394_v1 = vsel %vm10300_vm2, %v10299_v52, 0.0 }
 0x6f1   : > { %v10763_v40 = vmul.f32 %v10578_v21, %v16892_v54  ;;  %10395 = vadd.xlane.f32.xlu0 %v10394_v1 }
 0x6f2   : > { %v10582_v43 = vmul.f32 0.5, %v10581_v18 }
 0x6f3   : > { %10795 = vst.msk [vmem:[%s16934_s15 + $0x70] sm:$0xff] %vm10300_vm2, %v10763_v40 }
 0x6f4   : > { %v10583_v24 = vsub.f32 1.5, %v10582_v43  ;;  %v10354_v30 = vpop.xlane.xlu1 %10353 }
 0x6f5   : > { %v13106_v41 = vpop.eup %13105  ;;  %v10414_v31 = vmax.f32 %v10354_v30, 1e-24 }
 0x6f6   : > { %v10584_v33 = vmul.f32 %v13104_v37, %v10583_v24  ;;  %v10590_v63 = vmul.f32 %v13106_v41, %v10413_v27  ;;  %vm10596_vm5 = vweird.f32 %v13106_v41 }
 0x6f7   : > { %13107 = vrsqrt.f32 %v10414_v31  ;;  %vm10597_vm8 = vmor %vm10595_vm6, %vm10596_vm5  ;;  %vm10605_vm7 = vweird.f32 %v10414_v31 }
 0x6f8   : > { %v10588_v28 = vsel %vm10587_vm15, %v13104_v37, %v10584_v33  ;;  %v10591_v34 = vmul.f32 %v13106_v41, %v10590_v63 }
 0x6f9   : > { %v10764_v29 = vmul.f32 %v10588_v28, %v16900_v56 }
 0x6fa   : > { %v10592_v54 = vmul.f32 0.5, %v10591_v34 }
 0x6fb   : > { %10796 = vst.msk [vmem:[%s16934_s15 + $0x78] sm:$0xff] %vm10300_vm2, %v10764_v29 }
 0x6fc   : > { %v10593_v48 = vsub.f32 1.5, %v10592_v54  ;;  %v10357_v36 = vpop.xlane.xlu2 %10356 }
 0x6fd   : > { %v13108_v26 = vpop.eup %13107  ;;  %v10415_v9 = vmax.f32 %v10357_v36, 1e-24 }
 0x6fe   : > { %v10594_v32 = vmul.f32 %v13106_v41, %v10593_v48  ;;  %v10600_v60 = vmul.f32 %v13108_v26, %v10414_v31  ;;  %vm10606_vm4 = vweird.f32 %v13108_v26 }
 0x6ff   : > { %13109 = vrsqrt.f32 %v10415_v9  ;;  %vm10607_vm10 = vmor %vm10605_vm7, %vm10606_vm4  ;;  %vm10615_vm13 = vweird.f32 %v10415_v9 }
 0x700   : > { %v10598_v5 = vsel %vm10597_vm8, %v13106_v41, %v10594_v32  ;;  %v10601_v45 = vmul.f32 %v13108_v26, %v10600_v60 }
 0x701   : > { %v10765_v6 = vmul.f32 %v10598_v5, %v16912_v10 }
 0x702   : > { %v10602_v56 = vmul.f32 0.5, %v10601_v45 }
 0x703   : > { %10797 = vst.msk [vmem:[%s16934_s15 + $0x80] sm:$0xff] %vm10300_vm2, %v10765_v6 }
 0x704   : > { %v10603_v35 = vsub.f32 1.5, %v10602_v56  ;;  %v10360_v57 = vpop.xlane.xlu0 %10359 }
 0x705   : > { %v13110_v20 = vpop.eup %13109  ;;  %v10416_v39 = vmax.f32 %v10360_v57, 1e-24 }
 0x706   : > { %v10604_v42 = vmul.f32 %v13108_v26, %v10603_v35  ;;  %v10610_v62 = vmul.f32 %v13110_v20, %v10415_v9  ;;  %vm10616_vm11 = vweird.f32 %v13110_v20 }
 0x707   : > { %13111 = vrsqrt.f32 %v10416_v39  ;;  %vm10617_vm14 = vmor %vm10615_vm13, %vm10616_vm11  ;;  %vm10625_vm1 = vweird.f32 %v10416_v39 }
 0x708   : > { %v10608_v8 = vsel %vm10607_vm10, %v13108_v26, %v10604_v42  ;;  %v10611_v23 = vmul.f32 %v13110_v20, %v10610_v62 }
 0x709   : > { %v10766_v50 = vmul.f32 %v10608_v8, %v16922_v3 }
 0x70a   : > { %v10612_v10 = vmul.f32 0.5, %v10611_v23 }
 0x70b   : > { %10798 = vst.msk [vmem:[%s16934_s15 + $0x88] sm:$0xff] %vm10300_vm2, %v10766_v50 }
 0x70c   : > { %v10613_v7 = vsub.f32 1.5, %v10612_v10  ;;  %v10363_v58 = vpop.xlane.xlu1 %10362 }
 0x70d   : > { %v13112_v0 = vpop.eup %13111  ;;  %v10417_v51 = vmax.f32 %v10363_v58, 1e-24 }
 0x70e   : > { %v10614_v53 = vmul.f32 %v13110_v20, %v10613_v7  ;;  %v10620_v14 = vmul.f32 %v13112_v0, %v10416_v39  ;;  %vm10626_vm0 = vweird.f32 %v13112_v0 }
 0x70f   : > { %13113 = vrsqrt.f32 %v10417_v51  ;;  %vm10627_vm3 = vmor %vm10625_vm1, %vm10626_vm0  ;;  %vm10635_vm12 = vweird.f32 %v10417_v51 }
 0x710   : > { %v10618_v47 = vsel %vm10617_vm14, %v13110_v20, %v10614_v53  ;;  %v10621_v22 = vmul.f32 %v13112_v0, %v10620_v14 }
 0x711   : > { %v10767_v61 = vmul.f32 %v10618_v47, %v16943_v2 }
 0x712   : > { %v10622_v37 = vmul.f32 0.5, %v10621_v22 }
 0x713   : > { %10799 = vst.msk [vmem:[%s16934_s15 + $0x90] sm:$0xff] %vm10300_vm2, %v10767_v61 }
 0x714   : > { %v10623_v3 = vsub.f32 1.5, %v10622_v37  ;;  %v10366_v27 = vpop.xlane.xlu2 %10365 }
 0x715   : > { %v13114_v44 = vpop.eup %13113  ;;  %v10418_v12 = vmax.f32 %v10366_v27, 1e-24 }
 0x716   : > { %v10624_v52 = vmul.f32 %v13112_v0, %v10623_v3  ;;  %v10630_v21 = vmul.f32 %v13114_v44, %v10417_v51  ;;  %vm10636_vm9 = vweird.f32 %v13114_v44 }
 0x717   : > { %13115 = vrsqrt.f32 %v10418_v12  ;;  %vm10637_vm15 = vmor %vm10635_vm12, %vm10636_vm9  ;;  %vm10645_vm6 = vweird.f32 %v10418_v12 }
 0x718   : > { %v10628_v18 = vsel %vm10627_vm3, %v13112_v0, %v10624_v52  ;;  %v10631_v1 = vmul.f32 %v13114_v44, %v10630_v21 }
 0x719   : > { %v10768_v40 = vmul.f32 %v10628_v18, %v16959_v38 }
 0x71a   : > { %v10632_v43 = vmul.f32 0.5, %v10631_v1 }
 0x71b   : > { %10800 = vst.msk [vmem:[%s16934_s15 + $0x98] sm:$0xff] %vm10300_vm2, %v10768_v40 }
 0x71c   : > { %v10633_v2 = vsub.f32 1.5, %v10632_v43  ;;  %v10369_v24 = vpop.xlane.xlu0 %10368 }
 0x71d   : > { %v13116_v41 = vpop.eup %13115  ;;  %v10419_v30 = vmax.f32 %v10369_v24, 1e-24 }
 0x71e   : > { %v10634_v33 = vmul.f32 %v13114_v44, %v10633_v2  ;;  %v10640_v63 = vmul.f32 %v13116_v41, %v10418_v12  ;;  %vm10646_vm5 = vweird.f32 %v13116_v41 }
 0x71f   : > { %13117 = vrsqrt.f32 %v10419_v30  ;;  %vm10647_vm8 = vmor %vm10645_vm6, %vm10646_vm5  ;;  %vm10655_vm7 = vweird.f32 %v10419_v30 }
 0x720   : > { %v10638_v31 = vsel %vm10637_vm15, %v13114_v44, %v10634_v33  ;;  %v10641_v28 = vmul.f32 %v13116_v41, %v10640_v63 }
 0x721   : > { %v10769_v34 = vmul.f32 %v10638_v31, %v16973_v55 }
 0x722   : > { %v10642_v29 = vmul.f32 0.5, %v10641_v28 }
 0x723   : > { %10801 = vst.msk [vmem:[%s16934_s15 + $0xa0] sm:$0xff] %vm10300_vm2, %v10769_v34 }
 0x724   : > { %v10643_v38 = vsub.f32 1.5, %v10642_v29  ;;  %v10372_v54 = vpop.xlane.xlu1 %10371 }
 0x725   : > { %v13118_v48 = vpop.eup %13117  ;;  %v10420_v36 = vmax.f32 %v10372_v54, 1e-24 }
 0x726   : > { %v10644_v26 = vmul.f32 %v13116_v41, %v10643_v38  ;;  %v10650_v32 = vmul.f32 %v13118_v48, %v10419_v30  ;;  %vm10656_vm4 = vweird.f32 %v13118_v48 }
 0x727   : > { %13119 = vrsqrt.f32 %v10420_v36  ;;  %vm10657_vm10 = vmor %vm10655_vm7, %vm10656_vm4  ;;  %vm10665_vm13 = vweird.f32 %v10420_v36 }
 0x728   : > { %v10648_v9 = vsel %vm10647_vm8, %v13116_v41, %v10644_v26  ;;  %v10651_v60 = vmul.f32 %v13118_v48, %v10650_v32 }
 0x729   : > { %v10770_v5 = vmul.f32 %v10648_v9, %v16985_v17 }
 0x72a   : > { %v10652_v6 = vmul.f32 0.5, %v10651_v60 }
 0x72b   : > { %10802 = vst.msk [vmem:[%s16934_s15 + $0xa8] sm:$0xff] %vm10300_vm2, %v10770_v5 }
 0x72c   : > { %v10653_v55 = vsub.f32 1.5, %v10652_v6  ;;  %v10375_v45 = vpop.xlane.xlu2 %10374 }
 0x72d   : > { %v13120_v56 = vpop.eup %13119  ;;  %v10421_v35 = vmax.f32 %v10375_v45, 1e-24 }
 0x72e   : > { %v10654_v57 = vmul.f32 %v13118_v48, %v10653_v55  ;;  %v10660_v20 = vmul.f32 %v13120_v56, %v10420_v36  ;;  %vm10666_vm11 = vweird.f32 %v13120_v56 }
 0x72f   : > { %13121 = vrsqrt.f32 %v10421_v35  ;;  %vm10667_vm14 = vmor %vm10665_vm13, %vm10666_vm11  ;;  %vm10675_vm1 = vweird.f32 %v10421_v35 }
 0x730   : > { %v10658_v39 = vsel %vm10657_vm10, %v13118_v48, %v10654_v57  ;;  %v10661_v42 = vmul.f32 %v13120_v56, %v10660_v20 }
 0x731   : > { %v10771_v62 = vmul.f32 %v10658_v39, %v16995_v19 }
 0x732   : > { %v10662_v8 = vmul.f32 0.5, %v10661_v42 }
 0x733   : > { %10803 = vst.msk [vmem:[%s16934_s15 + $0xb0] sm:$0xff] %vm10300_vm2, %v10771_v62 }
 0x734   : > { %v10663_v17 = vsub.f32 1.5, %v10662_v8  ;;  %v10378_v23 = vpop.xlane.xlu0 %10377 }
 0x735   : > { %v13122_v50 = vpop.eup %13121  ;;  %v10422_v10 = vmax.f32 %v10378_v23, 1e-24 }
 0x736   : > { %v10664_v7 = vmul.f32 %v13120_v56, %v10663_v17  ;;  %v10670_v58 = vmul.f32 %v13122_v50, %v10421_v35  ;;  %vm10676_vm0 = vweird.f32 %v13122_v50 }
 0x737   : > { %13123 = vrsqrt.f32 %v10422_v10  ;;  %vm10677_vm3 = vmor %vm10675_vm1, %vm10676_vm0  ;;  %vm10685_vm12 = vweird.f32 %v10422_v10 }
 0x738   : > { %v10668_v0 = vsel %vm10667_vm14, %v13120_v56, %v10664_v7  ;;  %v10671_v51 = vmul.f32 %v13122_v50, %v10670_v58 }
 0x739   : > { %v10772_v53 = vmul.f32 %v10668_v0, %v17004_v59 }
 0x73a   : > { %v10672_v14 = vmul.f32 0.5, %v10671_v51 }
 0x73b   : > { %10804 = vst.msk [vmem:[%s16934_s15 + $0xb8] sm:$0xff] %vm10300_vm2, %v10772_v53 }
 0x73c   : > { %v10673_v19 = vsub.f32 1.5, %v10672_v14  ;;  %v10381_v47 = vpop.xlane.xlu1 %10380 }
 0x73d   : > { %v13124_v22 = vpop.eup %13123  ;;  %v10423_v61 = vmax.f32 %v10381_v47, 1e-24 }
 0x73e   : > { %v10674_v37 = vmul.f32 %v13122_v50, %v10673_v19  ;;  %v10680_v3 = vmul.f32 %v13124_v22, %v10422_v10  ;;  %vm10686_vm9 = vweird.f32 %v13124_v22 }
 0x73f   : > { %13125 = vrsqrt.f32 %v10423_v61  ;;  %vm10687_vm15 = vmor %vm10685_vm12, %vm10686_vm9  ;;  %vm10695_vm6 = vweird.f32 %v10423_v61 }
 0x740   : > { %v10678_v27 = vsel %vm10677_vm3, %v13122_v50, %v10674_v37  ;;  %v10681_v44 = vmul.f32 %v13124_v22, %v10680_v3 }
 0x741   : > { %v10773_v12 = vmul.f32 %v10678_v27, %v17013_v25 }
 0x742   : > { %v10682_v52 = vmul.f32 0.5, %v10681_v44 }
 0x743   : > { %10805 = vst.msk [vmem:[%s16934_s15 + $0xc0] sm:$0xff] %vm10300_vm2, %v10773_v12 }
 0x744   : > { %v10683_v59 = vsub.f32 1.5, %v10682_v52  ;;  %v10384_v21 = vpop.xlane.xlu2 %10383 }
 0x745   : > { %v13126_v18 = vpop.eup %13125  ;;  %v10424_v1 = vmax.f32 %v10384_v21, 1e-24 }
 0x746   : > { %v10684_v40 = vmul.f32 %v13124_v22, %v10683_v59  ;;  %v10690_v43 = vmul.f32 %v13126_v18, %v10423_v61  ;;  %vm10696_vm5 = vweird.f32 %v13126_v18 }
 0x747   : > { %13127 = vrsqrt.f32 %v10424_v1  ;;  %vm10697_vm8 = vmor %vm10695_vm6, %vm10696_vm5  ;;  %vm10705_vm7 = vweird.f32 %v10424_v1 }
 0x748   : > { %v10688_v2 = vsel %vm10687_vm15, %v13124_v22, %v10684_v40  ;;  %v10691_v24 = vmul.f32 %v13126_v18, %v10690_v43 }
 0x749   : > { %v10774_v41 = vmul.f32 %v10688_v2, %v17022_v16 }
 0x74a   : > { %v10692_v30 = vmul.f32 0.5, %v10691_v24 }
 0x74b   : > { %10806 = vst.msk [vmem:[%s16934_s15 + $0xc8] sm:$0xff] %vm10300_vm2, %v10774_v41 }
 0x74c   : > { %v10693_v25 = vsub.f32 1.5, %v10692_v30  ;;  %v10387_v33 = vpop.xlane.xlu0 %10386 }
 0x74d   : > { %v13128_v63 = vpop.eup %13127  ;;  %v10425_v31 = vmax.f32 %v10387_v33, 1e-24 }
 0x74e   : > { %v10694_v28 = vmul.f32 %v13126_v18, %v10693_v25  ;;  %v10700_v34 = vmul.f32 %v13128_v63, %v10424_v1  ;;  %vm10706_vm4 = vweird.f32 %v13128_v63 }
 0x74f   : > { %13129 = vrsqrt.f32 %v10425_v31  ;;  %vm10707_vm10 = vmor %vm10705_vm7, %vm10706_vm4  ;;  %vm10715_vm13 = vweird.f32 %v10425_v31 }
 0x750   : > { %v10698_v29 = vsel %vm10697_vm8, %v13126_v18, %v10694_v28  ;;  %v10701_v38 = vmul.f32 %v13128_v63, %v10700_v34 }
 0x751   : > { %v10775_v54 = vmul.f32 %v10698_v29, %v17031_v15 }
 0x752   : > { %v10702_v48 = vmul.f32 0.5, %v10701_v38 }
 0x753   : > { %10807 = vst.msk [vmem:[%s16934_s15 + $0xd0] sm:$0xff] %vm10300_vm2, %v10775_v54 }
 0x754   : > { %v10703_v16 = vsub.f32 1.5, %v10702_v48  ;;  %v10390_v36 = vpop.xlane.xlu1 %10389 }
 0x755   : > { %v13130_v26 = vpop.eup %13129  ;;  %v10426_v32 = vmax.f32 %v10390_v36, 1e-24 }
 0x756   : > { %v10704_v9 = vmul.f32 %v13128_v63, %v10703_v16  ;;  %v10710_v60 = vmul.f32 %v13130_v26, %v10425_v31  ;;  %vm10716_vm11 = vweird.f32 %v13130_v26 }
 0x757   : > { %13131 = vrsqrt.f32 %v10426_v32  ;;  %vm10717_vm14 = vmor %vm10715_vm13, %vm10716_vm11  ;;  %vm10725_vm1 = vweird.f32 %v10426_v32 }
 0x758   : > { %v10708_v5 = vsel %vm10707_vm10, %v13128_v63, %v10704_v9  ;;  %v10711_v6 = vmul.f32 %v13130_v26, %v10710_v60 }
 0x759   : > { %v10776_v55 = vmul.f32 %v10708_v5, %v17040_v46 }
 0x75a   : > { %v10712_v45 = vmul.f32 0.5, %v10711_v6 }
 0x75b   : > { %10808 = vst.msk [vmem:[%s16934_s15 + $0xd8] sm:$0xff] %vm10300_vm2, %v10776_v55 }
 0x75c   : > { %v10713_v15 = vsub.f32 1.5, %v10712_v45  ;;  %v10393_v56 = vpop.xlane.xlu2 %10392 }
 0x75d   : > { %v13132_v35 = vpop.eup %13131  ;;  %v10427_v57 = vmax.f32 %v10393_v56, 1e-24 }
 0x75e   : > { %v10714_v20 = vmul.f32 %v13130_v26, %v10713_v15  ;;  %v10720_v39 = vmul.f32 %v13132_v35, %v10426_v32  ;;  %vm10726_vm0 = vweird.f32 %v13132_v35 }
 0x75f   : > { %13133 = vrsqrt.f32 %v10427_v57  ;;  %vm10727_vm3 = vmor %vm10725_vm1, %vm10726_vm0  ;;  %vm10735_vm12 = vweird.f32 %v10427_v57 }
 0x760   : > { %v10718_v42 = vsel %vm10717_vm14, %v13130_v26, %v10714_v20  ;;  %v10721_v62 = vmul.f32 %v13132_v35, %v10720_v39 }
 0x761   : > { %v10777_v8 = vmul.f32 %v10718_v42, %v17049_v11 }
 0x762   : > { %v10722_v17 = vmul.f32 0.5, %v10721_v62 }
 0x763   : > { %10809 = vst.msk [vmem:[%s16934_s15 + $0xe0] sm:$0xff] %vm10300_vm2, %v10777_v8 }
 0x764   : > { %v10396_v46 = vpop.xlane.xlu0 %10395  ;;  %v10723_v23 = vsub.f32 1.5, %v10722_v17 }
 0x765   : > { %v10428_v50 = vmax.f32 %v10396_v46, 1e-24  ;;  %v13134_v10 = vpop.eup %13133 }
 0x766   : > { %v10724_v7 = vmul.f32 %v13132_v35, %v10723_v23  ;;  %v10730_v58 = vmul.f32 %v13134_v10, %v10427_v57  ;;  %vm10736_vm9 = vweird.f32 %v13134_v10 }
 0x767   : > { %13135 = vrsqrt.f32 %v10428_v50  ;;  %vm10737_vm15 = vmor %vm10735_vm12, %vm10736_vm9  ;;  %vm10745_vm6 = vweird.f32 %v10428_v50 }
 0x768   : > { %v10728_v0 = vsel %vm10727_vm3, %v13132_v35, %v10724_v7  ;;  %v10731_v51 = vmul.f32 %v13134_v10, %v10730_v58 }
 0x769   : > { %v10778_v53 = vmul.f32 %v10728_v0, %v17058_v13 }
 0x76a   : > { %v10732_v11 = vmul.f32 0.5, %v10731_v51 }
 0x76b   : > { %10810 = vst.msk [vmem:[%s16934_s15 + $0xe8] sm:$0xff] %vm10300_vm2, %v10778_v53 }
 0x76c   : > { %v10733_v19 = vsub.f32 1.5, %v10732_v11 }
 0x76d   : > { %v13136_v14 = vpop.eup %13135 }
 0x76e   : > { %v10740_v47 = vmul.f32 %v13136_v14, %v10428_v50  ;;  %v10734_v22 = vmul.f32 %v13134_v10, %v10733_v19  ;;  %vm10746_vm5 = vweird.f32 %v13136_v14 }
 0x76f   : > { %vm10747_vm8 = vmor %vm10745_vm6, %vm10746_vm5 }
 0x770   : > { %v10741_v61 = vmul.f32 %v13136_v14, %v10740_v47  ;;  %v10738_v37 = vsel %vm10737_vm15, %v13134_v10, %v10734_v22 }
 0x771   : > { %v10779_v3 = vmul.f32 %v10738_v37, %v17067_v49 }
 0x772   : > { %v10742_v27 = vmul.f32 0.5, %v10741_v61 }
 0x773   : > { %10811 = vst.msk [vmem:[%s16934_s15 + $0xf0] sm:$0xff] %vm10300_vm2, %v10779_v3 }
 0x774   : > { %v10743_v44 = vsub.f32 1.5, %v10742_v27 }
 0x776   : > { %v10744_v13 = vmul.f32 %v13136_v14, %v10743_v44 }
 0x778   : > { %v10748_v12 = vsel %vm10747_vm8, %v13136_v14, %v10744_v13 }
 0x779   : > { %v10780_v52 = vmul.f32 %v10748_v12, %v17076_v4 }
 0x77b   : > { %10812 = vst.msk [vmem:[%s16934_s15 + $0xf8] sm:$0xff] %vm10300_vm2, %v10780_v52 }
 0x77c PF: > { %s17_s24 = sadd.s32 1, %s13165_s24  }
 0x77d   : > { %p14_p4 = scmp.ge.s32.totalorder %s17_s24, 4  }
 0x77f   :  { %16 = sbr.rel (!%p14_p4) target bundleno = 1 (0x1), region = 94 }

</bundles_post_ra>
